<compile_context>
chip_gen: v7x
topology: tpu7x:2x2x1
jax: 0.10.0
libtpu: 0.0.40
codegen_flags: <defaults>
</compile_context>

<pallas_src>
import numpy as np
import jax
import jax.numpy as jnp
from jax.experimental import pallas as pl
from jax.experimental.pallas import tpu as pltpu

# ----------------------- small synthetic configuration ------------------------------
B        = 2                 # batch
HOP      = 32                # hop                       (real model: 160)
WIN      = 64                # analysis window / n_fft   (real model: 400); WIN == 2*HOP
NF       = 56                # frames (multiple of 8 for clean sublane tiling)
WAV_LEN  = (NF - 1) * HOP + WIN        # 1824 raw samples
NCHUNK   = WAV_LEN // HOP    # 57 hop-sized chunks
SR       = 16000
NBINS    = WIN // 2 + 1      # 33
NBP      = 64                # padded bin count (cos|sin concat -> 128 lanes)
NMEL     = 32                # mel features              (real model: 80)
C        = 128               # TDNN channels, lane-dense (real model: 1024)
SCALE    = 4                 # res2net scale             (real model: 8)
HID      = C // SCALE        # 32
SE_CH    = 32                # SE bottleneck             (real model: 128)
ATT_CH   = 128               # attention channels        (real model: 128)
CAT_C    = 3 * C             # MFA channels              (real model: 3072)
EMB_DIM  = 128               # embedding dim             (real model: 256)
KERNELS  = [5, 3, 3, 3]
DILS     = [1, 2, 3, 4]

F32  = jnp.float32
BF16 = jnp.bfloat16

assert WIN == 2 * HOP and WAV_LEN % HOP == 0 and NF % 8 == 0


# ------------------------------- spec helpers ---------------------------------------

def _const_spec(a):
    nd = a.ndim
    return pl.BlockSpec(a.shape, lambda b, _nd=nd: (0,) * _nd)


# ================================= fused Pallas kernel ===============================

def _ecapa_kernel(chunks_ref, dft_ref, mel_ref,
                  w0_ref, b0_ref, sc0_ref, sh0_ref,
                  w1_ref, b1_ref, sc1_ref, sh1_ref,
                  wr_ref, br_ref, scr_ref, shr_ref,
                  w2_ref, b2_ref, sc2_ref, sh2_ref,
                  sw1_ref, sb1_ref, sw2_ref, sb2_ref,
                  wm_ref, bm_ref, scm_ref, shm_ref,
                  wt_ref, bt_ref, sct_ref, sht_ref, wc_ref, bc_ref,
                  hsc_ref, hsh_ref, hw_ref, hb_ref,
                  o_ref):
    # hoisted row index for conv boundary masks
    row = jax.lax.broadcasted_iota(jnp.int32, (NF, 1), 0)

    def dconv(x, w, k, d):
        """'same' dilated 1-D conv: roll (XLU) + mask per tap, lane-concat im2col, ONE MXU matmul.

        x: (NF, cin) f32; w: (k*cin, cout) bf16, tap j in rows [j*cin:(j+1)*cin).
        TODO(synk): SpeechBrain Conv1d default is reflect padding; zero padding used here.
        """
        pad = (k - 1) // 2
        cols = []
        for j in range(k):
            s = (j - pad) * d
            if s == 0:
                cols.append(x)
            else:
                r = pltpu.roll(x, shift=(-s) % NF, axis=0)          # out[t] = x[(t+s) % NF]
                valid = jnp.logical_and(row + s >= 0, row + s < NF)
                cols.append(jnp.where(valid, r, 0.0))
        xi = jnp.concatenate(cols, axis=-1).astype(BF16)            # (NF, k*cin)
        return jnp.dot(xi, w, preferred_element_type=F32)

    # ---------------- framing + Fbank + mean-norm (InputNormalization, std_norm=False) ----------
    fr = chunks_ref[0]                                               # (NF+1, HOP)
    frames = jnp.concatenate([fr[:NF, :], fr[1:NF + 1, :]], axis=-1)  # (NF, WIN) lane concat
    spec = jnp.dot(frames.astype(BF16), dft_ref[...], preferred_element_type=F32)  # (NF, 2*NBP)
    re = spec[:, :NBP]
    im = spec[:, NBP:]
    power = re * re + im * im                                        # (NF, NBP)
    mel = jnp.dot(power.astype(BF16), mel_ref[...], preferred_element_type=F32)    # (NF, NMEL)
    # TODO(synk): SpeechBrain amplitude_to_DB top_db clamping / ref scaling / dither not reproduced.
    feats = 10.0 * jnp.log10(mel + 1e-10)
    feats = feats - jnp.mean(feats, axis=0, keepdims=True)

    # ---------------- block0 TDNN (k=5, d=1): im2col + single matmul ----------------------------
    x = dconv(feats, w0_ref[...], KERNELS[0], DILS[0])               # (NF, C)
    x = jnp.maximum(x + b0_ref[...], 0.0) * sc0_ref[...] + sh0_ref[...]

    # ---------------- 3 SERes2Net layers, MFA contraction accumulated on the fly ----------------
    mfa_acc = None
    for li in range(3):
        d = DILS[li + 1]
        x_in = x                                                     # residual (f32)
        # tdnn1 (1x1 -> ReLU -> folded BN)
        y = jnp.dot(x.astype(BF16), w1_ref[li], preferred_element_type=F32) + b1_ref[li]
        y = jnp.maximum(y, 0.0) * sc1_ref[li] + sh1_ref[li]          # (NF, C)
        # Res2Net: sequential dilated TDNN branches on 32-lane chunks
        ys = [y[:, 0:HID]]
        for i in range(1, SCALE):
            chunk = y[:, i * HID:(i + 1) * HID]
            inp = chunk if i == 1 else chunk + ys[-1]
            conv = dconv(inp, wr_ref[li, i - 1], 3, d)               # one (NF,96)@(96,32) push
            ys.append(jnp.maximum(conv + br_ref[li, i - 1], 0.0)
                      * scr_ref[li, i - 1] + shr_ref[li, i - 1])
        # tdnn2 (1x1) over concat(ys): lane-concat -> ONE full-K matmul
        ycat = jnp.concatenate(ys, axis=-1)                          # (NF, C)
        y2 = jnp.dot(ycat.astype(BF16), w2_ref[li], preferred_element_type=F32) + b2_ref[li]
        y2 = jnp.maximum(y2, 0.0) * sc2_ref[li] + sh2_ref[li]
        # SE block (global mean -> 1x1 -> relu -> 1x1 -> sigmoid -> scale) + residual add
        s = jnp.mean(y2, axis=0, keepdims=True)                      # (1, C)
        s = jnp.maximum(jnp.dot(s.astype(BF16), sw1_ref[li], preferred_element_type=F32)
                        + sb1_ref[li], 0.0)
        g = jax.nn.sigmoid(jnp.dot(s.astype(BF16), sw2_ref[li], preferred_element_type=F32)
                           + sb2_ref[li])
        x = y2 * g + x_in                                            # layer output (NF, C)
        # MFA TDNN(k=1) over implicit concat([x1,x2,x3]): accumulate split contraction now,
        # so the per-layer outputs never need to persist.
        contrib = jnp.dot(x.astype(BF16), wm_ref[li], preferred_element_type=F32)
        mfa_acc = contrib if mfa_acc is None else mfa_acc + contrib

    xm = jnp.maximum(mfa_acc + bm_ref[...], 0.0) * scm_ref[...] + shm_ref[...]   # (NF, CAT_C)

    # ---------------- AttentiveStatisticsPooling (global context) -------------------------------
    # concat([x, mu, sg]) @ Wt computed as x @ Wt_x + broadcast(mu @ Wt_mu + sg @ Wt_sg)
    mu = jnp.mean(xm, axis=0, keepdims=True)                         # (1, CAT_C)
    sg = jnp.sqrt(jnp.maximum(jnp.mean(xm * xm, axis=0, keepdims=True) - mu * mu, 1e-12))
    a = (jnp.dot(xm.astype(BF16), wt_ref[0], preferred_element_type=F32)
         + jnp.dot(mu.astype(BF16), wt_ref[1], preferred_element_type=F32)
         + jnp.dot(sg.astype(BF16), wt_ref[2], preferred_element_type=F32)
         + bt_ref[...])
    a = jnp.maximum(a, 0.0) * sct_ref[...] + sht_ref[...]            # attention TDNNBlock (folded BN)
    a = jnp.tanh(a)
    a = jnp.dot(a.astype(BF16), wc_ref[...], preferred_element_type=F32) + bc_ref[...]
    # softmax over time, divide replaced by EUP reciprocal
    a = a - jnp.max(a, axis=0, keepdims=True)
    e = jnp.exp(a)
    attn = e * pl.reciprocal(jnp.sum(e, axis=0, keepdims=True), approx=True)
    mean = jnp.sum(attn * xm, axis=0, keepdims=True)                 # (1, CAT_C)
    std = jnp.sqrt(jnp.maximum(jnp.sum(attn * xm * xm, axis=0, keepdims=True) - mean * mean, 1e-12))

    # ---------------- asp_bn (folded) + fc, pooled=[mean|std] as split row-blocks ----------------
    hm = mean * hsc_ref[:, :CAT_C] + hsh_ref[:, :CAT_C]
    hs = std * hsc_ref[:, CAT_C:] + hsh_ref[:, CAT_C:]
    emb = (jnp.dot(hm.astype(BF16), hw_ref[:CAT_C, :], preferred_element_type=F32)
           + jnp.dot(hs.astype(BF16), hw_ref[CAT_C:, :], preferred_element_type=F32)
           + hb_ref[...])
    o_ref[0] = emb                                                   # (1, EMB_DIM)


# ================================= wrapper ==========================================

PARAM_ORDER = ('w0', 'b0', 'sc0', 'sh0',
               'w1', 'b1', 'sc1', 'sh1',
               'wr', 'br', 'scr', 'shr',
               'w2', 'b2', 'sc2', 'sh2',
               'sw1', 'sb1', 'sw2', 'sb2',
               'wm', 'bm', 'scm', 'shm',
               'wt', 'bt', 'sct', 'sht', 'wc', 'bc',
               'hsc', 'hsh', 'hw', 'hb')


def ecapa_forward(wav, params, consts):
    # free reshape; framing (50% overlap, WIN == 2*HOP) is completed inside the kernel
    chunks = wav.reshape(B, NCHUNK, HOP)
    args = (chunks, consts['dft'], consts['mel']) + tuple(params[k] for k in PARAM_ORDER)
    out = pl.pallas_call(
        _ecapa_kernel,
        out_shape=jax.ShapeDtypeStruct((B, 1, EMB_DIM), F32),
        grid=(B,),
        in_specs=[pl.BlockSpec((1, NCHUNK, HOP), lambda b: (b, 0, 0))]
                 + [_const_spec(a) for a in args[1:]],
        out_specs=pl.BlockSpec((1, 1, EMB_DIM), lambda b: (b, 0, 0)),
        compiler_params=pltpu.CompilerParams(dimension_semantics=("parallel",)),
    )(*args)
    # EncoderClassifier.encode_batch returns (B, 1, E); the module then does .squeeze(1).
    return out[:, 0, :]


# ============================ deterministic init =====================================

def _mel_filterbank(n_mels, n_bins, sr, n_fft):
    def hz2mel(f): return 2595.0 * np.log10(1.0 + f / 700.0)
    def mel2hz(m): return 700.0 * (10.0 ** (m / 2595.0) - 1.0)
    mels = np.linspace(hz2mel(0.0), hz2mel(sr / 2.0), n_mels + 2)
    bins = np.floor((n_fft + 1) * mel2hz(mels) / sr).astype(np.int64)
    fb = np.zeros((n_bins, n_mels), dtype=np.float32)
    for m in range(1, n_mels + 1):
        l, c, r = bins[m - 1], bins[m], bins[m + 1]
        for kk in range(l, min(c, n_bins)):
            fb[kk, m - 1] = (kk - l) / max(c - l, 1)
        for kk in range(c, min(r, n_bins)):
            fb[kk, m - 1] = (r - kk) / max(r - c, 1)
    return fb


def make_feature_consts():
    n = np.arange(WIN)[:, None]
    k = np.arange(NBINS)[None, :]
    ang = 2.0 * np.pi * n * k / WIN
    win = 0.54 - 0.46 * np.cos(2.0 * np.pi * np.arange(WIN) / WIN)   # periodic Hamming (torch default)
    dft = np.zeros((WIN, 2 * NBP), dtype=np.float32)                 # [win*cos | -win*sin], lane-padded
    dft[:, :NBINS] = win[:, None] * np.cos(ang)
    dft[:, NBP:NBP + NBINS] = -win[:, None] * np.sin(ang)
    mel = np.zeros((NBP, NMEL), dtype=np.float32)
    mel[:NBINS, :] = _mel_filterbank(NMEL, NBINS, SR, WIN)
    return {'dft': jnp.asarray(dft, BF16), 'mel': jnp.asarray(mel, BF16)}


def init_params(key):
    keys = iter(jax.random.split(key, 64))

    def nrm(shape, scale, dtype=F32):
        return (scale * jax.random.normal(next(keys), shape, F32)).astype(dtype)

    p = {}
    # block0 TDNN (k=5): folded eval-mode BatchNorm -> (sc, sh)
    p['w0'] = nrm((KERNELS[0] * NMEL, C), 1.0 / float(np.sqrt(KERNELS[0] * NMEL)), BF16)
    p['b0'] = nrm((1, C), 0.05); p['sc0'] = 1.0 + nrm((1, C), 0.05); p['sh0'] = nrm((1, C), 0.05)
    # 3 SERes2Net layers, stacked along a leading axis of size 3
    p['w1'] = nrm((3, C, C), 1.0 / float(np.sqrt(C)), BF16)
    p['b1'] = nrm((3, 1, C), 0.05); p['sc1'] = 1.0 + nrm((3, 1, C), 0.05); p['sh1'] = nrm((3, 1, C), 0.05)
    p['wr'] = nrm((3, SCALE - 1, 3 * HID, HID), 1.0 / float(np.sqrt(3 * HID)), BF16)
    p['br'] = nrm((3, SCALE - 1, 1, HID), 0.05)
    p['scr'] = 1.0 + nrm((3, SCALE - 1, 1, HID), 0.05)
    p['shr'] = nrm((3, SCALE - 1, 1, HID), 0.05)
    p['w2'] = nrm((3, C, C), 1.0 / float(np.sqrt(C)), BF16)
    p['b2'] = nrm((3, 1, C), 0.05); p['sc2'] = 1.0 + nrm((3, 1, C), 0.05); p['sh2'] = nrm((3, 1, C), 0.05)
    p['sw1'] = nrm((3, C, SE_CH), 1.0 / float(np.sqrt(C)), BF16)
    p['sb1'] = nrm((3, 1, SE_CH), 0.05)
    p['sw2'] = nrm((3, SE_CH, C), 1.0 / float(np.sqrt(SE_CH)), BF16)
    p['sb2'] = nrm((3, 1, C), 0.05)
    # MFA TDNN(k=1) over concat of the three layer outputs (split weight, stacked)
    p['wm'] = nrm((3, C, CAT_C), 1.0 / float(np.sqrt(CAT_C)), BF16)
    p['bm'] = nrm((1, CAT_C), 0.05); p['scm'] = 1.0 + nrm((1, CAT_C), 0.05); p['shm'] = nrm((1, CAT_C), 0.05)
    # AttentiveStatisticsPooling (global context): wt split into [x, mu, sg] blocks
    p['wt'] = nrm((3, CAT_C, ATT_CH), 1.0 / float(np.sqrt(3 * CAT_C)), BF16)
    p['bt'] = nrm((1, ATT_CH), 0.05); p['sct'] = 1.0 + nrm((1, ATT_CH), 0.05); p['sht'] = nrm((1, ATT_CH), 0.05)
    p['wc'] = nrm((ATT_CH, CAT_C), 1.0 / float(np.sqrt(ATT_CH)), BF16)
    p['bc'] = nrm((1, CAT_C), 0.05)
    # asp_bn (folded) + fc head
    p['hsc'] = 1.0 + nrm((1, 2 * CAT_C), 0.05)
    p['hsh'] = nrm((1, 2 * CAT_C), 0.05)
    p['hw'] = nrm((2 * CAT_C, EMB_DIM), 1.0 / float(np.sqrt(2 * CAT_C)), BF16)
    p['hb'] = nrm((1, EMB_DIM), 0.05)
    return p


# ===================================== main ==========================================

if __name__ == "__main__":
    key = jax.random.PRNGKey(0)
    k_wav, k_par = jax.random.split(key)
    wav = 0.1 * jax.random.normal(k_wav, (B, WAV_LEN), F32)           # x: raw waveform (B, T)
    params = init_params(k_par)
    consts = make_feature_consts()

    fwd = jax.jit(lambda w: ecapa_forward(w, params, consts))
    emb = fwd(wav)
    jax.block_until_ready(emb)

    assert emb.shape == (B, EMB_DIM), emb.shape
    assert bool(jnp.all(jnp.isfinite(emb)))
    print("KERNEL_OK")
</pallas_src>

<mosaic_0001>
module attributes {stable_mosaic.version = 11 : i64} {
  func.func @_ecapa_kernel(%arg0: i32, %arg1: memref<1x57x32xf32, #tpu.memory_space<vmem>>, %arg2: memref<64x128xbf16, #tpu.memory_space<vmem>>, %arg3: memref<64x32xbf16, #tpu.memory_space<vmem>>, %arg4: memref<160x128xbf16, #tpu.memory_space<vmem>>, %arg5: memref<1x128xf32, #tpu.memory_space<vmem>>, %arg6: memref<1x128xf32, #tpu.memory_space<vmem>>, %arg7: memref<1x128xf32, #tpu.memory_space<vmem>>, %arg8: memref<3x128x128xbf16, #tpu.memory_space<vmem>>, %arg9: memref<3x1x128xf32, #tpu.memory_space<vmem>>, %arg10: memref<3x1x128xf32, #tpu.memory_space<vmem>>, %arg11: memref<3x1x128xf32, #tpu.memory_space<vmem>>, %arg12: memref<3x3x96x32xbf16, #tpu.memory_space<vmem>>, %arg13: memref<3x3x1x32xf32, #tpu.memory_space<vmem>>, %arg14: memref<3x3x1x32xf32, #tpu.memory_space<vmem>>, %arg15: memref<3x3x1x32xf32, #tpu.memory_space<vmem>>, %arg16: memref<3x128x128xbf16, #tpu.memory_space<vmem>>, %arg17: memref<3x1x128xf32, #tpu.memory_space<vmem>>, %arg18: memref<3x1x128xf32, #tpu.memory_space<vmem>>, %arg19: memref<3x1x128xf32, #tpu.memory_space<vmem>>, %arg20: memref<3x128x32xbf16, #tpu.memory_space<vmem>>, %arg21: memref<3x1x32xf32, #tpu.memory_space<vmem>>, %arg22: memref<3x32x128xbf16, #tpu.memory_space<vmem>>, %arg23: memref<3x1x128xf32, #tpu.memory_space<vmem>>, %arg24: memref<3x128x384xbf16, #tpu.memory_space<vmem>>, %arg25: memref<1x384xf32, #tpu.memory_space<vmem>>, %arg26: memref<1x384xf32, #tpu.memory_space<vmem>>, %arg27: memref<1x384xf32, #tpu.memory_space<vmem>>, %arg28: memref<3x384x128xbf16, #tpu.memory_space<vmem>>, %arg29: memref<1x128xf32, #tpu.memory_space<vmem>>, %arg30: memref<1x128xf32, #tpu.memory_space<vmem>>, %arg31: memref<1x128xf32, #tpu.memory_space<vmem>>, %arg32: memref<128x384xbf16, #tpu.memory_space<vmem>>, %arg33: memref<1x384xf32, #tpu.memory_space<vmem>>, %arg34: memref<1x768xf32, #tpu.memory_space<vmem>>, %arg35: memref<1x768xf32, #tpu.memory_space<vmem>>, %arg36: memref<768x128xbf16, #tpu.memory_space<vmem>>, %arg37: memref<1x128xf32, #tpu.memory_space<vmem>>, %arg38: memref<1x1x128xf32, #tpu.memory_space<vmem>>) attributes {dimension_semantics = [#tpu.dimension_semantics<parallel>], iteration_bounds = array<i64: 2>, scalar_prefetch = 0 : i64, scratch_operands = 0 : i64, tpu.core_type = #tpu.core_type<tc>, window_params = [{transform_indices = @transform_0, window_bounds = array<i64: 1, 57, 32>}, {pipeline_mode = #tpu.pipeline_mode<synchronous>, transform_indices = @transform_1, window_bounds = array<i64: 64, 128>}, {pipeline_mode = #tpu.pipeline_mode<synchronous>, transform_indices = @transform_2, window_bounds = array<i64: 64, 32>}, {pipeline_mode = #tpu.pipeline_mode<synchronous>, transform_indices = @transform_3, window_bounds = array<i64: 160, 128>}, {pipeline_mode = #tpu.pipeline_mode<synchronous>, transform_indices = @transform_4, window_bounds = array<i64: 1, 128>}, {pipeline_mode = #tpu.pipeline_mode<synchronous>, transform_indices = @transform_5, window_bounds = array<i64: 1, 128>}, {pipeline_mode = #tpu.pipeline_mode<synchronous>, transform_indices = @transform_6, window_bounds = array<i64: 1, 128>}, {pipeline_mode = #tpu.pipeline_mode<synchronous>, transform_indices = @transform_7, window_bounds = array<i64: 3, 128, 128>}, {pipeline_mode = #tpu.pipeline_mode<synchronous>, transform_indices = @transform_8, window_bounds = array<i64: 3, 1, 128>}, {pipeline_mode = #tpu.pipeline_mode<synchronous>, transform_indices = @transform_9, window_bounds = array<i64: 3, 1, 128>}, {pipeline_mode = #tpu.pipeline_mode<synchronous>, transform_indices = @transform_10, window_bounds = array<i64: 3, 1, 128>}, {pipeline_mode = #tpu.pipeline_mode<synchronous>, transform_indices = @transform_11, window_bounds = array<i64: 3, 3, 96, 32>}, {pipeline_mode = #tpu.pipeline_mode<synchronous>, transform_indices = @transform_12, window_bounds = array<i64: 3, 3, 1, 32>}, {pipeline_mode = #tpu.pipeline_mode<synchronous>, transform_indices = @transform_13, window_bounds = array<i64: 3, 3, 1, 32>}, {pipeline_mode = #tpu.pipeline_mode<synchronous>, transform_indices = @transform_14, window_bounds = array<i64: 3, 3, 1, 32>}, {pipeline_mode = #tpu.pipeline_mode<synchronous>, transform_indices = @transform_15, window_bounds = array<i64: 3, 128, 128>}, {pipeline_mode = #tpu.pipeline_mode<synchronous>, transform_indices = @transform_16, window_bounds = array<i64: 3, 1, 128>}, {pipeline_mode = #tpu.pipeline_mode<synchronous>, transform_indices = @transform_17, window_bounds = array<i64: 3, 1, 128>}, {pipeline_mode = #tpu.pipeline_mode<synchronous>, transform_indices = @transform_18, window_bounds = array<i64: 3, 1, 128>}, {pipeline_mode = #tpu.pipeline_mode<synchronous>, transform_indices = @transform_19, window_bounds = array<i64: 3, 128, 32>}, {pipeline_mode = #tpu.pipeline_mode<synchronous>, transform_indices = @transform_20, window_bounds = array<i64: 3, 1, 32>}, {pipeline_mode = #tpu.pipeline_mode<synchronous>, transform_indices = @transform_21, window_bounds = array<i64: 3, 32, 128>}, {pipeline_mode = #tpu.pipeline_mode<synchronous>, transform_indices = @transform_22, window_bounds = array<i64: 3, 1, 128>}, {pipeline_mode = #tpu.pipeline_mode<synchronous>, transform_indices = @transform_23, window_bounds = array<i64: 3, 128, 384>}, {pipeline_mode = #tpu.pipeline_mode<synchronous>, transform_indices = @transform_24, window_bounds = array<i64: 1, 384>}, {pipeline_mode = #tpu.pipeline_mode<synchronous>, transform_indices = @transform_25, window_bounds = array<i64: 1, 384>}, {pipeline_mode = #tpu.pipeline_mode<synchronous>, transform_indices = @transform_26, window_bounds = array<i64: 1, 384>}, {pipeline_mode = #tpu.pipeline_mode<synchronous>, transform_indices = @transform_27, window_bounds = array<i64: 3, 384, 128>}, {pipeline_mode = #tpu.pipeline_mode<synchronous>, transform_indices = @transform_28, window_bounds = array<i64: 1, 128>}, {pipeline_mode = #tpu.pipeline_mode<synchronous>, transform_indices = @transform_29, window_bounds = array<i64: 1, 128>}, {pipeline_mode = #tpu.pipeline_mode<synchronous>, transform_indices = @transform_30, window_bounds = array<i64: 1, 128>}, {pipeline_mode = #tpu.pipeline_mode<synchronous>, transform_indices = @transform_31, window_bounds = array<i64: 128, 384>}, {pipeline_mode = #tpu.pipeline_mode<synchronous>, transform_indices = @transform_32, window_bounds = array<i64: 1, 384>}, {pipeline_mode = #tpu.pipeline_mode<synchronous>, transform_indices = @transform_33, window_bounds = array<i64: 1, 768>}, {pipeline_mode = #tpu.pipeline_mode<synchronous>, transform_indices = @transform_34, window_bounds = array<i64: 1, 768>}, {pipeline_mode = #tpu.pipeline_mode<synchronous>, transform_indices = @transform_35, window_bounds = array<i64: 768, 128>}, {pipeline_mode = #tpu.pipeline_mode<synchronous>, transform_indices = @transform_36, window_bounds = array<i64: 1, 128>}, {transform_indices = @transform_37, window_bounds = array<i64: 1, 1, 128>}]} {
    %0 = tpu.iota {dimensions = array<i32: 0>} : vector<56x1xi32>
    %c0 = arith.constant 0 : index
    %c0_0 = arith.constant 0 : index
    %c0_1 = arith.constant 0 : index
    %1 = vector.load %arg1[%c0, %c0_0, %c0_1] : memref<1x57x32xf32, #tpu.memory_space<vmem>>, vector<1x57x32xf32>
    %2 = vector.shape_cast %1 : vector<1x57x32xf32> to vector<57x32xf32>
    %3 = vector.extract_strided_slice %2 {offsets = [0, 0], sizes = [56, 32], strides = [1, 1]} : vector<57x32xf32> to vector<56x32xf32>
    %4 = vector.extract_strided_slice %2 {offsets = [1, 0], sizes = [56, 32], strides = [1, 1]} : vector<57x32xf32> to vector<56x32xf32>
    %5 = tpu.concatenate %3, %4 in 1 : vector<56x32xf32>, vector<56x32xf32> -> vector<56x64xf32>
    %6 = arith.truncf %5 : vector<56x64xf32> to vector<56x64xbf16>
    %c0_2 = arith.constant 0 : index
    %c0_3 = arith.constant 0 : index
    %7 = vector.load %arg2[%c0_2, %c0_3] : memref<64x128xbf16, #tpu.memory_space<vmem>>, vector<64x128xbf16>
    %cst = arith.constant dense<0.000000e+00> : vector<56x128xf32>
    %8 = tpu.matmul %6, %7, %cst {dimension_numbers = #tpu.dot_dimension_numbers<[1], [0], [0], [1], [0, 0, 1, 1], [], []>} : vector<56x64xbf16>, vector<64x128xbf16>, vector<56x128xf32> -> vector<56x128xf32>
    %9 = vector.extract_strided_slice %8 {offsets = [0, 0], sizes = [56, 64], strides = [1, 1]} : vector<56x128xf32> to vector<56x64xf32>
    %10 = vector.extract_strided_slice %8 {offsets = [0, 64], sizes = [56, 64], strides = [1, 1]} : vector<56x128xf32> to vector<56x64xf32>
    %11 = arith.mulf %9, %9 : vector<56x64xf32>
    %12 = arith.mulf %10, %10 : vector<56x64xf32>
    %13 = arith.addf %11, %12 : vector<56x64xf32>
    %14 = arith.truncf %13 : vector<56x64xf32> to vector<56x64xbf16>
    %c0_4 = arith.constant 0 : index
    %c0_5 = arith.constant 0 : index
    %15 = vector.load %arg3[%c0_4, %c0_5] : memref<64x32xbf16, #tpu.memory_space<vmem>>, vector<64x32xbf16>
    %cst_6 = arith.constant dense<0.000000e+00> : vector<56x32xf32>
    %16 = tpu.matmul %14, %15, %cst_6 {dimension_numbers = #tpu.dot_dimension_numbers<[1], [0], [0], [1], [0, 0, 1, 1], [], []>} : vector<56x64xbf16>, vector<64x32xbf16>, vector<56x32xf32> -> vector<56x32xf32>
    %cst_7 = arith.constant 1.000000e-10 : f32
    %17 = vector.broadcast %cst_7 : f32 to vector<56x32xf32>
    %18 = arith.addf %16, %17 : vector<56x32xf32>
    %19 = math.log %18 : vector<56x32xf32>
    %cst_8 = arith.constant 0.434294492 : f32
    %20 = vector.broadcast %cst_8 : f32 to vector<56x32xf32>
    %21 = arith.mulf %19, %20 : vector<56x32xf32>
    %cst_9 = arith.constant 1.000000e+01 : f32
    %22 = vector.broadcast %cst_9 : f32 to vector<56x32xf32>
    %23 = arith.mulf %22, %21 : vector<56x32xf32>
    %cst_10 = arith.constant dense<0.000000e+00> : vector<32xf32>
    %24 = vector.multi_reduction <add>, %23, %cst_10 [0] : vector<56x32xf32> to vector<32xf32>
    %25 = vector.shape_cast %24 : vector<32xf32> to vector<1x32xf32>
    %cst_11 = arith.constant 5.600000e+01 : f32
    %26 = vector.broadcast %cst_11 : f32 to vector<1x32xf32>
    %27 = arith.divf %25, %26 : vector<1x32xf32>
    %28 = vector.broadcast %27 : vector<1x32xf32> to vector<56x32xf32>
    %29 = arith.subf %23, %28 : vector<56x32xf32>
    %c0_12 = arith.constant 0 : index
    %c0_13 = arith.constant 0 : index
    %30 = vector.load %arg4[%c0_12, %c0_13] : memref<160x128xbf16, #tpu.memory_space<vmem>>, vector<160x128xbf16>
    %c2_i32 = arith.constant 2 : i32
    %31 = tpu.dynamic_rotate %29 by %c2_i32 dim 0 : vector<56x32xf32>, i32 -> vector<56x32xf32>
    %c-2_i32 = arith.constant -2 : i32
    %32 = vector.broadcast %c-2_i32 : i32 to vector<56x1xi32>
    %33 = arith.addi %0, %32 : vector<56x1xi32>
    %c0_i32 = arith.constant 0 : i32
    %34 = vector.broadcast %c0_i32 : i32 to vector<56x1xi32>
    %35 = arith.cmpi sge, %33, %34 : vector<56x1xi32>
    %c-2_i32_14 = arith.constant -2 : i32
    %36 = vector.broadcast %c-2_i32_14 : i32 to vector<56x1xi32>
    %37 = arith.addi %0, %36 : vector<56x1xi32>
    %c56_i32 = arith.constant 56 : i32
    %38 = vector.broadcast %c56_i32 : i32 to vector<56x1xi32>
    %39 = arith.cmpi slt, %37, %38 : vector<56x1xi32>
    %40 = arith.andi %35, %39 : vector<56x1xi1>
    %cst_15 = arith.constant 0.000000e+00 : f32
    %41 = vector.shape_cast %40 : vector<56x1xi1> to vector<56x1xi1>
    %42 = vector.broadcast %41 : vector<56x1xi1> to vector<56x32xi1>
    %43 = vector.broadcast %cst_15 : f32 to vector<56x32xf32>
    %44 = arith.select %42, %31, %43 : vector<56x32xi1>, vector<56x32xf32>
    %c1_i32 = arith.constant 1 : i32
    %45 = tpu.dynamic_rotate %29 by %c1_i32 dim 0 : vector<56x32xf32>, i32 -> vector<56x32xf32>
    %c-1_i32 = arith.constant -1 : i32
    %46 = vector.broadcast %c-1_i32 : i32 to vector<56x1xi32>
    %47 = arith.addi %0, %46 : vector<56x1xi32>
    %c0_i32_16 = arith.constant 0 : i32
    %48 = vector.broadcast %c0_i32_16 : i32 to vector<56x1xi32>
    %49 = arith.cmpi sge, %47, %48 : vector<56x1xi32>
    %c-1_i32_17 = arith.constant -1 : i32
    %50 = vector.broadcast %c-1_i32_17 : i32 to vector<56x1xi32>
    %51 = arith.addi %0, %50 : vector<56x1xi32>
    %c56_i32_18 = arith.constant 56 : i32
    %52 = vector.broadcast %c56_i32_18 : i32 to vector<56x1xi32>
    %53 = arith.cmpi slt, %51, %52 : vector<56x1xi32>
    %54 = arith.andi %49, %53 : vector<56x1xi1>
    %cst_19 = arith.constant 0.000000e+00 : f32
    %55 = vector.shape_cast %54 : vector<56x1xi1> to vector<56x1xi1>
    %56 = vector.broadcast %55 : vector<56x1xi1> to vector<56x32xi1>
    %57 = vector.broadcast %cst_19 : f32 to vector<56x32xf32>
    %58 = arith.select %56, %45, %57 : vector<56x32xi1>, vector<56x32xf32>
    %c55_i32 = arith.constant 55 : i32
    %59 = tpu.dynamic_rotate %29 by %c55_i32 dim 0 : vector<56x32xf32>, i32 -> vector<56x32xf32>
    %c1_i32_20 = arith.constant 1 : i32
    %60 = vector.broadcast %c1_i32_20 : i32 to vector<56x1xi32>
    %61 = arith.addi %0, %60 : vector<56x1xi32>
    %c0_i32_21 = arith.constant 0 : i32
    %62 = vector.broadcast %c0_i32_21 : i32 to vector<56x1xi32>
    %63 = arith.cmpi sge, %61, %62 : vector<56x1xi32>
    %c1_i32_22 = arith.constant 1 : i32
    %64 = vector.broadcast %c1_i32_22 : i32 to vector<56x1xi32>
    %65 = arith.addi %0, %64 : vector<56x1xi32>
    %c56_i32_23 = arith.constant 56 : i32
    %66 = vector.broadcast %c56_i32_23 : i32 to vector<56x1xi32>
    %67 = arith.cmpi slt, %65, %66 : vector<56x1xi32>
    %68 = arith.andi %63, %67 : vector<56x1xi1>
    %cst_24 = arith.constant 0.000000e+00 : f32
    %69 = vector.shape_cast %68 : vector<56x1xi1> to vector<56x1xi1>
    %70 = vector.broadcast %69 : vector<56x1xi1> to vector<56x32xi1>
    %71 = vector.broadcast %cst_24 : f32 to vector<56x32xf32>
    %72 = arith.select %70, %59, %71 : vector<56x32xi1>, vector<56x32xf32>
    %c54_i32 = arith.constant 54 : i32
    %73 = tpu.dynamic_rotate %29 by %c54_i32 dim 0 : vector<56x32xf32>, i32 -> vector<56x32xf32>
    %c2_i32_25 = arith.constant 2 : i32
    %74 = vector.broadcast %c2_i32_25 : i32 to vector<56x1xi32>
    %75 = arith.addi %0, %74 : vector<56x1xi32>
    %c0_i32_26 = arith.constant 0 : i32
    %76 = vector.broadcast %c0_i32_26 : i32 to vector<56x1xi32>
    %77 = arith.cmpi sge, %75, %76 : vector<56x1xi32>
    %c2_i32_27 = arith.constant 2 : i32
    %78 = vector.broadcast %c2_i32_27 : i32 to vector<56x1xi32>
    %79 = arith.addi %0, %78 : vector<56x1xi32>
    %c56_i32_28 = arith.constant 56 : i32
    %80 = vector.broadcast %c56_i32_28 : i32 to vector<56x1xi32>
    %81 = arith.cmpi slt, %79, %80 : vector<56x1xi32>
    %82 = arith.andi %77, %81 : vector<56x1xi1>
    %cst_29 = arith.constant 0.000000e+00 : f32
    %83 = vector.shape_cast %82 : vector<56x1xi1> to vector<56x1xi1>
    %84 = vector.broadcast %83 : vector<56x1xi1> to vector<56x32xi1>
    %85 = vector.broadcast %cst_29 : f32 to vector<56x32xf32>
    %86 = arith.select %84, %73, %85 : vector<56x32xi1>, vector<56x32xf32>
    %87 = tpu.concatenate %44, %58, %29, %72, %86 in 1 : vector<56x32xf32>, vector<56x32xf32>, vector<56x32xf32>, vector<56x32xf32>, vector<56x32xf32> -> vector<56x160xf32>
    %88 = arith.truncf %87 : vector<56x160xf32> to vector<56x160xbf16>
    %cst_30 = arith.constant dense<0.000000e+00> : vector<56x128xf32>
    %89 = tpu.matmul %88, %30, %cst_30 {dimension_numbers = #tpu.dot_dimension_numbers<[1], [0], [0], [1], [0, 0, 1, 1], [], []>} : vector<56x160xbf16>, vector<160x128xbf16>, vector<56x128xf32> -> vector<56x128xf32>
    %c0_31 = arith.constant 0 : index
    %c0_32 = arith.constant 0 : index
    %90 = vector.load %arg5[%c0_31, %c0_32] : memref<1x128xf32, #tpu.memory_space<vmem>>, vector<1x128xf32>
    %91 = vector.broadcast %90 : vector<1x128xf32> to vector<56x128xf32>
    %92 = arith.addf %89, %91 : vector<56x128xf32>
    %cst_33 = arith.constant 0.000000e+00 : f32
    %93 = vector.broadcast %cst_33 : f32 to vector<56x128xf32>
    %94 = arith.maximumf %92, %93 : vector<56x128xf32>
    %c0_34 = arith.constant 0 : index
    %c0_35 = arith.constant 0 : index
    %95 = vector.load %arg6[%c0_34, %c0_35] : memref<1x128xf32, #tpu.memory_space<vmem>>, vector<1x128xf32>
    %96 = vector.broadcast %95 : vector<1x128xf32> to vector<56x128xf32>
    %97 = arith.mulf %94, %96 : vector<56x128xf32>
    %c0_36 = arith.constant 0 : index
    %c0_37 = arith.constant 0 : index
    %98 = vector.load %arg7[%c0_36, %c0_37] : memref<1x128xf32, #tpu.memory_space<vmem>>, vector<1x128xf32>
    %99 = vector.broadcast %98 : vector<1x128xf32> to vector<56x128xf32>
    %100 = arith.addf %97, %99 : vector<56x128xf32>
    %101 = arith.truncf %100 : vector<56x128xf32> to vector<56x128xbf16>
    %c0_38 = arith.constant 0 : index
    %c0_39 = arith.constant 0 : index
    %c0_40 = arith.constant 0 : index
    %102 = vector.load %arg8[%c0_38, %c0_39, %c0_40] : memref<3x128x128xbf16, #tpu.memory_space<vmem>>, vector<1x128x128xbf16>
    %103 = vector.shape_cast %102 : vector<1x128x128xbf16> to vector<128x128xbf16>
    %cst_41 = arith.constant dense<0.000000e+00> : vector<56x128xf32>
    %104 = tpu.matmul %101, %103, %cst_41 {dimension_numbers = #tpu.dot_dimension_numbers<[1], [0], [0], [1], [0, 0, 1, 1], [], []>} : vector<56x128xbf16>, vector<128x128xbf16>, vector<56x128xf32> -> vector<56x128xf32>
    %c0_42 = arith.constant 0 : index
    %c0_43 = arith.constant 0 : index
    %c0_44 = arith.constant 0 : index
    %105 = vector.load %arg9[%c0_42, %c0_43, %c0_44] : memref<3x1x128xf32, #tpu.memory_space<vmem>>, vector<1x1x128xf32>
    %106 = vector.shape_cast %105 : vector<1x1x128xf32> to vector<1x128xf32>
    %107 = vector.broadcast %106 : vector<1x128xf32> to vector<56x128xf32>
    %108 = arith.addf %104, %107 : vector<56x128xf32>
    %cst_45 = arith.constant 0.000000e+00 : f32
    %109 = vector.broadcast %cst_45 : f32 to vector<56x128xf32>
    %110 = arith.maximumf %108, %109 : vector<56x128xf32>
    %c0_46 = arith.constant 0 : index
    %c0_47 = arith.constant 0 : index
    %c0_48 = arith.constant 0 : index
    %111 = vector.load %arg10[%c0_46, %c0_47, %c0_48] : memref<3x1x128xf32, #tpu.memory_space<vmem>>, vector<1x1x128xf32>
    %112 = vector.shape_cast %111 : vector<1x1x128xf32> to vector<1x128xf32>
    %113 = vector.broadcast %112 : vector<1x128xf32> to vector<56x128xf32>
    %114 = arith.mulf %110, %113 : vector<56x128xf32>
    %c0_49 = arith.constant 0 : index
    %c0_50 = arith.constant 0 : index
    %c0_51 = arith.constant 0 : index
    %115 = vector.load %arg11[%c0_49, %c0_50, %c0_51] : memref<3x1x128xf32, #tpu.memory_space<vmem>>, vector<1x1x128xf32>
    %116 = vector.shape_cast %115 : vector<1x1x128xf32> to vector<1x128xf32>
    %117 = vector.broadcast %116 : vector<1x128xf32> to vector<56x128xf32>
    %118 = arith.addf %114, %117 : vector<56x128xf32>
    %119 = vector.extract_strided_slice %118 {offsets = [0, 0], sizes = [56, 32], strides = [1, 1]} : vector<56x128xf32> to vector<56x32xf32>
    %120 = vector.extract_strided_slice %118 {offsets = [0, 32], sizes = [56, 32], strides = [1, 1]} : vector<56x128xf32> to vector<56x32xf32>
    %c0_52 = arith.constant 0 : index
    %c0_53 = arith.constant 0 : index
    %c0_54 = arith.constant 0 : index
    %c0_55 = arith.constant 0 : index
    %121 = vector.load %arg12[%c0_52, %c0_53, %c0_54, %c0_55] : memref<3x3x96x32xbf16, #tpu.memory_space<vmem>>, vector<1x1x96x32xbf16>
    %122 = vector.shape_cast %121 : vector<1x1x96x32xbf16> to vector<96x32xbf16>
    %c2_i32_56 = arith.constant 2 : i32
    %123 = tpu.dynamic_rotate %120 by %c2_i32_56 dim 0 : vector<56x32xf32>, i32 -> vector<56x32xf32>
    %c-2_i32_57 = arith.constant -2 : i32
    %124 = vector.broadcast %c-2_i32_57 : i32 to vector<56x1xi32>
    %125 = arith.addi %0, %124 : vector<56x1xi32>
    %c0_i32_58 = arith.constant 0 : i32
    %126 = vector.broadcast %c0_i32_58 : i32 to vector<56x1xi32>
    %127 = arith.cmpi sge, %125, %126 : vector<56x1xi32>
    %c-2_i32_59 = arith.constant -2 : i32
    %128 = vector.broadcast %c-2_i32_59 : i32 to vector<56x1xi32>
    %129 = arith.addi %0, %128 : vector<56x1xi32>
    %c56_i32_60 = arith.constant 56 : i32
    %130 = vector.broadcast %c56_i32_60 : i32 to vector<56x1xi32>
    %131 = arith.cmpi slt, %129, %130 : vector<56x1xi32>
    %132 = arith.andi %127, %131 : vector<56x1xi1>
    %cst_61 = arith.constant 0.000000e+00 : f32
    %133 = vector.shape_cast %132 : vector<56x1xi1> to vector<56x1xi1>
    %134 = vector.broadcast %133 : vector<56x1xi1> to vector<56x32xi1>
    %135 = vector.broadcast %cst_61 : f32 to vector<56x32xf32>
    %136 = arith.select %134, %123, %135 : vector<56x32xi1>, vector<56x32xf32>
    %c54_i32_62 = arith.constant 54 : i32
    %137 = tpu.dynamic_rotate %120 by %c54_i32_62 dim 0 : vector<56x32xf32>, i32 -> vector<56x32xf32>
    %c2_i32_63 = arith.constant 2 : i32
    %138 = vector.broadcast %c2_i32_63 : i32 to vector<56x1xi32>
    %139 = arith.addi %0, %138 : vector<56x1xi32>
    %c0_i32_64 = arith.constant 0 : i32
    %140 = vector.broadcast %c0_i32_64 : i32 to vector<56x1xi32>
    %141 = arith.cmpi sge, %139, %140 : vector<56x1xi32>
    %c2_i32_65 = arith.constant 2 : i32
    %142 = vector.broadcast %c2_i32_65 : i32 to vector<56x1xi32>
    %143 = arith.addi %0, %142 : vector<56x1xi32>
    %c56_i32_66 = arith.constant 56 : i32
    %144 = vector.broadcast %c56_i32_66 : i32 to vector<56x1xi32>
    %145 = arith.cmpi slt, %143, %144 : vector<56x1xi32>
    %146 = arith.andi %141, %145 : vector<56x1xi1>
    %cst_67 = arith.constant 0.000000e+00 : f32
    %147 = vector.shape_cast %146 : vector<56x1xi1> to vector<56x1xi1>
    %148 = vector.broadcast %147 : vector<56x1xi1> to vector<56x32xi1>
    %149 = vector.broadcast %cst_67 : f32 to vector<56x32xf32>
    %150 = arith.select %148, %137, %149 : vector<56x32xi1>, vector<56x32xf32>
    %151 = tpu.concatenate %136, %120, %150 in 1 : vector<56x32xf32>, vector<56x32xf32>, vector<56x32xf32> -> vector<56x96xf32>
    %152 = arith.truncf %151 : vector<56x96xf32> to vector<56x96xbf16>
    %cst_68 = arith.constant dense<0.000000e+00> : vector<56x32xf32>
    %153 = tpu.matmul %152, %122, %cst_68 {dimension_numbers = #tpu.dot_dimension_numbers<[1], [0], [0], [1], [0, 0, 1, 1], [], []>} : vector<56x96xbf16>, vector<96x32xbf16>, vector<56x32xf32> -> vector<56x32xf32>
    %c0_69 = arith.constant 0 : index
    %c0_70 = arith.constant 0 : index
    %c0_71 = arith.constant 0 : index
    %c0_72 = arith.constant 0 : index
    %154 = vector.load %arg13[%c0_69, %c0_70, %c0_71, %c0_72] : memref<3x3x1x32xf32, #tpu.memory_space<vmem>>, vector<1x1x1x32xf32>
    %155 = vector.shape_cast %154 : vector<1x1x1x32xf32> to vector<1x32xf32>
    %156 = vector.broadcast %155 : vector<1x32xf32> to vector<56x32xf32>
    %157 = arith.addf %153, %156 : vector<56x32xf32>
    %cst_73 = arith.constant 0.000000e+00 : f32
    %158 = vector.broadcast %cst_73 : f32 to vector<56x32xf32>
    %159 = arith.maximumf %157, %158 : vector<56x32xf32>
    %c0_74 = arith.constant 0 : index
    %c0_75 = arith.constant 0 : index
    %c0_76 = arith.constant 0 : index
    %c0_77 = arith.constant 0 : index
    %160 = vector.load %arg14[%c0_74, %c0_75, %c0_76, %c0_77] : memref<3x3x1x32xf32, #tpu.memory_space<vmem>>, vector<1x1x1x32xf32>
    %161 = vector.shape_cast %160 : vector<1x1x1x32xf32> to vector<1x32xf32>
    %162 = vector.broadcast %161 : vector<1x32xf32> to vector<56x32xf32>
    %163 = arith.mulf %159, %162 : vector<56x32xf32>
    %c0_78 = arith.constant 0 : index
    %c0_79 = arith.constant 0 : index
    %c0_80 = arith.constant 0 : index
    %c0_81 = arith.constant 0 : index
    %164 = vector.load %arg15[%c0_78, %c0_79, %c0_80, %c0_81] : memref<3x3x1x32xf32, #tpu.memory_space<vmem>>, vector<1x1x1x32xf32>
    %165 = vector.shape_cast %164 : vector<1x1x1x32xf32> to vector<1x32xf32>
    %166 = vector.broadcast %165 : vector<1x32xf32> to vector<56x32xf32>
    %167 = arith.addf %163, %166 : vector<56x32xf32>
    %168 = vector.extract_strided_slice %118 {offsets = [0, 64], sizes = [56, 32], strides = [1, 1]} : vector<56x128xf32> to vector<56x32xf32>
    %169 = arith.addf %168, %167 : vector<56x32xf32>
    %c0_82 = arith.constant 0 : index
    %c1 = arith.constant 1 : index
    %c0_83 = arith.constant 0 : index
    %c0_84 = arith.constant 0 : index
    %170 = vector.load %arg12[%c0_82, %c1, %c0_83, %c0_84] : memref<3x3x96x32xbf16, #tpu.memory_space<vmem>>, vector<1x1x96x32xbf16>
    %171 = vector.shape_cast %170 : vector<1x1x96x32xbf16> to vector<96x32xbf16>
    %c2_i32_85 = arith.constant 2 : i32
    %172 = tpu.dynamic_rotate %169 by %c2_i32_85 dim 0 : vector<56x32xf32>, i32 -> vector<56x32xf32>
    %c-2_i32_86 = arith.constant -2 : i32
    %173 = vector.broadcast %c-2_i32_86 : i32 to vector<56x1xi32>
    %174 = arith.addi %0, %173 : vector<56x1xi32>
    %c0_i32_87 = arith.constant 0 : i32
    %175 = vector.broadcast %c0_i32_87 : i32 to vector<56x1xi32>
    %176 = arith.cmpi sge, %174, %175 : vector<56x1xi32>
    %c-2_i32_88 = arith.constant -2 : i32
    %177 = vector.broadcast %c-2_i32_88 : i32 to vector<56x1xi32>
    %178 = arith.addi %0, %177 : vector<56x1xi32>
    %c56_i32_89 = arith.constant 56 : i32
    %179 = vector.broadcast %c56_i32_89 : i32 to vector<56x1xi32>
    %180 = arith.cmpi slt, %178, %179 : vector<56x1xi32>
    %181 = arith.andi %176, %180 : vector<56x1xi1>
    %cst_90 = arith.constant 0.000000e+00 : f32
    %182 = vector.shape_cast %181 : vector<56x1xi1> to vector<56x1xi1>
    %183 = vector.broadcast %182 : vector<56x1xi1> to vector<56x32xi1>
    %184 = vector.broadcast %cst_90 : f32 to vector<56x32xf32>
    %185 = arith.select %183, %172, %184 : vector<56x32xi1>, vector<56x32xf32>
    %c54_i32_91 = arith.constant 54 : i32
    %186 = tpu.dynamic_rotate %169 by %c54_i32_91 dim 0 : vector<56x32xf32>, i32 -> vector<56x32xf32>
    %c2_i32_92 = arith.constant 2 : i32
    %187 = vector.broadcast %c2_i32_92 : i32 to vector<56x1xi32>
    %188 = arith.addi %0, %187 : vector<56x1xi32>
    %c0_i32_93 = arith.constant 0 : i32
    %189 = vector.broadcast %c0_i32_93 : i32 to vector<56x1xi32>
    %190 = arith.cmpi sge, %188, %189 : vector<56x1xi32>
    %c2_i32_94 = arith.constant 2 : i32
    %191 = vector.broadcast %c2_i32_94 : i32 to vector<56x1xi32>
    %192 = arith.addi %0, %191 : vector<56x1xi32>
    %c56_i32_95 = arith.constant 56 : i32
    %193 = vector.broadcast %c56_i32_95 : i32 to vector<56x1xi32>
    %194 = arith.cmpi slt, %192, %193 : vector<56x1xi32>
    %195 = arith.andi %190, %194 : vector<56x1xi1>
    %cst_96 = arith.constant 0.000000e+00 : f32
    %196 = vector.shape_cast %195 : vector<56x1xi1> to vector<56x1xi1>
    %197 = vector.broadcast %196 : vector<56x1xi1> to vector<56x32xi1>
    %198 = vector.broadcast %cst_96 : f32 to vector<56x32xf32>
    %199 = arith.select %197, %186, %198 : vector<56x32xi1>, vector<56x32xf32>
    %200 = tpu.concatenate %185, %169, %199 in 1 : vector<56x32xf32>, vector<56x32xf32>, vector<56x32xf32> -> vector<56x96xf32>
    %201 = arith.truncf %200 : vector<56x96xf32> to vector<56x96xbf16>
    %cst_97 = arith.constant dense<0.000000e+00> : vector<56x32xf32>
    %202 = tpu.matmul %201, %171, %cst_97 {dimension_numbers = #tpu.dot_dimension_numbers<[1], [0], [0], [1], [0, 0, 1, 1], [], []>} : vector<56x96xbf16>, vector<96x32xbf16>, vector<56x32xf32> -> vector<56x32xf32>
    %c0_98 = arith.constant 0 : index
    %c1_99 = arith.constant 1 : index
    %c0_100 = arith.constant 0 : index
    %c0_101 = arith.constant 0 : index
    %203 = vector.load %arg13[%c0_98, %c1_99, %c0_100, %c0_101] : memref<3x3x1x32xf32, #tpu.memory_space<vmem>>, vector<1x1x1x32xf32>
    %204 = vector.shape_cast %203 : vector<1x1x1x32xf32> to vector<1x32xf32>
    %205 = vector.broadcast %204 : vector<1x32xf32> to vector<56x32xf32>
    %206 = arith.addf %202, %205 : vector<56x32xf32>
    %cst_102 = arith.constant 0.000000e+00 : f32
    %207 = vector.broadcast %cst_102 : f32 to vector<56x32xf32>
    %208 = arith.maximumf %206, %207 : vector<56x32xf32>
    %c0_103 = arith.constant 0 : index
    %c1_104 = arith.constant 1 : index
    %c0_105 = arith.constant 0 : index
    %c0_106 = arith.constant 0 : index
    %209 = vector.load %arg14[%c0_103, %c1_104, %c0_105, %c0_106] : memref<3x3x1x32xf32, #tpu.memory_space<vmem>>, vector<1x1x1x32xf32>
    %210 = vector.shape_cast %209 : vector<1x1x1x32xf32> to vector<1x32xf32>
    %211 = vector.broadcast %210 : vector<1x32xf32> to vector<56x32xf32>
    %212 = arith.mulf %208, %211 : vector<56x32xf32>
    %c0_107 = arith.constant 0 : index
    %c1_108 = arith.constant 1 : index
    %c0_109 = arith.constant 0 : index
    %c0_110 = arith.constant 0 : index
    %213 = vector.load %arg15[%c0_107, %c1_108, %c0_109, %c0_110] : memref<3x3x1x32xf32, #tpu.memory_space<vmem>>, vector<1x1x1x32xf32>
    %214 = vector.shape_cast %213 : vector<1x1x1x32xf32> to vector<1x32xf32>
    %215 = vector.broadcast %214 : vector<1x32xf32> to vector<56x32xf32>
    %216 = arith.addf %212, %215 : vector<56x32xf32>
    %217 = vector.extract_strided_slice %118 {offsets = [0, 96], sizes = [56, 32], strides = [1, 1]} : vector<56x128xf32> to vector<56x32xf32>
    %218 = arith.addf %217, %216 : vector<56x32xf32>
    %c0_111 = arith.constant 0 : index
    %c2 = arith.constant 2 : index
    %c0_112 = arith.constant 0 : index
    %c0_113 = arith.constant 0 : index
    %219 = vector.load %arg12[%c0_111, %c2, %c0_112, %c0_113] : memref<3x3x96x32xbf16, #tpu.memory_space<vmem>>, vector<1x1x96x32xbf16>
    %220 = vector.shape_cast %219 : vector<1x1x96x32xbf16> to vector<96x32xbf16>
    %c2_i32_114 = arith.constant 2 : i32
    %221 = tpu.dynamic_rotate %218 by %c2_i32_114 dim 0 : vector<56x32xf32>, i32 -> vector<56x32xf32>
    %c-2_i32_115 = arith.constant -2 : i32
    %222 = vector.broadcast %c-2_i32_115 : i32 to vector<56x1xi32>
    %223 = arith.addi %0, %222 : vector<56x1xi32>
    %c0_i32_116 = arith.constant 0 : i32
    %224 = vector.broadcast %c0_i32_116 : i32 to vector<56x1xi32>
    %225 = arith.cmpi sge, %223, %224 : vector<56x1xi32>
    %c-2_i32_117 = arith.constant -2 : i32
    %226 = vector.broadcast %c-2_i32_117 : i32 to vector<56x1xi32>
    %227 = arith.addi %0, %226 : vector<56x1xi32>
    %c56_i32_118 = arith.constant 56 : i32
    %228 = vector.broadcast %c56_i32_118 : i32 to vector<56x1xi32>
    %229 = arith.cmpi slt, %227, %228 : vector<56x1xi32>
    %230 = arith.andi %225, %229 : vector<56x1xi1>
    %cst_119 = arith.constant 0.000000e+00 : f32
    %231 = vector.shape_cast %230 : vector<56x1xi1> to vector<56x1xi1>
    %232 = vector.broadcast %231 : vector<56x1xi1> to vector<56x32xi1>
    %233 = vector.broadcast %cst_119 : f32 to vector<56x32xf32>
    %234 = arith.select %232, %221, %233 : vector<56x32xi1>, vector<56x32xf32>
    %c54_i32_120 = arith.constant 54 : i32
    %235 = tpu.dynamic_rotate %218 by %c54_i32_120 dim 0 : vector<56x32xf32>, i32 -> vector<56x32xf32>
    %c2_i32_121 = arith.constant 2 : i32
    %236 = vector.broadcast %c2_i32_121 : i32 to vector<56x1xi32>
    %237 = arith.addi %0, %236 : vector<56x1xi32>
    %c0_i32_122 = arith.constant 0 : i32
    %238 = vector.broadcast %c0_i32_122 : i32 to vector<56x1xi32>
    %239 = arith.cmpi sge, %237, %238 : vector<56x1xi32>
    %c2_i32_123 = arith.constant 2 : i32
    %240 = vector.broadcast %c2_i32_123 : i32 to vector<56x1xi32>
    %241 = arith.addi %0, %240 : vector<56x1xi32>
    %c56_i32_124 = arith.constant 56 : i32
    %242 = vector.broadcast %c56_i32_124 : i32 to vector<56x1xi32>
    %243 = arith.cmpi slt, %241, %242 : vector<56x1xi32>
    %244 = arith.andi %239, %243 : vector<56x1xi1>
    %cst_125 = arith.constant 0.000000e+00 : f32
    %245 = vector.shape_cast %244 : vector<56x1xi1> to vector<56x1xi1>
    %246 = vector.broadcast %245 : vector<56x1xi1> to vector<56x32xi1>
    %247 = vector.broadcast %cst_125 : f32 to vector<56x32xf32>
    %248 = arith.select %246, %235, %247 : vector<56x32xi1>, vector<56x32xf32>
    %249 = tpu.concatenate %234, %218, %248 in 1 : vector<56x32xf32>, vector<56x32xf32>, vector<56x32xf32> -> vector<56x96xf32>
    %250 = arith.truncf %249 : vector<56x96xf32> to vector<56x96xbf16>
    %cst_126 = arith.constant dense<0.000000e+00> : vector<56x32xf32>
    %251 = tpu.matmul %250, %220, %cst_126 {dimension_numbers = #tpu.dot_dimension_numbers<[1], [0], [0], [1], [0, 0, 1, 1], [], []>} : vector<56x96xbf16>, vector<96x32xbf16>, vector<56x32xf32> -> vector<56x32xf32>
    %c0_127 = arith.constant 0 : index
    %c2_128 = arith.constant 2 : index
    %c0_129 = arith.constant 0 : index
    %c0_130 = arith.constant 0 : index
    %252 = vector.load %arg13[%c0_127, %c2_128, %c0_129, %c0_130] : memref<3x3x1x32xf32, #tpu.memory_space<vmem>>, vector<1x1x1x32xf32>
    %253 = vector.shape_cast %252 : vector<1x1x1x32xf32> to vector<1x32xf32>
    %254 = vector.broadcast %253 : vector<1x32xf32> to vector<56x32xf32>
    %255 = arith.addf %251, %254 : vector<56x32xf32>
    %cst_131 = arith.constant 0.000000e+00 : f32
    %256 = vector.broadcast %cst_131 : f32 to vector<56x32xf32>
    %257 = arith.maximumf %255, %256 : vector<56x32xf32>
    %c0_132 = arith.constant 0 : index
    %c2_133 = arith.constant 2 : index
    %c0_134 = arith.constant 0 : index
    %c0_135 = arith.constant 0 : index
    %258 = vector.load %arg14[%c0_132, %c2_133, %c0_134, %c0_135] : memref<3x3x1x32xf32, #tpu.memory_space<vmem>>, vector<1x1x1x32xf32>
    %259 = vector.shape_cast %258 : vector<1x1x1x32xf32> to vector<1x32xf32>
    %260 = vector.broadcast %259 : vector<1x32xf32> to vector<56x32xf32>
    %261 = arith.mulf %257, %260 : vector<56x32xf32>
    %c0_136 = arith.constant 0 : index
    %c2_137 = arith.constant 2 : index
    %c0_138 = arith.constant 0 : index
    %c0_139 = arith.constant 0 : index
    %262 = vector.load %arg15[%c0_136, %c2_137, %c0_138, %c0_139] : memref<3x3x1x32xf32, #tpu.memory_space<vmem>>, vector<1x1x1x32xf32>
    %263 = vector.shape_cast %262 : vector<1x1x1x32xf32> to vector<1x32xf32>
    %264 = vector.broadcast %263 : vector<1x32xf32> to vector<56x32xf32>
    %265 = arith.addf %261, %264 : vector<56x32xf32>
    %266 = tpu.concatenate %119, %167, %216, %265 in 1 : vector<56x32xf32>, vector<56x32xf32>, vector<56x32xf32>, vector<56x32xf32> -> vector<56x128xf32>
    %267 = arith.truncf %266 : vector<56x128xf32> to vector<56x128xbf16>
    %c0_140 = arith.constant 0 : index
    %c0_141 = arith.constant 0 : index
    %c0_142 = arith.constant 0 : index
    %268 = vector.load %arg16[%c0_140, %c0_141, %c0_142] : memref<3x128x128xbf16, #tpu.memory_space<vmem>>, vector<1x128x128xbf16>
    %269 = vector.shape_cast %268 : vector<1x128x128xbf16> to vector<128x128xbf16>
    %cst_143 = arith.constant dense<0.000000e+00> : vector<56x128xf32>
    %270 = tpu.matmul %267, %269, %cst_143 {dimension_numbers = #tpu.dot_dimension_numbers<[1], [0], [0], [1], [0, 0, 1, 1], [], []>} : vector<56x128xbf16>, vector<128x128xbf16>, vector<56x128xf32> -> vector<56x128xf32>
    %c0_144 = arith.constant 0 : index
    %c0_145 = arith.constant 0 : index
    %c0_146 = arith.constant 0 : index
    %271 = vector.load %arg17[%c0_144, %c0_145, %c0_146] : memref<3x1x128xf32, #tpu.memory_space<vmem>>, vector<1x1x128xf32>
    %272 = vector.shape_cast %271 : vector<1x1x128xf32> to vector<1x128xf32>
    %273 = vector.broadcast %272 : vector<1x128xf32> to vector<56x128xf32>
    %274 = arith.addf %270, %273 : vector<56x128xf32>
    %cst_147 = arith.constant 0.000000e+00 : f32
    %275 = vector.broadcast %cst_147 : f32 to vector<56x128xf32>
    %276 = arith.maximumf %274, %275 : vector<56x128xf32>
    %c0_148 = arith.constant 0 : index
    %c0_149 = arith.constant 0 : index
    %c0_150 = arith.constant 0 : index
    %277 = vector.load %arg18[%c0_148, %c0_149, %c0_150] : memref<3x1x128xf32, #tpu.memory_space<vmem>>, vector<1x1x128xf32>
    %278 = vector.shape_cast %277 : vector<1x1x128xf32> to vector<1x128xf32>
    %279 = vector.broadcast %278 : vector<1x128xf32> to vector<56x128xf32>
    %280 = arith.mulf %276, %279 : vector<56x128xf32>
    %c0_151 = arith.constant 0 : index
    %c0_152 = arith.constant 0 : index
    %c0_153 = arith.constant 0 : index
    %281 = vector.load %arg19[%c0_151, %c0_152, %c0_153] : memref<3x1x128xf32, #tpu.memory_space<vmem>>, vector<1x1x128xf32>
    %282 = vector.shape_cast %281 : vector<1x1x128xf32> to vector<1x128xf32>
    %283 = vector.broadcast %282 : vector<1x128xf32> to vector<56x128xf32>
    %284 = arith.addf %280, %283 : vector<56x128xf32>
    %cst_154 = arith.constant dense<0.000000e+00> : vector<128xf32>
    %285 = vector.multi_reduction <add>, %284, %cst_154 [0] : vector<56x128xf32> to vector<128xf32>
    %286 = vector.shape_cast %285 : vector<128xf32> to vector<1x128xf32>
    %cst_155 = arith.constant 5.600000e+01 : f32
    %287 = vector.broadcast %cst_155 : f32 to vector<1x128xf32>
    %288 = arith.divf %286, %287 : vector<1x128xf32>
    %289 = arith.truncf %288 : vector<1x128xf32> to vector<1x128xbf16>
    %c0_156 = arith.constant 0 : index
    %c0_157 = arith.constant 0 : index
    %c0_158 = arith.constant 0 : index
    %290 = vector.load %arg20[%c0_156, %c0_157, %c0_158] : memref<3x128x32xbf16, #tpu.memory_space<vmem>>, vector<1x128x32xbf16>
    %291 = vector.shape_cast %290 : vector<1x128x32xbf16> to vector<128x32xbf16>
    %cst_159 = arith.constant dense<0.000000e+00> : vector<1x32xf32>
    %292 = tpu.matmul %289, %291, %cst_159 {dimension_numbers = #tpu.dot_dimension_numbers<[1], [0], [0], [1], [0, 0, 1, 1], [], []>} : vector<1x128xbf16>, vector<128x32xbf16>, vector<1x32xf32> -> vector<1x32xf32>
    %c0_160 = arith.constant 0 : index
    %c0_161 = arith.constant 0 : index
    %c0_162 = arith.constant 0 : index
    %293 = vector.load %arg21[%c0_160, %c0_161, %c0_162] : memref<3x1x32xf32, #tpu.memory_space<vmem>>, vector<1x1x32xf32>
    %294 = vector.shape_cast %293 : vector<1x1x32xf32> to vector<1x32xf32>
    %295 = arith.addf %292, %294 : vector<1x32xf32>
    %cst_163 = arith.constant 0.000000e+00 : f32
    %296 = vector.broadcast %cst_163 : f32 to vector<1x32xf32>
    %297 = arith.maximumf %295, %296 : vector<1x32xf32>
    %298 = arith.truncf %297 : vector<1x32xf32> to vector<1x32xbf16>
    %c0_164 = arith.constant 0 : index
    %c0_165 = arith.constant 0 : index
    %c0_166 = arith.constant 0 : index
    %299 = vector.load %arg22[%c0_164, %c0_165, %c0_166] : memref<3x32x128xbf16, #tpu.memory_space<vmem>>, vector<1x32x128xbf16>
    %300 = vector.shape_cast %299 : vector<1x32x128xbf16> to vector<32x128xbf16>
    %cst_167 = arith.constant dense<0.000000e+00> : vector<1x128xf32>
    %301 = tpu.matmul %298, %300, %cst_167 {dimension_numbers = #tpu.dot_dimension_numbers<[1], [0], [0], [1], [0, 0, 1, 1], [], []>} : vector<1x32xbf16>, vector<32x128xbf16>, vector<1x128xf32> -> vector<1x128xf32>
    %c0_168 = arith.constant 0 : index
    %c0_169 = arith.constant 0 : index
    %c0_170 = arith.constant 0 : index
    %302 = vector.load %arg23[%c0_168, %c0_169, %c0_170] : memref<3x1x128xf32, #tpu.memory_space<vmem>>, vector<1x1x128xf32>
    %303 = vector.shape_cast %302 : vector<1x1x128xf32> to vector<1x128xf32>
    %304 = arith.addf %301, %303 : vector<1x128xf32>
    %305 = arith.negf %304 : vector<1x128xf32>
    %306 = math.exp %305 : vector<1x128xf32>
    %cst_171 = arith.constant 1.000000e+00 : f32
    %307 = vector.broadcast %cst_171 : f32 to vector<1x128xf32>
    %308 = arith.addf %307, %306 : vector<1x128xf32>
    %309 = arith.divf %307, %308 : vector<1x128xf32>
    %310 = vector.broadcast %309 : vector<1x128xf32> to vector<56x128xf32>
    %311 = arith.mulf %284, %310 : vector<56x128xf32>
    %312 = arith.addf %311, %100 : vector<56x128xf32>
    %313 = arith.truncf %312 : vector<56x128xf32> to vector<56x128xbf16>
    %c0_172 = arith.constant 0 : index
    %c0_173 = arith.constant 0 : index
    %c0_174 = arith.constant 0 : index
    %314 = vector.load %arg24[%c0_172, %c0_173, %c0_174] : memref<3x128x384xbf16, #tpu.memory_space<vmem>>, vector<1x128x384xbf16>
    %315 = vector.shape_cast %314 : vector<1x128x384xbf16> to vector<128x384xbf16>
    %cst_175 = arith.constant dense<0.000000e+00> : vector<56x384xf32>
    %316 = tpu.matmul %313, %315, %cst_175 {dimension_numbers = #tpu.dot_dimension_numbers<[1], [0], [0], [1], [0, 0, 1, 1], [], []>} : vector<56x128xbf16>, vector<128x384xbf16>, vector<56x384xf32> -> vector<56x384xf32>
    %317 = arith.truncf %312 : vector<56x128xf32> to vector<56x128xbf16>
    %c1_176 = arith.constant 1 : index
    %c0_177 = arith.constant 0 : index
    %c0_178 = arith.constant 0 : index
    %318 = vector.load %arg8[%c1_176, %c0_177, %c0_178] : memref<3x128x128xbf16, #tpu.memory_space<vmem>>, vector<1x128x128xbf16>
    %319 = vector.shape_cast %318 : vector<1x128x128xbf16> to vector<128x128xbf16>
    %cst_179 = arith.constant dense<0.000000e+00> : vector<56x128xf32>
    %320 = tpu.matmul %317, %319, %cst_179 {dimension_numbers = #tpu.dot_dimension_numbers<[1], [0], [0], [1], [0, 0, 1, 1], [], []>} : vector<56x128xbf16>, vector<128x128xbf16>, vector<56x128xf32> -> vector<56x128xf32>
    %c1_180 = arith.constant 1 : index
    %c0_181 = arith.constant 0 : index
    %c0_182 = arith.constant 0 : index
    %321 = vector.load %arg9[%c1_180, %c0_181, %c0_182] : memref<3x1x128xf32, #tpu.memory_space<vmem>>, vector<1x1x128xf32>
    %322 = vector.shape_cast %321 : vector<1x1x128xf32> to vector<1x128xf32>
    %323 = vector.broadcast %322 : vector<1x128xf32> to vector<56x128xf32>
    %324 = arith.addf %320, %323 : vector<56x128xf32>
    %cst_183 = arith.constant 0.000000e+00 : f32
    %325 = vector.broadcast %cst_183 : f32 to vector<56x128xf32>
    %326 = arith.maximumf %324, %325 : vector<56x128xf32>
    %c1_184 = arith.constant 1 : index
    %c0_185 = arith.constant 0 : index
    %c0_186 = arith.constant 0 : index
    %327 = vector.load %arg10[%c1_184, %c0_185, %c0_186] : memref<3x1x128xf32, #tpu.memory_space<vmem>>, vector<1x1x128xf32>
    %328 = vector.shape_cast %327 : vector<1x1x128xf32> to vector<1x128xf32>
    %329 = vector.broadcast %328 : vector<1x128xf32> to vector<56x128xf32>
    %330 = arith.mulf %326, %329 : vector<56x128xf32>
    %c1_187 = arith.constant 1 : index
    %c0_188 = arith.constant 0 : index
    %c0_189 = arith.constant 0 : index
    %331 = vector.load %arg11[%c1_187, %c0_188, %c0_189] : memref<3x1x128xf32, #tpu.memory_space<vmem>>, vector<1x1x128xf32>
    %332 = vector.shape_cast %331 : vector<1x1x128xf32> to vector<1x128xf32>
    %333 = vector.broadcast %332 : vector<1x128xf32> to vector<56x128xf32>
    %334 = arith.addf %330, %333 : vector<56x128xf32>
    %335 = vector.extract_strided_slice %334 {offsets = [0, 0], sizes = [56, 32], strides = [1, 1]} : vector<56x128xf32> to vector<56x32xf32>
    %336 = vector.extract_strided_slice %334 {offsets = [0, 32], sizes = [56, 32], strides = [1, 1]} : vector<56x128xf32> to vector<56x32xf32>
    %c1_190 = arith.constant 1 : index
    %c0_191 = arith.constant 0 : index
    %c0_192 = arith.constant 0 : index
    %c0_193 = arith.constant 0 : index
    %337 = vector.load %arg12[%c1_190, %c0_191, %c0_192, %c0_193] : memref<3x3x96x32xbf16, #tpu.memory_space<vmem>>, vector<1x1x96x32xbf16>
    %338 = vector.shape_cast %337 : vector<1x1x96x32xbf16> to vector<96x32xbf16>
    %c3_i32 = arith.constant 3 : i32
    %339 = tpu.dynamic_rotate %336 by %c3_i32 dim 0 : vector<56x32xf32>, i32 -> vector<56x32xf32>
    %c-3_i32 = arith.constant -3 : i32
    %340 = vector.broadcast %c-3_i32 : i32 to vector<56x1xi32>
    %341 = arith.addi %0, %340 : vector<56x1xi32>
    %c0_i32_194 = arith.constant 0 : i32
    %342 = vector.broadcast %c0_i32_194 : i32 to vector<56x1xi32>
    %343 = arith.cmpi sge, %341, %342 : vector<56x1xi32>
    %c-3_i32_195 = arith.constant -3 : i32
    %344 = vector.broadcast %c-3_i32_195 : i32 to vector<56x1xi32>
    %345 = arith.addi %0, %344 : vector<56x1xi32>
    %c56_i32_196 = arith.constant 56 : i32
    %346 = vector.broadcast %c56_i32_196 : i32 to vector<56x1xi32>
    %347 = arith.cmpi slt, %345, %346 : vector<56x1xi32>
    %348 = arith.andi %343, %347 : vector<56x1xi1>
    %cst_197 = arith.constant 0.000000e+00 : f32
    %349 = vector.shape_cast %348 : vector<56x1xi1> to vector<56x1xi1>
    %350 = vector.broadcast %349 : vector<56x1xi1> to vector<56x32xi1>
    %351 = vector.broadcast %cst_197 : f32 to vector<56x32xf32>
    %352 = arith.select %350, %339, %351 : vector<56x32xi1>, vector<56x32xf32>
    %c53_i32 = arith.constant 53 : i32
    %353 = tpu.dynamic_rotate %336 by %c53_i32 dim 0 : vector<56x32xf32>, i32 -> vector<56x32xf32>
    %c3_i32_198 = arith.constant 3 : i32
    %354 = vector.broadcast %c3_i32_198 : i32 to vector<56x1xi32>
    %355 = arith.addi %0, %354 : vector<56x1xi32>
    %c0_i32_199 = arith.constant 0 : i32
    %356 = vector.broadcast %c0_i32_199 : i32 to vector<56x1xi32>
    %357 = arith.cmpi sge, %355, %356 : vector<56x1xi32>
    %c3_i32_200 = arith.constant 3 : i32
    %358 = vector.broadcast %c3_i32_200 : i32 to vector<56x1xi32>
    %359 = arith.addi %0, %358 : vector<56x1xi32>
    %c56_i32_201 = arith.constant 56 : i32
    %360 = vector.broadcast %c56_i32_201 : i32 to vector<56x1xi32>
    %361 = arith.cmpi slt, %359, %360 : vector<56x1xi32>
    %362 = arith.andi %357, %361 : vector<56x1xi1>
    %cst_202 = arith.constant 0.000000e+00 : f32
    %363 = vector.shape_cast %362 : vector<56x1xi1> to vector<56x1xi1>
    %364 = vector.broadcast %363 : vector<56x1xi1> to vector<56x32xi1>
    %365 = vector.broadcast %cst_202 : f32 to vector<56x32xf32>
    %366 = arith.select %364, %353, %365 : vector<56x32xi1>, vector<56x32xf32>
    %367 = tpu.concatenate %352, %336, %366 in 1 : vector<56x32xf32>, vector<56x32xf32>, vector<56x32xf32> -> vector<56x96xf32>
    %368 = arith.truncf %367 : vector<56x96xf32> to vector<56x96xbf16>
    %cst_203 = arith.constant dense<0.000000e+00> : vector<56x32xf32>
    %369 = tpu.matmul %368, %338, %cst_203 {dimension_numbers = #tpu.dot_dimension_numbers<[1], [0], [0], [1], [0, 0, 1, 1], [], []>} : vector<56x96xbf16>, vector<96x32xbf16>, vector<56x32xf32> -> vector<56x32xf32>
    %c1_204 = arith.constant 1 : index
    %c0_205 = arith.constant 0 : index
    %c0_206 = arith.constant 0 : index
    %c0_207 = arith.constant 0 : index
    %370 = vector.load %arg13[%c1_204, %c0_205, %c0_206, %c0_207] : memref<3x3x1x32xf32, #tpu.memory_space<vmem>>, vector<1x1x1x32xf32>
    %371 = vector.shape_cast %370 : vector<1x1x1x32xf32> to vector<1x32xf32>
    %372 = vector.broadcast %371 : vector<1x32xf32> to vector<56x32xf32>
    %373 = arith.addf %369, %372 : vector<56x32xf32>
    %cst_208 = arith.constant 0.000000e+00 : f32
    %374 = vector.broadcast %cst_208 : f32 to vector<56x32xf32>
    %375 = arith.maximumf %373, %374 : vector<56x32xf32>
    %c1_209 = arith.constant 1 : index
    %c0_210 = arith.constant 0 : index
    %c0_211 = arith.constant 0 : index
    %c0_212 = arith.constant 0 : index
    %376 = vector.load %arg14[%c1_209, %c0_210, %c0_211, %c0_212] : memref<3x3x1x32xf32, #tpu.memory_space<vmem>>, vector<1x1x1x32xf32>
    %377 = vector.shape_cast %376 : vector<1x1x1x32xf32> to vector<1x32xf32>
    %378 = vector.broadcast %377 : vector<1x32xf32> to vector<56x32xf32>
    %379 = arith.mulf %375, %378 : vector<56x32xf32>
    %c1_213 = arith.constant 1 : index
    %c0_214 = arith.constant 0 : index
    %c0_215 = arith.constant 0 : index
    %c0_216 = arith.constant 0 : index
    %380 = vector.load %arg15[%c1_213, %c0_214, %c0_215, %c0_216] : memref<3x3x1x32xf32, #tpu.memory_space<vmem>>, vector<1x1x1x32xf32>
    %381 = vector.shape_cast %380 : vector<1x1x1x32xf32> to vector<1x32xf32>
    %382 = vector.broadcast %381 : vector<1x32xf32> to vector<56x32xf32>
    %383 = arith.addf %379, %382 : vector<56x32xf32>
    %384 = vector.extract_strided_slice %334 {offsets = [0, 64], sizes = [56, 32], strides = [1, 1]} : vector<56x128xf32> to vector<56x32xf32>
    %385 = arith.addf %384, %383 : vector<56x32xf32>
    %c1_217 = arith.constant 1 : index
    %c1_218 = arith.constant 1 : index
    %c0_219 = arith.constant 0 : index
    %c0_220 = arith.constant 0 : index
    %386 = vector.load %arg12[%c1_217, %c1_218, %c0_219, %c0_220] : memref<3x3x96x32xbf16, #tpu.memory_space<vmem>>, vector<1x1x96x32xbf16>
    %387 = vector.shape_cast %386 : vector<1x1x96x32xbf16> to vector<96x32xbf16>
    %c3_i32_221 = arith.constant 3 : i32
    %388 = tpu.dynamic_rotate %385 by %c3_i32_221 dim 0 : vector<56x32xf32>, i32 -> vector<56x32xf32>
    %c-3_i32_222 = arith.constant -3 : i32
    %389 = vector.broadcast %c-3_i32_222 : i32 to vector<56x1xi32>
    %390 = arith.addi %0, %389 : vector<56x1xi32>
    %c0_i32_223 = arith.constant 0 : i32
    %391 = vector.broadcast %c0_i32_223 : i32 to vector<56x1xi32>
    %392 = arith.cmpi sge, %390, %391 : vector<56x1xi32>
    %c-3_i32_224 = arith.constant -3 : i32
    %393 = vector.broadcast %c-3_i32_224 : i32 to vector<56x1xi32>
    %394 = arith.addi %0, %393 : vector<56x1xi32>
    %c56_i32_225 = arith.constant 56 : i32
    %395 = vector.broadcast %c56_i32_225 : i32 to vector<56x1xi32>
    %396 = arith.cmpi slt, %394, %395 : vector<56x1xi32>
    %397 = arith.andi %392, %396 : vector<56x1xi1>
    %cst_226 = arith.constant 0.000000e+00 : f32
    %398 = vector.shape_cast %397 : vector<56x1xi1> to vector<56x1xi1>
    %399 = vector.broadcast %398 : vector<56x1xi1> to vector<56x32xi1>
    %400 = vector.broadcast %cst_226 : f32 to vector<56x32xf32>
    %401 = arith.select %399, %388, %400 : vector<56x32xi1>, vector<56x32xf32>
    %c53_i32_227 = arith.constant 53 : i32
    %402 = tpu.dynamic_rotate %385 by %c53_i32_227 dim 0 : vector<56x32xf32>, i32 -> vector<56x32xf32>
    %c3_i32_228 = arith.constant 3 : i32
    %403 = vector.broadcast %c3_i32_228 : i32 to vector<56x1xi32>
    %404 = arith.addi %0, %403 : vector<56x1xi32>
    %c0_i32_229 = arith.constant 0 : i32
    %405 = vector.broadcast %c0_i32_229 : i32 to vector<56x1xi32>
    %406 = arith.cmpi sge, %404, %405 : vector<56x1xi32>
    %c3_i32_230 = arith.constant 3 : i32
    %407 = vector.broadcast %c3_i32_230 : i32 to vector<56x1xi32>
    %408 = arith.addi %0, %407 : vector<56x1xi32>
    %c56_i32_231 = arith.constant 56 : i32
    %409 = vector.broadcast %c56_i32_231 : i32 to vector<56x1xi32>
    %410 = arith.cmpi slt, %408, %409 : vector<56x1xi32>
    %411 = arith.andi %406, %410 : vector<56x1xi1>
    %cst_232 = arith.constant 0.000000e+00 : f32
    %412 = vector.shape_cast %411 : vector<56x1xi1> to vector<56x1xi1>
    %413 = vector.broadcast %412 : vector<56x1xi1> to vector<56x32xi1>
    %414 = vector.broadcast %cst_232 : f32 to vector<56x32xf32>
    %415 = arith.select %413, %402, %414 : vector<56x32xi1>, vector<56x32xf32>
    %416 = tpu.concatenate %401, %385, %415 in 1 : vector<56x32xf32>, vector<56x32xf32>, vector<56x32xf32> -> vector<56x96xf32>
    %417 = arith.truncf %416 : vector<56x96xf32> to vector<56x96xbf16>
    %cst_233 = arith.constant dense<0.000000e+00> : vector<56x32xf32>
    %418 = tpu.matmul %417, %387, %cst_233 {dimension_numbers = #tpu.dot_dimension_numbers<[1], [0], [0], [1], [0, 0, 1, 1], [], []>} : vector<56x96xbf16>, vector<96x32xbf16>, vector<56x32xf32> -> vector<56x32xf32>
    %c1_234 = arith.constant 1 : index
    %c1_235 = arith.constant 1 : index
    %c0_236 = arith.constant 0 : index
    %c0_237 = arith.constant 0 : index
    %419 = vector.load %arg13[%c1_234, %c1_235, %c0_236, %c0_237] : memref<3x3x1x32xf32, #tpu.memory_space<vmem>>, vector<1x1x1x32xf32>
    %420 = vector.shape_cast %419 : vector<1x1x1x32xf32> to vector<1x32xf32>
    %421 = vector.broadcast %420 : vector<1x32xf32> to vector<56x32xf32>
    %422 = arith.addf %418, %421 : vector<56x32xf32>
    %cst_238 = arith.constant 0.000000e+00 : f32
    %423 = vector.broadcast %cst_238 : f32 to vector<56x32xf32>
    %424 = arith.maximumf %422, %423 : vector<56x32xf32>
    %c1_239 = arith.constant 1 : index
    %c1_240 = arith.constant 1 : index
    %c0_241 = arith.constant 0 : index
    %c0_242 = arith.constant 0 : index
    %425 = vector.load %arg14[%c1_239, %c1_240, %c0_241, %c0_242] : memref<3x3x1x32xf32, #tpu.memory_space<vmem>>, vector<1x1x1x32xf32>
    %426 = vector.shape_cast %425 : vector<1x1x1x32xf32> to vector<1x32xf32>
    %427 = vector.broadcast %426 : vector<1x32xf32> to vector<56x32xf32>
    %428 = arith.mulf %424, %427 : vector<56x32xf32>
    %c1_243 = arith.constant 1 : index
    %c1_244 = arith.constant 1 : index
    %c0_245 = arith.constant 0 : index
    %c0_246 = arith.constant 0 : index
    %429 = vector.load %arg15[%c1_243, %c1_244, %c0_245, %c0_246] : memref<3x3x1x32xf32, #tpu.memory_space<vmem>>, vector<1x1x1x32xf32>
    %430 = vector.shape_cast %429 : vector<1x1x1x32xf32> to vector<1x32xf32>
    %431 = vector.broadcast %430 : vector<1x32xf32> to vector<56x32xf32>
    %432 = arith.addf %428, %431 : vector<56x32xf32>
    %433 = vector.extract_strided_slice %334 {offsets = [0, 96], sizes = [56, 32], strides = [1, 1]} : vector<56x128xf32> to vector<56x32xf32>
    %434 = arith.addf %433, %432 : vector<56x32xf32>
    %c1_247 = arith.constant 1 : index
    %c2_248 = arith.constant 2 : index
    %c0_249 = arith.constant 0 : index
    %c0_250 = arith.constant 0 : index
    %435 = vector.load %arg12[%c1_247, %c2_248, %c0_249, %c0_250] : memref<3x3x96x32xbf16, #tpu.memory_space<vmem>>, vector<1x1x96x32xbf16>
    %436 = vector.shape_cast %435 : vector<1x1x96x32xbf16> to vector<96x32xbf16>
    %c3_i32_251 = arith.constant 3 : i32
    %437 = tpu.dynamic_rotate %434 by %c3_i32_251 dim 0 : vector<56x32xf32>, i32 -> vector<56x32xf32>
    %c-3_i32_252 = arith.constant -3 : i32
    %438 = vector.broadcast %c-3_i32_252 : i32 to vector<56x1xi32>
    %439 = arith.addi %0, %438 : vector<56x1xi32>
    %c0_i32_253 = arith.constant 0 : i32
    %440 = vector.broadcast %c0_i32_253 : i32 to vector<56x1xi32>
    %441 = arith.cmpi sge, %439, %440 : vector<56x1xi32>
    %c-3_i32_254 = arith.constant -3 : i32
    %442 = vector.broadcast %c-3_i32_254 : i32 to vector<56x1xi32>
    %443 = arith.addi %0, %442 : vector<56x1xi32>
    %c56_i32_255 = arith.constant 56 : i32
    %444 = vector.broadcast %c56_i32_255 : i32 to vector<56x1xi32>
    %445 = arith.cmpi slt, %443, %444 : vector<56x1xi32>
    %446 = arith.andi %441, %445 : vector<56x1xi1>
    %cst_256 = arith.constant 0.000000e+00 : f32
    %447 = vector.shape_cast %446 : vector<56x1xi1> to vector<56x1xi1>
    %448 = vector.broadcast %447 : vector<56x1xi1> to vector<56x32xi1>
    %449 = vector.broadcast %cst_256 : f32 to vector<56x32xf32>
    %450 = arith.select %448, %437, %449 : vector<56x32xi1>, vector<56x32xf32>
    %c53_i32_257 = arith.constant 53 : i32
    %451 = tpu.dynamic_rotate %434 by %c53_i32_257 dim 0 : vector<56x32xf32>, i32 -> vector<56x32xf32>
    %c3_i32_258 = arith.constant 3 : i32
    %452 = vector.broadcast %c3_i32_258 : i32 to vector<56x1xi32>
    %453 = arith.addi %0, %452 : vector<56x1xi32>
    %c0_i32_259 = arith.constant 0 : i32
    %454 = vector.broadcast %c0_i32_259 : i32 to vector<56x1xi32>
    %455 = arith.cmpi sge, %453, %454 : vector<56x1xi32>
    %c3_i32_260 = arith.constant 3 : i32
    %456 = vector.broadcast %c3_i32_260 : i32 to vector<56x1xi32>
    %457 = arith.addi %0, %456 : vector<56x1xi32>
    %c56_i32_261 = arith.constant 56 : i32
    %458 = vector.broadcast %c56_i32_261 : i32 to vector<56x1xi32>
    %459 = arith.cmpi slt, %457, %458 : vector<56x1xi32>
    %460 = arith.andi %455, %459 : vector<56x1xi1>
    %cst_262 = arith.constant 0.000000e+00 : f32
    %461 = vector.shape_cast %460 : vector<56x1xi1> to vector<56x1xi1>
    %462 = vector.broadcast %461 : vector<56x1xi1> to vector<56x32xi1>
    %463 = vector.broadcast %cst_262 : f32 to vector<56x32xf32>
    %464 = arith.select %462, %451, %463 : vector<56x32xi1>, vector<56x32xf32>
    %465 = tpu.concatenate %450, %434, %464 in 1 : vector<56x32xf32>, vector<56x32xf32>, vector<56x32xf32> -> vector<56x96xf32>
    %466 = arith.truncf %465 : vector<56x96xf32> to vector<56x96xbf16>
    %cst_263 = arith.constant dense<0.000000e+00> : vector<56x32xf32>
    %467 = tpu.matmul %466, %436, %cst_263 {dimension_numbers = #tpu.dot_dimension_numbers<[1], [0], [0], [1], [0, 0, 1, 1], [], []>} : vector<56x96xbf16>, vector<96x32xbf16>, vector<56x32xf32> -> vector<56x32xf32>
    %c1_264 = arith.constant 1 : index
    %c2_265 = arith.constant 2 : index
    %c0_266 = arith.constant 0 : index
    %c0_267 = arith.constant 0 : index
    %468 = vector.load %arg13[%c1_264, %c2_265, %c0_266, %c0_267] : memref<3x3x1x32xf32, #tpu.memory_space<vmem>>, vector<1x1x1x32xf32>
    %469 = vector.shape_cast %468 : vector<1x1x1x32xf32> to vector<1x32xf32>
    %470 = vector.broadcast %469 : vector<1x32xf32> to vector<56x32xf32>
    %471 = arith.addf %467, %470 : vector<56x32xf32>
    %cst_268 = arith.constant 0.000000e+00 : f32
    %472 = vector.broadcast %cst_268 : f32 to vector<56x32xf32>
    %473 = arith.maximumf %471, %472 : vector<56x32xf32>
    %c1_269 = arith.constant 1 : index
    %c2_270 = arith.constant 2 : index
    %c0_271 = arith.constant 0 : index
    %c0_272 = arith.constant 0 : index
    %474 = vector.load %arg14[%c1_269, %c2_270, %c0_271, %c0_272] : memref<3x3x1x32xf32, #tpu.memory_space<vmem>>, vector<1x1x1x32xf32>
    %475 = vector.shape_cast %474 : vector<1x1x1x32xf32> to vector<1x32xf32>
    %476 = vector.broadcast %475 : vector<1x32xf32> to vector<56x32xf32>
    %477 = arith.mulf %473, %476 : vector<56x32xf32>
    %c1_273 = arith.constant 1 : index
    %c2_274 = arith.constant 2 : index
    %c0_275 = arith.constant 0 : index
    %c0_276 = arith.constant 0 : index
    %478 = vector.load %arg15[%c1_273, %c2_274, %c0_275, %c0_276] : memref<3x3x1x32xf32, #tpu.memory_space<vmem>>, vector<1x1x1x32xf32>
    %479 = vector.shape_cast %478 : vector<1x1x1x32xf32> to vector<1x32xf32>
    %480 = vector.broadcast %479 : vector<1x32xf32> to vector<56x32xf32>
    %481 = arith.addf %477, %480 : vector<56x32xf32>
    %482 = tpu.concatenate %335, %383, %432, %481 in 1 : vector<56x32xf32>, vector<56x32xf32>, vector<56x32xf32>, vector<56x32xf32> -> vector<56x128xf32>
    %483 = arith.truncf %482 : vector<56x128xf32> to vector<56x128xbf16>
    %c1_277 = arith.constant 1 : index
    %c0_278 = arith.constant 0 : index
    %c0_279 = arith.constant 0 : index
    %484 = vector.load %arg16[%c1_277, %c0_278, %c0_279] : memref<3x128x128xbf16, #tpu.memory_space<vmem>>, vector<1x128x128xbf16>
    %485 = vector.shape_cast %484 : vector<1x128x128xbf16> to vector<128x128xbf16>
    %cst_280 = arith.constant dense<0.000000e+00> : vector<56x128xf32>
    %486 = tpu.matmul %483, %485, %cst_280 {dimension_numbers = #tpu.dot_dimension_numbers<[1], [0], [0], [1], [0, 0, 1, 1], [], []>} : vector<56x128xbf16>, vector<128x128xbf16>, vector<56x128xf32> -> vector<56x128xf32>
    %c1_281 = arith.constant 1 : index
    %c0_282 = arith.constant 0 : index
    %c0_283 = arith.constant 0 : index
    %487 = vector.load %arg17[%c1_281, %c0_282, %c0_283] : memref<3x1x128xf32, #tpu.memory_space<vmem>>, vector<1x1x128xf32>
    %488 = vector.shape_cast %487 : vector<1x1x128xf32> to vector<1x128xf32>
    %489 = vector.broadcast %488 : vector<1x128xf32> to vector<56x128xf32>
    %490 = arith.addf %486, %489 : vector<56x128xf32>
    %cst_284 = arith.constant 0.000000e+00 : f32
    %491 = vector.broadcast %cst_284 : f32 to vector<56x128xf32>
    %492 = arith.maximumf %490, %491 : vector<56x128xf32>
    %c1_285 = arith.constant 1 : index
    %c0_286 = arith.constant 0 : index
    %c0_287 = arith.constant 0 : index
    %493 = vector.load %arg18[%c1_285, %c0_286, %c0_287] : memref<3x1x128xf32, #tpu.memory_space<vmem>>, vector<1x1x128xf32>
    %494 = vector.shape_cast %493 : vector<1x1x128xf32> to vector<1x128xf32>
    %495 = vector.broadcast %494 : vector<1x128xf32> to vector<56x128xf32>
    %496 = arith.mulf %492, %495 : vector<56x128xf32>
    %c1_288 = arith.constant 1 : index
    %c0_289 = arith.constant 0 : index
    %c0_290 = arith.constant 0 : index
    %497 = vector.load %arg19[%c1_288, %c0_289, %c0_290] : memref<3x1x128xf32, #tpu.memory_space<vmem>>, vector<1x1x128xf32>
    %498 = vector.shape_cast %497 : vector<1x1x128xf32> to vector<1x128xf32>
    %499 = vector.broadcast %498 : vector<1x128xf32> to vector<56x128xf32>
    %500 = arith.addf %496, %499 : vector<56x128xf32>
    %cst_291 = arith.constant dense<0.000000e+00> : vector<128xf32>
    %501 = vector.multi_reduction <add>, %500, %cst_291 [0] : vector<56x128xf32> to vector<128xf32>
    %502 = vector.shape_cast %501 : vector<128xf32> to vector<1x128xf32>
    %cst_292 = arith.constant 5.600000e+01 : f32
    %503 = vector.broadcast %cst_292 : f32 to vector<1x128xf32>
    %504 = arith.divf %502, %503 : vector<1x128xf32>
    %505 = arith.truncf %504 : vector<1x128xf32> to vector<1x128xbf16>
    %c1_293 = arith.constant 1 : index
    %c0_294 = arith.constant 0 : index
    %c0_295 = arith.constant 0 : index
    %506 = vector.load %arg20[%c1_293, %c0_294, %c0_295] : memref<3x128x32xbf16, #tpu.memory_space<vmem>>, vector<1x128x32xbf16>
    %507 = vector.shape_cast %506 : vector<1x128x32xbf16> to vector<128x32xbf16>
    %cst_296 = arith.constant dense<0.000000e+00> : vector<1x32xf32>
    %508 = tpu.matmul %505, %507, %cst_296 {dimension_numbers = #tpu.dot_dimension_numbers<[1], [0], [0], [1], [0, 0, 1, 1], [], []>} : vector<1x128xbf16>, vector<128x32xbf16>, vector<1x32xf32> -> vector<1x32xf32>
    %c1_297 = arith.constant 1 : index
    %c0_298 = arith.constant 0 : index
    %c0_299 = arith.constant 0 : index
    %509 = vector.load %arg21[%c1_297, %c0_298, %c0_299] : memref<3x1x32xf32, #tpu.memory_space<vmem>>, vector<1x1x32xf32>
    %510 = vector.shape_cast %509 : vector<1x1x32xf32> to vector<1x32xf32>
    %511 = arith.addf %508, %510 : vector<1x32xf32>
    %cst_300 = arith.constant 0.000000e+00 : f32
    %512 = vector.broadcast %cst_300 : f32 to vector<1x32xf32>
    %513 = arith.maximumf %511, %512 : vector<1x32xf32>
    %514 = arith.truncf %513 : vector<1x32xf32> to vector<1x32xbf16>
    %c1_301 = arith.constant 1 : index
    %c0_302 = arith.constant 0 : index
    %c0_303 = arith.constant 0 : index
    %515 = vector.load %arg22[%c1_301, %c0_302, %c0_303] : memref<3x32x128xbf16, #tpu.memory_space<vmem>>, vector<1x32x128xbf16>
    %516 = vector.shape_cast %515 : vector<1x32x128xbf16> to vector<32x128xbf16>
    %cst_304 = arith.constant dense<0.000000e+00> : vector<1x128xf32>
    %517 = tpu.matmul %514, %516, %cst_304 {dimension_numbers = #tpu.dot_dimension_numbers<[1], [0], [0], [1], [0, 0, 1, 1], [], []>} : vector<1x32xbf16>, vector<32x128xbf16>, vector<1x128xf32> -> vector<1x128xf32>
    %c1_305 = arith.constant 1 : index
    %c0_306 = arith.constant 0 : index
    %c0_307 = arith.constant 0 : index
    %518 = vector.load %arg23[%c1_305, %c0_306, %c0_307] : memref<3x1x128xf32, #tpu.memory_space<vmem>>, vector<1x1x128xf32>
    %519 = vector.shape_cast %518 : vector<1x1x128xf32> to vector<1x128xf32>
    %520 = arith.addf %517, %519 : vector<1x128xf32>
    %521 = arith.negf %520 : vector<1x128xf32>
    %522 = math.exp %521 : vector<1x128xf32>
    %cst_308 = arith.constant 1.000000e+00 : f32
    %523 = vector.broadcast %cst_308 : f32 to vector<1x128xf32>
    %524 = arith.addf %523, %522 : vector<1x128xf32>
    %525 = arith.divf %523, %524 : vector<1x128xf32>
    %526 = vector.broadcast %525 : vector<1x128xf32> to vector<56x128xf32>
    %527 = arith.mulf %500, %526 : vector<56x128xf32>
    %528 = arith.addf %527, %312 : vector<56x128xf32>
    %529 = arith.truncf %528 : vector<56x128xf32> to vector<56x128xbf16>
    %c1_309 = arith.constant 1 : index
    %c0_310 = arith.constant 0 : index
    %c0_311 = arith.constant 0 : index
    %530 = vector.load %arg24[%c1_309, %c0_310, %c0_311] : memref<3x128x384xbf16, #tpu.memory_space<vmem>>, vector<1x128x384xbf16>
    %531 = vector.shape_cast %530 : vector<1x128x384xbf16> to vector<128x384xbf16>
    %cst_312 = arith.constant dense<0.000000e+00> : vector<56x384xf32>
    %532 = tpu.matmul %529, %531, %cst_312 {dimension_numbers = #tpu.dot_dimension_numbers<[1], [0], [0], [1], [0, 0, 1, 1], [], []>} : vector<56x128xbf16>, vector<128x384xbf16>, vector<56x384xf32> -> vector<56x384xf32>
    %533 = arith.addf %316, %532 : vector<56x384xf32>
    %534 = arith.truncf %528 : vector<56x128xf32> to vector<56x128xbf16>
    %c2_313 = arith.constant 2 : index
    %c0_314 = arith.constant 0 : index
    %c0_315 = arith.constant 0 : index
    %535 = vector.load %arg8[%c2_313, %c0_314, %c0_315] : memref<3x128x128xbf16, #tpu.memory_space<vmem>>, vector<1x128x128xbf16>
    %536 = vector.shape_cast %535 : vector<1x128x128xbf16> to vector<128x128xbf16>
    %cst_316 = arith.constant dense<0.000000e+00> : vector<56x128xf32>
    %537 = tpu.matmul %534, %536, %cst_316 {dimension_numbers = #tpu.dot_dimension_numbers<[1], [0], [0], [1], [0, 0, 1, 1], [], []>} : vector<56x128xbf16>, vector<128x128xbf16>, vector<56x128xf32> -> vector<56x128xf32>
    %c2_317 = arith.constant 2 : index
    %c0_318 = arith.constant 0 : index
    %c0_319 = arith.constant 0 : index
    %538 = vector.load %arg9[%c2_317, %c0_318, %c0_319] : memref<3x1x128xf32, #tpu.memory_space<vmem>>, vector<1x1x128xf32>
    %539 = vector.shape_cast %538 : vector<1x1x128xf32> to vector<1x128xf32>
    %540 = vector.broadcast %539 : vector<1x128xf32> to vector<56x128xf32>
    %541 = arith.addf %537, %540 : vector<56x128xf32>
    %cst_320 = arith.constant 0.000000e+00 : f32
    %542 = vector.broadcast %cst_320 : f32 to vector<56x128xf32>
    %543 = arith.maximumf %541, %542 : vector<56x128xf32>
    %c2_321 = arith.constant 2 : index
    %c0_322 = arith.constant 0 : index
    %c0_323 = arith.constant 0 : index
    %544 = vector.load %arg10[%c2_321, %c0_322, %c0_323] : memref<3x1x128xf32, #tpu.memory_space<vmem>>, vector<1x1x128xf32>
    %545 = vector.shape_cast %544 : vector<1x1x128xf32> to vector<1x128xf32>
    %546 = vector.broadcast %545 : vector<1x128xf32> to vector<56x128xf32>
    %547 = arith.mulf %543, %546 : vector<56x128xf32>
    %c2_324 = arith.constant 2 : index
    %c0_325 = arith.constant 0 : index
    %c0_326 = arith.constant 0 : index
    %548 = vector.load %arg11[%c2_324, %c0_325, %c0_326] : memref<3x1x128xf32, #tpu.memory_space<vmem>>, vector<1x1x128xf32>
    %549 = vector.shape_cast %548 : vector<1x1x128xf32> to vector<1x128xf32>
    %550 = vector.broadcast %549 : vector<1x128xf32> to vector<56x128xf32>
    %551 = arith.addf %547, %550 : vector<56x128xf32>
    %552 = vector.extract_strided_slice %551 {offsets = [0, 0], sizes = [56, 32], strides = [1, 1]} : vector<56x128xf32> to vector<56x32xf32>
    %553 = vector.extract_strided_slice %551 {offsets = [0, 32], sizes = [56, 32], strides = [1, 1]} : vector<56x128xf32> to vector<56x32xf32>
    %c2_327 = arith.constant 2 : index
    %c0_328 = arith.constant 0 : index
    %c0_329 = arith.constant 0 : index
    %c0_330 = arith.constant 0 : index
    %554 = vector.load %arg12[%c2_327, %c0_328, %c0_329, %c0_330] : memref<3x3x96x32xbf16, #tpu.memory_space<vmem>>, vector<1x1x96x32xbf16>
    %555 = vector.shape_cast %554 : vector<1x1x96x32xbf16> to vector<96x32xbf16>
    %c4_i32 = arith.constant 4 : i32
    %556 = tpu.dynamic_rotate %553 by %c4_i32 dim 0 : vector<56x32xf32>, i32 -> vector<56x32xf32>
    %c-4_i32 = arith.constant -4 : i32
    %557 = vector.broadcast %c-4_i32 : i32 to vector<56x1xi32>
    %558 = arith.addi %0, %557 : vector<56x1xi32>
    %c0_i32_331 = arith.constant 0 : i32
    %559 = vector.broadcast %c0_i32_331 : i32 to vector<56x1xi32>
    %560 = arith.cmpi sge, %558, %559 : vector<56x1xi32>
    %c-4_i32_332 = arith.constant -4 : i32
    %561 = vector.broadcast %c-4_i32_332 : i32 to vector<56x1xi32>
    %562 = arith.addi %0, %561 : vector<56x1xi32>
    %c56_i32_333 = arith.constant 56 : i32
    %563 = vector.broadcast %c56_i32_333 : i32 to vector<56x1xi32>
    %564 = arith.cmpi slt, %562, %563 : vector<56x1xi32>
    %565 = arith.andi %560, %564 : vector<56x1xi1>
    %cst_334 = arith.constant 0.000000e+00 : f32
    %566 = vector.shape_cast %565 : vector<56x1xi1> to vector<56x1xi1>
    %567 = vector.broadcast %566 : vector<56x1xi1> to vector<56x32xi1>
    %568 = vector.broadcast %cst_334 : f32 to vector<56x32xf32>
    %569 = arith.select %567, %556, %568 : vector<56x32xi1>, vector<56x32xf32>
    %c52_i32 = arith.constant 52 : i32
    %570 = tpu.dynamic_rotate %553 by %c52_i32 dim 0 : vector<56x32xf32>, i32 -> vector<56x32xf32>
    %c4_i32_335 = arith.constant 4 : i32
    %571 = vector.broadcast %c4_i32_335 : i32 to vector<56x1xi32>
    %572 = arith.addi %0, %571 : vector<56x1xi32>
    %c0_i32_336 = arith.constant 0 : i32
    %573 = vector.broadcast %c0_i32_336 : i32 to vector<56x1xi32>
    %574 = arith.cmpi sge, %572, %573 : vector<56x1xi32>
    %c4_i32_337 = arith.constant 4 : i32
    %575 = vector.broadcast %c4_i32_337 : i32 to vector<56x1xi32>
    %576 = arith.addi %0, %575 : vector<56x1xi32>
    %c56_i32_338 = arith.constant 56 : i32
    %577 = vector.broadcast %c56_i32_338 : i32 to vector<56x1xi32>
    %578 = arith.cmpi slt, %576, %577 : vector<56x1xi32>
    %579 = arith.andi %574, %578 : vector<56x1xi1>
    %cst_339 = arith.constant 0.000000e+00 : f32
    %580 = vector.shape_cast %579 : vector<56x1xi1> to vector<56x1xi1>
    %581 = vector.broadcast %580 : vector<56x1xi1> to vector<56x32xi1>
    %582 = vector.broadcast %cst_339 : f32 to vector<56x32xf32>
    %583 = arith.select %581, %570, %582 : vector<56x32xi1>, vector<56x32xf32>
    %584 = tpu.concatenate %569, %553, %583 in 1 : vector<56x32xf32>, vector<56x32xf32>, vector<56x32xf32> -> vector<56x96xf32>
    %585 = arith.truncf %584 : vector<56x96xf32> to vector<56x96xbf16>
    %cst_340 = arith.constant dense<0.000000e+00> : vector<56x32xf32>
    %586 = tpu.matmul %585, %555, %cst_340 {dimension_numbers = #tpu.dot_dimension_numbers<[1], [0], [0], [1], [0, 0, 1, 1], [], []>} : vector<56x96xbf16>, vector<96x32xbf16>, vector<56x32xf32> -> vector<56x32xf32>
    %c2_341 = arith.constant 2 : index
    %c0_342 = arith.constant 0 : index
    %c0_343 = arith.constant 0 : index
    %c0_344 = arith.constant 0 : index
    %587 = vector.load %arg13[%c2_341, %c0_342, %c0_343, %c0_344] : memref<3x3x1x32xf32, #tpu.memory_space<vmem>>, vector<1x1x1x32xf32>
    %588 = vector.shape_cast %587 : vector<1x1x1x32xf32> to vector<1x32xf32>
    %589 = vector.broadcast %588 : vector<1x32xf32> to vector<56x32xf32>
    %590 = arith.addf %586, %589 : vector<56x32xf32>
    %cst_345 = arith.constant 0.000000e+00 : f32
    %591 = vector.broadcast %cst_345 : f32 to vector<56x32xf32>
    %592 = arith.maximumf %590, %591 : vector<56x32xf32>
    %c2_346 = arith.constant 2 : index
    %c0_347 = arith.constant 0 : index
    %c0_348 = arith.constant 0 : index
    %c0_349 = arith.constant 0 : index
    %593 = vector.load %arg14[%c2_346, %c0_347, %c0_348, %c0_349] : memref<3x3x1x32xf32, #tpu.memory_space<vmem>>, vector<1x1x1x32xf32>
    %594 = vector.shape_cast %593 : vector<1x1x1x32xf32> to vector<1x32xf32>
    %595 = vector.broadcast %594 : vector<1x32xf32> to vector<56x32xf32>
    %596 = arith.mulf %592, %595 : vector<56x32xf32>
    %c2_350 = arith.constant 2 : index
    %c0_351 = arith.constant 0 : index
    %c0_352 = arith.constant 0 : index
    %c0_353 = arith.constant 0 : index
    %597 = vector.load %arg15[%c2_350, %c0_351, %c0_352, %c0_353] : memref<3x3x1x32xf32, #tpu.memory_space<vmem>>, vector<1x1x1x32xf32>
    %598 = vector.shape_cast %597 : vector<1x1x1x32xf32> to vector<1x32xf32>
    %599 = vector.broadcast %598 : vector<1x32xf32> to vector<56x32xf32>
    %600 = arith.addf %596, %599 : vector<56x32xf32>
    %601 = vector.extract_strided_slice %551 {offsets = [0, 64], sizes = [56, 32], strides = [1, 1]} : vector<56x128xf32> to vector<56x32xf32>
    %602 = arith.addf %601, %600 : vector<56x32xf32>
    %c2_354 = arith.constant 2 : index
    %c1_355 = arith.constant 1 : index
    %c0_356 = arith.constant 0 : index
    %c0_357 = arith.constant 0 : index
    %603 = vector.load %arg12[%c2_354, %c1_355, %c0_356, %c0_357] : memref<3x3x96x32xbf16, #tpu.memory_space<vmem>>, vector<1x1x96x32xbf16>
    %604 = vector.shape_cast %603 : vector<1x1x96x32xbf16> to vector<96x32xbf16>
    %c4_i32_358 = arith.constant 4 : i32
    %605 = tpu.dynamic_rotate %602 by %c4_i32_358 dim 0 : vector<56x32xf32>, i32 -> vector<56x32xf32>
    %c-4_i32_359 = arith.constant -4 : i32
    %606 = vector.broadcast %c-4_i32_359 : i32 to vector<56x1xi32>
    %607 = arith.addi %0, %606 : vector<56x1xi32>
    %c0_i32_360 = arith.constant 0 : i32
    %608 = vector.broadcast %c0_i32_360 : i32 to vector<56x1xi32>
    %609 = arith.cmpi sge, %607, %608 : vector<56x1xi32>
    %c-4_i32_361 = arith.constant -4 : i32
    %610 = vector.broadcast %c-4_i32_361 : i32 to vector<56x1xi32>
    %611 = arith.addi %0, %610 : vector<56x1xi32>
    %c56_i32_362 = arith.constant 56 : i32
    %612 = vector.broadcast %c56_i32_362 : i32 to vector<56x1xi32>
    %613 = arith.cmpi slt, %611, %612 : vector<56x1xi32>
    %614 = arith.andi %609, %613 : vector<56x1xi1>
    %cst_363 = arith.constant 0.000000e+00 : f32
    %615 = vector.shape_cast %614 : vector<56x1xi1> to vector<56x1xi1>
    %616 = vector.broadcast %615 : vector<56x1xi1> to vector<56x32xi1>
    %617 = vector.broadcast %cst_363 : f32 to vector<56x32xf32>
    %618 = arith.select %616, %605, %617 : vector<56x32xi1>, vector<56x32xf32>
    %c52_i32_364 = arith.constant 52 : i32
    %619 = tpu.dynamic_rotate %602 by %c52_i32_364 dim 0 : vector<56x32xf32>, i32 -> vector<56x32xf32>
    %c4_i32_365 = arith.constant 4 : i32
    %620 = vector.broadcast %c4_i32_365 : i32 to vector<56x1xi32>
    %621 = arith.addi %0, %620 : vector<56x1xi32>
    %c0_i32_366 = arith.constant 0 : i32
    %622 = vector.broadcast %c0_i32_366 : i32 to vector<56x1xi32>
    %623 = arith.cmpi sge, %621, %622 : vector<56x1xi32>
    %c4_i32_367 = arith.constant 4 : i32
    %624 = vector.broadcast %c4_i32_367 : i32 to vector<56x1xi32>
    %625 = arith.addi %0, %624 : vector<56x1xi32>
    %c56_i32_368 = arith.constant 56 : i32
    %626 = vector.broadcast %c56_i32_368 : i32 to vector<56x1xi32>
    %627 = arith.cmpi slt, %625, %626 : vector<56x1xi32>
    %628 = arith.andi %623, %627 : vector<56x1xi1>
    %cst_369 = arith.constant 0.000000e+00 : f32
    %629 = vector.shape_cast %628 : vector<56x1xi1> to vector<56x1xi1>
    %630 = vector.broadcast %629 : vector<56x1xi1> to vector<56x32xi1>
    %631 = vector.broadcast %cst_369 : f32 to vector<56x32xf32>
    %632 = arith.select %630, %619, %631 : vector<56x32xi1>, vector<56x32xf32>
    %633 = tpu.concatenate %618, %602, %632 in 1 : vector<56x32xf32>, vector<56x32xf32>, vector<56x32xf32> -> vector<56x96xf32>
    %634 = arith.truncf %633 : vector<56x96xf32> to vector<56x96xbf16>
    %cst_370 = arith.constant dense<0.000000e+00> : vector<56x32xf32>
    %635 = tpu.matmul %634, %604, %cst_370 {dimension_numbers = #tpu.dot_dimension_numbers<[1], [0], [0], [1], [0, 0, 1, 1], [], []>} : vector<56x96xbf16>, vector<96x32xbf16>, vector<56x32xf32> -> vector<56x32xf32>
    %c2_371 = arith.constant 2 : index
    %c1_372 = arith.constant 1 : index
    %c0_373 = arith.constant 0 : index
    %c0_374 = arith.constant 0 : index
    %636 = vector.load %arg13[%c2_371, %c1_372, %c0_373, %c0_374] : memref<3x3x1x32xf32, #tpu.memory_space<vmem>>, vector<1x1x1x32xf32>
    %637 = vector.shape_cast %636 : vector<1x1x1x32xf32> to vector<1x32xf32>
    %638 = vector.broadcast %637 : vector<1x32xf32> to vector<56x32xf32>
    %639 = arith.addf %635, %638 : vector<56x32xf32>
    %cst_375 = arith.constant 0.000000e+00 : f32
    %640 = vector.broadcast %cst_375 : f32 to vector<56x32xf32>
    %641 = arith.maximumf %639, %640 : vector<56x32xf32>
    %c2_376 = arith.constant 2 : index
    %c1_377 = arith.constant 1 : index
    %c0_378 = arith.constant 0 : index
    %c0_379 = arith.constant 0 : index
    %642 = vector.load %arg14[%c2_376, %c1_377, %c0_378, %c0_379] : memref<3x3x1x32xf32, #tpu.memory_space<vmem>>, vector<1x1x1x32xf32>
    %643 = vector.shape_cast %642 : vector<1x1x1x32xf32> to vector<1x32xf32>
    %644 = vector.broadcast %643 : vector<1x32xf32> to vector<56x32xf32>
    %645 = arith.mulf %641, %644 : vector<56x32xf32>
    %c2_380 = arith.constant 2 : index
    %c1_381 = arith.constant 1 : index
    %c0_382 = arith.constant 0 : index
    %c0_383 = arith.constant 0 : index
    %646 = vector.load %arg15[%c2_380, %c1_381, %c0_382, %c0_383] : memref<3x3x1x32xf32, #tpu.memory_space<vmem>>, vector<1x1x1x32xf32>
    %647 = vector.shape_cast %646 : vector<1x1x1x32xf32> to vector<1x32xf32>
    %648 = vector.broadcast %647 : vector<1x32xf32> to vector<56x32xf32>
    %649 = arith.addf %645, %648 : vector<56x32xf32>
    %650 = vector.extract_strided_slice %551 {offsets = [0, 96], sizes = [56, 32], strides = [1, 1]} : vector<56x128xf32> to vector<56x32xf32>
    %651 = arith.addf %650, %649 : vector<56x32xf32>
    %c2_384 = arith.constant 2 : index
    %c2_385 = arith.constant 2 : index
    %c0_386 = arith.constant 0 : index
    %c0_387 = arith.constant 0 : index
    %652 = vector.load %arg12[%c2_384, %c2_385, %c0_386, %c0_387] : memref<3x3x96x32xbf16, #tpu.memory_space<vmem>>, vector<1x1x96x32xbf16>
    %653 = vector.shape_cast %652 : vector<1x1x96x32xbf16> to vector<96x32xbf16>
    %c4_i32_388 = arith.constant 4 : i32
    %654 = tpu.dynamic_rotate %651 by %c4_i32_388 dim 0 : vector<56x32xf32>, i32 -> vector<56x32xf32>
    %c-4_i32_389 = arith.constant -4 : i32
    %655 = vector.broadcast %c-4_i32_389 : i32 to vector<56x1xi32>
    %656 = arith.addi %0, %655 : vector<56x1xi32>
    %c0_i32_390 = arith.constant 0 : i32
    %657 = vector.broadcast %c0_i32_390 : i32 to vector<56x1xi32>
    %658 = arith.cmpi sge, %656, %657 : vector<56x1xi32>
    %c-4_i32_391 = arith.constant -4 : i32
    %659 = vector.broadcast %c-4_i32_391 : i32 to vector<56x1xi32>
    %660 = arith.addi %0, %659 : vector<56x1xi32>
    %c56_i32_392 = arith.constant 56 : i32
    %661 = vector.broadcast %c56_i32_392 : i32 to vector<56x1xi32>
    %662 = arith.cmpi slt, %660, %661 : vector<56x1xi32>
    %663 = arith.andi %658, %662 : vector<56x1xi1>
    %cst_393 = arith.constant 0.000000e+00 : f32
    %664 = vector.shape_cast %663 : vector<56x1xi1> to vector<56x1xi1>
    %665 = vector.broadcast %664 : vector<56x1xi1> to vector<56x32xi1>
    %666 = vector.broadcast %cst_393 : f32 to vector<56x32xf32>
    %667 = arith.select %665, %654, %666 : vector<56x32xi1>, vector<56x32xf32>
    %c52_i32_394 = arith.constant 52 : i32
    %668 = tpu.dynamic_rotate %651 by %c52_i32_394 dim 0 : vector<56x32xf32>, i32 -> vector<56x32xf32>
    %c4_i32_395 = arith.constant 4 : i32
    %669 = vector.broadcast %c4_i32_395 : i32 to vector<56x1xi32>
    %670 = arith.addi %0, %669 : vector<56x1xi32>
    %c0_i32_396 = arith.constant 0 : i32
    %671 = vector.broadcast %c0_i32_396 : i32 to vector<56x1xi32>
    %672 = arith.cmpi sge, %670, %671 : vector<56x1xi32>
    %c4_i32_397 = arith.constant 4 : i32
    %673 = vector.broadcast %c4_i32_397 : i32 to vector<56x1xi32>
    %674 = arith.addi %0, %673 : vector<56x1xi32>
    %c56_i32_398 = arith.constant 56 : i32
    %675 = vector.broadcast %c56_i32_398 : i32 to vector<56x1xi32>
    %676 = arith.cmpi slt, %674, %675 : vector<56x1xi32>
    %677 = arith.andi %672, %676 : vector<56x1xi1>
    %cst_399 = arith.constant 0.000000e+00 : f32
    %678 = vector.shape_cast %677 : vector<56x1xi1> to vector<56x1xi1>
    %679 = vector.broadcast %678 : vector<56x1xi1> to vector<56x32xi1>
    %680 = vector.broadcast %cst_399 : f32 to vector<56x32xf32>
    %681 = arith.select %679, %668, %680 : vector<56x32xi1>, vector<56x32xf32>
    %682 = tpu.concatenate %667, %651, %681 in 1 : vector<56x32xf32>, vector<56x32xf32>, vector<56x32xf32> -> vector<56x96xf32>
    %683 = arith.truncf %682 : vector<56x96xf32> to vector<56x96xbf16>
    %cst_400 = arith.constant dense<0.000000e+00> : vector<56x32xf32>
    %684 = tpu.matmul %683, %653, %cst_400 {dimension_numbers = #tpu.dot_dimension_numbers<[1], [0], [0], [1], [0, 0, 1, 1], [], []>} : vector<56x96xbf16>, vector<96x32xbf16>, vector<56x32xf32> -> vector<56x32xf32>
    %c2_401 = arith.constant 2 : index
    %c2_402 = arith.constant 2 : index
    %c0_403 = arith.constant 0 : index
    %c0_404 = arith.constant 0 : index
    %685 = vector.load %arg13[%c2_401, %c2_402, %c0_403, %c0_404] : memref<3x3x1x32xf32, #tpu.memory_space<vmem>>, vector<1x1x1x32xf32>
    %686 = vector.shape_cast %685 : vector<1x1x1x32xf32> to vector<1x32xf32>
    %687 = vector.broadcast %686 : vector<1x32xf32> to vector<56x32xf32>
    %688 = arith.addf %684, %687 : vector<56x32xf32>
    %cst_405 = arith.constant 0.000000e+00 : f32
    %689 = vector.broadcast %cst_405 : f32 to vector<56x32xf32>
    %690 = arith.maximumf %688, %689 : vector<56x32xf32>
    %c2_406 = arith.constant 2 : index
    %c2_407 = arith.constant 2 : index
    %c0_408 = arith.constant 0 : index
    %c0_409 = arith.constant 0 : index
    %691 = vector.load %arg14[%c2_406, %c2_407, %c0_408, %c0_409] : memref<3x3x1x32xf32, #tpu.memory_space<vmem>>, vector<1x1x1x32xf32>
    %692 = vector.shape_cast %691 : vector<1x1x1x32xf32> to vector<1x32xf32>
    %693 = vector.broadcast %692 : vector<1x32xf32> to vector<56x32xf32>
    %694 = arith.mulf %690, %693 : vector<56x32xf32>
    %c2_410 = arith.constant 2 : index
    %c2_411 = arith.constant 2 : index
    %c0_412 = arith.constant 0 : index
    %c0_413 = arith.constant 0 : index
    %695 = vector.load %arg15[%c2_410, %c2_411, %c0_412, %c0_413] : memref<3x3x1x32xf32, #tpu.memory_space<vmem>>, vector<1x1x1x32xf32>
    %696 = vector.shape_cast %695 : vector<1x1x1x32xf32> to vector<1x32xf32>
    %697 = vector.broadcast %696 : vector<1x32xf32> to vector<56x32xf32>
    %698 = arith.addf %694, %697 : vector<56x32xf32>
    %699 = tpu.concatenate %552, %600, %649, %698 in 1 : vector<56x32xf32>, vector<56x32xf32>, vector<56x32xf32>, vector<56x32xf32> -> vector<56x128xf32>
    %700 = arith.truncf %699 : vector<56x128xf32> to vector<56x128xbf16>
    %c2_414 = arith.constant 2 : index
    %c0_415 = arith.constant 0 : index
    %c0_416 = arith.constant 0 : index
    %701 = vector.load %arg16[%c2_414, %c0_415, %c0_416] : memref<3x128x128xbf16, #tpu.memory_space<vmem>>, vector<1x128x128xbf16>
    %702 = vector.shape_cast %701 : vector<1x128x128xbf16> to vector<128x128xbf16>
    %cst_417 = arith.constant dense<0.000000e+00> : vector<56x128xf32>
    %703 = tpu.matmul %700, %702, %cst_417 {dimension_numbers = #tpu.dot_dimension_numbers<[1], [0], [0], [1], [0, 0, 1, 1], [], []>} : vector<56x128xbf16>, vector<128x128xbf16>, vector<56x128xf32> -> vector<56x128xf32>
    %c2_418 = arith.constant 2 : index
    %c0_419 = arith.constant 0 : index
    %c0_420 = arith.constant 0 : index
    %704 = vector.load %arg17[%c2_418, %c0_419, %c0_420] : memref<3x1x128xf32, #tpu.memory_space<vmem>>, vector<1x1x128xf32>
    %705 = vector.shape_cast %704 : vector<1x1x128xf32> to vector<1x128xf32>
    %706 = vector.broadcast %705 : vector<1x128xf32> to vector<56x128xf32>
    %707 = arith.addf %703, %706 : vector<56x128xf32>
    %cst_421 = arith.constant 0.000000e+00 : f32
    %708 = vector.broadcast %cst_421 : f32 to vector<56x128xf32>
    %709 = arith.maximumf %707, %708 : vector<56x128xf32>
    %c2_422 = arith.constant 2 : index
    %c0_423 = arith.constant 0 : index
    %c0_424 = arith.constant 0 : index
    %710 = vector.load %arg18[%c2_422, %c0_423, %c0_424] : memref<3x1x128xf32, #tpu.memory_space<vmem>>, vector<1x1x128xf32>
    %711 = vector.shape_cast %710 : vector<1x1x128xf32> to vector<1x128xf32>
    %712 = vector.broadcast %711 : vector<1x128xf32> to vector<56x128xf32>
    %713 = arith.mulf %709, %712 : vector<56x128xf32>
    %c2_425 = arith.constant 2 : index
    %c0_426 = arith.constant 0 : index
    %c0_427 = arith.constant 0 : index
    %714 = vector.load %arg19[%c2_425, %c0_426, %c0_427] : memref<3x1x128xf32, #tpu.memory_space<vmem>>, vector<1x1x128xf32>
    %715 = vector.shape_cast %714 : vector<1x1x128xf32> to vector<1x128xf32>
    %716 = vector.broadcast %715 : vector<1x128xf32> to vector<56x128xf32>
    %717 = arith.addf %713, %716 : vector<56x128xf32>
    %cst_428 = arith.constant dense<0.000000e+00> : vector<128xf32>
    %718 = vector.multi_reduction <add>, %717, %cst_428 [0] : vector<56x128xf32> to vector<128xf32>
    %719 = vector.shape_cast %718 : vector<128xf32> to vector<1x128xf32>
    %cst_429 = arith.constant 5.600000e+01 : f32
    %720 = vector.broadcast %cst_429 : f32 to vector<1x128xf32>
    %721 = arith.divf %719, %720 : vector<1x128xf32>
    %722 = arith.truncf %721 : vector<1x128xf32> to vector<1x128xbf16>
    %c2_430 = arith.constant 2 : index
    %c0_431 = arith.constant 0 : index
    %c0_432 = arith.constant 0 : index
    %723 = vector.load %arg20[%c2_430, %c0_431, %c0_432] : memref<3x128x32xbf16, #tpu.memory_space<vmem>>, vector<1x128x32xbf16>
    %724 = vector.shape_cast %723 : vector<1x128x32xbf16> to vector<128x32xbf16>
    %cst_433 = arith.constant dense<0.000000e+00> : vector<1x32xf32>
    %725 = tpu.matmul %722, %724, %cst_433 {dimension_numbers = #tpu.dot_dimension_numbers<[1], [0], [0], [1], [0, 0, 1, 1], [], []>} : vector<1x128xbf16>, vector<128x32xbf16>, vector<1x32xf32> -> vector<1x32xf32>
    %c2_434 = arith.constant 2 : index
    %c0_435 = arith.constant 0 : index
    %c0_436 = arith.constant 0 : index
    %726 = vector.load %arg21[%c2_434, %c0_435, %c0_436] : memref<3x1x32xf32, #tpu.memory_space<vmem>>, vector<1x1x32xf32>
    %727 = vector.shape_cast %726 : vector<1x1x32xf32> to vector<1x32xf32>
    %728 = arith.addf %725, %727 : vector<1x32xf32>
    %cst_437 = arith.constant 0.000000e+00 : f32
    %729 = vector.broadcast %cst_437 : f32 to vector<1x32xf32>
    %730 = arith.maximumf %728, %729 : vector<1x32xf32>
    %731 = arith.truncf %730 : vector<1x32xf32> to vector<1x32xbf16>
    %c2_438 = arith.constant 2 : index
    %c0_439 = arith.constant 0 : index
    %c0_440 = arith.constant 0 : index
    %732 = vector.load %arg22[%c2_438, %c0_439, %c0_440] : memref<3x32x128xbf16, #tpu.memory_space<vmem>>, vector<1x32x128xbf16>
    %733 = vector.shape_cast %732 : vector<1x32x128xbf16> to vector<32x128xbf16>
    %cst_441 = arith.constant dense<0.000000e+00> : vector<1x128xf32>
    %734 = tpu.matmul %731, %733, %cst_441 {dimension_numbers = #tpu.dot_dimension_numbers<[1], [0], [0], [1], [0, 0, 1, 1], [], []>} : vector<1x32xbf16>, vector<32x128xbf16>, vector<1x128xf32> -> vector<1x128xf32>
    %c2_442 = arith.constant 2 : index
    %c0_443 = arith.constant 0 : index
    %c0_444 = arith.constant 0 : index
    %735 = vector.load %arg23[%c2_442, %c0_443, %c0_444] : memref<3x1x128xf32, #tpu.memory_space<vmem>>, vector<1x1x128xf32>
    %736 = vector.shape_cast %735 : vector<1x1x128xf32> to vector<1x128xf32>
    %737 = arith.addf %734, %736 : vector<1x128xf32>
    %738 = arith.negf %737 : vector<1x128xf32>
    %739 = math.exp %738 : vector<1x128xf32>
    %cst_445 = arith.constant 1.000000e+00 : f32
    %740 = vector.broadcast %cst_445 : f32 to vector<1x128xf32>
    %741 = arith.addf %740, %739 : vector<1x128xf32>
    %742 = arith.divf %740, %741 : vector<1x128xf32>
    %743 = vector.broadcast %742 : vector<1x128xf32> to vector<56x128xf32>
    %744 = arith.mulf %717, %743 : vector<56x128xf32>
    %745 = arith.addf %744, %528 : vector<56x128xf32>
    %746 = arith.truncf %745 : vector<56x128xf32> to vector<56x128xbf16>
    %c2_446 = arith.constant 2 : index
    %c0_447 = arith.constant 0 : index
    %c0_448 = arith.constant 0 : index
    %747 = vector.load %arg24[%c2_446, %c0_447, %c0_448] : memref<3x128x384xbf16, #tpu.memory_space<vmem>>, vector<1x128x384xbf16>
    %748 = vector.shape_cast %747 : vector<1x128x384xbf16> to vector<128x384xbf16>
    %cst_449 = arith.constant dense<0.000000e+00> : vector<56x384xf32>
    %749 = tpu.matmul %746, %748, %cst_449 {dimension_numbers = #tpu.dot_dimension_numbers<[1], [0], [0], [1], [0, 0, 1, 1], [], []>} : vector<56x128xbf16>, vector<128x384xbf16>, vector<56x384xf32> -> vector<56x384xf32>
    %750 = arith.addf %533, %749 : vector<56x384xf32>
    %c0_450 = arith.constant 0 : index
    %c0_451 = arith.constant 0 : index
    %751 = vector.load %arg25[%c0_450, %c0_451] : memref<1x384xf32, #tpu.memory_space<vmem>>, vector<1x384xf32>
    %752 = vector.broadcast %751 : vector<1x384xf32> to vector<56x384xf32>
    %753 = arith.addf %750, %752 : vector<56x384xf32>
    %cst_452 = arith.constant 0.000000e+00 : f32
    %754 = vector.broadcast %cst_452 : f32 to vector<56x384xf32>
    %755 = arith.maximumf %753, %754 : vector<56x384xf32>
    %c0_453 = arith.constant 0 : index
    %c0_454 = arith.constant 0 : index
    %756 = vector.load %arg26[%c0_453, %c0_454] : memref<1x384xf32, #tpu.memory_space<vmem>>, vector<1x384xf32>
    %757 = vector.broadcast %756 : vector<1x384xf32> to vector<56x384xf32>
    %758 = arith.mulf %755, %757 : vector<56x384xf32>
    %c0_455 = arith.constant 0 : index
    %c0_456 = arith.constant 0 : index
    %759 = vector.load %arg27[%c0_455, %c0_456] : memref<1x384xf32, #tpu.memory_space<vmem>>, vector<1x384xf32>
    %760 = vector.broadcast %759 : vector<1x384xf32> to vector<56x384xf32>
    %761 = arith.addf %758, %760 : vector<56x384xf32>
    %cst_457 = arith.constant dense<0.000000e+00> : vector<384xf32>
    %762 = vector.multi_reduction <add>, %761, %cst_457 [0] : vector<56x384xf32> to vector<384xf32>
    %763 = vector.shape_cast %762 : vector<384xf32> to vector<1x384xf32>
    %cst_458 = arith.constant 5.600000e+01 : f32
    %764 = vector.broadcast %cst_458 : f32 to vector<1x384xf32>
    %765 = arith.divf %763, %764 : vector<1x384xf32>
    %766 = arith.mulf %761, %761 : vector<56x384xf32>
    %cst_459 = arith.constant dense<0.000000e+00> : vector<384xf32>
    %767 = vector.multi_reduction <add>, %766, %cst_459 [0] : vector<56x384xf32> to vector<384xf32>
    %768 = vector.shape_cast %767 : vector<384xf32> to vector<1x384xf32>
    %cst_460 = arith.constant 5.600000e+01 : f32
    %769 = vector.broadcast %cst_460 : f32 to vector<1x384xf32>
    %770 = arith.divf %768, %769 : vector<1x384xf32>
    %771 = arith.mulf %765, %765 : vector<1x384xf32>
    %772 = arith.subf %770, %771 : vector<1x384xf32>
    %cst_461 = arith.constant 9.99999996E-13 : f32
    %773 = vector.broadcast %cst_461 : f32 to vector<1x384xf32>
    %774 = arith.maximumf %772, %773 : vector<1x384xf32>
    %775 = math.sqrt %774 : vector<1x384xf32>
    %776 = arith.truncf %761 : vector<56x384xf32> to vector<56x384xbf16>
    %c0_462 = arith.constant 0 : index
    %c0_463 = arith.constant 0 : index
    %c0_464 = arith.constant 0 : index
    %777 = vector.load %arg28[%c0_462, %c0_463, %c0_464] : memref<3x384x128xbf16, #tpu.memory_space<vmem>>, vector<1x384x128xbf16>
    %778 = vector.shape_cast %777 : vector<1x384x128xbf16> to vector<384x128xbf16>
    %cst_465 = arith.constant dense<0.000000e+00> : vector<56x128xf32>
    %779 = tpu.matmul %776, %778, %cst_465 {dimension_numbers = #tpu.dot_dimension_numbers<[1], [0], [0], [1], [0, 0, 1, 1], [], []>} : vector<56x384xbf16>, vector<384x128xbf16>, vector<56x128xf32> -> vector<56x128xf32>
    %780 = arith.truncf %765 : vector<1x384xf32> to vector<1x384xbf16>
    %c1_466 = arith.constant 1 : index
    %c0_467 = arith.constant 0 : index
    %c0_468 = arith.constant 0 : index
    %781 = vector.load %arg28[%c1_466, %c0_467, %c0_468] : memref<3x384x128xbf16, #tpu.memory_space<vmem>>, vector<1x384x128xbf16>
    %782 = vector.shape_cast %781 : vector<1x384x128xbf16> to vector<384x128xbf16>
    %cst_469 = arith.constant dense<0.000000e+00> : vector<1x128xf32>
    %783 = tpu.matmul %780, %782, %cst_469 {dimension_numbers = #tpu.dot_dimension_numbers<[1], [0], [0], [1], [0, 0, 1, 1], [], []>} : vector<1x384xbf16>, vector<384x128xbf16>, vector<1x128xf32> -> vector<1x128xf32>
    %784 = vector.broadcast %783 : vector<1x128xf32> to vector<56x128xf32>
    %785 = arith.addf %779, %784 : vector<56x128xf32>
    %786 = arith.truncf %775 : vector<1x384xf32> to vector<1x384xbf16>
    %c2_470 = arith.constant 2 : index
    %c0_471 = arith.constant 0 : index
    %c0_472 = arith.constant 0 : index
    %787 = vector.load %arg28[%c2_470, %c0_471, %c0_472] : memref<3x384x128xbf16, #tpu.memory_space<vmem>>, vector<1x384x128xbf16>
    %788 = vector.shape_cast %787 : vector<1x384x128xbf16> to vector<384x128xbf16>
    %cst_473 = arith.constant dense<0.000000e+00> : vector<1x128xf32>
    %789 = tpu.matmul %786, %788, %cst_473 {dimension_numbers = #tpu.dot_dimension_numbers<[1], [0], [0], [1], [0, 0, 1, 1], [], []>} : vector<1x384xbf16>, vector<384x128xbf16>, vector<1x128xf32> -> vector<1x128xf32>
    %790 = vector.broadcast %789 : vector<1x128xf32> to vector<56x128xf32>
    %791 = arith.addf %785, %790 : vector<56x128xf32>
    %c0_474 = arith.constant 0 : index
    %c0_475 = arith.constant 0 : index
    %792 = vector.load %arg29[%c0_474, %c0_475] : memref<1x128xf32, #tpu.memory_space<vmem>>, vector<1x128xf32>
    %793 = vector.broadcast %792 : vector<1x128xf32> to vector<56x128xf32>
    %794 = arith.addf %791, %793 : vector<56x128xf32>
    %cst_476 = arith.constant 0.000000e+00 : f32
    %795 = vector.broadcast %cst_476 : f32 to vector<56x128xf32>
    %796 = arith.maximumf %794, %795 : vector<56x128xf32>
    %c0_477 = arith.constant 0 : index
    %c0_478 = arith.constant 0 : index
    %797 = vector.load %arg30[%c0_477, %c0_478] : memref<1x128xf32, #tpu.memory_space<vmem>>, vector<1x128xf32>
    %798 = vector.broadcast %797 : vector<1x128xf32> to vector<56x128xf32>
    %799 = arith.mulf %796, %798 : vector<56x128xf32>
    %c0_479 = arith.constant 0 : index
    %c0_480 = arith.constant 0 : index
    %800 = vector.load %arg31[%c0_479, %c0_480] : memref<1x128xf32, #tpu.memory_space<vmem>>, vector<1x128xf32>
    %801 = vector.broadcast %800 : vector<1x128xf32> to vector<56x128xf32>
    %802 = arith.addf %799, %801 : vector<56x128xf32>
    %803 = math.tanh %802 : vector<56x128xf32>
    %804 = arith.truncf %803 : vector<56x128xf32> to vector<56x128xbf16>
    %c0_481 = arith.constant 0 : index
    %c0_482 = arith.constant 0 : index
    %805 = vector.load %arg32[%c0_481, %c0_482] : memref<128x384xbf16, #tpu.memory_space<vmem>>, vector<128x384xbf16>
    %cst_483 = arith.constant dense<0.000000e+00> : vector<56x384xf32>
    %806 = tpu.matmul %804, %805, %cst_483 {dimension_numbers = #tpu.dot_dimension_numbers<[1], [0], [0], [1], [0, 0, 1, 1], [], []>} : vector<56x128xbf16>, vector<128x384xbf16>, vector<56x384xf32> -> vector<56x384xf32>
    %c0_484 = arith.constant 0 : index
    %c0_485 = arith.constant 0 : index
    %807 = vector.load %arg33[%c0_484, %c0_485] : memref<1x384xf32, #tpu.memory_space<vmem>>, vector<1x384xf32>
    %808 = vector.broadcast %807 : vector<1x384xf32> to vector<56x384xf32>
    %809 = arith.addf %806, %808 : vector<56x384xf32>
    %cst_486 = arith.constant dense<0xFF800000> : vector<384xf32>
    %810 = vector.multi_reduction <maximumf>, %809, %cst_486 [0] : vector<56x384xf32> to vector<384xf32>
    %811 = vector.shape_cast %810 : vector<384xf32> to vector<1x384xf32>
    %812 = vector.broadcast %811 : vector<1x384xf32> to vector<56x384xf32>
    %813 = arith.subf %809, %812 : vector<56x384xf32>
    %814 = math.exp %813 : vector<56x384xf32>
    %cst_487 = arith.constant dense<0.000000e+00> : vector<384xf32>
    %815 = vector.multi_reduction <add>, %814, %cst_487 [0] : vector<56x384xf32> to vector<384xf32>
    %816 = vector.shape_cast %815 : vector<384xf32> to vector<1x384xf32>
    %817 = tpu.reciprocal %816 {approx = true} : vector<1x384xf32> -> vector<1x384xf32>
    %818 = vector.broadcast %817 : vector<1x384xf32> to vector<56x384xf32>
    %819 = arith.mulf %814, %818 : vector<56x384xf32>
    %820 = arith.mulf %819, %761 : vector<56x384xf32>
    %cst_488 = arith.constant dense<0.000000e+00> : vector<384xf32>
    %821 = vector.multi_reduction <add>, %820, %cst_488 [0] : vector<56x384xf32> to vector<384xf32>
    %822 = vector.shape_cast %821 : vector<384xf32> to vector<1x384xf32>
    %823 = arith.mulf %819, %761 : vector<56x384xf32>
    %824 = arith.mulf %823, %761 : vector<56x384xf32>
    %cst_489 = arith.constant dense<0.000000e+00> : vector<384xf32>
    %825 = vector.multi_reduction <add>, %824, %cst_489 [0] : vector<56x384xf32> to vector<384xf32>
    %826 = vector.shape_cast %825 : vector<384xf32> to vector<1x384xf32>
    %827 = arith.mulf %822, %822 : vector<1x384xf32>
    %828 = arith.subf %826, %827 : vector<1x384xf32>
    %cst_490 = arith.constant 9.99999996E-13 : f32
    %829 = vector.broadcast %cst_490 : f32 to vector<1x384xf32>
    %830 = arith.maximumf %828, %829 : vector<1x384xf32>
    %831 = math.sqrt %830 : vector<1x384xf32>
    %c0_491 = arith.constant 0 : index
    %c0_492 = arith.constant 0 : index
    %832 = vector.load %arg34[%c0_491, %c0_492] : memref<1x768xf32, #tpu.memory_space<vmem>>, vector<1x384xf32>
    %833 = arith.mulf %822, %832 : vector<1x384xf32>
    %c0_493 = arith.constant 0 : index
    %c0_494 = arith.constant 0 : index
    %834 = vector.load %arg35[%c0_493, %c0_494] : memref<1x768xf32, #tpu.memory_space<vmem>>, vector<1x384xf32>
    %835 = arith.addf %833, %834 : vector<1x384xf32>
    %c0_495 = arith.constant 0 : index
    %c384 = arith.constant 384 : index
    %836 = vector.load %arg34[%c0_495, %c384] : memref<1x768xf32, #tpu.memory_space<vmem>>, vector<1x384xf32>
    %837 = arith.mulf %831, %836 : vector<1x384xf32>
    %c0_496 = arith.constant 0 : index
    %c384_497 = arith.constant 384 : index
    %838 = vector.load %arg35[%c0_496, %c384_497] : memref<1x768xf32, #tpu.memory_space<vmem>>, vector<1x384xf32>
    %839 = arith.addf %837, %838 : vector<1x384xf32>
    %840 = arith.truncf %835 : vector<1x384xf32> to vector<1x384xbf16>
    %c0_498 = arith.constant 0 : index
    %c0_499 = arith.constant 0 : index
    %841 = vector.load %arg36[%c0_498, %c0_499] : memref<768x128xbf16, #tpu.memory_space<vmem>>, vector<384x128xbf16>
    %cst_500 = arith.constant dense<0.000000e+00> : vector<1x128xf32>
    %842 = tpu.matmul %840, %841, %cst_500 {dimension_numbers = #tpu.dot_dimension_numbers<[1], [0], [0], [1], [0, 0, 1, 1], [], []>} : vector<1x384xbf16>, vector<384x128xbf16>, vector<1x128xf32> -> vector<1x128xf32>
    %843 = arith.truncf %839 : vector<1x384xf32> to vector<1x384xbf16>
    %c384_501 = arith.constant 384 : index
    %c0_502 = arith.constant 0 : index
    %844 = vector.load %arg36[%c384_501, %c0_502] : memref<768x128xbf16, #tpu.memory_space<vmem>>, vector<384x128xbf16>
    %cst_503 = arith.constant dense<0.000000e+00> : vector<1x128xf32>
    %845 = tpu.matmul %843, %844, %cst_503 {dimension_numbers = #tpu.dot_dimension_numbers<[1], [0], [0], [1], [0, 0, 1, 1], [], []>} : vector<1x384xbf16>, vector<384x128xbf16>, vector<1x128xf32> -> vector<1x128xf32>
    %846 = arith.addf %842, %845 : vector<1x128xf32>
    %c0_504 = arith.constant 0 : index
    %c0_505 = arith.constant 0 : index
    %847 = vector.load %arg37[%c0_504, %c0_505] : memref<1x128xf32, #tpu.memory_space<vmem>>, vector<1x128xf32>
    %848 = arith.addf %846, %847 : vector<1x128xf32>
    %c0_506 = arith.constant 0 : index
    %c0_507 = arith.constant 0 : index
    %c0_508 = arith.constant 0 : index
    %849 = vector.load %arg38[%c0_506, %c0_507, %c0_508] : memref<1x1x128xf32, #tpu.memory_space<vmem>>, vector<1x1x128xf32>
    %850 = vector.shape_cast %849 : vector<1x1x128xf32> to vector<1x128xf32>
    %851 = vector.shape_cast %848 : vector<1x128xf32> to vector<1x1x128xf32>
    tpu.vector_store %arg38[%c0_506, %c0_507, %c0_508], %851 {strides = array<i32>} : memref<1x1x128xf32, #tpu.memory_space<vmem>>, vector<1x1x128xf32>,
    return
  }
  func.func @transform_0(%arg0: i32) -> (i32, i32, i32) {
    %c0_i32 = arith.constant 0 : i32
    %c0_i32_0 = arith.constant 0 : i32
    %c0_i32_1 = arith.constant 0 : i32
    return %arg0, %c0_i32, %c0_i32_0 : i32, i32, i32
  }
  func.func @transform_1(%arg0: i32) -> (i32, i32) {
    %c0_i32 = arith.constant 0 : i32
    %c0_i32_0 = arith.constant 0 : i32
    %c0_i32_1 = arith.constant 0 : i32
    return %c0_i32, %c0_i32_0 : i32, i32
  }
  func.func @transform_2(%arg0: i32) -> (i32, i32) {
    %c0_i32 = arith.constant 0 : i32
    %c0_i32_0 = arith.constant 0 : i32
    %c0_i32_1 = arith.constant 0 : i32
    return %c0_i32, %c0_i32_0 : i32, i32
  }
  func.func @transform_3(%arg0: i32) -> (i32, i32) {
    %c0_i32 = arith.constant 0 : i32
    %c0_i32_0 = arith.constant 0 : i32
    %c0_i32_1 = arith.constant 0 : i32
    return %c0_i32, %c0_i32_0 : i32, i32
  }
  func.func @transform_4(%arg0: i32) -> (i32, i32) {
    %c0_i32 = arith.constant 0 : i32
    %c0_i32_0 = arith.constant 0 : i32
    %c0_i32_1 = arith.constant 0 : i32
    return %c0_i32, %c0_i32_0 : i32, i32
  }
  func.func @transform_5(%arg0: i32) -> (i32, i32) {
    %c0_i32 = arith.constant 0 : i32
    %c0_i32_0 = arith.constant 0 : i32
    %c0_i32_1 = arith.constant 0 : i32
    return %c0_i32, %c0_i32_0 : i32, i32
  }
  func.func @transform_6(%arg0: i32) -> (i32, i32) {
    %c0_i32 = arith.constant 0 : i32
    %c0_i32_0 = arith.constant 0 : i32
    %c0_i32_1 = arith.constant 0 : i32
    return %c0_i32, %c0_i32_0 : i32, i32
  }
  func.func @transform_7(%arg0: i32) -> (i32, i32, i32) {
    %c0_i32 = arith.constant 0 : i32
    %c0_i32_0 = arith.constant 0 : i32
    %c0_i32_1 = arith.constant 0 : i32
    %c0_i32_2 = arith.constant 0 : i32
    return %c0_i32, %c0_i32_0, %c0_i32_1 : i32, i32, i32
  }
  func.func @transform_8(%arg0: i32) -> (i32, i32, i32) {
    %c0_i32 = arith.constant 0 : i32
    %c0_i32_0 = arith.constant 0 : i32
    %c0_i32_1 = arith.constant 0 : i32
    %c0_i32_2 = arith.constant 0 : i32
    return %c0_i32, %c0_i32_0, %c0_i32_1 : i32, i32, i32
  }
  func.func @transform_9(%arg0: i32) -> (i32, i32, i32) {
    %c0_i32 = arith.constant 0 : i32
    %c0_i32_0 = arith.constant 0 : i32
    %c0_i32_1 = arith.constant 0 : i32
    %c0_i32_2 = arith.constant 0 : i32
    return %c0_i32, %c0_i32_0, %c0_i32_1 : i32, i32, i32
  }
  func.func @transform_10(%arg0: i32) -> (i32, i32, i32) {
    %c0_i32 = arith.constant 0 : i32
    %c0_i32_0 = arith.constant 0 : i32
    %c0_i32_1 = arith.constant 0 : i32
    %c0_i32_2 = arith.constant 0 : i32
    return %c0_i32, %c0_i32_0, %c0_i32_1 : i32, i32, i32
  }
  func.func @transform_11(%arg0: i32) -> (i32, i32, i32, i32) {
    %c0_i32 = arith.constant 0 : i32
    %c0_i32_0 = arith.constant 0 : i32
    %c0_i32_1 = arith.constant 0 : i32
    %c0_i32_2 = arith.constant 0 : i32
    %c0_i32_3 = arith.constant 0 : i32
    return %c0_i32, %c0_i32_0, %c0_i32_1, %c0_i32_2 : i32, i32, i32, i32
  }
  func.func @transform_12(%arg0: i32) -> (i32, i32, i32, i32) {
    %c0_i32 = arith.constant 0 : i32
    %c0_i32_0 = arith.constant 0 : i32
    %c0_i32_1 = arith.constant 0 : i32
    %c0_i32_2 = arith.constant 0 : i32
    %c0_i32_3 = arith.constant 0 : i32
    return %c0_i32, %c0_i32_0, %c0_i32_1, %c0_i32_2 : i32, i32, i32, i32
  }
  func.func @transform_13(%arg0: i32) -> (i32, i32, i32, i32) {
    %c0_i32 = arith.constant 0 : i32
    %c0_i32_0 = arith.constant 0 : i32
    %c0_i32_1 = arith.constant 0 : i32
    %c0_i32_2 = arith.constant 0 : i32
    %c0_i32_3 = arith.constant 0 : i32
    return %c0_i32, %c0_i32_0, %c0_i32_1, %c0_i32_2 : i32, i32, i32, i32
  }
  func.func @transform_14(%arg0: i32) -> (i32, i32, i32, i32) {
    %c0_i32 = arith.constant 0 : i32
    %c0_i32_0 = arith.constant 0 : i32
    %c0_i32_1 = arith.constant 0 : i32
    %c0_i32_2 = arith.constant 0 : i32
    %c0_i32_3 = arith.constant 0 : i32
    return %c0_i32, %c0_i32_0, %c0_i32_1, %c0_i32_2 : i32, i32, i32, i32
  }
  func.func @transform_15(%arg0: i32) -> (i32, i32, i32) {
    %c0_i32 = arith.constant 0 : i32
    %c0_i32_0 = arith.constant 0 : i32
    %c0_i32_1 = arith.constant 0 : i32
    %c0_i32_2 = arith.constant 0 : i32
    return %c0_i32, %c0_i32_0, %c0_i32_1 : i32, i32, i32
  }
  func.func @transform_16(%arg0: i32) -> (i32, i32, i32) {
    %c0_i32 = arith.constant 0 : i32
    %c0_i32_0 = arith.constant 0 : i32
    %c0_i32_1 = arith.constant 0 : i32
    %c0_i32_2 = arith.constant 0 : i32
    return %c0_i32, %c0_i32_0, %c0_i32_1 : i32, i32, i32
  }
  func.func @transform_17(%arg0: i32) -> (i32, i32, i32) {
    %c0_i32 = arith.constant 0 : i32
    %c0_i32_0 = arith.constant 0 : i32
    %c0_i32_1 = arith.constant 0 : i32
    %c0_i32_2 = arith.constant 0 : i32
    return %c0_i32, %c0_i32_0, %c0_i32_1 : i32, i32, i32
  }
  func.func @transform_18(%arg0: i32) -> (i32, i32, i32) {
    %c0_i32 = arith.constant 0 : i32
    %c0_i32_0 = arith.constant 0 : i32
    %c0_i32_1 = arith.constant 0 : i32
    %c0_i32_2 = arith.constant 0 : i32
    return %c0_i32, %c0_i32_0, %c0_i32_1 : i32, i32, i32
  }
  func.func @transform_19(%arg0: i32) -> (i32, i32, i32) {
    %c0_i32 = arith.constant 0 : i32
    %c0_i32_0 = arith.constant 0 : i32
    %c0_i32_1 = arith.constant 0 : i32
    %c0_i32_2 = arith.constant 0 : i32
    return %c0_i32, %c0_i32_0, %c0_i32_1 : i32, i32, i32
  }
  func.func @transform_20(%arg0: i32) -> (i32, i32, i32) {
    %c0_i32 = arith.constant 0 : i32
    %c0_i32_0 = arith.constant 0 : i32
    %c0_i32_1 = arith.constant 0 : i32
    %c0_i32_2 = arith.constant 0 : i32
    return %c0_i32, %c0_i32_0, %c0_i32_1 : i32, i32, i32
  }
  func.func @transform_21(%arg0: i32) -> (i32, i32, i32) {
    %c0_i32 = arith.constant 0 : i32
    %c0_i32_0 = arith.constant 0 : i32
    %c0_i32_1 = arith.constant 0 : i32
    %c0_i32_2 = arith.constant 0 : i32
    return %c0_i32, %c0_i32_0, %c0_i32_1 : i32, i32, i32
  }
  func.func @transform_22(%arg0: i32) -> (i32, i32, i32) {
    %c0_i32 = arith.constant 0 : i32
    %c0_i32_0 = arith.constant 0 : i32
    %c0_i32_1 = arith.constant 0 : i32
    %c0_i32_2 = arith.constant 0 : i32
    return %c0_i32, %c0_i32_0, %c0_i32_1 : i32, i32, i32
  }
  func.func @transform_23(%arg0: i32) -> (i32, i32, i32) {
    %c0_i32 = arith.constant 0 : i32
    %c0_i32_0 = arith.constant 0 : i32
    %c0_i32_1 = arith.constant 0 : i32
    %c0_i32_2 = arith.constant 0 : i32
    return %c0_i32, %c0_i32_0, %c0_i32_1 : i32, i32, i32
  }
  func.func @transform_24(%arg0: i32) -> (i32, i32) {
    %c0_i32 = arith.constant 0 : i32
    %c0_i32_0 = arith.constant 0 : i32
    %c0_i32_1 = arith.constant 0 : i32
    return %c0_i32, %c0_i32_0 : i32, i32
  }
  func.func @transform_25(%arg0: i32) -> (i32, i32) {
    %c0_i32 = arith.constant 0 : i32
    %c0_i32_0 = arith.constant 0 : i32
    %c0_i32_1 = arith.constant 0 : i32
    return %c0_i32, %c0_i32_0 : i32, i32
  }
  func.func @transform_26(%arg0: i32) -> (i32, i32) {
    %c0_i32 = arith.constant 0 : i32
    %c0_i32_0 = arith.constant 0 : i32
    %c0_i32_1 = arith.constant 0 : i32
    return %c0_i32, %c0_i32_0 : i32, i32
  }
  func.func @transform_27(%arg0: i32) -> (i32, i32, i32) {
    %c0_i32 = arith.constant 0 : i32
    %c0_i32_0 = arith.constant 0 : i32
    %c0_i32_1 = arith.constant 0 : i32
    %c0_i32_2 = arith.constant 0 : i32
    return %c0_i32, %c0_i32_0, %c0_i32_1 : i32, i32, i32
  }
  func.func @transform_28(%arg0: i32) -> (i32, i32) {
    %c0_i32 = arith.constant 0 : i32
    %c0_i32_0 = arith.constant 0 : i32
    %c0_i32_1 = arith.constant 0 : i32
    return %c0_i32, %c0_i32_0 : i32, i32
  }
  func.func @transform_29(%arg0: i32) -> (i32, i32) {
    %c0_i32 = arith.constant 0 : i32
    %c0_i32_0 = arith.constant 0 : i32
    %c0_i32_1 = arith.constant 0 : i32
    return %c0_i32, %c0_i32_0 : i32, i32
  }
  func.func @transform_30(%arg0: i32) -> (i32, i32) {
    %c0_i32 = arith.constant 0 : i32
    %c0_i32_0 = arith.constant 0 : i32
    %c0_i32_1 = arith.constant 0 : i32
    return %c0_i32, %c0_i32_0 : i32, i32
  }
  func.func @transform_31(%arg0: i32) -> (i32, i32) {
    %c0_i32 = arith.constant 0 : i32
    %c0_i32_0 = arith.constant 0 : i32
    %c0_i32_1 = arith.constant 0 : i32
    return %c0_i32, %c0_i32_0 : i32, i32
  }
  func.func @transform_32(%arg0: i32) -> (i32, i32) {
    %c0_i32 = arith.constant 0 : i32
    %c0_i32_0 = arith.constant 0 : i32
    %c0_i32_1 = arith.constant 0 : i32
    return %c0_i32, %c0_i32_0 : i32, i32
  }
  func.func @transform_33(%arg0: i32) -> (i32, i32) {
    %c0_i32 = arith.constant 0 : i32
    %c0_i32_0 = arith.constant 0 : i32
    %c0_i32_1 = arith.constant 0 : i32
    return %c0_i32, %c0_i32_0 : i32, i32
  }
  func.func @transform_34(%arg0: i32) -> (i32, i32) {
    %c0_i32 = arith.constant 0 : i32
    %c0_i32_0 = arith.constant 0 : i32
    %c0_i32_1 = arith.constant 0 : i32
    return %c0_i32, %c0_i32_0 : i32, i32
  }
  func.func @transform_35(%arg0: i32) -> (i32, i32) {
    %c0_i32 = arith.constant 0 : i32
    %c0_i32_0 = arith.constant 0 : i32
    %c0_i32_1 = arith.constant 0 : i32
    return %c0_i32, %c0_i32_0 : i32, i32
  }
  func.func @transform_36(%arg0: i32) -> (i32, i32) {
    %c0_i32 = arith.constant 0 : i32
    %c0_i32_0 = arith.constant 0 : i32
    %c0_i32_1 = arith.constant 0 : i32
    return %c0_i32, %c0_i32_0 : i32, i32
  }
  func.func @transform_37(%arg0: i32) -> (i32, i32, i32) {
    %c0_i32 = arith.constant 0 : i32
    %c0_i32_0 = arith.constant 0 : i32
    %c0_i32_1 = arith.constant 0 : i32
    return %arg0, %c0_i32, %c0_i32_0 : i32, i32, i32
  }
}

</mosaic_0001>

<bundles_post_ra>
// kernel: _lambda_.1
= control target key start
LH: loop header
LB: loop body
LE: loop exit
PB: predicated region body
PF: predicated region fallthrough
CT: control target
= control target key end

     0   :  { %s15504_s6 = smov 1   ;;  %s15505_s10 = smov 2   ;;  %s18877_s0 = inlined_call_operand.smem [shape: u32[38], index: -1, kind: input, shape index: {}] }
   0x1   :  { %s15588_s5 = sld [smem:[%s18877_s0]]   ;;  %s15506_s14 = smov 3  }
   0x2   :  { %s15593_s9 = sld [smem:[%s18877_s0 + %s15504_s6]]   ;;  %s15507_s18 = smov 4  }
   0x3   :  { %s15598_s13 = sld [smem:[%s18877_s0 + %s15505_s10]]   ;;  %s15508_s22 = smov 5  }
   0x4   :  { %s15603_s17 = sld [smem:[%s18877_s0 + %s15506_s14]]   ;;  %s15509_s26 = smov 6  }
   0x5   :  { %s15608_s21 = sld [smem:[%s18877_s0 + %s15507_s18]]   ;;  %s15510_s30 = smov 7  }
   0x6   :  { %s15613_s25 = sld [smem:[%s18877_s0 + %s15508_s22]]   ;;  %s15511_s4 = smov 8  }
   0x7   :  { %18943 = sst [smem:[#allocation63_spill]] %s15588_s5  ;;  %s15512_s10 = smov 9  }
   0x8   :  { %18944 = sst [smem:[#allocation64_spill]] %s15593_s9  ;;  %s15513_s15 = smov 10  }
   0x9   :  { %18945 = sst [smem:[#allocation65_spill]] %s15598_s13  ;;  %s15514_s20 = smov 11  }
   0xa   :  { %18946 = sst [smem:[#allocation66_spill]] %s15603_s17  ;;  %s15516_s1 = smov 13  }
   0xb   :  { %s15618_s29 = sld [smem:[%s18877_s0 + %s15509_s26]]   ;;  %s15515_s26 = smov 12  }
   0xc   :  { %18947 = sst [smem:[#allocation67_spill]] %s15613_s25  ;;  %s15517_s7 = smov 14  }
   0xd   :  { %s15623_s3 = sld [smem:[%s18877_s0 + %s15510_s30]]   ;;  %s15519_s22 = smov 16  }
   0xe   :  { %s15628_s8 = sld [smem:[%s18877_s0 + %s15511_s4]]   ;;  %s15520_s28 = smov 17  }
   0xf   :  { %s15633_s14 = sld [smem:[%s18877_s0 + %s15512_s10]]  }
  0x10   :  { %s15638_s19 = sld [smem:[%s18877_s0 + %s15513_s15]]   ;;  %s15518_s15 = smov 15  }
  0x11   :  { %s15643_s24 = sld [smem:[%s18877_s0 + %s15514_s20]]  }
  0x12   :  { %s15648_s30 = sld [smem:[%s18877_s0 + %s15515_s26]]  }
  0x13   :  { %18948 = sst [smem:[#allocation68_spill]] %s15623_s3 }
  0x14   :  { %18949 = sst [smem:[#allocation69_spill]] %s15628_s8 }
  0x15   :  { %18950 = sst [smem:[#allocation70_spill]] %s15633_s14 }
  0x16   :  { %s15653_s6 = sld [smem:[%s18877_s0 + %s15516_s1]]  }
  0x17   :  { %18951 = sst [smem:[#allocation71_spill]] %s15643_s24 }
  0x18   :  { %18952 = sst [smem:[#allocation72_spill]] %s15648_s30 }
  0x19   :  { %s15658_s12 = sld [smem:[%s18877_s0 + %s15517_s7]]   ;;  %s15521_s7 = smov 18  }
  0x1a   :  { %s15663_s20 = sld [smem:[%s18877_s0 + %s15518_s15]]   ;;  %s15522_s15 = smov 19  }
  0x1b   :  { %s15668_s27 = sld [smem:[%s18877_s0 + %s15519_s22]]   ;;  %s15523_s22 = smov 20  }
  0x1c   :  { %18953 = sst [smem:[#allocation73_spill]] %s15653_s6 }
  0x1d   :  { %s15673_s4 = sld [smem:[%s18877_s0 + %s15520_s28]]   ;;  %s15524_s28 = smov 21  }
  0x1e   :  { %s15678_s24 = sld [smem:[%s18877_s0 + %s15521_s7]]   ;;  %s15525_s7 = smov 22  }
  0x1f   :  { %18954 = sst [smem:[#allocation74_spill]] %s15658_s12 }
  0x20   :  { %s15683_s5 = sld [smem:[%s18877_s0 + %s15522_s15]]   ;;  %s15526_s15 = smov 23  }
  0x21   :  { %18955 = sst [smem:[#allocation75_spill]] %s15668_s27 }
  0x22   :  { %s15688_s27 = sld [smem:[%s18877_s0 + %s15523_s22]]   ;;  %s15527_s22 = smov 24  }
  0x23   :  { %18956 = sst [smem:[#allocation76_spill]] %s15673_s4 }
  0x24   :  { %18957 = sst [smem:[#allocation77_spill]] %s15678_s24 }
  0x25   :  { %s15693_s12 = sld [smem:[%s18877_s0 + %s15524_s28]]   ;;  %s15528_s28 = smov 25  }
  0x26   :  { %18958 = sst [smem:[#allocation78_spill]] %s15683_s5 }
  0x27   :  { %s15698_s24 = sld [smem:[%s18877_s0 + %s15525_s7]]   ;;  %s15529_s7 = smov 26  }
  0x28   :  { %s15703_s5 = sld [smem:[%s18877_s0 + %s15526_s15]]   ;;  %s15530_s15 = smov 27  }
  0x29   :  { %s15708_s30 = sld [smem:[%s18877_s0 + %s15527_s22]]   ;;  %s15531_s22 = smov 28  }
  0x2a   :  { %s15728_s14 = sld [smem:[%s18877_s0 + %s15531_s22]]   ;;  %s15535_s22 = smov 32  }
  0x2b   :  { %18959 = sst [smem:[#allocation79_spill]] %s15693_s12 }
  0x2c   :  { %s15713_s12 = sld [smem:[%s18877_s0 + %s15528_s28]]   ;;  %s15532_s28 = smov 29  }
  0x2d   :  { %18960 = sst [smem:[#allocation80_spill]] %s15698_s24 }
  0x2e   :  { %18961 = sst [smem:[#allocation81_spill]] %s15703_s5 }
  0x2f   :  { %s15718_s24 = sld [smem:[%s18877_s0 + %s15529_s7]]   ;;  %s15533_s7 = smov 30  }
  0x30   :  { %s15723_s5 = sld [smem:[%s18877_s0 + %s15530_s15]]   ;;  %s15534_s15 = smov 31  }
  0x31   :  { %18964 = sst [smem:[#allocation84_spill]] %s15728_s14 }
  0x32   :  { %18962 = sst [smem:[#allocation82_spill]] %s15713_s12 }
  0x33   :  { %s15733_s12 = sld [smem:[%s18877_s0 + %s15532_s28]]   ;;  %s15536_s28 = smov 33  }
  0x34   :  { %s15738_s3 = sld [smem:[%s18877_s0 + %s15533_s7]]   ;;  %s15537_s7 = smov 34  }
  0x35   :  { %s15748_s14 = sld [smem:[%s18877_s0 + %s15535_s22]]   ;;  %s15539_s22 = smov 36  }
  0x36   :  { %18963 = sst [smem:[#allocation83_spill]] %s15723_s5 }
  0x37   :  { %s15743_s5 = sld [smem:[%s18877_s0 + %s15534_s15]]   ;;  %s15538_s15 = smov 35  }
  0x38   :  { %s15753_s25 = sld [smem:[%s18877_s0 + %s15536_s28]]   ;;  %s15540_s28 = smov 37  }
  0x39   :  { %18965 = sst [smem:[#allocation85_spill]] %s15733_s12 }
  0x3a   :  { %18966 = sst [smem:[#allocation86_spill]] %s15738_s3 }
  0x3b   :  { %18968 = sst [smem:[#allocation88_spill]] %s15748_s14 }
  0x3c   :  { %s15758_s3 = sld [smem:[%s18877_s0 + %s15537_s7]]  }
  0x3d   :  { %18967 = sst [smem:[#allocation87_spill]] %s15743_s5 }
  0x3e   :  { %s15763_s5 = sld [smem:[%s18877_s0 + %s15538_s15]]  }
  0x3f   :  { %s15768_s14 = sld [smem:[%s18877_s0 + %s15539_s22]]  }
  0x40   :  { %s15773_s17 = sld [smem:[%s18877_s0 + %s15540_s28]]  }
  0x42   :  { %18969 = sst [smem:[#allocation89_spill]] %s15758_s3 }
  0x43   :  { %80 = vsyncpa [#allocation3], 0 }
  0x44   :  { %81 = vsyncpa [#allocation6], 0 }
  0x45   :  { %82 = vsyncpa [#allocation9], 0 }
  0x46   :  { %83 = vsyncpa [#allocation12], 0 }
  0x47   :  { %84 = vsyncpa [#allocation15], 0 }
  0x48   :  { %85 = vsyncpa [#allocation18], 0 }
  0x49   :  { %86 = vsyncpa [#allocation21], 0 }
  0x4a   :  { %87 = vsyncpa [#allocation24], 0 }
  0x4b   :  { %88 = vsyncpa [#allocation27], 0 }
  0x4c   :  { %89 = vsyncpa [#allocation30], 0 }
  0x4d   :  { %90 = vsyncpa [#allocation33], 0 }
  0x4e   :  { %91 = vsyncpa [#allocation36], 0 }
  0x4f   :  { %92 = vsyncpa [#allocation39], 0 }
  0x50   :  { %93 = vsyncpa [#allocation42], 0 }
  0x51   :  { %94 = vsyncpa [#allocation45], 0 }
  0x52   :  { %95 = vsyncpa [#allocation4], 0 }
  0x53   :  { %97 = vsyncpa [#allocation4 + $0x1], 0  ;;  %s15775_s7 = smov 0   ;;  %s15777_s0 = smov 0  }
  0x54   :  { %s15779_s10 = smov 0   ;;  %s15781_s11 = smov 0  }
  0x55 LB: > { %s18970_s3 = sld [smem:[#allocation89_spill]]  ;;  %s18971_s12 = sld [smem:[#allocation85_spill]]  ;;  %s15498_s10 = sphi %s15779_s10, %s19072_s10   ;;  %s15494_s0 = sphi %s15777_s0, %s19074_s0   ;;  %s15490_s7 = sphi %s15775_s7, %s19073_s7   ;;  %s15502_s11 = sphi %s15781_s11, %s19070_s11  }
  0x56   : > { %s18972_s9 = sld [smem:[#allocation64_spill]]  ;;  %s18973_s4 = sld [smem:[#allocation76_spill]] }
  0x57   : > { %s18974_s8 = sld [smem:[#allocation69_spill]]  ;;  %s18975_s6 = sld [smem:[#allocation73_spill]] }
  0x58   : > { %s18976_s13 = sld [smem:[#allocation65_spill]]  ;;  %18977 = sst [smem:[#allocation90_spill]] %s15490_s7 }
  0x59   : > { %18978 = sst [smem:[#allocation91_spill]] %s15498_s10  ;;  %s15796_s15 = sadd.s32 4294967295, %s15502_s11  }
  0x5a   : > { %18979 = sst [smem:[#allocation92_spill]] %s15502_s11  ;;  %s11218_s16 = sadd.s32 4294967294, %s15502_s11  }
  0x5b   : > { %s15800_s18 = sadd.s32 1, %s15502_s11   ;;  %s892_s22 = sadd.s32 1, %s15498_s10 }
  0x5c   : > { %18980 = sst [smem:[#allocation93_spill]] %s15800_s18  ;;  %s889_s23 = ssub.s32 %s15502_s11, %s15800_s18 }
  0x5d   : > { %p902_p0 = scmp.ne.s32.totalorder %s15498_s10, %s15494_s0  ;;  %p890_p1 = scmp.eq.s32.totalorder %s889_s23, 0 }
  0x5e   : > { %p903_p2 = scmp.eq.s32.totalorder %s15796_s15, 1  ;;  %p908_p3 = scmp.ne.s32.totalorder %s15494_s0, %s15490_s7 }
  0x5f   : > { %p909_p4 = scmp.eq.s32.totalorder %s11218_s16, 1  ;;  %p11219_p7 = scmp.ge.s32.totalorder %s15502_s11, 1 }
  0x60   : > { %s15811_s26 = scalar_select %p890_p1, %s15498_s10, %s892_s22  }
  0x61   : > { %p15813_p5 = por %p903_p2, %p902_p0  ;;  %p15817_p6 = por %p909_p4, %p908_p3 }
  0x62   : > { %18981 = sst [smem:[#allocation94_spill]] %s15811_s26  ;;  %p916_p8 = scmp.lt.s32.totalorder %s15502_s11, 3 }
  0x63   : > { %s18982_s28 = scalar_select %p15813_p5, 1, 0 }
  0x64   : > { %s18984_s1 = scalar_select %p15817_p6, 1, 0 }
  0x65   : > { %18983 = sst [smem:[#allocation95_spill]] %s18982_s28  ;;  %p18901_p9 = scmp.eq.s32.totalorder %s15796_s15, 0 }
  0x66   : > { %18985 = sst [smem:[#allocation96_spill]] %s18984_s1  ;;  %p15824_p10 = pnand %p11219_p7, %p916_p8 }
  0x67   : > { %s15541_s16 = smov [#allocation5]   ;;  %s15542_s26 = smov [#allocation8]  }
  0x68   : > { %s18986_s2 = scalar_select %p15824_p10, 1, 0 }
  0x69   : > { %p13275_p11 = pneg %p15824_p10  ;;  %s941_s22 = sshll.u32 %s15541_s16, 4  ;;  %s15830_s22 = int_to_ptr.vmem [resolvable:$true] %s941_s22 }
  0x6a   : > { %s968_s10 = sshll.u32 %s15542_s26, 4  ;;  %s15543_s18 = smov [#allocation11]   ;;  %s15838_s10 = int_to_ptr.vmem [resolvable:$true] %s968_s10 }
  0x6b   : > { %p15834_p12 = pnand %p18901_p9, %p13275_p11  ;;  %s15840_s1 = sshll.u32 %s15543_s18, 4  ;;  %s991_s1 = int_to_ptr.vmem [resolvable:$true] %s15840_s1 }
  0x6c   : > { %s14596_s7 = scalar_lea.hbm %s18976_s13, 512 }
  0x6d   : > { %p14597_p13 = scmp.ne.s32.totalorder %s18976_s13, %s14596_s7  ;;  %p15846_p0 = pneg %p15834_p12 }
  0x6e   : > { %p14603_p3 = scmp.lt.u32.totalorder %s14596_s7, %s18976_s13 }
  0x6f   : > { %p14599_p1 = pnand %p15846_p0, %p14597_p13 }
  0x71   : > { %p14600_p2 = pneg %p14599_p1 }
  0x73   : > { %p14605_p4 = pnand %p14603_p3, %p14600_p2 }
  0x75   : > { %14608 = shalt.err (!%p14605_p4)
}
  0x76   : > { %s14609_s18 = scalar_lea.vmem %s15830_s22, 512  ;;  %p14617_p9 = scmp.lt.s32.totalorder %s15830_s22, %s15830_s22 }
  0x77   : > { %p14610_p7 = scmp.ne.s32.totalorder %s15830_s22, %s14609_s18  ;;  %p14618_p6 = scmp.lt.s32.totalorder %s14609_s18, %s14609_s18 }
  0x79   : > { %p14612_p8 = pnand %p14610_p7, %p15846_p0  ;;  %p14619_p5 = por %p14618_p6, %p14617_p9 }
  0x7b   : > { %p14613_p11 = pneg %p14612_p8 }
  0x7d   : > { %p14620_p10 = pnand %p14619_p5, %p14613_p11 }
  0x7f   : > { %14623 = shalt.err (!%p14620_p10)
}
  0x80   : > { %s18907_s26 = smov 64   ;;  %s18909_s7 = smov 4  }
  0x81   : > { %13281 = dma.hbm_to_vmem [thread:$0]  (!%p15834_p12), %s18976_s13, 512, %s15830_s22, [#allocation6], %s18907_s26, %s18907_s26, %s18909_s7  }
  0x82   : > { %s14624_s11 = scalar_lea.hbm %s15608_s21, 16 }
  0x83   : > { %p14625_p13 = scmp.ne.s32.totalorder %s15608_s21, %s14624_s11  ;;  %p14631_p9 = scmp.lt.u32.totalorder %s14624_s11, %s15608_s21 }
  0x85   : > { %p14627_p6 = pnand %p14625_p13, %p15846_p0 }
  0x87   : > { %p14628_p5 = pneg %p14627_p6 }
  0x89   : > { %p14633_p10 = pnand %p14631_p9, %p14628_p5 }
  0x8b   : > { %14636 = shalt.err (!%p14633_p10)
}
  0x8c   : > { %s14637_s18 = scalar_lea.vmem %s15838_s10, 16  ;;  %s14644_s28 = scalar_lea.vmem %s15838_s10, 32 }
  0x8d   : > { %p14638_p1 = scmp.ne.s32.totalorder %s15838_s10, %s14637_s18  ;;  %p14645_p4 = scmp.lt.s32.totalorder %s15838_s10, %s15838_s10 }
  0x8e   : > { %p14646_p7 = scmp.lt.s32.totalorder %s14644_s28, %s14637_s18 }
  0x8f   : > { %p14640_p2 = pnand %p14638_p1, %p15846_p0 }
  0x90   : > { %p14647_p8 = por %p14646_p7, %p14645_p4 }
  0x91   : > { %p14641_p3 = pneg %p14640_p2 }
  0x93   : > { %p14648_p11 = pnand %p14647_p8, %p14641_p3 }
  0x95   : > { %14651 = shalt.err (!%p14648_p11)
}
  0x96   : > { %13287 = dma.hbm_to_vmem [thread:$0]  (!%p15834_p12), %s15608_s21, 16, %s15838_s10, [#allocation9]  }
  0x97   : > { %s14652_s11 = scalar_lea.hbm %s15618_s29, 16 }
  0x98   : > { %p14653_p13 = scmp.ne.s32.totalorder %s15618_s29, %s14652_s11  ;;  %p14659_p9 = scmp.lt.u32.totalorder %s14652_s11, %s15618_s29 }
  0x9a   : > { %p14655_p6 = pnand %p14653_p13, %p15846_p0 }
  0x9c   : > { %p14656_p5 = pneg %p14655_p6 }
  0x9e   : > { %p14661_p10 = pnand %p14659_p9, %p14656_p5 }
  0xa0   : > { %14664 = shalt.err (!%p14661_p10)
}
  0xa1   : > { %s14665_s28 = scalar_lea.vmem %s991_s1, 16  ;;  %s14672_s22 = scalar_lea.vmem %s991_s1, 32 }
  0xa2   : > { %p14666_p1 = scmp.ne.s32.totalorder %s991_s1, %s14665_s28  ;;  %p14673_p4 = scmp.lt.s32.totalorder %s991_s1, %s991_s1 }
  0xa3   : > { %p14674_p7 = scmp.lt.s32.totalorder %s14672_s22, %s14665_s28 }
  0xa4   : > { %p14668_p2 = pnand %p14666_p1, %p15846_p0 }
  0xa5   : > { %p14675_p8 = por %p14674_p7, %p14673_p4 }
  0xa6   : > { %p14669_p3 = pneg %p14668_p2 }
  0xa8   : > { %p14676_p11 = pnand %p14675_p8, %p14669_p3 }
  0xaa   : > { %14679 = shalt.err (!%p14676_p11)
}
  0xab   : > { %13293 = dma.hbm_to_vmem [thread:$0]  (!%p15834_p12), %s15618_s29, 16, %s991_s1, [#allocation12]  }
  0xac   : > { %s15546_s10 = smov [#allocation14]   ;;  %s14680_s11 = scalar_lea.hbm %s18974_s8, 48 }
  0xad   : > { %s1013_s18 = sshll.u32 %s15546_s10, 4  ;;  %p14681_p13 = scmp.ne.s32.totalorder %s18974_s8, %s14680_s11  ;;  %s1014_s18 = int_to_ptr.vmem [resolvable:$true] %s1013_s18 }
  0xae   : > { %p14687_p9 = scmp.lt.u32.totalorder %s14680_s11, %s18974_s8 }
  0xaf   : > { %p14683_p6 = pnand %p14681_p13, %p15846_p0 }
  0xb1   : > { %p14684_p5 = pneg %p14683_p6 }
  0xb3   : > { %p14689_p10 = pnand %p14687_p9, %p14684_p5 }
  0xb5   : > { %14692 = shalt.err (!%p14689_p10)
}
  0xb6   : > { %s14693_s28 = scalar_lea.vmem %s1014_s18, 48  ;;  %s14700_s22 = scalar_lea.vmem %s1014_s18, 64 }
  0xb7   : > { %p14694_p1 = scmp.ne.s32.totalorder %s1014_s18, %s14693_s28  ;;  %p14701_p4 = scmp.lt.s32.totalorder %s1014_s18, %s1014_s18 }
  0xb8   : > { %p14702_p7 = scmp.lt.s32.totalorder %s14700_s22, %s14693_s28 }
  0xb9   : > { %p14696_p2 = pnand %p14694_p1, %p15846_p0 }
  0xba   : > { %p14703_p8 = por %p14702_p7, %p14701_p4 }
  0xbb   : > { %p14697_p3 = pneg %p14696_p2 }
  0xbd   : > { %p14704_p11 = pnand %p14703_p8, %p14697_p3 }
  0xbf   : > { %14707 = shalt.err (!%p14704_p11)
}
  0xc0   : > { %s18914_s1 = smov 16   ;;  %s18916_s10 = smov 1  }
  0xc1   : > { %13299 = dma.hbm_to_vmem [thread:$0]  (!%p15834_p12), %s18974_s8, 48, %s1014_s18, [#allocation15], %s18914_s1, %s18914_s1, %s18916_s10  }
  0xc2   : > { %s15549_s11 = smov [#allocation17]   ;;  %s15550_s7 = smov [#allocation20]  }
  0xc3   : > { %s1039_s26 = sshll.u32 %s15549_s11, 4  ;;  %s1068_s28 = sshll.u32 %s15550_s7, 4  ;;  %s1040_s26 = int_to_ptr.vmem [resolvable:$true] %s1039_s26  ;;  %s15906_s28 = int_to_ptr.vmem [resolvable:$true] %s1068_s28 }
  0xc4   : > { %s14708_s22 = scalar_lea.hbm %s15638_s19, 48 }
  0xc5   : > { %p14709_p13 = scmp.ne.s32.totalorder %s15638_s19, %s14708_s22  ;;  %p14715_p9 = scmp.lt.u32.totalorder %s14708_s22, %s15638_s19 }
  0xc7   : > { %p14711_p6 = pnand %p14709_p13, %p15846_p0 }
  0xc9   : > { %p14712_p5 = pneg %p14711_p6 }
  0xcb   : > { %p14717_p10 = pnand %p14715_p9, %p14712_p5 }
  0xcd   : > { %14720 = shalt.err (!%p14717_p10)
}
  0xce   : > { %s14721_s13 = scalar_lea.vmem %s1040_s26, 48  ;;  %s14728_s18 = scalar_lea.vmem %s1040_s26, 64 }
  0xcf   : > { %p14722_p1 = scmp.ne.s32.totalorder %s1040_s26, %s14721_s13  ;;  %p14729_p4 = scmp.lt.s32.totalorder %s1040_s26, %s1040_s26 }
  0xd0   : > { %p14730_p7 = scmp.lt.s32.totalorder %s14728_s18, %s14721_s13 }
  0xd1   : > { %p14724_p2 = pnand %p14722_p1, %p15846_p0 }
  0xd2   : > { %p14731_p8 = por %p14730_p7, %p14729_p4 }
  0xd3   : > { %p14725_p3 = pneg %p14724_p2 }
  0xd5   : > { %p14732_p11 = pnand %p14731_p8, %p14725_p3 }
  0xd7   : > { %14735 = shalt.err (!%p14732_p11)
}
  0xd8   : > { %13305 = dma.hbm_to_vmem [thread:$0]  (!%p15834_p12), %s15638_s19, 48, %s1040_s26, [#allocation18], %s18914_s1, %s18914_s1, %s18916_s10  }
  0xd9   : > { %s14736_s7 = scalar_lea.hbm %s18975_s6, 144 }
  0xda   : > { %p14737_p13 = scmp.ne.s32.totalorder %s18975_s6, %s14736_s7  ;;  %p14743_p9 = scmp.lt.u32.totalorder %s14736_s7, %s18975_s6 }
  0xdc   : > { %p14739_p6 = pnand %p14737_p13, %p15846_p0 }
  0xde   : > { %p14740_p5 = pneg %p14739_p6 }
  0xe0   : > { %p14745_p10 = pnand %p14743_p9, %p14740_p5 }
  0xe2   : > { %14748 = shalt.err (!%p14745_p10)
}
  0xe3   : > { %s14749_s13 = scalar_lea.vmem %s15906_s28, 144  ;;  %s14756_s11 = scalar_lea.vmem %s15906_s28, 160 }
  0xe4   : > { %p14750_p1 = scmp.ne.s32.totalorder %s15906_s28, %s14749_s13  ;;  %p14757_p4 = scmp.lt.s32.totalorder %s15906_s28, %s15906_s28 }
  0xe5   : > { %p14758_p7 = scmp.lt.s32.totalorder %s14756_s11, %s14749_s13 }
  0xe6   : > { %p14752_p2 = pnand %p14750_p1, %p15846_p0 }
  0xe7   : > { %p14759_p8 = por %p14758_p7, %p14757_p4 }
  0xe8   : > { %p14753_p3 = pneg %p14752_p2 }
  0xea   : > { %p14760_p11 = pnand %p14759_p8, %p14753_p3 }
  0xec   : > { %14763 = shalt.err (!%p14760_p11)
}
  0xed   : > { %13311 = dma.hbm_to_vmem [thread:$0]  (!%p15834_p12), %s18975_s6, 144, %s15906_s28, [#allocation21], %s18914_s1, %s18914_s1, %s18916_s10  }
  0xee   : > { %s15551_s26 = smov [#allocation23]   ;;  %s15552_s18 = smov [#allocation26]  }
  0xef   : > { %s1094_s22 = sshll.u32 %s15551_s26, 4  ;;  %s1120_s7 = sshll.u32 %s15552_s18, 4  ;;  %s1095_s22 = int_to_ptr.vmem [resolvable:$true] %s1094_s22  ;;  %s15940_s7 = int_to_ptr.vmem [resolvable:$true] %s1120_s7 }
  0xf0   : > { %s14764_s13 = scalar_lea.hbm %s15663_s20, 3072 }
  0xf1   : > { %p14765_p13 = scmp.ne.s32.totalorder %s15663_s20, %s14764_s13  ;;  %p14771_p9 = scmp.lt.u32.totalorder %s14764_s13, %s15663_s20 }
  0xf3   : > { %p14767_p6 = pnand %p14765_p13, %p15846_p0 }
  0xf5   : > { %p14768_p5 = pneg %p14767_p6 }
  0xf7   : > { %p14773_p10 = pnand %p14771_p9, %p14768_p5 }
  0xf9   : > { %14776 = shalt.err (!%p14773_p10)
}
  0xfa   : > { %s14777_s11 = scalar_lea.vmem %s1095_s22, 3072  ;;  %p14785_p4 = scmp.lt.s32.totalorder %s1095_s22, %s1095_s22 }
  0xfb   : > { %p14778_p1 = scmp.ne.s32.totalorder %s1095_s22, %s14777_s11  ;;  %p14786_p7 = scmp.lt.s32.totalorder %s14777_s11, %s14777_s11 }
  0xfd   : > { %p14780_p2 = pnand %p14778_p1, %p15846_p0  ;;  %p14787_p8 = por %p14786_p7, %p14785_p4 }
  0xff   : > { %p14781_p3 = pneg %p14780_p2 }
 0x101   : > { %p14788_p11 = pnand %p14787_p8, %p14781_p3 }
 0x103   : > { %14791 = shalt.err (!%p14788_p11)
}
 0x104   : > { %s18989_s28 = smov 4   ;;  %s18990_s26 = smov 64  }
 0x105   : > { %13317 = dma.hbm_to_vmem [thread:$0]  (!%p15834_p12), %s15663_s20, 3072, %s1095_s22, [#allocation24], %s18990_s26, %s18990_s26, %s18989_s28  }
 0x106   : > { %s14792_s18 = scalar_lea.hbm %s18973_s4, 48 }
 0x107   : > { %p14793_p13 = scmp.ne.s32.totalorder %s18973_s4, %s14792_s18  ;;  %p14799_p9 = scmp.lt.u32.totalorder %s14792_s18, %s18973_s4 }
 0x109   : > { %p14795_p6 = pnand %p14793_p13, %p15846_p0 }
 0x10b   : > { %p14796_p5 = pneg %p14795_p6 }
 0x10d   : > { %p14801_p10 = pnand %p14799_p9, %p14796_p5 }
 0x10f   : > { %14804 = shalt.err (!%p14801_p10)
}
 0x110   : > { %s14805_s13 = scalar_lea.vmem %s15940_s7, 48  ;;  %s14812_s11 = scalar_lea.vmem %s15940_s7, 64 }
 0x111   : > { %p14806_p1 = scmp.ne.s32.totalorder %s15940_s7, %s14805_s13  ;;  %p14813_p4 = scmp.lt.s32.totalorder %s15940_s7, %s15940_s7 }
 0x112   : > { %p14814_p7 = scmp.lt.s32.totalorder %s14812_s11, %s14805_s13 }
 0x113   : > { %p14808_p2 = pnand %p14806_p1, %p15846_p0 }
 0x114   : > { %p14815_p8 = por %p14814_p7, %p14813_p4 }
 0x115   : > { %p14809_p3 = pneg %p14808_p2 }
 0x117   : > { %p14816_p11 = pnand %p14815_p8, %p14809_p3 }
 0x119   : > { %14819 = shalt.err (!%p14816_p11)
}
 0x11a   : > { %13323 = dma.hbm_to_vmem [thread:$0]  (!%p15834_p12), %s18973_s4, 48, %s15940_s7, [#allocation27], %s18914_s1, %s18914_s1, %s18916_s10  }
 0x11b   : > { %s15553_s22 = smov [#allocation29]   ;;  %s15554_s6 = smov [#allocation32]  }
 0x11c   : > { %s1149_s18 = sshll.u32 %s15553_s22, 4  ;;  %s1182_s8 = sshll.u32 %s15554_s6, 4  ;;  %s1150_s18 = int_to_ptr.vmem [resolvable:$true] %s1149_s18  ;;  %s15974_s8 = int_to_ptr.vmem [resolvable:$true] %s1182_s8 }
 0x11d   : > { %s14820_s13 = scalar_lea.hbm %s15688_s27, 48 }
 0x11e   : > { %p14821_p13 = scmp.ne.s32.totalorder %s15688_s27, %s14820_s13  ;;  %p14827_p9 = scmp.lt.u32.totalorder %s14820_s13, %s15688_s27 }
 0x120   : > { %p14823_p6 = pnand %p14821_p13, %p15846_p0 }
 0x122   : > { %p14824_p5 = pneg %p14823_p6 }
 0x124   : > { %p14829_p10 = pnand %p14827_p9, %p14824_p5 }
 0x126   : > { %14832 = shalt.err (!%p14829_p10)
}
 0x127   : > { %s14833_s11 = scalar_lea.vmem %s1150_s18, 48  ;;  %s14840_s7 = scalar_lea.vmem %s1150_s18, 64 }
 0x128   : > { %p14834_p1 = scmp.ne.s32.totalorder %s1150_s18, %s14833_s11  ;;  %p14841_p4 = scmp.lt.s32.totalorder %s1150_s18, %s1150_s18 }
 0x129   : > { %p14842_p7 = scmp.lt.s32.totalorder %s14840_s7, %s14833_s11 }
 0x12a   : > { %p14836_p2 = pnand %p14834_p1, %p15846_p0 }
 0x12b   : > { %p14843_p8 = por %p14842_p7, %p14841_p4 }
 0x12c   : > { %p14837_p3 = pneg %p14836_p2 }
 0x12e   : > { %p14844_p11 = pnand %p14843_p8, %p14837_p3 }
 0x130   : > { %14847 = shalt.err (!%p14844_p11)
}
 0x131   : > { %13329 = dma.hbm_to_vmem [thread:$0]  (!%p15834_p12), %s15688_s27, 48, %s1150_s18, [#allocation30], %s18914_s1, %s18914_s1, %s18916_s10  }
 0x132   : > { %s14848_s6 = scalar_lea.hbm %s15708_s30, 48 }
 0x133   : > { %p14849_p13 = scmp.ne.s32.totalorder %s15708_s30, %s14848_s6  ;;  %p14855_p9 = scmp.lt.u32.totalorder %s14848_s6, %s15708_s30 }
 0x135   : > { %p14851_p6 = pnand %p14849_p13, %p15846_p0 }
 0x137   : > { %p14852_p5 = pneg %p14851_p6 }
 0x139   : > { %p14857_p10 = pnand %p14855_p9, %p14852_p5 }
 0x13b   : > { %14860 = shalt.err (!%p14857_p10)
}
 0x13c   : > { %s14861_s22 = scalar_lea.vmem %s15974_s8, 48  ;;  %s14868_s13 = scalar_lea.vmem %s15974_s8, 64 }
 0x13d   : > { %p14862_p1 = scmp.ne.s32.totalorder %s15974_s8, %s14861_s22  ;;  %p14869_p4 = scmp.lt.s32.totalorder %s15974_s8, %s15974_s8 }
 0x13e   : > { %p14870_p7 = scmp.lt.s32.totalorder %s14868_s13, %s14861_s22 }
 0x13f   : > { %p14864_p2 = pnand %p14862_p1, %p15846_p0 }
 0x140   : > { %p14871_p8 = por %p14870_p7, %p14869_p4 }
 0x141   : > { %p14865_p3 = pneg %p14864_p2 }
 0x143   : > { %p14872_p11 = pnand %p14871_p8, %p14865_p3 }
 0x145   : > { %14875 = shalt.err (!%p14872_p11)
}
 0x146   : > { %13335 = dma.hbm_to_vmem [thread:$0]  (!%p15834_p12), %s15708_s30, 48, %s15974_s8, [#allocation33]  }
 0x147   : > { %s15555_s18 = smov [#allocation35]   ;;  %s15556_s7 = smov [#allocation38]  }
 0x148   : > { %s1204_s11 = sshll.u32 %s15555_s18, 4  ;;  %s1229_s6 = sshll.u32 %s15556_s7, 4  ;;  %s1205_s11 = int_to_ptr.vmem [resolvable:$true] %s1204_s11  ;;  %s16005_s6 = int_to_ptr.vmem [resolvable:$true] %s1229_s6 }
 0x149   : > { %s14876_s22 = scalar_lea.hbm %s15718_s24, 48 }
 0x14a   : > { %p14877_p13 = scmp.ne.s32.totalorder %s15718_s24, %s14876_s22  ;;  %p14883_p9 = scmp.lt.u32.totalorder %s14876_s22, %s15718_s24 }
 0x14c   : > { %p14879_p6 = pnand %p14877_p13, %p15846_p0 }
 0x14e   : > { %p14880_p5 = pneg %p14879_p6 }
 0x150   : > { %p14885_p10 = pnand %p14883_p9, %p14880_p5 }
 0x152   : > { %14888 = shalt.err (!%p14885_p10)
}
 0x153   : > { %s14889_s13 = scalar_lea.vmem %s1205_s11, 48  ;;  %s14896_s8 = scalar_lea.vmem %s1205_s11, 64 }
 0x154   : > { %p14890_p1 = scmp.ne.s32.totalorder %s1205_s11, %s14889_s13  ;;  %p14897_p4 = scmp.lt.s32.totalorder %s1205_s11, %s1205_s11 }
 0x155   : > { %p14898_p7 = scmp.lt.s32.totalorder %s14896_s8, %s14889_s13 }
 0x156   : > { %p14892_p2 = pnand %p14890_p1, %p15846_p0 }
 0x157   : > { %p14899_p8 = por %p14898_p7, %p14897_p4 }
 0x158   : > { %p14893_p3 = pneg %p14892_p2 }
 0x15a   : > { %p14900_p11 = pnand %p14899_p8, %p14893_p3 }
 0x15c   : > { %14903 = shalt.err (!%p14900_p11)
}
 0x15d   : > { %13341 = dma.hbm_to_vmem [thread:$0]  (!%p15834_p12), %s15718_s24, 48, %s1205_s11, [#allocation36]  }
 0x15e   : > { %s14904_s18 = scalar_lea.hbm %s18971_s12, 16 }
 0x15f   : > { %p14905_p13 = scmp.ne.s32.totalorder %s18971_s12, %s14904_s18  ;;  %p14911_p9 = scmp.lt.u32.totalorder %s14904_s18, %s18971_s12 }
 0x161   : > { %p14907_p6 = pnand %p14905_p13, %p15846_p0 }
 0x163   : > { %p14908_p5 = pneg %p14907_p6 }
 0x165   : > { %p14913_p10 = pnand %p14911_p9, %p14908_p5 }
 0x167   : > { %14916 = shalt.err (!%p14913_p10)
}
 0x168   : > { %s14917_s7 = scalar_lea.vmem %s16005_s6, 16  ;;  %s14924_s22 = scalar_lea.vmem %s16005_s6, 32 }
 0x169   : > { %p14918_p1 = scmp.ne.s32.totalorder %s16005_s6, %s14917_s7  ;;  %p14925_p4 = scmp.lt.s32.totalorder %s16005_s6, %s16005_s6 }
 0x16a   : > { %p14926_p7 = scmp.lt.s32.totalorder %s14924_s22, %s14917_s7 }
 0x16b   : > { %p14920_p2 = pnand %p14918_p1, %p15846_p0 }
 0x16c   : > { %p14927_p8 = por %p14926_p7, %p14925_p4 }
 0x16d   : > { %p14921_p3 = pneg %p14920_p2 }
 0x16f   : > { %p14928_p11 = pnand %p14927_p8, %p14921_p3 }
 0x171   : > { %14931 = shalt.err (!%p14928_p11)
}
 0x172   : > { %13347 = dma.hbm_to_vmem [thread:$0]  (!%p15834_p12), %s18971_s12, 16, %s16005_s6, [#allocation39]  }
 0x173   : > { %s15557_s11 = smov [#allocation41]   ;;  %s15558_s8 = smov [#allocation2]  }
 0x174   : > { %s1257_s13 = sshll.u32 %s15557_s11, 4  ;;  %s928_s18 = sshll.u32 %s15558_s8, 4  ;;  %s1258_s13 = int_to_ptr.vmem [resolvable:$true] %s1257_s13  ;;  %s16033_s18 = int_to_ptr.vmem [resolvable:$true] %s928_s18 }
 0x175   : > { %s14932_s7 = scalar_lea.hbm %s15753_s25, 96 }
 0x176   : > { %p14933_p13 = scmp.ne.s32.totalorder %s15753_s25, %s14932_s7  ;;  %p14939_p9 = scmp.lt.u32.totalorder %s14932_s7, %s15753_s25 }
 0x178   : > { %p14935_p6 = pnand %p14933_p13, %p15846_p0 }
 0x17a   : > { %p14936_p5 = pneg %p14935_p6 }
 0x17c   : > { %p14941_p10 = pnand %p14939_p9, %p14936_p5 }
 0x17e   : > { %14944 = shalt.err (!%p14941_p10)
}
 0x17f   : > { %s14945_s22 = scalar_lea.vmem %s1258_s13, 96  ;;  %p14953_p4 = scmp.lt.s32.totalorder %s1258_s13, %s1258_s13 }
 0x180   : > { %p14946_p1 = scmp.ne.s32.totalorder %s1258_s13, %s14945_s22  ;;  %p14954_p7 = scmp.lt.s32.totalorder %s14945_s22, %s14945_s22 }
 0x182   : > { %p14948_p2 = pnand %p14946_p1, %p15846_p0  ;;  %p14955_p8 = por %p14954_p7, %p14953_p4 }
 0x184   : > { %p14949_p3 = pneg %p14948_p2 }
 0x186   : > { %p14956_p11 = pnand %p14955_p8, %p14949_p3 }
 0x188   : > { %14959 = shalt.err (!%p14956_p11)
}
 0x189   : > { %13353 = dma.hbm_to_vmem [thread:$0]  (!%p15834_p12), %s15753_s25, 96, %s1258_s13, [#allocation42]  }
 0x18a   : > { %s14960_s6 = scalar_lea.hbm %s18972_s9, 512 }
 0x18b   : > { %p14961_p13 = scmp.ne.s32.totalorder %s18972_s9, %s14960_s6  ;;  %p14967_p9 = scmp.lt.u32.totalorder %s14960_s6, %s18972_s9 }
 0x18d   : > { %p14963_p6 = pnand %p14961_p13, %p15846_p0 }
 0x18f   : > { %p14964_p5 = pneg %p14963_p6 }
 0x191   : > { %p14969_p10 = pnand %p14967_p9, %p14964_p5 }
 0x193   : > { %14972 = shalt.err (!%p14969_p10)
}
 0x194   : > { %s14973_s11 = scalar_lea.vmem %s16033_s18, 512  ;;  %p14981_p4 = scmp.lt.s32.totalorder %s16033_s18, %s16033_s18 }
 0x195   : > { %p14974_p1 = scmp.ne.s32.totalorder %s16033_s18, %s14973_s11  ;;  %p14982_p7 = scmp.lt.s32.totalorder %s14973_s11, %s14973_s11 }
 0x197   : > { %p14976_p2 = pnand %p14974_p1, %p15846_p0  ;;  %p14983_p8 = por %p14982_p7, %p14981_p4 }
 0x199   : > { %p14977_p3 = pneg %p14976_p2 }
 0x19b   : > { %p14984_p11 = pnand %p14983_p8, %p14977_p3 }
 0x19d   : > { %14987 = shalt.err (!%p14984_p11)
}
 0x19e   : > { %s18991_s13 = sld [smem:[#allocation66_spill]]  ;;  %s15559_s8 = smov [#allocation7]  }
 0x19f   : > { %13278 = dma.hbm_to_vmem [thread:$0]  (!%p15834_p12), %s18972_s9, 512, %s16033_s18, [#allocation3], %s18990_s26, %s18990_s26, %s18989_s28  }
 0x1a0   : > { %s954_s7 = sshll.u32 %s15559_s8, 4  ;;  %s15560_s22 = smov [#allocation10]   ;;  %s955_s7 = int_to_ptr.vmem [resolvable:$true] %s954_s7 }
 0x1a1   : > { %s979_s6 = sshll.u32 %s15560_s22, 4  ;;  %s16063_s6 = int_to_ptr.vmem [resolvable:$true] %s979_s6 }
 0x1a4   : > { %s14988_s11 = scalar_lea.hbm %s18991_s13, 1280 }
 0x1a5   : > { %p14989_p13 = scmp.ne.s32.totalorder %s18991_s13, %s14988_s11  ;;  %p14995_p9 = scmp.lt.u32.totalorder %s14988_s11, %s18991_s13 }
 0x1a7   : > { %p14991_p6 = pnand %p14989_p13, %p15846_p0 }
 0x1a9   : > { %p14992_p5 = pneg %p14991_p6 }
 0x1ab   : > { %p14997_p10 = pnand %p14995_p9, %p14992_p5 }
 0x1ad   : > { %15000 = shalt.err (!%p14997_p10)
}
 0x1ae   : > { %s15001_s1 = scalar_lea.vmem %s955_s7, 1280  ;;  %p15009_p4 = scmp.lt.s32.totalorder %s955_s7, %s955_s7 }
 0x1af   : > { %p15002_p1 = scmp.ne.s32.totalorder %s955_s7, %s15001_s1  ;;  %p15010_p7 = scmp.lt.s32.totalorder %s15001_s1, %s15001_s1 }
 0x1b1   : > { %p15004_p2 = pnand %p15002_p1, %p15846_p0  ;;  %p15011_p8 = por %p15010_p7, %p15009_p4 }
 0x1b3   : > { %p15005_p3 = pneg %p15004_p2 }
 0x1b5   : > { %p15012_p11 = pnand %p15011_p8, %p15005_p3 }
 0x1b7   : > { %15015 = shalt.err (!%p15012_p11)
}
 0x1b8   : > { %s18992_s18 = sld [smem:[#allocation67_spill]] }
 0x1b9   : > { %13284 = dma.hbm_to_vmem [thread:$0]  (!%p15834_p12), %s18991_s13, 1280, %s955_s7, [#allocation6], %s18990_s26, %s18990_s26, %s18989_s28  }
 0x1be   : > { %s15016_s8 = scalar_lea.hbm %s18992_s18, 16 }
 0x1bf   : > { %p15017_p13 = scmp.ne.s32.totalorder %s18992_s18, %s15016_s8  ;;  %p15023_p9 = scmp.lt.u32.totalorder %s15016_s8, %s18992_s18 }
 0x1c1   : > { %p15019_p6 = pnand %p15017_p13, %p15846_p0 }
 0x1c3   : > { %p15020_p5 = pneg %p15019_p6 }
 0x1c5   : > { %p15025_p10 = pnand %p15023_p9, %p15020_p5 }
 0x1c7   : > { %15028 = shalt.err (!%p15025_p10)
}
 0x1c8   : > { %s15029_s1 = scalar_lea.vmem %s16063_s6, 16  ;;  %s15036_s22 = scalar_lea.vmem %s16063_s6, 32 }
 0x1c9   : > { %p15030_p1 = scmp.ne.s32.totalorder %s16063_s6, %s15029_s1  ;;  %p15037_p4 = scmp.lt.s32.totalorder %s16063_s6, %s16063_s6 }
 0x1ca   : > { %p15038_p7 = scmp.lt.s32.totalorder %s15036_s22, %s15029_s1 }
 0x1cb   : > { %p15032_p2 = pnand %p15030_p1, %p15846_p0 }
 0x1cc   : > { %p15039_p8 = por %p15038_p7, %p15037_p4 }
 0x1cd   : > { %p15033_p3 = pneg %p15032_p2 }
 0x1cf   : > { %p15040_p11 = pnand %p15039_p8, %p15033_p3 }
 0x1d1   : > { %15043 = shalt.err (!%p15040_p11)
}
 0x1d2   : > { %s18993_s7 = sld [smem:[#allocation68_spill]]  ;;  %s15561_s11 = smov [#allocation13]  }
 0x1d3   : > { %13290 = dma.hbm_to_vmem [thread:$0]  (!%p15834_p12), %s18992_s18, 16, %s16063_s6, [#allocation9]  }
 0x1d4   : > { %s1000_s10 = sshll.u32 %s15561_s11, 4  ;;  %s15562_s4 = smov [#allocation16]   ;;  %s1001_s10 = int_to_ptr.vmem [resolvable:$true] %s1000_s10 }
 0x1d5   : > { %s1026_s9 = sshll.u32 %s15562_s4, 4  ;;  %s16094_s9 = int_to_ptr.vmem [resolvable:$true] %s1026_s9 }
 0x1d8   : > { %s18994_s8 = smov %s18993_s7  ;;  %s15044_s1 = scalar_lea.hbm %s18993_s7, 3072 }
 0x1d9   : > { %p15045_p13 = scmp.ne.s32.totalorder %s18994_s8, %s15044_s1  ;;  %p15051_p9 = scmp.lt.u32.totalorder %s15044_s1, %s18994_s8 }
 0x1db   : > { %p15047_p6 = pnand %p15045_p13, %p15846_p0 }
 0x1dd   : > { %p15048_p5 = pneg %p15047_p6 }
 0x1df   : > { %p15053_p10 = pnand %p15051_p9, %p15048_p5 }
 0x1e1   : > { %15056 = shalt.err (!%p15053_p10)
}
 0x1e2   : > { %s15057_s22 = scalar_lea.vmem %s1001_s10, 3072  ;;  %p15065_p4 = scmp.lt.s32.totalorder %s1001_s10, %s1001_s10 }
 0x1e3   : > { %p15058_p1 = scmp.ne.s32.totalorder %s1001_s10, %s15057_s22  ;;  %p15066_p7 = scmp.lt.s32.totalorder %s15057_s22, %s15057_s22 }
 0x1e5   : > { %p15060_p2 = pnand %p15058_p1, %p15846_p0  ;;  %p15067_p8 = por %p15066_p7, %p15065_p4 }
 0x1e7   : > { %p15061_p3 = pneg %p15060_p2 }
 0x1e9   : > { %p15068_p11 = pnand %p15067_p8, %p15061_p3 }
 0x1eb   : > { %15071 = shalt.err (!%p15068_p11)
}
 0x1ec   : > { %s18995_s4 = sld [smem:[#allocation70_spill]] }
 0x1ed   : > { %13296 = dma.hbm_to_vmem [thread:$0]  (!%p15834_p12), %s18994_s8, 3072, %s1001_s10, [#allocation12], %s18990_s26, %s18990_s26, %s18989_s28  }
 0x1f2   : > { %s15072_s6 = scalar_lea.hbm %s18995_s4, 48 }
 0x1f3   : > { %p15073_p13 = scmp.ne.s32.totalorder %s18995_s4, %s15072_s6  ;;  %p15079_p9 = scmp.lt.u32.totalorder %s15072_s6, %s18995_s4 }
 0x1f5   : > { %p15075_p6 = pnand %p15073_p13, %p15846_p0 }
 0x1f7   : > { %p15076_p5 = pneg %p15075_p6 }
 0x1f9   : > { %p15081_p10 = pnand %p15079_p9, %p15076_p5 }
 0x1fb   : > { %15084 = shalt.err (!%p15081_p10)
}
 0x1fc   : > { %s15085_s7 = scalar_lea.vmem %s16094_s9, 48  ;;  %s15092_s11 = scalar_lea.vmem %s16094_s9, 64 }
 0x1fd   : > { %p15086_p1 = scmp.ne.s32.totalorder %s16094_s9, %s15085_s7  ;;  %p15093_p4 = scmp.lt.s32.totalorder %s16094_s9, %s16094_s9 }
 0x1fe   : > { %p15094_p7 = scmp.lt.s32.totalorder %s15092_s11, %s15085_s7 }
 0x1ff   : > { %p15088_p2 = pnand %p15086_p1, %p15846_p0 }
 0x200   : > { %p15095_p8 = por %p15094_p7, %p15093_p4 }
 0x201   : > { %p15089_p3 = pneg %p15088_p2 }
 0x203   : > { %p15096_p11 = pnand %p15095_p8, %p15089_p3 }
 0x205   : > { %15099 = shalt.err (!%p15096_p11)
}
 0x206   : > { %s18996_s10 = smov 1   ;;  %s18997_s1 = smov 16  }
 0x207   : > { %s18998_s22 = sld [smem:[#allocation72_spill]]  ;;  %s15563_s6 = smov [#allocation19]  }
 0x208   : > { %13302 = dma.hbm_to_vmem [thread:$0]  (!%p15834_p12), %s18995_s4, 48, %s16094_s9, [#allocation15], %s18997_s1, %s18997_s1, %s18996_s10  }
 0x209   : > { %s1055_s8 = sshll.u32 %s15563_s6, 4  ;;  %s15564_s12 = smov [#allocation22]   ;;  %s1056_s8 = int_to_ptr.vmem [resolvable:$true] %s1055_s8 }
 0x20a   : > { %s1081_s13 = sshll.u32 %s15564_s12, 4  ;;  %s16128_s13 = int_to_ptr.vmem [resolvable:$true] %s1081_s13 }
 0x20d   : > { %s15100_s7 = scalar_lea.hbm %s18998_s22, 144 }
 0x20e   : > { %p15101_p13 = scmp.ne.s32.totalorder %s18998_s22, %s15100_s7  ;;  %p15107_p9 = scmp.lt.u32.totalorder %s15100_s7, %s18998_s22 }
 0x210   : > { %p15103_p6 = pnand %p15101_p13, %p15846_p0 }
 0x212   : > { %p15104_p5 = pneg %p15103_p6 }
 0x214   : > { %p15109_p10 = pnand %p15107_p9, %p15104_p5 }
 0x216   : > { %15112 = shalt.err (!%p15109_p10)
}
 0x217   : > { %s15113_s11 = scalar_lea.vmem %s1056_s8, 144  ;;  %s15120_s9 = scalar_lea.vmem %s1056_s8, 160 }
 0x218   : > { %p15114_p1 = scmp.ne.s32.totalorder %s1056_s8, %s15113_s11  ;;  %p15121_p4 = scmp.lt.s32.totalorder %s1056_s8, %s1056_s8 }
 0x219   : > { %p15122_p7 = scmp.lt.s32.totalorder %s15120_s9, %s15113_s11 }
 0x21a   : > { %p15116_p2 = pnand %p15114_p1, %p15846_p0 }
 0x21b   : > { %p15123_p8 = por %p15122_p7, %p15121_p4 }
 0x21c   : > { %p15117_p3 = pneg %p15116_p2 }
 0x21e   : > { %p15124_p11 = pnand %p15123_p8, %p15117_p3 }
 0x220   : > { %15127 = shalt.err (!%p15124_p11)
}
 0x221   : > { %s18999_s12 = sld [smem:[#allocation74_spill]] }
 0x222   : > { %13308 = dma.hbm_to_vmem [thread:$0]  (!%p15834_p12), %s18998_s22, 144, %s1056_s8, [#allocation18], %s18997_s1, %s18997_s1, %s18996_s10  }
 0x227   : > { %s15128_s6 = scalar_lea.hbm %s18999_s12, 144 }
 0x228   : > { %p15129_p13 = scmp.ne.s32.totalorder %s18999_s12, %s15128_s6  ;;  %p15135_p9 = scmp.lt.u32.totalorder %s15128_s6, %s18999_s12 }
 0x22a   : > { %p15131_p6 = pnand %p15129_p13, %p15846_p0 }
 0x22c   : > { %p15132_p5 = pneg %p15131_p6 }
 0x22e   : > { %p15137_p10 = pnand %p15135_p9, %p15132_p5 }
 0x230   : > { %15140 = shalt.err (!%p15137_p10)
}
 0x231   : > { %s15141_s7 = scalar_lea.vmem %s16128_s13, 144  ;;  %s15148_s11 = scalar_lea.vmem %s16128_s13, 160 }
 0x232   : > { %p15142_p1 = scmp.ne.s32.totalorder %s16128_s13, %s15141_s7  ;;  %p15149_p4 = scmp.lt.s32.totalorder %s16128_s13, %s16128_s13 }
 0x233   : > { %p15150_p7 = scmp.lt.s32.totalorder %s15148_s11, %s15141_s7 }
 0x234   : > { %p15144_p2 = pnand %p15142_p1, %p15846_p0 }
 0x235   : > { %p15151_p8 = por %p15150_p7, %p15149_p4 }
 0x236   : > { %p15145_p3 = pneg %p15144_p2 }
 0x238   : > { %p15152_p11 = pnand %p15151_p8, %p15145_p3 }
 0x23a   : > { %15155 = shalt.err (!%p15152_p11)
}
 0x23b   : > { %s19000_s8 = sld [smem:[#allocation75_spill]]  ;;  %s15565_s9 = smov [#allocation25]  }
 0x23c   : > { %13314 = dma.hbm_to_vmem [thread:$0]  (!%p15834_p12), %s18999_s12, 144, %s16128_s13, [#allocation21], %s18997_s1, %s18997_s1, %s18996_s10  }
 0x23d   : > { %s1107_s6 = sshll.u32 %s15565_s9, 4  ;;  %s15566_s4 = smov [#allocation28]   ;;  %s1108_s6 = int_to_ptr.vmem [resolvable:$true] %s1107_s6 }
 0x23e   : > { %s1133_s18 = sshll.u32 %s15566_s4, 4  ;;  %s16162_s18 = int_to_ptr.vmem [resolvable:$true] %s1133_s18 }
 0x241   : > { %s15156_s7 = scalar_lea.hbm %s19000_s8, 48 }
 0x242   : > { %p15157_p13 = scmp.ne.s32.totalorder %s19000_s8, %s15156_s7  ;;  %p15163_p9 = scmp.lt.u32.totalorder %s15156_s7, %s19000_s8 }
 0x244   : > { %p15159_p6 = pnand %p15157_p13, %p15846_p0 }
 0x246   : > { %p15160_p5 = pneg %p15159_p6 }
 0x248   : > { %p15165_p10 = pnand %p15163_p9, %p15160_p5 }
 0x24a   : > { %15168 = shalt.err (!%p15165_p10)
}
 0x24b   : > { %s15169_s11 = scalar_lea.vmem %s1108_s6, 48  ;;  %s15176_s13 = scalar_lea.vmem %s1108_s6, 64 }
 0x24c   : > { %p15170_p1 = scmp.ne.s32.totalorder %s1108_s6, %s15169_s11  ;;  %p15177_p4 = scmp.lt.s32.totalorder %s1108_s6, %s1108_s6 }
 0x24d   : > { %p15178_p7 = scmp.lt.s32.totalorder %s15176_s13, %s15169_s11 }
 0x24e   : > { %p15172_p2 = pnand %p15170_p1, %p15846_p0 }
 0x24f   : > { %p15179_p8 = por %p15178_p7, %p15177_p4 }
 0x250   : > { %p15173_p3 = pneg %p15172_p2 }
 0x252   : > { %p15180_p11 = pnand %p15179_p8, %p15173_p3 }
 0x254   : > { %15183 = shalt.err (!%p15180_p11)
}
 0x255   : > { %s19001_s4 = sld [smem:[#allocation77_spill]] }
 0x256   : > { %13320 = dma.hbm_to_vmem [thread:$0]  (!%p15834_p12), %s19000_s8, 48, %s1108_s6, [#allocation24], %s18997_s1, %s18997_s1, %s18996_s10  }
 0x25b   : > { %s15184_s9 = scalar_lea.hbm %s19001_s4, 48 }
 0x25c   : > { %p15185_p13 = scmp.ne.s32.totalorder %s19001_s4, %s15184_s9  ;;  %p15191_p9 = scmp.lt.u32.totalorder %s15184_s9, %s19001_s4 }
 0x25e   : > { %p15187_p6 = pnand %p15185_p13, %p15846_p0 }
 0x260   : > { %p15188_p5 = pneg %p15187_p6 }
 0x262   : > { %p15193_p10 = pnand %p15191_p9, %p15188_p5 }
 0x264   : > { %15196 = shalt.err (!%p15193_p10)
}
 0x265   : > { %s15197_s7 = scalar_lea.vmem %s16162_s18, 48  ;;  %s15204_s11 = scalar_lea.vmem %s16162_s18, 64 }
 0x266   : > { %p15198_p1 = scmp.ne.s32.totalorder %s16162_s18, %s15197_s7  ;;  %p15205_p4 = scmp.lt.s32.totalorder %s16162_s18, %s16162_s18 }
 0x267   : > { %p15206_p7 = scmp.lt.s32.totalorder %s15204_s11, %s15197_s7 }
 0x268   : > { %p15200_p2 = pnand %p15198_p1, %p15846_p0 }
 0x269   : > { %p15207_p8 = por %p15206_p7, %p15205_p4 }
 0x26a   : > { %p15201_p3 = pneg %p15200_p2 }
 0x26c   : > { %p15208_p11 = pnand %p15207_p8, %p15201_p3 }
 0x26e   : > { %15211 = shalt.err (!%p15208_p11)
}
 0x26f   : > { %s19002_s6 = sld [smem:[#allocation80_spill]]  ;;  %s15567_s13 = smov [#allocation31]  }
 0x270   : > { %13326 = dma.hbm_to_vmem [thread:$0]  (!%p15834_p12), %s19001_s4, 48, %s16162_s18, [#allocation27], %s18997_s1, %s18997_s1, %s18996_s10  }
 0x271   : > { %s1165_s9 = sshll.u32 %s15567_s13, 4  ;;  %s15568_s8 = smov [#allocation34]   ;;  %s1166_s9 = int_to_ptr.vmem [resolvable:$true] %s1165_s9 }
 0x272   : > { %s1193_s12 = sshll.u32 %s15568_s8, 4  ;;  %s16196_s12 = int_to_ptr.vmem [resolvable:$true] %s1193_s12 }
 0x275   : > { %s15212_s7 = scalar_lea.hbm %s19002_s6, 48 }
 0x276   : > { %p15213_p13 = scmp.ne.s32.totalorder %s19002_s6, %s15212_s7  ;;  %p15219_p9 = scmp.lt.u32.totalorder %s15212_s7, %s19002_s6 }
 0x278   : > { %p15215_p6 = pnand %p15213_p13, %p15846_p0 }
 0x27a   : > { %p15216_p5 = pneg %p15215_p6 }
 0x27c   : > { %p15221_p10 = pnand %p15219_p9, %p15216_p5 }
 0x27e   : > { %15224 = shalt.err (!%p15221_p10)
}
 0x27f   : > { %s15225_s11 = scalar_lea.vmem %s1166_s9, 48  ;;  %s15232_s18 = scalar_lea.vmem %s1166_s9, 64 }
 0x280   : > { %p15226_p1 = scmp.ne.s32.totalorder %s1166_s9, %s15225_s11  ;;  %p15233_p4 = scmp.lt.s32.totalorder %s1166_s9, %s1166_s9 }
 0x281   : > { %p15234_p7 = scmp.lt.s32.totalorder %s15232_s18, %s15225_s11 }
 0x282   : > { %p15228_p2 = pnand %p15226_p1, %p15846_p0 }
 0x283   : > { %p15235_p8 = por %p15234_p7, %p15233_p4 }
 0x284   : > { %p15229_p3 = pneg %p15228_p2 }
 0x286   : > { %p15236_p11 = pnand %p15235_p8, %p15229_p3 }
 0x288   : > { %15239 = shalt.err (!%p15236_p11)
}
 0x289   : > { %s19003_s8 = sld [smem:[#allocation82_spill]] }
 0x28a   : > { %13332 = dma.hbm_to_vmem [thread:$0]  (!%p15834_p12), %s19002_s6, 48, %s1166_s9, [#allocation30], %s18997_s1, %s18997_s1, %s18996_s10  }
 0x28f   : > { %s15240_s13 = scalar_lea.hbm %s19003_s8, 48 }
 0x290   : > { %p15241_p13 = scmp.ne.s32.totalorder %s19003_s8, %s15240_s13  ;;  %p15247_p9 = scmp.lt.u32.totalorder %s15240_s13, %s19003_s8 }
 0x292   : > { %p15243_p6 = pnand %p15241_p13, %p15846_p0 }
 0x294   : > { %p15244_p5 = pneg %p15243_p6 }
 0x296   : > { %p15249_p10 = pnand %p15247_p9, %p15244_p5 }
 0x298   : > { %15252 = shalt.err (!%p15249_p10)
}
 0x299   : > { %s15253_s7 = scalar_lea.vmem %s16196_s12, 48  ;;  %s15260_s11 = scalar_lea.vmem %s16196_s12, 64 }
 0x29a   : > { %p15254_p1 = scmp.ne.s32.totalorder %s16196_s12, %s15253_s7  ;;  %p15261_p4 = scmp.lt.s32.totalorder %s16196_s12, %s16196_s12 }
 0x29b   : > { %p15262_p7 = scmp.lt.s32.totalorder %s15260_s11, %s15253_s7 }
 0x29c   : > { %p15256_p2 = pnand %p15254_p1, %p15846_p0 }
 0x29d   : > { %p15263_p8 = por %p15262_p7, %p15261_p4 }
 0x29e   : > { %p15257_p3 = pneg %p15256_p2 }
 0x2a0   : > { %p15264_p11 = pnand %p15263_p8, %p15257_p3 }
 0x2a2   : > { %15267 = shalt.err (!%p15264_p11)
}
 0x2a3   : > { %s19004_s10 = sld [smem:[#allocation84_spill]]  ;;  %s15569_s9 = smov [#allocation37]  }
 0x2a4   : > { %13338 = dma.hbm_to_vmem [thread:$0]  (!%p15834_p12), %s19003_s8, 48, %s16196_s12, [#allocation33]  }
 0x2a5   : > { %s1218_s18 = sshll.u32 %s15569_s9, 4  ;;  %s15570_s13 = smov [#allocation40]   ;;  %s1219_s18 = int_to_ptr.vmem [resolvable:$true] %s1218_s18 }
 0x2a6   : > { %s1246_s4 = sshll.u32 %s15570_s13, 4  ;;  %s16227_s4 = int_to_ptr.vmem [resolvable:$true] %s1246_s4 }
 0x2a9   : > { %s19005_s1 = smov %s19004_s10  ;;  %s15268_s7 = scalar_lea.hbm %s19004_s10, 16 }
 0x2aa   : > { %p15269_p13 = scmp.ne.s32.totalorder %s19005_s1, %s15268_s7  ;;  %p15275_p9 = scmp.lt.u32.totalorder %s15268_s7, %s19005_s1 }
 0x2ac   : > { %p15271_p6 = pnand %p15269_p13, %p15846_p0 }
 0x2ae   : > { %p15272_p5 = pneg %p15271_p6 }
 0x2b0   : > { %p15277_p10 = pnand %p15275_p9, %p15272_p5 }
 0x2b2   : > { %15280 = shalt.err (!%p15277_p10)
}
 0x2b3   : > { %s15281_s11 = scalar_lea.vmem %s1219_s18, 16  ;;  %s15288_s12 = scalar_lea.vmem %s1219_s18, 32 }
 0x2b4   : > { %p15282_p1 = scmp.ne.s32.totalorder %s1219_s18, %s15281_s11  ;;  %p15289_p4 = scmp.lt.s32.totalorder %s1219_s18, %s1219_s18 }
 0x2b5   : > { %p15290_p7 = scmp.lt.s32.totalorder %s15288_s12, %s15281_s11 }
 0x2b6   : > { %p15284_p2 = pnand %p15282_p1, %p15846_p0 }
 0x2b7   : > { %p15291_p8 = por %p15290_p7, %p15289_p4 }
 0x2b8   : > { %p15285_p3 = pneg %p15284_p2 }
 0x2ba   : > { %p15292_p11 = pnand %p15291_p8, %p15285_p3 }
 0x2bc   : > { %15295 = shalt.err (!%p15292_p11)
}
 0x2bd   : > { %s19006_s10 = sld [smem:[#allocation88_spill]] }
 0x2be   : > { %13344 = dma.hbm_to_vmem [thread:$0]  (!%p15834_p12), %s19005_s1, 16, %s1219_s18, [#allocation36]  }
 0x2c3   : > { %s19007_s9 = smov %s19006_s10  ;;  %s15296_s13 = scalar_lea.hbm %s19006_s10, 48 }
 0x2c4   : > { %p15297_p13 = scmp.ne.s32.totalorder %s19007_s9, %s15296_s13  ;;  %p15303_p9 = scmp.lt.u32.totalorder %s15296_s13, %s19007_s9 }
 0x2c6   : > { %p15299_p6 = pnand %p15297_p13, %p15846_p0 }
 0x2c8   : > { %p15300_p5 = pneg %p15299_p6 }
 0x2ca   : > { %p15305_p10 = pnand %p15303_p9, %p15300_p5 }
 0x2cc   : > { %15308 = shalt.err (!%p15305_p10)
}
 0x2cd   : > { %s15309_s7 = scalar_lea.vmem %s16227_s4, 48  ;;  %s15316_s11 = scalar_lea.vmem %s16227_s4, 64 }
 0x2ce   : > { %p15310_p1 = scmp.ne.s32.totalorder %s16227_s4, %s15309_s7  ;;  %p15317_p4 = scmp.lt.s32.totalorder %s16227_s4, %s16227_s4 }
 0x2cf   : > { %p15318_p7 = scmp.lt.s32.totalorder %s15316_s11, %s15309_s7 }
 0x2d0   : > { %p15312_p2 = pnand %p15310_p1, %p15846_p0 }
 0x2d1   : > { %p15319_p8 = por %p15318_p7, %p15317_p4 }
 0x2d2   : > { %p15313_p3 = pneg %p15312_p2 }
 0x2d4   : > { %p15320_p11 = pnand %p15319_p8, %p15313_p3 }
 0x2d6   : > { %15323 = shalt.err (!%p15320_p11)
}
 0x2d7   : > { %13350 = dma.hbm_to_vmem [thread:$0]  (!%p15834_p12), %s19007_s9, 48, %s16227_s4, [#allocation39]  }
 0x2d8   : > { %s15571_s18 = smov [#allocation43]   ;;  %s15572_s10 = smov [#allocation44]  }
 0x2d9   : > { %s1268_s12 = sshll.u32 %s15571_s18, 4  ;;  %s1278_s13 = sshll.u32 %s15572_s10, 4  ;;  %s1269_s12 = int_to_ptr.vmem [resolvable:$true] %s1268_s12  ;;  %s16255_s13 = int_to_ptr.vmem [resolvable:$true] %s1278_s13 }
 0x2da   : > { %s15324_s7 = scalar_lea.hbm %s18970_s3, 96 }
 0x2db   : > { %p15325_p13 = scmp.ne.s32.totalorder %s18970_s3, %s15324_s7  ;;  %p15331_p9 = scmp.lt.u32.totalorder %s15324_s7, %s18970_s3 }
 0x2dd   : > { %p15327_p6 = pnand %p15325_p13, %p15846_p0 }
 0x2df   : > { %p15328_p5 = pneg %p15327_p6 }
 0x2e1   : > { %p15333_p10 = pnand %p15331_p9, %p15328_p5 }
 0x2e3   : > { %15336 = shalt.err (!%p15333_p10)
}
 0x2e4   : > { %s15337_s11 = scalar_lea.vmem %s1269_s12, 96  ;;  %p15345_p4 = scmp.lt.s32.totalorder %s1269_s12, %s1269_s12 }
 0x2e5   : > { %p15338_p1 = scmp.ne.s32.totalorder %s1269_s12, %s15337_s11  ;;  %p15346_p7 = scmp.lt.s32.totalorder %s15337_s11, %s15337_s11 }
 0x2e7   : > { %p15340_p2 = pnand %p15338_p1, %p15846_p0  ;;  %p15347_p8 = por %p15346_p7, %p15345_p4 }
 0x2e9   : > { %p15341_p3 = pneg %p15340_p2 }
 0x2eb   : > { %p15348_p11 = pnand %p15347_p8, %p15341_p3 }
 0x2ed   : > { %15351 = shalt.err (!%p15348_p11)
}
 0x2ee   : > { %13356 = dma.hbm_to_vmem [thread:$0]  (!%p15834_p12), %s18970_s3, 96, %s1269_s12, [#allocation42]  }
 0x2ef   : > { %s15352_s4 = scalar_lea.hbm %s15763_s5, 6144 }
 0x2f0   : > { %p15353_p13 = scmp.ne.s32.totalorder %s15763_s5, %s15352_s4  ;;  %p15359_p9 = scmp.lt.u32.totalorder %s15352_s4, %s15763_s5 }
 0x2f2   : > { %p15355_p6 = pnand %p15353_p13, %p15846_p0 }
 0x2f4   : > { %p15356_p5 = pneg %p15355_p6 }
 0x2f6   : > { %p15361_p10 = pnand %p15359_p9, %p15356_p5 }
 0x2f8   : > { %15364 = shalt.err (!%p15361_p10)
}
 0x2f9   : > { %s15365_s18 = scalar_lea.vmem %s16255_s13, 6144  ;;  %p15373_p4 = scmp.lt.s32.totalorder %s16255_s13, %s16255_s13 }
 0x2fa   : > { %p15366_p1 = scmp.ne.s32.totalorder %s16255_s13, %s15365_s18  ;;  %p15374_p7 = scmp.lt.s32.totalorder %s15365_s18, %s15365_s18 }
 0x2fc   : > { %p15368_p2 = pnand %p15366_p1, %p15846_p0  ;;  %p15375_p8 = por %p15374_p7, %p15373_p4 }
 0x2fe   : > { %p15369_p3 = pneg %p15368_p2 }
 0x300   : > { %p15376_p11 = pnand %p15375_p8, %p15369_p3 }
 0x302   : > { %15379 = shalt.err (!%p15376_p11)
}
 0x303   : > { %13359 = dma.hbm_to_vmem [thread:$0]  (!%p15834_p12), %s15763_s5, 6144, %s16255_s13, [#allocation45], %s18990_s26, %s18990_s26, %s18989_s28  }
 0x304   : > { %p19008_p13 = scmp.ne.s32.totalorder %s18986_s2, 0 }
 0x306   : > { %1305 = sbr.rel (%p19008_p13) target bundleno = 11345 (0x2c51), region = 168 }
 0x30d   : > { %p19009_p0 = scmp.eq.s32.totalorder %s15796_s15, 0 }
 0x30f   : > { %15425 = dma.done.wait (%p19009_p0), [#allocation3], 512   ;;  %p19010_p6 = pmov %p19009_p0 }
 0x310   : > { %p19011_p5 = pmov %p19009_p0 }
 0x311   : > { %15427 = vsyncadd (%p19010_p6), [#allocation3], 4294966784 }
 0x312   : > { %15429 = dma.done.wait (%p19011_p5), [#allocation6], 1792   ;;  %p19012_p9 = pmov %p19009_p0 }
 0x313   : > { %p19013_p10 = pmov %p19009_p0 }
 0x314   : > { %15431 = vsyncadd (%p19012_p9), [#allocation6], 4294965504 }
 0x315   : > { %15433 = dma.done.wait (%p19013_p10), [#allocation9], 32   ;;  %p19014_p12 = pmov %p19009_p0 }
 0x316   : > { %p19015_p1 = pmov %p19009_p0 }
 0x317   : > { %15435 = vsyncadd (%p19014_p12), [#allocation9], 4294967264 }
 0x318   : > { %15437 = dma.done.wait (%p19015_p1), [#allocation12], 3088   ;;  %p19016_p2 = pmov %p19009_p0 }
 0x319   : > { %p19017_p3 = pmov %p19009_p0 }
 0x31a   : > { %15439 = vsyncadd (%p19016_p2), [#allocation12], 4294964208 }
 0x31b   : > { %15441 = dma.done.wait (%p19017_p3), [#allocation15], 96   ;;  %p19018_p4 = pmov %p19009_p0 }
 0x31c   : > { %p19019_p7 = pmov %p19009_p0 }
 0x31d   : > { %15443 = vsyncadd (%p19018_p4), [#allocation15], 4294967200 }
 0x31e   : > { %15445 = dma.done.wait (%p19019_p7), [#allocation18], 192   ;;  %p19020_p8 = pmov %p19009_p0 }
 0x31f   : > { %p19021_p11 = pmov %p19009_p0 }
 0x320   : > { %15447 = vsyncadd (%p19020_p8), [#allocation18], 4294967104 }
 0x321   : > { %15449 = dma.done.wait (%p19021_p11), [#allocation21], 288   ;;  %p19022_p13 = pmov %p19009_p0 }
 0x323   : > { %15451 = vsyncadd (%p19022_p13), [#allocation21], 4294967008 }
 0x324   : > { %15453 = dma.done.wait (%p19009_p0), [#allocation24], 3120   ;;  %p19023_p6 = pmov %p19009_p0 }
 0x325   : > { %p19024_p5 = pmov %p19009_p0 }
 0x326   : > { %15455 = vsyncadd (%p19023_p6), [#allocation24], 4294964176 }
 0x327   : > { %15457 = dma.done.wait (%p19024_p5), [#allocation27], 96   ;;  %p19025_p9 = pmov %p19009_p0 }
 0x328   : > { %p19026_p10 = pmov %p19009_p0 }
 0x329   : > { %15459 = vsyncadd (%p19025_p9), [#allocation27], 4294967200 }
 0x32a   : > { %15461 = dma.done.wait (%p19026_p10), [#allocation30], 96   ;;  %p19027_p12 = pmov %p19009_p0 }
 0x32b   : > { %p19028_p1 = pmov %p19009_p0 }
 0x32c   : > { %15463 = vsyncadd (%p19027_p12), [#allocation30], 4294967200 }
 0x32d   : > { %15465 = dma.done.wait (%p19028_p1), [#allocation33], 96   ;;  %p19029_p2 = pmov %p19009_p0 }
 0x32e   : > { %p19030_p3 = pmov %p19009_p0 }
 0x32f   : > { %15467 = vsyncadd (%p19029_p2), [#allocation33], 4294967200 }
 0x330   : > { %15469 = dma.done.wait (%p19030_p3), [#allocation36], 64   ;;  %p19031_p4 = pmov %p19009_p0 }
 0x331   : > { %p19032_p7 = pmov %p19009_p0 }
 0x332   : > { %15471 = vsyncadd (%p19031_p4), [#allocation36], 4294967232 }
 0x333   : > { %15473 = dma.done.wait (%p19032_p7), [#allocation39], 64   ;;  %p19033_p8 = pmov %p19009_p0 }
 0x334   : > { %p19034_p11 = pmov %p19009_p0 }
 0x335   : > { %15475 = vsyncadd (%p19033_p8), [#allocation39], 4294967232 }
 0x336   : > { %15477 = dma.done.wait (%p19034_p11), [#allocation42], 192   ;;  %p19035_p13 = pmov %p19009_p0 }
 0x338   : > { %15479 = vsyncadd (%p19035_p13), [#allocation42], 4294967104 }
 0x339   : > { %15481 = dma.done.wait (%p19009_p0), [#allocation45], 6144   ;;  %p19036_p6 = pmov %p19009_p0 }
 0x33a   : > { %s19037_s2 = sld [smem:[#allocation63_spill]]  ;;  %p1504_p5 = scmp.lt.s32.totalorder %s15796_s15, 1  ;;  %vm1534_vm0 = vcmask 1046528   ;;  %v14098_v21 = vld [vmem:[#allocation2] sm:$0xff]   ;;  %v14099_v24 = vld [vmem:[#allocation2 + $0x8] sm:$0xff]   ;;  %v14100_v27 = vld [vmem:[#allocation2 + $0x10] sm:$0xff]  }
 0x33b   : > { %15483 = vsyncadd (%p19036_p6), [#allocation45], 4294961152  ;;  %s15573_s26 = smov 32   ;;  %12489 = vmatprep.subr.bf16.mxu0 %v14098_v21  ;;  %v14101_v29 = vld [vmem:[#allocation2 + $0x18] sm:$0xff]   ;;  %vm1571_vm1 = vcmask 261120   ;;  %vm1615_vm2 = vcmask 523264  }
 0x33c   : > { %s1505_s23 = scalar_select %p1504_p5, %s15796_s15, 1  ;;  %12490 = vmatpush3.bf16.msra.mxu0 %v14098_v21  ;;  %v14102_v51 = vld [vmem:[#allocation5] sm:$0xff]   ;;  %v14103_v52 = vld [vmem:[#allocation5 + $0x8] sm:$0xff]   ;;  %v14104_v53 = vld [vmem:[#allocation5 + $0x10] sm:$0xff]   ;;  %vm2276_vm10 = vcmask 785408   ;;  %vm15578_vm12 = vmmov 0  }
 0x33d   : > { %12491 = vmatprep.subr.bf16.mxu0 %v14099_v24  ;;  %12505 = vmatprep.subr.bf16.mxu1 %v14102_v51  ;;  %v14105_v54 = vld [vmem:[#allocation5 + $0x18] sm:$0xff]   ;;  %s15574_s12 = smov 64   ;;  %s15576_s10 = smov 96  }
 0x33e   : > { %s12050_s16 = sshll.u32 %s1505_s23, 6  ;;  %12506 = vmatpush3.bf16.msra.mxu1 %v14102_v51  ;;  %s19039_s13 = sld [smem:[#allocation71_spill]] }
 0x33f   : > { %12507 = vmatprep.subr.bf16.mxu1 %v14103_v52  ;;  %s19040_s7 = sld [smem:[#allocation78_spill]]  ;;  %s19042_s11 = sld [smem:[#allocation79_spill]] }
 0x340   : > { %s1508_s28 = scalar_lea.vmem %s19037_s2, %s12050_s16  ;;  %12492 = vmatpush3.bf16.msra.mxu0 %v14099_v24  ;;  %v14106_v24 = vld [vmem:[#allocation7] sm:$0xff]   ;;  %s19054_s2 = sld [smem:[#allocation81_spill]] }
 0x341   : > { %v1518_v0 = vld [vmem:[%s1508_s28] sm:$0xff]  ;;  %v1519_v1 = vld [vmem:[%s1508_s28 + $0x8] sm:$0xff]  ;;  %v1520_v2 = vld [vmem:[%s1508_s28 + $0x10] sm:$0xff]  ;;  %12493 = vmatprep.subr.bf16.mxu0 %v14100_v27  ;;  %s19056_s23 = sld [smem:[#allocation83_spill]]  ;;  %s19059_s16 = sld [smem:[#allocation87_spill]] }
 0x342   : > { %v1535_v3 = vrot.slane %v1518_v0, 1  ;;  %v1536_v4 = vrot.slane %v1519_v1, 1  ;;  %v1538_v5 = vrot.slane %v1520_v2, 1  ;;  %v1521_v6 = vld [vmem:[%s1508_s28 + $0x18] sm:$0xff]  ;;  %v1522_v7 = vld [vmem:[%s1508_s28 + $0x20] sm:$0xff]  ;;  %v1523_v8 = vld [vmem:[%s1508_s28 + $0x28] sm:$0xff]  ;;  %12508 = vmatpush3.bf16.msra.mxu1 %v14103_v52 }
 0x343   : > { %v1540_v9 = vrot.slane %v1521_v6, 1  ;;  %v1542_v10 = vrot.slane %v1522_v7, 1  ;;  %v1524_v11 = vld [vmem:[%s1508_s28 + $0x30] sm:$0xff]  ;;  %v1544_v12 = vrot.slane %v1523_v8, 1  ;;  %v1525_v13 = vld [vmem:[%s1508_s28 + $0x38] sm:$0x1]  ;;  %12509 = vmatprep.subr.bf16.mxu1 %v14104_v53 }
 0x344   : > { %v1537_v14 = vsel %vm1534_vm0, %v1535_v3, %v1536_v4  ;;  %v1539_v15 = vsel %vm1534_vm0, %v1536_v4, %v1538_v5  ;;  %v1546_v16 = vrot.slane %v1524_v11, 1  ;;  %v1548_v23 = vrot.slane %v1525_v13, 1  ;;  %12494 = vmatpush3.bf16.msra.mxu0 %v14100_v27  ;;  %v14108_v27 = vld [vmem:[#allocation7 + $0x10] sm:$0xff]   ;;  %s19060_s28 = sld [smem:[#allocation86_spill]]  ;;  %s15579_s3 = smov [#allocation46]  }
 0x345   : > { %v13528_v17 = vpack.i.bf16 %v1539_v15, %v1537_v14  ;;  %v1541_v18 = vsel %vm1534_vm0, %v1538_v5, %v1540_v9  ;;  %v1543_v19 = vsel %vm1534_vm0, %v1540_v9, %v1542_v10  ;;  %v1545_v20 = vsel %vm1534_vm0, %v1542_v10, %v1544_v12  ;;  %12495 = vmatprep.subr.bf16.mxu0 %v14101_v29  ;;  %s19041_s4 = smov %s19040_s7  ;;  %s19043_s18 = smov %s19042_s11 }
 0x346   : > { %v1547_v22 = vsel %vm1534_vm0, %v1544_v12, %v1546_v16  ;;  %v13533_v25 = vpack.i.bf16 %v1543_v19, %v1541_v18  ;;  %v1549_v28 = vsel %vm1534_vm0, %v1546_v16, %v1548_v23  ;;  %12510 = vmatpush3.bf16.msra.mxu1 %v14104_v53 }
 0x347   : > { %13529 = vrot.lane.b32.xlu0 %v13528_v17, %s15573_s26  ;;  %v13538_v26 = vpack.i.bf16 %v1547_v22, %v1545_v20  ;;  %12511 = vmatprep.subr.bf16.mxu1 %v14105_v54 }
 0x348   : > { %12496 = vmatpush3.bf16.msra.mxu0 %v14101_v29  ;;  %v14110_v29 = vld [vmem:[#allocation7 + $0x20] sm:$0xff]  }
 0x349   : > { %13539 = vrot.lane.b32.xlu1 %v13538_v26, %s15573_s26  ;;  %v14107_v26 = vld [vmem:[#allocation7 + $0x8] sm:$0xff]  }
 0x34a   : > { %12512 = vmatpush3.bf16.msra.mxu1 %v14105_v54 }
 0x34b   : > { %13534 = vrot.lane.b32.xlu0 %v13533_v25, %s15573_s26  ;;  %v18928_v25 = vmov 0  }
 0x34c   : > { %2371 = vmatprep.subr.bf16.mxu0 %v18928_v25 }
 0x34d   : > { %1562 = vrot.lane.b32.xlu1 %v1549_v28, %s15573_s26  ;;  %v14109_v28 = vld [vmem:[#allocation7 + $0x18] sm:$0xff]  }
 0x3b9   : > { %v13530_v30 = vpop.permute.xlu0 %13529 }
 0x3ba   : > { %v13532_v31 = vunpack.i.h.bf16 %v13530_v30  ;;  %v13531_v32 = vunpack.i.l.bf16 %v13530_v30  ;;  %v14111_v30 = vld [vmem:[#allocation7 + $0x28] sm:$0xff]  }
 0x3bb   : > { %v13540_v33 = vpop.permute.xlu1 %13539 }
 0x3bc   : > { %v1572_v34 = vsel %vm1571_vm1, %v1518_v0, %v13531_v32  ;;  %v1573_v35 = vsel %vm1571_vm1, %v1519_v1, %v13532_v31  ;;  %v13542_v36 = vunpack.i.h.bf16 %v13540_v33  ;;  %v13541_v37 = vunpack.i.l.bf16 %v13540_v33  ;;  %v14112_v31 = vld [vmem:[#allocation7 + $0x30] sm:$0xff]  }
 0x3bd   : > { %v13535_v38 = vpop.permute.xlu0 %13534  ;;  %v1579_v39 = vpack.c.bf16 %v1573_v35, %v1572_v34 }
 0x3be   : > { %v13537_v40 = vunpack.i.h.bf16 %v13535_v38  ;;  %v13536_v41 = vunpack.i.l.bf16 %v13535_v38  ;;  %v1577_v42 = vsel %vm1571_vm1, %v1523_v8, %v13542_v36  ;;  %v1576_v43 = vsel %vm1571_vm1, %v1522_v7, %v13541_v37 }
 0x3bf   : > { %12497 = vmatprep.mubr.msk.bf16.mxu0 %vm1615_vm2, %v1579_v39  ;;  %v1581_v46 = vpack.c.bf16 %v1577_v42, %v1576_v43  ;;  %v1563_v48 = vpop.permute.xlu1 %1562 }
 0x3c0   : > { %v1575_v44 = vsel %vm1571_vm1, %v1521_v6, %v13537_v40  ;;  %v1574_v45 = vsel %vm1571_vm1, %v1520_v2, %v13536_v41  ;;  %v1578_v49 = vsel %vm1571_vm1, %v1524_v11, %v1563_v48 }
 0x3c1   : > { %v1580_v47 = vpack.c.bf16 %v1575_v44, %v1574_v45  ;;  %v1582_v50 = vpack.c.bf16 %v1578_v49, %v1578_v49 }
 0x3c3   : > { %12498 = vmatmul.mubr.msk.bf16.vlgmr.msra.gmra.mrb[0].mxu0 %vm1615_vm2, %v1580_v47 }
 0x3c4   : > { %12501 = vmatprep.mubr.msk.bf16.mxu0 %vm1615_vm2, %v1581_v46  ;;  %2372 = vmatpush1.bf16.msra.mxu0 %v14106_v24 }
 0x3c5   : > { %2373 = vmatprep.subr.bf16.mxu0 %v18928_v25 }
 0x3c8   : > { %2374 = vmatpush1.bf16.msra.mxu0 %v14107_v26 }
 0x3c9   : > { %2375 = vmatprep.subr.bf16.mxu0 %v18928_v25 }
 0x3cb   : > { %12502 = vmatmul.mubr.msk.bf16.gmra.mrb[4].mxu0 %vm1615_vm2, %v1582_v50 }
 0x3cc   : > { %2376 = vmatpush1.bf16.msra.mxu0 %v14108_v27  ;;  %v1510_v27 = vlaneseq }
 0x3cd   : > { %2377 = vmatprep.subr.bf16.mxu0 %v18928_v25 }
 0x3d0   : > { %2378 = vmatpush1.bf16.msra.mxu0 %v14109_v28 }
 0x3d1   : > { %2379 = vmatprep.subr.bf16.mxu0 %v18928_v25 }
 0x3d4   : > { %2380 = vmatpush1.bf16.msra.mxu0 %v14110_v29  ;;  %v14113_v29 = vld [vmem:[#allocation7 + $0x38] sm:$0xff]  }
 0x3d5   : > { %2381 = vmatprep.subr.bf16.mxu0 %v18928_v25 }
 0x3d8   : > { %2382 = vmatpush1.bf16.msra.mxu0 %v14111_v30 }
 0x3d9   : > { %2383 = vmatprep.subr.bf16.mxu0 %v18928_v25 }
 0x3dc   : > { %2384 = vmatpush1.bf16.msra.mxu0 %v14112_v31  ;;  %v16398_v31 = vshrl.u32 %v1510_v27, 7 }
 0x3dd   : > { %2385 = vmatprep.subr.bf16.mxu0 %v18928_v25 }
 0x3de   : > { %vm2121_vm3 = vcmp.lt.s32.totalorder %v16398_v31, 6  ;;  %vm1993_vm4 = vcmp.lt.s32.totalorder %v16398_v31, 1  ;;  %vm2057_vm6 = vcmp.lt.s32.totalorder %v16398_v31, 7  ;;  %vm1929_vm7 = vcmp.lt.s32.totalorder %v16398_v31, 2 }
 0x3df   : > { %vm4338_vm13 = vcmp.lt.s32.totalorder %v16398_v31, 3  ;;  %vm4402_vm14 = vcmp.lt.s32.totalorder %v16398_v31, 5 }
 0x3e0   : > { %2386 = vmatpush1.bf16.msra.mxu0 %v14113_v29 }
 0x3e1   : > { %2387 = vmatprep.subr.bf16.mxu0 %v18928_v25 }
 0x496   : > { %v12499_v55 = vpop.f32.mrb[0].mxu0 }
 0x497   : > { %v1662_v56 = vpop.f32.mrb[1].mxu0  ;;  %v1694_v61 = vmul.f32 %v12499_v55, %v12499_v55 }
 0x498   : > { %v1692_v57 = vmul.f32 %v1662_v56, %v1662_v56  ;;  %v12500_v58 = vpop.f32.mrb[2].mxu0 }
 0x499   : > { %v1665_v59 = vpop.f32.mrb[3].mxu0  ;;  %v1695_v62 = vmul.f32 %v12500_v58, %v12500_v58 }
 0x49a   : > { %v1693_v60 = vmul.f32 %v1665_v59, %v1665_v59  ;;  %1706 = vrot.lane.b32.xlu0 %v1692_v57, %s15574_s12 }
 0x49c   : > { %1708 = vrot.lane.b32.xlu1 %v1693_v60, %s15574_s12 }
 0x49e   : > { %1710 = vrot.lane.b32.xlu0 %v1694_v61, %s15574_s12  ;;  %v12503_v63 = vpop.f32.mrb[4].mxu0 }
 0x49f   : > { %v1678_v0 = vpop.f32.mrb[5].mxu0  ;;  %v1698_v5 = vmul.f32 %v12503_v63, %v12503_v63 }
 0x4a0   : > { %v1696_v1 = vmul.f32 %v1678_v0, %v1678_v0  ;;  %1712 = vrot.lane.b32.xlu1 %v1695_v62, %s15574_s12  ;;  %v12504_v2 = vpop.f32.mrb[6].mxu0 }
 0x4a1   : > { %v1681_v3 = vpop.f32.mrb[7].mxu0 }
 0x4a2   : > { %v1697_v4 = vmul.f32 %v1681_v3, %v1681_v3  ;;  %1714 = vrot.lane.b32.xlu0 %v1696_v1, %s15574_s12 }
 0x4a4   : > { %1716 = vrot.lane.b32.xlu1 %v1697_v4, %s15574_s12 }
 0x4a6   : > { %1718 = vrot.lane.b32.xlu0 %v1698_v5, %s15574_s12 }
 0x50c   : > { %v1707_v6 = vpop.permute.xlu0 %1706 }
 0x50d   : > { %v1727_v8 = vadd.f32 %v1707_v6, %v1692_v57 }
 0x50e   : > { %v1709_v7 = vpop.permute.xlu1 %1708 }
 0x50f   : > { %v1728_v9 = vadd.f32 %v1709_v7, %v1693_v60 }
 0x510   : > { %v1711_v10 = vpop.permute.xlu0 %1710 }
 0x511   : > { %v1734_v11 = vpack.c.bf16 %v1728_v9, %v1727_v8  ;;  %v1729_v13 = vadd.f32 %v1711_v10, %v1694_v61 }
 0x512   : > { %v1713_v12 = vpop.permute.xlu1 %1712 }
 0x513   : > { %v1730_v14 = vadd.f32 %v1713_v12, %v1695_v62  ;;  %12513 = vmatprep.mubr.msk.bf16.mxu1 %vm1615_vm2, %v1734_v11 }
 0x514   : > { %v1715_v15 = vpop.permute.xlu0 %1714 }
 0x515   : > { %v1735_v16 = vpack.c.bf16 %v1730_v14, %v1729_v13  ;;  %v1731_v18 = vadd.f32 %v1715_v15, %v1696_v1 }
 0x516   : > { %v1717_v17 = vpop.permute.xlu1 %1716 }
 0x517   : > { %v1732_v19 = vadd.f32 %v1717_v17, %v1697_v4  ;;  %12514 = vmatmul.mubr.msk.bf16.vlgmr.msra.gmra.mrb[0].mxu1 %vm1615_vm2, %v1735_v16 }
 0x518   : > { %v1719_v20 = vpop.permute.xlu0 %1718 }
 0x519   : > { %v1736_v21 = vpack.c.bf16 %v1732_v19, %v1731_v18  ;;  %v1733_v22 = vadd.f32 %v1719_v20, %v1698_v5 }
 0x51b   : > { %12517 = vmatprep.mubr.msk.bf16.mxu1 %vm1615_vm2, %v1736_v21  ;;  %v1737_v23 = vpack.c.bf16 %v1733_v22, %v1733_v22 }
 0x51f   : > { %12518 = vmatmul.mubr.msk.bf16.gmra.mrb[4].mxu1 %vm1615_vm2, %v1737_v23 }
 0x5ea   : > { %v12515_v32 = vpop.f32.mrb[0].mxu1 }
 0x5eb   : > { %v1825_v33 = vadd.f32 1e-10, %v12515_v32  ;;  %v1816_v34 = vpop.f32.mrb[1].mxu1 }
 0x5ec   : > { %v1817_v35 = vadd.f32 1e-10, %v1816_v34  ;;  %v12516_v36 = vpop.f32.mrb[2].mxu1 }
 0x5ed   : > { %14496 = vlog2.f32 %v1825_v33  ;;  %v1828_v37 = vadd.f32 1e-10, %v12516_v36  ;;  %v1819_v38 = vpop.f32.mrb[3].mxu1  ;;  %v2001_v33 = vadd.s32 4294967295, %v16398_v31  ;;  %v14114_v36 = vld [vmem:[#allocation7 + $0x40] sm:$0xff]  }
 0x5ee   : > { %14498 = vlog2.f32 %v1817_v35  ;;  %v1820_v39 = vadd.f32 1e-10, %v1819_v38  ;;  %2388 = vmatpush1.bf16.msra.mxu0 %v14114_v36 }
 0x5ef   : > { %14500 = vlog2.f32 %v1828_v37  ;;  %vm2008_vm5 = vcmp.ge.s32.totalorder %v2001_v33, 0  ;;  %2389 = vmatprep.subr.bf16.mxu0 %v18928_v25 }
 0x5f0   : > { %14502 = vlog2.f32 %v1820_v39 }
 0x5f2   : > { %v12519_v40 = vpop.f32.mrb[4].mxu1 }
 0x5f3   : > { %v1841_v41 = vadd.f32 1e-10, %v12519_v40  ;;  %v1832_v42 = vpop.f32.mrb[5].mxu1 }
 0x5f4   : > { %v1833_v43 = vadd.f32 1e-10, %v1832_v42  ;;  %v12520_v44 = vpop.f32.mrb[6].mxu1 }
 0x5f5   : > { %14504 = vlog2.f32 %v1841_v41  ;;  %v1835_v45 = vpop.f32.mrb[7].mxu1  ;;  %v16420_v44 = vadd.s32 48, %v16398_v31 }
 0x5f6   : > { %14506 = vlog2.f32 %v1833_v43  ;;  %v1836_v46 = vadd.f32 1e-10, %v1835_v45 }
 0x5f7   : > { %v14497_v47 = vpop.eup %14496  ;;  %19038 = vst [vmem:[#allocation97_spill] sm:$0xff] %v16420_v44 }
 0x5f8   : > { %v14499_v48 = vpop.eup %14498  ;;  %v1851_v49 = vmul.f32 0.6931472, %v14497_v47  ;;  %14508 = vlog2.f32 %v1836_v46 }
 0x5f9   : > { %v14501_v50 = vpop.eup %14500  ;;  %v1847_v51 = vmul.f32 0.6931472, %v14499_v48 }
 0x5fa   : > { %v14503_v52 = vpop.eup %14502  ;;  %v1862_v53 = vmul.f32 0.4342945, %v1851_v49  ;;  %v1853_v54 = vmul.f32 0.6931472, %v14501_v50 }
 0x5fb   : > { %v1860_v55 = vmul.f32 0.4342945, %v1847_v51  ;;  %v1849_v56 = vmul.f32 0.6931472, %v14503_v52 }
 0x5fc   : > { %v1863_v58 = vmul.f32 0.4342945, %v1853_v54  ;;  %v1869_v60 = vmul.f32 10.0, %v1862_v53 }
 0x5fd   : > { %v1867_v57 = vmul.f32 10.0, %v1860_v55  ;;  %v1861_v59 = vmul.f32 0.4342945, %v1849_v56 }
 0x5fe   : > { %v1870_v2 = vmul.f32 10.0, %v1863_v58  ;;  %v1877_v6 = vsel %vm1571_vm1, %v1869_v60, 0.0 }
 0x5ff   : > { %v14505_v61 = vpop.eup %14504  ;;  %v1868_v62 = vmul.f32 10.0, %v1861_v59  ;;  %v1874_v1 = vsel %vm1571_vm1, %v1867_v57, 0.0 }
 0x600   : > { %v14507_v63 = vpop.eup %14506  ;;  %v1859_v0 = vmul.f32 0.6931472, %v14505_v61  ;;  %v1879_v12 = vsel %vm1571_vm1, %v1870_v2, 0.0 }
 0x601   : > { %v1875_v3 = vsel %vm1571_vm1, %v1868_v62, 0.0  ;;  %v1855_v4 = vmul.f32 0.6931472, %v14507_v63 }
 0x602   : > { %v14509_v5 = vpop.eup %14508  ;;  %v1876_v7 = vadd.f32 %v1875_v3, %v1874_v1  ;;  %v1866_v8 = vmul.f32 0.4342945, %v1859_v0 }
 0x603   : > { %v1864_v9 = vmul.f32 0.4342945, %v1855_v4  ;;  %v1857_v10 = vmul.f32 0.6931472, %v14509_v5 }
 0x604   : > { %v1878_v11 = vadd.f32 %v1877_v6, %v1876_v7  ;;  %v1873_v16 = vmul.f32 10.0, %v1866_v8 }
 0x605   : > { %v1871_v13 = vmul.f32 10.0, %v1864_v9  ;;  %v1865_v14 = vmul.f32 0.4342945, %v1857_v10 }
 0x606   : > { %v1880_v15 = vadd.f32 %v1879_v12, %v1878_v11  ;;  %v1885_v22 = vsel %vm1571_vm1, %v1873_v16, 0.0 }
 0x607   : > { %v1881_v17 = vsel %vm1571_vm1, %v1871_v13, 0.0  ;;  %v1872_v18 = vmul.f32 10.0, %v1865_v14 }
 0x608   : > { %v1882_v19 = vadd.f32 %v1881_v17, %v1880_v15 }
 0x609   : > { %v1883_v20 = vsel %vm1571_vm1, %v1872_v18, 0.0 }
 0x60a   : > { %v1884_v21 = vadd.f32 %v1883_v20, %v1882_v19 }
 0x60c   : > { %v1886_v23 = vadd.f32 %v1885_v22, %v1884_v21 }
 0x60e   : > { %v1887_v24 = vrot.slane %v1886_v23, 4 }
 0x610   : > { %v1888_v26 = vadd.f32 %v1887_v24, %v1886_v23 }
 0x612   : > { %v1889_v28 = vrot.slane %v1888_v26, 2 }
 0x614   : > { %v1890_v30 = vadd.f32 %v1889_v28, %v1888_v26  ;;  %v2071_v28 = vadd.s32 1, %v16420_v44 }
 0x616   : > { %v1891_v32 = vrot.slane %v1890_v30, 1  ;;  %vm2085_vm8 = vcmp.lt.s32.totalorder %v2071_v28, 56 }
 0x618   : > { %v1892_v34 = vadd.f32 %v1891_v32, %v1890_v30 }
 0x61a   : > { %v1894_v35 = vmul.f32 0.017857144, %v1892_v34 }
 0x61c   : > { %v16405_v37 = vsub.f32 %v1872_v18, %v1894_v35  ;;  %v16407_v38 = vsub.f32 %v1867_v57, %v1894_v35  ;;  %v16409_v39 = vsub.f32 %v1868_v62, %v1894_v35  ;;  %v16411_v40 = vsub.f32 %v1869_v60, %v1894_v35  ;;  %v14115_v57 = vld [vmem:[#allocation7 + $0x48] sm:$0xff]  }
 0x61d   : > { %v16413_v41 = vsub.f32 %v1870_v2, %v1894_v35  ;;  %v16415_v42 = vsub.f32 %v1873_v16, %v1894_v35  ;;  %v16417_v43 = vsub.f32 %v1871_v13, %v1894_v35  ;;  %2390 = vmatpush1.bf16.msra.mxu0 %v14115_v57 }
 0x61e   : > { %v13543_v45 = vpack.i.bf16 %v16409_v39, %v16407_v38  ;;  %v2114_v46 = vrot.slane %v16407_v38, 2  ;;  %v2115_v47 = vrot.slane %v16409_v39, 2  ;;  %v2116_v48 = vrot.slane %v16411_v40, 2 }
 0x61f   : > { %v1987_v49 = vrot.slane %v16409_v39, 7  ;;  %v1988_v50 = vrot.slane %v16411_v40, 7  ;;  %v1989_v51 = vrot.slane %v16413_v41, 7  ;;  %v1986_v52 = vrot.slane %v16407_v38, 7 }
 0x620   : > { %13544 = vrot.lane.b32.xlu0 %v13543_v45, %s15574_s12  ;;  %v2126_v53 = vsel %vm2121_vm3, %v2115_v47, %v2116_v48  ;;  %v2127_v54 = vsel %vm2121_vm3, %v2114_v46, %v2115_v47  ;;  %v1992_v55 = vrot.slane %v16415_v42, 7  ;;  %v2052_v56 = vrot.slane %v16411_v40, 1 }
 0x621   : > { %v2285_v58 = vpack.c.bf16 %v2126_v53, %v2127_v54  ;;  %v1997_v59 = vsel %vm1993_vm4, %v1988_v50, %v1989_v51  ;;  %v1998_v60 = vsel %vm1993_vm4, %v1987_v49, %v1988_v50  ;;  %v1999_v61 = vsel %vm1993_vm4, %v1986_v52, %v1987_v49 }
 0x622   : > { %v13558_v62 = vpack.i.bf16 %v1997_v59, %v1998_v60  ;;  %v2000_v63 = vsel %vm1993_vm4, %v1992_v55, %v1986_v52  ;;  %v2053_v0 = vrot.slane %v16413_v41, 1  ;;  %v2054_v1 = vrot.slane %v16417_v43, 1  ;;  %v14117_v59 = vld [vmem:[#allocation13 + $0x8] sm:$0xff]  }
 0x623   : > { %11307 = vmatprep.mubr.msk.bf16.mxu0 %vm1571_vm1, %v2285_v58  ;;  %v2043_v2 = vsel %vm2008_vm5, %v2000_v63, 0.0  ;;  %v2050_v3 = vrot.slane %v16407_v38, 1  ;;  %v2051_v4 = vrot.slane %v16409_v39, 1  ;;  %v13578_v5 = vpack.i.bf16 %v16405_v37, %v16417_v43 }
 0x624   : > { %13559 = vrot.lane.b32.xlu0 %v13558_v62, %s15573_s26  ;;  %v13548_v6 = vpack.i.bf16 %v1999_v61, %v2043_v2  ;;  %v2060_v7 = vsel %vm2057_vm6, %v2053_v0, %v2054_v1  ;;  %v2061_v8 = vsel %vm2057_vm6, %v2052_v56, %v2053_v0  ;;  %v13563_v9 = vpack.i.bf16 %v16413_v41, %v16411_v40 }
 0x625   : > { %v13568_v10 = vpack.i.bf16 %v2060_v7, %v2061_v8  ;;  %v2062_v11 = vsel %vm2057_vm6, %v2051_v4, %v2052_v56  ;;  %v2063_v12 = vsel %vm2057_vm6, %v2050_v3, %v2051_v4  ;;  %v1991_v13 = vrot.slane %v16405_v37, 7 }
 0x626   : > { %13549 = vrot.lane.b32.xlu1 %v13548_v6, %s15573_s26  ;;  %v13553_v14 = vpack.i.bf16 %v2062_v11, %v2063_v12  ;;  %v1990_v15 = vrot.slane %v16417_v43, 7  ;;  %v2056_v16 = vrot.slane %v16415_v42, 1  ;;  %v2055_v17 = vrot.slane %v16405_v37, 1 }
 0x627   : > { %v1994_v18 = vsel %vm1993_vm4, %v1991_v13, %v1992_v55  ;;  %v1923_v19 = vrot.slane %v16409_v39, 6  ;;  %v1924_v20 = vrot.slane %v16411_v40, 6  ;;  %v1925_v21 = vrot.slane %v16413_v41, 6 }
 0x628   : > { %13569 = vrot.lane.b32.xlu0 %v13568_v10, %s15576_s10  ;;  %v1995_v22 = vsel %vm1993_vm4, %v1990_v15, %v1991_v13  ;;  %v1996_v23 = vsel %vm1993_vm4, %v1989_v51, %v1990_v15  ;;  %v2064_v24 = vsel %vm2057_vm6, %v2056_v16, %v2050_v3  ;;  %v2058_v26 = vsel %vm2057_vm6, %v2055_v17, %v2056_v16 }
 0x629   : > { %v13573_v27 = vpack.i.bf16 %v1995_v22, %v1996_v23  ;;  %v2059_v29 = vsel %vm2057_vm6, %v2054_v1, %v2055_v17  ;;  %v16495_v30 = vsel %vm1929_vm7, %v1924_v20, %v1925_v21  ;;  %v16500_v33 = vsel %vm1929_vm7, %v1923_v19, %v1924_v20 }
 0x62a   : > { %13554 = vrot.lane.b32.xlu1 %v13553_v14, %s15576_s10  ;;  %v13583_v32 = vpack.i.bf16 %v2058_v26, %v2059_v29  ;;  %v1928_v34 = vrot.slane %v16415_v42, 6  ;;  %v1922_v35 = vrot.slane %v16407_v38, 6  ;;  %v2117_v36 = vrot.slane %v16413_v41, 2  ;;  %v14116_v38 = vld [vmem:[#allocation13] sm:$0xff]  }
 0x62b   : > { %v2118_v39 = vrot.slane %v16417_v43, 2  ;;  %v1927_v45 = vrot.slane %v16405_v37, 6  ;;  %v1926_v47 = vrot.slane %v16417_v43, 6  ;;  %v2119_v51 = vrot.slane %v16405_v37, 2  ;;  %12521 = vmatprep.subr.bf16.mxu1 %v14116_v38 }
 0x62c   : > { %13579 = vrot.lane.b32.xlu0 %v13578_v5, %s15574_s12  ;;  %v1935_v49 = vsel %vm1929_vm7, %v1922_v35, %v1923_v19  ;;  %v1936_v50 = vsel %vm1929_vm7, %v1928_v34, %v1922_v35  ;;  %v2120_v52 = vrot.slane %v16415_v42, 2  ;;  %v2125_v43 = vsel %vm2121_vm3, %v2116_v48, %v2117_v36  ;;  %12522 = vmatpush3.bf16.msra.mxu1 %v14116_v38 }
 0x62d   : > { %v2124_v41 = vsel %vm2121_vm3, %v2117_v36, %v2118_v39  ;;  %v16523_v53 = vsel %vm1929_vm7, %v1927_v45, %v1928_v34  ;;  %v16528_v37 = vsel %vm1929_vm7, %v1926_v47, %v1927_v45  ;;  %v16532_v55 = vsel %vm1929_vm7, %v1925_v21, %v1926_v47  ;;  %12523 = vmatprep.subr.bf16.mxu1 %v14117_v59 }
 0x62e   : > { %13564 = vrot.lane.b32.xlu1 %v13563_v9, %s15574_s12  ;;  %v2287_v54 = vpack.c.bf16 %v2124_v41, %v2125_v43  ;;  %v16536_v40 = vsel %vm2121_vm3, %v2119_v51, %v2120_v52  ;;  %v16540_v48 = vsel %vm2121_vm3, %v2118_v39, %v2119_v51  ;;  %v16546_v56 = vsel %vm2121_vm3, %v2120_v52, %v2114_v46  ;;  %v14118_v46 = vld [vmem:[#allocation13 + $0x10] sm:$0xff]  }
 0x62f   : > { %v2289_v57 = vpack.c.bf16 %v16536_v40, %v16540_v48  ;;  %v2113_v58 = vsel %vm2085_vm8, %v2064_v24, 0.0  ;;  %v16557_v61 = vadd.s32 4294967294, %v16398_v31  ;;  %v16582_v39 = vadd.s32 2, %v16420_v44 }
 0x630   : > { %2197 = vrot.lane.b32.xlu0 %v1994_v18, %s15573_s26  ;;  %12524 = vmatpush3.bf16.msra.mxu1 %v14117_v59 }
 0x631   : > { %12525 = vmatprep.subr.bf16.mxu1 %v14118_v46  ;;  %vm1944_vm9 = vcmp.ge.s32.totalorder %v16557_v61, 0  ;;  %vm2149_vm11 = vcmp.lt.s32.totalorder %v16582_v39, 56 }
 0x632   : > { %13574 = vrot.lane.b32.xlu1 %v13573_v27, %s15573_s26 }
 0x634   : > { %2253 = vrot.lane.b32.xlu0 %v2113_v58, %s15576_s10  ;;  %12526 = vmatpush3.bf16.msra.mxu1 %v14118_v46  ;;  %v2177_v58 = vsel %vm2149_vm11, %v16546_v56, 0.0  ;;  %v14121_v56 = vld [vmem:[#allocation13 + $0x28] sm:$0xff]  }
 0x635   : > { %v2291_v46 = vpack.c.bf16 %v2177_v58, %v2177_v58 }
 0x636   : > { %13584 = vrot.lane.b32.xlu1 %v13583_v32, %s15576_s10 }
 0x63a   : > { %2225 = vrot.lane.b32.xlu1 %v16415_v42, %s15574_s12  ;;  %v1979_v42 = vsel %vm1944_vm9, %v1936_v50, 0.0 }
 0x692   : > { %v13545_v60 = vpop.permute.xlu0 %13544 }
 0x693   : > { %v13547_v4 = vunpack.i.h.bf16 %v13545_v60  ;;  %v13546_v5 = vunpack.i.l.bf16 %v13545_v60 }
 0x696   : > { %v13560_v63 = vpop.permute.xlu0 %13559 }
 0x697   : > { %v13562_v9 = vunpack.i.h.bf16 %v13560_v63  ;;  %v13561_v10 = vunpack.i.l.bf16 %v13560_v63  ;;  %v14120_v63 = vld [vmem:[#allocation13 + $0x20] sm:$0xff]  }
 0x698   : > { %v13550_v62 = vpop.permute.xlu1 %13549 }
 0x699   : > { %v13552_v0 = vunpack.i.h.bf16 %v13550_v62  ;;  %v13551_v1 = vunpack.i.l.bf16 %v13550_v62  ;;  %v2265_v20 = vsel %vm1571_vm1, %v16495_v30, %v13562_v9  ;;  %v2264_v21 = vsel %vm1571_vm1, %v16500_v33, %v13561_v10  ;;  %v14119_v62 = vld [vmem:[#allocation13 + $0x18] sm:$0xff]  }
 0x69a   : > { %v13570_v13 = vpop.permute.xlu0 %13569  ;;  %12527 = vmatprep.subr.bf16.mxu1 %v14119_v62 }
 0x69b   : > { %v2262_v2 = vsel %vm1571_vm1, %v1979_v42, %v13551_v1  ;;  %v2263_v3 = vsel %vm1571_vm1, %v1935_v49, %v13552_v0  ;;  %v13572_v22 = vunpack.i.h.bf16 %v13570_v13  ;;  %v13571_v23 = vunpack.i.l.bf16 %v13570_v13  ;;  %12528 = vmatpush3.bf16.msra.mxu1 %v14119_v62  ;;  %v14123_v0 = vld [vmem:[#allocation13 + $0x38] sm:$0xff]  }
 0x69c   : > { %v13555_v6 = vpop.permute.xlu1 %13554  ;;  %v2269_v11 = vsel %vm1615_vm2, %v2262_v2, %v13546_v5  ;;  %v2270_v12 = vsel %vm1615_vm2, %v2263_v3, %v13547_v4  ;;  %12529 = vmatprep.subr.bf16.mxu1 %v14120_v63  ;;  %v11296_v1 = vld [vmem:[#allocation8] ss:$0 sm:$0xff]  ;;  %v11311_v4 = vld [vmem:[#allocation10] ss:$0 sm:$0xff] }
 0x69d   : > { %v13557_v7 = vunpack.i.h.bf16 %v13555_v6  ;;  %v13556_v8 = vunpack.i.l.bf16 %v13555_v6 }
 0x69e   : > { %v13580_v32 = vpop.permute.xlu0 %13579 }
 0x69f   : > { %v2277_v14 = vsel %vm2276_vm10, %v2269_v11, %v13556_v8  ;;  %v2278_v15 = vsel %vm2276_vm10, %v2270_v12, %v13557_v7  ;;  %v13582_v45 = vunpack.i.h.bf16 %v13580_v32  ;;  %v13581_v47 = vunpack.i.l.bf16 %v13580_v32  ;;  %12530 = vmatpush3.bf16.msra.mxu1 %v14120_v63  ;;  %v11312_v11 = vld [vmem:[#allocation11] ss:$0 sm:$0xff]  ;;  %v11322_v63 = vld [vmem:[#allocation16] ss:$0 sm:$0xff] }
 0x6a0   : > { %v2284_v16 = vpack.c.bf16 %v2278_v15, %v2277_v14  ;;  %v13565_v17 = vpop.permute.xlu1 %13564  ;;  %12531 = vmatprep.subr.bf16.mxu1 %v14121_v56 }
 0x6a1   : > { %v13567_v18 = vunpack.i.h.bf16 %v13565_v17  ;;  %v13566_v19 = vunpack.i.l.bf16 %v13565_v17 }
 0x6a2   : > { %2404 = vmatmul.mubr.bf16.vlgmr.msra.gmra.mrb[8].mxu0 %v2284_v16 }
 0x6a3   : > { %11308 = vmatprep.mubr.msk.bf16.mxu0 %vm1571_vm1, %v2287_v54  ;;  %v2271_v24 = vsel %vm1615_vm2, %v2264_v21, %v13566_v19  ;;  %v2272_v26 = vsel %vm1615_vm2, %v2265_v20, %v13567_v18  ;;  %12532 = vmatpush3.bf16.msra.mxu1 %v14121_v56 }
 0x6a4   : > { %v13575_v27 = vpop.permute.xlu1 %13574  ;;  %v2279_v28 = vsel %vm2276_vm10, %v2271_v24, %v13571_v23  ;;  %v2280_v29 = vsel %vm2276_vm10, %v2272_v26, %v13572_v22 }
 0x6a5   : > { %v13577_v34 = vunpack.i.h.bf16 %v13575_v27  ;;  %v13576_v30 = vunpack.i.l.bf16 %v13575_v27  ;;  %v2286_v35 = vpack.c.bf16 %v2280_v29, %v2279_v28 }
 0x6a7   : > { %v2267_v33 = vsel %vm1571_vm1, %v16528_v37, %v13577_v34  ;;  %v2266_v36 = vsel %vm1571_vm1, %v16532_v55, %v13576_v30  ;;  %v2198_v55 = vpop.permute.xlu0 %2197 }
 0x6a8   : > { %v13585_v49 = vpop.permute.xlu1 %13584  ;;  %v2273_v52 = vsel %vm1615_vm2, %v2266_v36, %v13581_v47  ;;  %v2274_v41 = vsel %vm1615_vm2, %v2267_v33, %v13582_v45  ;;  %v2268_v59 = vsel %vm1571_vm1, %v16523_v53, %v2198_v55  ;;  %v14122_v53 = vld [vmem:[#allocation13 + $0x30] sm:$0xff]  }
 0x6a9   : > { %v13587_v50 = vunpack.i.h.bf16 %v13585_v49  ;;  %v13586_v51 = vunpack.i.l.bf16 %v13585_v49  ;;  %12533 = vmatprep.subr.bf16.mxu1 %v14122_v53 }
 0x6aa   : > { %2412 = vmatmul.mubr.bf16.gmra.mrb[12].mxu0 %v2286_v35  ;;  %12534 = vmatpush3.bf16.msra.mxu1 %v14122_v53 }
 0x6ab   : > { %11309 = vmatprep.mubr.msk.bf16.mxu0 %vm1571_vm1, %v2289_v57  ;;  %v2281_v43 = vsel %vm2276_vm10, %v2273_v52, %v13586_v51  ;;  %v2282_v54 = vsel %vm2276_vm10, %v2274_v41, %v13587_v50  ;;  %v2254_v48 = vpop.permute.xlu0 %2253  ;;  %12535 = vmatprep.subr.bf16.mxu1 %v14123_v0 }
 0x6ac   : > { %v2288_v37 = vpack.c.bf16 %v2282_v54, %v2281_v43  ;;  %v2226_v38 = vpop.permute.xlu1 %2225 }
 0x6ad   : > { %v2275_v40 = vsel %vm1615_vm2, %v2268_v59, %v2226_v38 }
 0x6ae   : > { %v2283_v57 = vsel %vm2276_vm10, %v2275_v40, %v2254_v48  ;;  %12536 = vmatpush3.bf16.msra.mxu1 %v14123_v0  ;;  %v11313_v48 = vld [vmem:[#allocation14] ss:$0 sm:$0xff] }
 0x6af   : > { %v2290_v60 = vpack.c.bf16 %v2283_v57, %v2283_v57 }
 0x6b2   : > { %2420 = vmatmul.mubr.bf16.gmra.mrb[16].mxu0 %v2288_v37 }
 0x6b3   : > { %11310 = vmatprep.mubr.msk.bf16.mxu0 %vm1571_vm1, %v2291_v46 }
 0x6ba   : > { %2428 = vmatmul.mubr.bf16.gmra.mrb[20].mxu0 %v2290_v60 }
 0x775   : > { %v2405_v42 = vpop.f32.mrb[8].mxu0 }
 0x776   : > { %v2406_v2 = vadd.f32 %v11296_v1, %v2405_v42  ;;  %v2407_v3 = vpop.f32.mrb[9].mxu0 }
 0x777   : > { %v2408_v5 = vpop.f32.mrb[10].mxu0 }
 0x778   : > { %v2435_v6 = vmax.f32 %v2406_v2, 0.0  ;;  %v2409_v7 = vadd.f32 %v11296_v1, %v2408_v5  ;;  %v2410_v8 = vpop.f32.mrb[11].mxu0 }
 0x77a   : > { %v2449_v9 = vmul.f32 %v11311_v4, %v2435_v6  ;;  %v2436_v10 = vmax.f32 %v2409_v7, 0.0  ;;  %v11323_v6 = vld [vmem:[#allocation17] ss:$0 sm:$0xff] }
 0x77c   : > { %v2450_v12 = vmul.f32 %v11311_v4, %v2436_v10  ;;  %v16601_v14 = vadd.f32 %v11312_v11, %v2449_v9 }
 0x77d   : > { %v2413_v13 = vpop.f32.mrb[12].mxu0 }
 0x77e   : > { %v16603_v15 = vadd.f32 %v11312_v11, %v2450_v12  ;;  %v2414_v16 = vadd.f32 %v11296_v1, %v2413_v13  ;;  %v2415_v17 = vpop.f32.mrb[13].mxu0 }
 0x77f   : > { %v2416_v18 = vpop.f32.mrb[14].mxu0 }
 0x780   : > { %v2437_v19 = vmax.f32 %v2414_v16, 0.0  ;;  %v2417_v20 = vadd.f32 %v11296_v1, %v2416_v18  ;;  %v2418_v21 = vpop.f32.mrb[15].mxu0  ;;  %v2470_v22 = vpack.c.bf16 %v16603_v15, %v16601_v14 }
 0x782   : > { %v2451_v23 = vmul.f32 %v11311_v4, %v2437_v19  ;;  %v2438_v24 = vmax.f32 %v2417_v20, 0.0  ;;  %12537 = vmatprep.mubr.bf16.mxu1 %v2470_v22 }
 0x784   : > { %v2452_v26 = vmul.f32 %v11311_v4, %v2438_v24  ;;  %v16607_v28 = vadd.f32 %v11312_v11, %v2451_v23 }
 0x785   : > { %v2421_v27 = vpop.f32.mrb[16].mxu0 }
 0x786   : > { %v16609_v29 = vadd.f32 %v11312_v11, %v2452_v26  ;;  %v2422_v32 = vadd.f32 %v11296_v1, %v2421_v27  ;;  %v2423_v34 = vpop.f32.mrb[17].mxu0 }
 0x787   : > { %v2424_v30 = vpop.f32.mrb[18].mxu0 }
 0x788   : > { %v2471_v35 = vpack.c.bf16 %v16609_v29, %v16607_v28  ;;  %v2439_v33 = vmax.f32 %v2422_v32, 0.0  ;;  %v2425_v36 = vadd.f32 %v11296_v1, %v2424_v30  ;;  %v2426_v45 = vpop.f32.mrb[19].mxu0 }
 0x789   : > { %v14124_v45 = vld [vmem:[%s19039_s13] sm:$0xff]  }
 0x78a   : > { %v2453_v47 = vmul.f32 %v11311_v4, %v2439_v33  ;;  %v2440_v49 = vmax.f32 %v2425_v36, 0.0  ;;  %12538 = vmatmul.mubr.bf16.vlgmr.msra.gmra.mrb[8].mxu1 %v2471_v35  ;;  %12545 = vmatprep.subr.bf16.mxu1 %v14124_v45 }
 0x78b   : > { %12546 = vmatpush3.bf16.msra.mxu1 %v14124_v45 }
 0x78c   : > { %v2454_v50 = vmul.f32 %v11311_v4, %v2440_v49  ;;  %v16613_v52 = vadd.f32 %v11312_v11, %v2453_v47  ;;  %v14125_v47 = vld [vmem:[%s19039_s13 + $0x8] sm:$0xff]  }
 0x78d   : > { %v2429_v51 = vpop.f32.mrb[20].mxu0  ;;  %12547 = vmatprep.subr.bf16.mxu1 %v14125_v47 }
 0x78e   : > { %v16615_v41 = vadd.f32 %v11312_v11, %v2454_v50  ;;  %v2430_v43 = vadd.f32 %v11296_v1, %v2429_v51  ;;  %v2431_v54 = vpop.f32.mrb[21].mxu0 }
 0x78f   : > { %v2432_v37 = vpop.f32.mrb[22].mxu0  ;;  %12548 = vmatpush3.bf16.msra.mxu1 %v14125_v47  ;;  %v14127_v54 = vld [vmem:[%s19039_s13 + $0x18] sm:$0xff]  }
 0x790   : > { %v2441_v55 = vmax.f32 %v2430_v43, 0.0  ;;  %v2433_v58 = vpop.f32.mrb[23].mxu0  ;;  %v2472_v38 = vpack.c.bf16 %v16615_v41, %v16613_v52  ;;  %v14126_v43 = vld [vmem:[%s19039_s13 + $0x10] sm:$0xff]   ;;  %v14128_v37 = vld [vmem:[%s19039_s13 + $0x20] sm:$0xff]  }
 0x791   : > { %12549 = vmatprep.subr.bf16.mxu1 %v14126_v43 }
 0x792   : > { %v2455_v59 = vmul.f32 %v11311_v4, %v2441_v55  ;;  %12541 = vmatprep.mubr.bf16.mxu1 %v2472_v38 }
 0x793   : > { %12550 = vmatpush3.bf16.msra.mxu1 %v14126_v43 }
 0x794   : > { %v16619_v46 = vadd.f32 %v11312_v11, %v2455_v59  ;;  %12551 = vmatprep.subr.bf16.mxu1 %v14127_v54 }
 0x796   : > { %v2473_v40 = vpack.c.bf16 %v16619_v46, %v16619_v46 }
 0x797   : > { %12552 = vmatpush3.bf16.msra.mxu1 %v14127_v54 }
 0x798   : > { %12542 = vmatmul.mubr.bf16.gmra.mrb[12].mxu1 %v2473_v40  ;;  %12553 = vmatprep.subr.bf16.mxu1 %v14128_v37 }
 0x79b   : > { %12554 = vmatpush3.bf16.msra.mxu1 %v14128_v37 }
 0x85d   : > { %v12539_v57 = vpop.f32.mrb[8].mxu1 }
 0x85e   : > { %v2588_v60 = vadd.f32 %v12539_v57, %v11313_v48  ;;  %v2579_v62 = vpop.f32.mrb[9].mxu1 }
 0x85f   : > { %v2580_v56 = vadd.f32 %v11313_v48, %v2579_v62  ;;  %v12540_v53 = vpop.f32.mrb[10].mxu1 }
 0x860   : > { %v2611_v0 = vmax.f32 %v2588_v60, 0.0  ;;  %v2591_v1 = vadd.f32 %v12540_v53, %v11313_v48  ;;  %v2582_v42 = vpop.f32.mrb[11].mxu1 }
 0x861   : > { %v2609_v2 = vmax.f32 %v2580_v56, 0.0  ;;  %v2583_v3 = vadd.f32 %v11313_v48, %v2582_v42 }
 0x862   : > { %v2625_v4 = vmul.f32 %v11322_v63, %v2611_v0  ;;  %v2612_v5 = vmax.f32 %v2591_v1, 0.0 }
 0x863   : > { %v2623_v7 = vmul.f32 %v11322_v63, %v2609_v2  ;;  %v2610_v8 = vmax.f32 %v2583_v3, 0.0 }
 0x864   : > { %v2626_v9 = vmul.f32 %v11322_v63, %v2612_v5  ;;  %v16623_v11 = vadd.f32 %v11323_v6, %v2625_v4 }
 0x865   : > { %v2624_v10 = vmul.f32 %v11322_v63, %v2610_v8  ;;  %v16627_v13 = vadd.f32 %v11323_v6, %v2623_v7 }
 0x866   : > { %v16625_v12 = vadd.f32 %v11323_v6, %v2626_v9 }
 0x867   : > { %v16629_v16 = vadd.f32 %v11323_v6, %v2624_v10 }
 0x868   : > { %v13588_v17 = vpack.i.bf16 %v16625_v12, %v16623_v11 }
 0x869   : > { %v13593_v18 = vpack.i.bf16 %v16629_v16, %v16627_v13 }
 0x86a   : > { %13589 = vrot.lane.b32.xlu0 %v13588_v17, %s15576_s10 }
 0x86b   : > { %v12543_v19 = vpop.f32.mrb[12].mxu1  ;;  %13594 = vrot.lane.b32.xlu1 %v13593_v18, %s15576_s10 }
 0x86c   : > { %v2604_v20 = vadd.f32 %v12543_v19, %v11313_v48  ;;  %v2595_v21 = vpop.f32.mrb[13].mxu1 }
 0x86d   : > { %v2596_v22 = vadd.f32 %v11313_v48, %v2595_v21  ;;  %v12544_v23 = vpop.f32.mrb[14].mxu1 }
 0x86e   : > { %v2615_v24 = vmax.f32 %v2604_v20, 0.0  ;;  %v2598_v26 = vpop.f32.mrb[15].mxu1 }
 0x86f   : > { %v2613_v27 = vmax.f32 %v2596_v22, 0.0  ;;  %v2599_v32 = vadd.f32 %v11313_v48, %v2598_v26 }
 0x870   : > { %v2629_v34 = vmul.f32 %v11322_v63, %v2615_v24 }
 0x871   : > { %v2627_v30 = vmul.f32 %v11322_v63, %v2613_v27  ;;  %v2614_v35 = vmax.f32 %v2599_v32, 0.0 }
 0x872   : > { %v16641_v49 = vadd.f32 %v11323_v6, %v2629_v34 }
 0x873   : > { %v16637_v33 = vadd.f32 %v11323_v6, %v2627_v30  ;;  %v2628_v36 = vmul.f32 %v11322_v63, %v2614_v35 }
 0x875   : > { %v16643_v50 = vadd.f32 %v11323_v6, %v2628_v36  ;;  %2671 = vrot.lane.b32.xlu1 %v16637_v33, %s15576_s10  ;;  %v14129_v6 = vld [vmem:[%s19039_s13 + $0x28] sm:$0xff]  }
 0x876   : > { %12555 = vmatprep.subr.bf16.mxu1 %v14129_v6 }
 0x877   : > { %v13598_v51 = vpack.i.bf16 %v16641_v49, %v16643_v50  ;;  %12556 = vmatpush3.bf16.msra.mxu1 %v14129_v6 }
 0x879   : > { %13599 = vrot.lane.b32.xlu0 %v13598_v51, %s15576_s10 }
 0x8dc   : > { %v13590_v55 = vpop.permute.xlu0 %13589 }
 0x8dd   : > { %v13592_v58 = vunpack.i.h.bf16 %v13590_v55  ;;  %v13591_v38 = vunpack.i.l.bf16 %v13590_v55  ;;  %v13595_v59 = vpop.permute.xlu1 %13594 }
 0x8de   : > { %v13597_v40 = vunpack.i.h.bf16 %v13595_v59  ;;  %v13596_v48 = vunpack.i.l.bf16 %v13595_v59 }
 0x8df   : > { %v2687_v57 = vrot.slane %v13592_v58, 6  ;;  %v2686_v60 = vrot.slane %v13591_v38, 6  ;;  %v2707_v62 = vrot.slane %v13591_v38, 2  ;;  %v2708_v7 = vrot.slane %v13592_v58, 2 }
 0x8e0   : > { %v2685_v63 = vrot.slane %v13597_v40, 6  ;;  %v2706_v56 = vrot.slane %v13597_v40, 2  ;;  %v2684_v53 = vrot.slane %v13596_v48, 6  ;;  %v2705_v0 = vrot.slane %v13596_v48, 2 }
 0x8e1   : > { %v2694_v1 = vsel %vm1929_vm7, %v2686_v60, %v2687_v57  ;;  %v2715_v17 = vsel %vm2121_vm3, %v2707_v62, %v2708_v7 }
 0x8e2   : > { %v2695_v42 = vsel %vm1929_vm7, %v2685_v63, %v2686_v60  ;;  %v2696_v2 = vsel %vm1929_vm7, %v2684_v53, %v2685_v63  ;;  %v2716_v3 = vsel %vm2121_vm3, %v2706_v56, %v2707_v62  ;;  %v2717_v4 = vsel %vm2121_vm3, %v2705_v0, %v2706_v56 }
 0x8e3   : > { %v13603_v5 = vpack.i.bf16 %v2716_v3, %v2717_v4  ;;  %v2755_v55 = vsel %vm1571_vm1, %v2696_v2, %v16629_v16  ;;  %v2757_v63 = vsel %vm1571_vm1, %v2694_v1, %v16625_v12  ;;  %v2756_v56 = vsel %vm1571_vm1, %v2695_v42, %v16623_v11 }
 0x8e5   : > { %13604 = vrot.lane.b32.xlu1 %v13603_v5, %s15574_s12 }
 0x8e7   : > { %v2672_v8 = vpop.permute.xlu1 %2671 }
 0x8e8   : > { %v2709_v9 = vrot.slane %v2672_v8, 2  ;;  %v2688_v62 = vrot.slane %v2672_v8, 6 }
 0x8ea   : > { %v2714_v10 = vsel %vm2121_vm3, %v2708_v7, %v2709_v9  ;;  %v2693_v3 = vsel %vm1929_vm7, %v2687_v57, %v2688_v62 }
 0x8eb   : > { %v13600_v18 = vpop.permute.xlu0 %13599  ;;  %v13608_v19 = vpack.i.bf16 %v2714_v10, %v2715_v17 }
 0x8ec   : > { %v13602_v20 = vunpack.i.h.bf16 %v13600_v18  ;;  %v13601_v21 = vunpack.i.l.bf16 %v13600_v18 }
 0x8ed   : > { %13609 = vrot.lane.b32.xlu0 %v13608_v19, %s15574_s12 }
 0x8ee   : > { %v2690_v22 = vrot.slane %v13602_v20, 6  ;;  %v2711_v23 = vrot.slane %v13602_v20, 2  ;;  %v2689_v24 = vrot.slane %v13601_v21, 6  ;;  %v2710_v26 = vrot.slane %v13601_v21, 2  ;;  %v11324_v20 = vld [vmem:[#allocation19] ss:$0 sm:$0xff] }
 0x8f0   : > { %v2697_v27 = vsel %vm1929_vm7, %v2690_v22, %v2684_v53  ;;  %v2718_v32 = vsel %vm2121_vm3, %v2711_v23, %v2705_v0  ;;  %v2712_v34 = vsel %vm2121_vm3, %v2710_v26, %v2711_v23  ;;  %v2713_v35 = vsel %vm2121_vm3, %v2709_v9, %v2710_v26 }
 0x8f1   : > { %v2725_v30 = vsel %vm2149_vm11, %v2718_v32, 0.0  ;;  %v2691_v36 = vsel %vm1929_vm7, %v2689_v24, %v2690_v22  ;;  %v13613_v45 = vpack.i.bf16 %v2712_v34, %v2713_v35  ;;  %v2698_v47 = vsel %vm1944_vm9, %v2697_v27, 0.0 }
 0x8f2   : > { %2745 = vrot.lane.b32.xlu0 %v2725_v30, %s15574_s12  ;;  %v2754_v37 = vsel %vm1571_vm1, %v2698_v47, %v16627_v13  ;;  %v2692_v4 = vsel %vm1929_vm7, %v2688_v62, %v2689_v24  ;;  %v2760_v1 = vsel %vm1571_vm1, %v2691_v36, %v16641_v49  ;;  %v2758_v9 = vsel %vm1571_vm1, %v2693_v3, %v16637_v33  ;;  %v11335_v24 = vld [vmem:[#allocation20] ss:$0 sm:$0xff] }
 0x8f3   : > { %13614 = vrot.lane.b32.xlu1 %v13613_v45, %s15574_s12  ;;  %v2759_v57 = vsel %vm1571_vm1, %v2692_v4, %v16643_v50  ;;  %v11336_v45 = vld [vmem:[#allocation22] ss:$0 sm:$0xff] }
 0x957   : > { %v13605_v51 = vpop.permute.xlu1 %13604 }
 0x958   : > { %v13607_v43 = vunpack.i.h.bf16 %v13605_v51  ;;  %v13606_v54 = vunpack.i.l.bf16 %v13605_v51 }
 0x95a   : > { %v2761_v58 = vsel %vm1615_vm2, %v2754_v37, %v13606_v54  ;;  %v2762_v38 = vsel %vm1615_vm2, %v2755_v55, %v13607_v43 }
 0x95b   : > { %v2768_v59 = vpack.c.bf16 %v2762_v38, %v2761_v58 }
 0x95d   : > { %12557 = vmatprep.mubr.msk.bf16.mxu1 %vm2276_vm10, %v2768_v59 }
 0x95f   : > { %v13610_v40 = vpop.permute.xlu0 %13609 }
 0x960   : > { %v13612_v48 = vunpack.i.h.bf16 %v13610_v40  ;;  %v13611_v60 = vunpack.i.l.bf16 %v13610_v40 }
 0x962   : > { %v2764_v53 = vsel %vm1615_vm2, %v2757_v63, %v13612_v48  ;;  %v2763_v0 = vsel %vm1615_vm2, %v2756_v56, %v13611_v60 }
 0x963   : > { %v2769_v2 = vpack.c.bf16 %v2764_v53, %v2763_v0 }
 0x964   : > { %v2746_v5 = vpop.permute.xlu0 %2745 }
 0x965   : > { %12558 = vmatmul.mubr.msk.bf16.vlgmr.msra.gmra.mrb[16].mxu1 %vm2276_vm10, %v2769_v2  ;;  %v13615_v6 = vpop.permute.xlu1 %13614  ;;  %v2767_v8 = vsel %vm1615_vm2, %v2760_v1, %v2746_v5 }
 0x966   : > { %v13617_v7 = vunpack.i.h.bf16 %v13615_v6  ;;  %v13616_v42 = vunpack.i.l.bf16 %v13615_v6  ;;  %v2771_v19 = vpack.c.bf16 %v2767_v8, %v2767_v8 }
 0x968   : > { %v2766_v10 = vsel %vm1615_vm2, %v2759_v57, %v13617_v7  ;;  %v2765_v17 = vsel %vm1615_vm2, %v2758_v9, %v13616_v42 }
 0x969   : > { %v2770_v18 = vpack.c.bf16 %v2766_v10, %v2765_v17 }
 0x96b   : > { %12561 = vmatprep.mubr.msk.bf16.mxu1 %vm2276_vm10, %v2770_v18 }
 0x96d   : > { %12562 = vmatmul.mubr.msk.bf16.gmra.mrb[20].mxu1 %vm2276_vm10, %v2771_v19 }
 0xa38   : > { %v12559_v21 = vpop.f32.mrb[16].mxu1 }
 0xa39   : > { %v2870_v22 = vadd.f32 %v12559_v21, %v11324_v20  ;;  %v2861_v23 = vpop.f32.mrb[17].mxu1 }
 0xa3a   : > { %v2862_v26 = vadd.f32 %v11324_v20, %v2861_v23  ;;  %v12560_v27 = vpop.f32.mrb[18].mxu1 }
 0xa3b   : > { %v2893_v32 = vmax.f32 %v2870_v22, 0.0  ;;  %v2873_v34 = vadd.f32 %v12560_v27, %v11324_v20  ;;  %v2864_v30 = vpop.f32.mrb[19].mxu1 }
 0xa3c   : > { %v2891_v35 = vmax.f32 %v2862_v26, 0.0  ;;  %v2865_v36 = vadd.f32 %v11324_v20, %v2864_v30 }
 0xa3d   : > { %v2907_v47 = vmul.f32 %v11335_v24, %v2893_v32  ;;  %v2894_v51 = vmax.f32 %v2873_v34, 0.0 }
 0xa3e   : > { %v2905_v43 = vmul.f32 %v11335_v24, %v2891_v35  ;;  %v2892_v54 = vmax.f32 %v2865_v36, 0.0 }
 0xa3f   : > { %v2908_v37 = vmul.f32 %v11335_v24, %v2894_v51  ;;  %v16715_v55 = vadd.f32 %v11336_v45, %v2907_v47 }
 0xa40   : > { %v2906_v58 = vmul.f32 %v11335_v24, %v2892_v54  ;;  %v12563_v38 = vpop.f32.mrb[20].mxu1  ;;  %v16723_v56 = vadd.f32 %v11336_v45, %v2905_v43  ;;  %v14130_v43 = vld [vmem:[%s19039_s13 + $0x30] sm:$0xff]   ;;  %v14131_v54 = vld [vmem:[%s19039_s13 + $0x38] sm:$0xff]  }
 0xa41   : > { %v2886_v59 = vadd.f32 %v12563_v38, %v11324_v20  ;;  %2937 = vrot.lane.b32.xlu1 %v16715_v55, %s15574_s12  ;;  %v2877_v40 = vpop.f32.mrb[21].mxu1  ;;  %v16719_v48 = vadd.f32 %v11336_v45, %v2908_v37  ;;  %12565 = vmatprep.subr.bf16.mxu0 %v14130_v43  ;;  %v14132_v37 = vld [vmem:[%s19039_s13 + $0x40] sm:$0xff]   ;;  %v14134_v38 = vld [vmem:[%s19039_s13 + $0x50] sm:$0xff]  }
 0xa42   : > { %v2878_v60 = vadd.f32 %v11324_v20, %v2877_v40  ;;  %v12564_v62 = vpop.f32.mrb[22].mxu1  ;;  %v16721_v63 = vadd.f32 %v11336_v45, %v2906_v58  ;;  %12566 = vmatpush3.bf16.msra.mxu0 %v14130_v43  ;;  %v14133_v58 = vld [vmem:[%s19039_s13 + $0x48] sm:$0xff]  }
 0xa43   : > { %v2880_v53 = vpop.f32.mrb[23].mxu1  ;;  %v13718_v0 = vpack.i.bf16 %v16719_v48, %v16715_v55  ;;  %v2897_v2 = vmax.f32 %v2886_v59, 0.0  ;;  %12567 = vmatprep.subr.bf16.mxu0 %v14131_v54 }
 0xa44   : > { %v2895_v3 = vmax.f32 %v2878_v60, 0.0  ;;  %v2881_v4 = vadd.f32 %v11324_v20, %v2880_v53  ;;  %2935 = vrot.lane.b32.xlu0 %v16721_v63, %s15574_s12  ;;  %v13713_v5 = vpack.i.bf16 %v16721_v63, %v16723_v56 }
 0xa45   : > { %2933 = vrot.lane.b32.xlu1 %v16723_v56, %s15574_s12  ;;  %v2911_v7 = vmul.f32 %v11335_v24, %v2897_v2 }
 0xa46   : > { %v2909_v6 = vmul.f32 %v11335_v24, %v2895_v3  ;;  %v2896_v1 = vmax.f32 %v2881_v4, 0.0  ;;  %12568 = vmatpush3.bf16.msra.mxu0 %v14131_v54  ;;  %v14135_v3 = vld [vmem:[%s19039_s13 + $0x58] sm:$0xff]  }
 0xa47   : > { %v16743_v57 = vadd.f32 %v11336_v45, %v2911_v7  ;;  %12569 = vmatprep.subr.bf16.mxu0 %v14132_v37 }
 0xa48   : > { %v2910_v42 = vmul.f32 %v11335_v24, %v2896_v1  ;;  %2939 = vrot.lane.b32.xlu0 %v16719_v48, %s15574_s12  ;;  %v16735_v8 = vadd.f32 %v11336_v45, %v2909_v6 }
 0xa4a   : > { %2941 = vrot.lane.b32.xlu1 %v16735_v8, %s15574_s12  ;;  %v16739_v9 = vadd.f32 %v11336_v45, %v2910_v42  ;;  %12570 = vmatpush3.bf16.msra.mxu0 %v14132_v37 }
 0xa4b   : > { %12571 = vmatprep.subr.bf16.mxu0 %v14133_v58 }
 0xa4c   : > { %2943 = vrot.lane.b32.xlu0 %v16739_v9, %s15574_s12  ;;  %v13733_v10 = vpack.i.bf16 %v16739_v9, %v16735_v8 }
 0xa4e   : > { %2945 = vrot.lane.b32.xlu1 %v16743_v57, %s15574_s12  ;;  %12572 = vmatpush3.bf16.msra.mxu0 %v14133_v58 }
 0xa4f   : > { %12573 = vmatprep.subr.bf16.mxu0 %v14134_v38 }
 0xa52   : > { %12574 = vmatpush3.bf16.msra.mxu0 %v14134_v38 }
 0xa53   : > { %12575 = vmatprep.subr.bf16.mxu0 %v14135_v3 }
 0xa56   : > { %12576 = vmatpush3.bf16.msra.mxu0 %v14135_v3 }
 0xab3   : > { %v2938_v17 = vpop.permute.xlu1 %2937 }
 0xab4   : > { %v2956_v24 = vadd.f32 %v2938_v17, %v16623_v11 }
 0xab6   : > { %v2936_v18 = vpop.permute.xlu0 %2935 }
 0xab7   : > { %v2955_v19 = vadd.f32 %v2936_v18, %v16629_v16  ;;  %v2934_v20 = vpop.permute.xlu1 %2933 }
 0xab8   : > { %v2954_v21 = vadd.f32 %v2934_v20, %v16627_v13 }
 0xaba   : > { %v13623_v22 = vpack.i.bf16 %v2955_v19, %v2954_v21  ;;  %v2940_v23 = vpop.permute.xlu0 %2939 }
 0xabb   : > { %v2957_v26 = vadd.f32 %v2940_v23, %v16625_v12 }
 0xabc   : > { %13624 = vrot.lane.b32.xlu0 %v13623_v22, %s15574_s12  ;;  %v2942_v27 = vpop.permute.xlu1 %2941 }
 0xabd   : > { %v13618_v32 = vpack.i.bf16 %v2957_v26, %v2956_v24  ;;  %v16755_v34 = vadd.f32 %v2942_v27, %v16637_v33 }
 0xabe   : > { %v2944_v30 = vpop.permute.xlu0 %2943 }
 0xabf   : > { %v16758_v35 = vadd.f32 %v2944_v30, %v16643_v50  ;;  %13619 = vrot.lane.b32.xlu1 %v13618_v32, %s15574_s12 }
 0xac0   : > { %2989 = vrot.lane.b32.xlu0 %v16755_v34, %s15574_s12  ;;  %v2946_v36 = vpop.permute.xlu1 %2945 }
 0xac1   : > { %v13648_v45 = vpack.i.bf16 %v16758_v35, %v16755_v34  ;;  %v2960_v47 = vadd.f32 %v2946_v36, %v16641_v49 }
 0xac3   : > { %v13628_v51 = vpack.i.bf16 %v2960_v47, %v16758_v35 }
 0xac4   : > { %13634 = vrot.lane.b32.xlu0 %v13623_v22, %s15576_s10 }
 0xac5   : > { %13629 = vrot.lane.b32.xlu1 %v13628_v51, %s15574_s12 }
 0xac9   : > { %13639 = vrot.lane.b32.xlu1 %v13618_v32, %s15576_s10 }
 0xb2e   : > { %v13625_v59 = vpop.permute.xlu0 %13624 }
 0xb2f   : > { %v13627_v40 = vunpack.i.h.bf16 %v13625_v59  ;;  %v13626_v60 = vunpack.i.l.bf16 %v13625_v59 }
 0xb31   : > { %v3003_v62 = vrot.slane %v13627_v40, 6  ;;  %v3002_v53 = vrot.slane %v13626_v60, 6  ;;  %v13620_v2 = vpop.permute.xlu1 %13619  ;;  %v3024_v4 = vrot.slane %v13627_v40, 2  ;;  %v3023_v6 = vrot.slane %v13626_v60, 2 }
 0xb32   : > { %v13622_v1 = vunpack.i.h.bf16 %v13620_v2  ;;  %v13621_v7 = vunpack.i.l.bf16 %v13620_v2  ;;  %v16776_v42 = vpop.permute.xlu0 %2989 }
 0xb33   : > { %v3014_v17 = vsel %vm1929_vm7, %v3002_v53, %v3003_v62  ;;  %v3027_v18 = vrot.slane %v16776_v42, 2  ;;  %v3035_v27 = vsel %vm2121_vm3, %v3023_v6, %v3024_v4 }
 0xb34   : > { %v16781_v19 = vrot.slane %v13622_v1, 6  ;;  %v3026_v20 = vrot.slane %v13622_v1, 2  ;;  %v3004_v21 = vrot.slane %v13621_v7, 6  ;;  %v3025_v22 = vrot.slane %v13621_v7, 2 }
 0xb36   : > { %v3012_v23 = vsel %vm1929_vm7, %v3004_v21, %v16781_v19  ;;  %v3013_v24 = vsel %vm1929_vm7, %v3003_v62, %v3004_v21  ;;  %v3034_v26 = vsel %vm2121_vm3, %v3024_v4, %v3025_v22  ;;  %v3032_v30 = vsel %vm2121_vm3, %v3026_v20, %v3027_v18 }
 0xb37   : > { %v13630_v32 = vpop.permute.xlu1 %13629  ;;  %v13643_v34 = vpack.i.bf16 %v3034_v26, %v3035_v27  ;;  %v3033_v51 = vsel %vm2121_vm3, %v3025_v22, %v3026_v20 }
 0xb38   : > { %v13632_v35 = vunpack.i.h.bf16 %v13630_v32  ;;  %v13631_v36 = vunpack.i.l.bf16 %v13630_v32  ;;  %v13653_v43 = vpack.i.bf16 %v3032_v30, %v3033_v51 }
 0xb39   : > { %13644 = vrot.lane.b32.xlu0 %v13643_v34, %s15574_s12 }
 0xb3a   : > { %v3008_v54 = vrot.slane %v13632_v35, 6  ;;  %v3029_v37 = vrot.slane %v13632_v35, 2  ;;  %v3028_v58 = vrot.slane %v13631_v36, 2  ;;  %v3007_v38 = vrot.slane %v13631_v36, 6  ;;  %13654 = vrot.lane.b32.xlu1 %v13653_v43, %s15574_s12 }
 0xb3b   : > { %v13640_v4 = vpop.permute.xlu1 %13639 }
 0xb3c   : > { %v3015_v59 = vsel %vm1929_vm7, %v3008_v54, %v3002_v53  ;;  %v3030_v40 = vsel %vm2121_vm3, %v3028_v58, %v3029_v37  ;;  %v3031_v60 = vsel %vm2121_vm3, %v3027_v18, %v3028_v58  ;;  %v3036_v2 = vsel %vm2121_vm3, %v3029_v37, %v3023_v6  ;;  %v13635_v53 = vpop.permute.xlu0 %13634 }
 0xb3d   : > { %13649 = vrot.lane.b32.xlu0 %v13648_v45, %s15576_s10  ;;  %v13658_v62 = vpack.i.bf16 %v3030_v40, %v3031_v60  ;;  %v3009_v3 = vsel %vm1929_vm7, %v3007_v38, %v3008_v54  ;;  %v3043_v45 = vsel %vm2149_vm11, %v3036_v2, 0.0  ;;  %v13637_v1 = vunpack.i.h.bf16 %v13635_v53 }
 0xb3e   : > { %3056 = vrot.lane.b32.xlu1 %v2960_v47, %s15576_s10  ;;  %v3016_v47 = vsel %vm1944_vm9, %v3015_v59, 0.0  ;;  %v13636_v7 = vunpack.i.l.bf16 %v13635_v53  ;;  %v13642_v18 = vunpack.i.h.bf16 %v13640_v4  ;;  %v13641_v20 = vunpack.i.l.bf16 %v13640_v4 }
 0xb3f   : > { %v3094_v26 = vsel %vm1571_vm1, %v3014_v17, %v13637_v1  ;;  %v3006_v58 = vrot.slane %v16776_v42, 6 }
 0xb40   : > { %v3093_v27 = vsel %vm1571_vm1, %v3016_v47, %v13636_v7  ;;  %v3095_v51 = vsel %vm1571_vm1, %v3013_v24, %v13641_v20  ;;  %v3096_v43 = vsel %vm1571_vm1, %v3012_v23, %v13642_v18 }
 0xb41   : > { %13659 = vrot.lane.b32.xlu0 %v13658_v62, %s15574_s12  ;;  %v3011_v23 = vsel %vm1929_vm7, %v16781_v19, %v3006_v58  ;;  %v3010_v42 = vsel %vm1929_vm7, %v3006_v58, %v3007_v38  ;;  %v11349_v38 = vld [vmem:[#allocation19 + $0x1] ss:$0 sm:$0xff] }
 0xb42   : > { %3084 = vrot.lane.b32.xlu1 %v3043_v45, %s15574_s12 }
 0xbab   : > { %v13645_v6 = vpop.permute.xlu0 %13644 }
 0xbac   : > { %v13647_v21 = vunpack.i.h.bf16 %v13645_v6  ;;  %v13646_v22 = vunpack.i.l.bf16 %v13645_v6  ;;  %v13655_v32 = vpop.permute.xlu1 %13654 }
 0xbad   : > { %v13657_v35 = vunpack.i.h.bf16 %v13655_v32  ;;  %v13656_v36 = vunpack.i.l.bf16 %v13655_v32  ;;  %v11360_v32 = vld [vmem:[#allocation20 + $0x1] ss:$0 sm:$0xff] }
 0xbae   : > { %v3101_v34 = vsel %vm1615_vm2, %v3094_v26, %v13647_v21  ;;  %v3100_v30 = vsel %vm1615_vm2, %v3093_v27, %v13646_v22 }
 0xbaf   : > { %v13650_v54 = vpop.permute.xlu0 %13649  ;;  %v3107_v37 = vpack.c.bf16 %v3101_v34, %v3100_v30  ;;  %v3102_v59 = vsel %vm1615_vm2, %v3095_v51, %v13656_v36  ;;  %v3103_v17 = vsel %vm1615_vm2, %v3096_v43, %v13657_v35 }
 0xbb0   : > { %v3108_v40 = vpack.c.bf16 %v3103_v17, %v3102_v59  ;;  %v13652_v60 = vunpack.i.h.bf16 %v13650_v54  ;;  %v13651_v62 = vunpack.i.l.bf16 %v13650_v54  ;;  %v3057_v2 = vpop.permute.xlu1 %3056  ;;  %v11361_v54 = vld [vmem:[#allocation22 + $0x1] ss:$0 sm:$0xff] }
 0xbb1   : > { %12577 = vmatprep.mubr.msk.bf16.mxu0 %vm2276_vm10, %v3107_v37  ;;  %v3099_v47 = vsel %vm1571_vm1, %v3009_v3, %v3057_v2 }
 0xbb2   : > { %12578 = vmatmul.mubr.msk.bf16.vlgmr.msra.gmra.mrb[24].mxu0 %vm2276_vm10, %v3108_v40  ;;  %v3098_v4 = vsel %vm1571_vm1, %v3010_v42, %v13652_v60  ;;  %v3097_v1 = vsel %vm1571_vm1, %v3011_v23, %v13651_v62 }
 0xbb3   : > { %v13660_v45 = vpop.permute.xlu0 %13659 }
 0xbb4   : > { %v13662_v24 = vunpack.i.h.bf16 %v13660_v45  ;;  %v13661_v53 = vunpack.i.l.bf16 %v13660_v45  ;;  %v3085_v7 = vpop.permute.xlu1 %3084 }
 0xbb5   : > { %v3106_v6 = vsel %vm1615_vm2, %v3099_v47, %v3085_v7 }
 0xbb6   : > { %v3104_v18 = vsel %vm1615_vm2, %v3097_v1, %v13661_v53  ;;  %v3105_v20 = vsel %vm1615_vm2, %v3098_v4, %v13662_v24  ;;  %v3110_v19 = vpack.c.bf16 %v3106_v6, %v3106_v6 }
 0xbb7   : > { %v3109_v21 = vpack.c.bf16 %v3105_v20, %v3104_v18 }
 0xbb9   : > { %12581 = vmatprep.mubr.msk.bf16.mxu0 %vm2276_vm10, %v3109_v21 }
 0xbba   : > { %12582 = vmatmul.mubr.msk.bf16.gmra.mrb[28].mxu0 %vm2276_vm10, %v3110_v19 }
 0xc85   : > { %v12579_v22 = vpop.f32.mrb[24].mxu0 }
 0xc86   : > { %v3210_v26 = vadd.f32 %v12579_v22, %v11349_v38  ;;  %v3201_v27 = vpop.f32.mrb[25].mxu0 }
 0xc87   : > { %v3202_v34 = vadd.f32 %v11349_v38, %v3201_v27  ;;  %v12580_v3 = vpop.f32.mrb[26].mxu0 }
 0xc88   : > { %v3233_v30 = vmax.f32 %v3210_v26, 0.0  ;;  %v3213_v35 = vadd.f32 %v12580_v3, %v11349_v38  ;;  %v3204_v36 = vpop.f32.mrb[27].mxu0 }
 0xc89   : > { %v3231_v51 = vmax.f32 %v3202_v34, 0.0  ;;  %v3205_v43 = vadd.f32 %v11349_v38, %v3204_v36 }
 0xc8a   : > { %v3248_v37 = vmul.f32 %v11360_v32, %v3233_v30  ;;  %v3234_v58 = vmax.f32 %v3213_v35, 0.0 }
 0xc8b   : > { %v3246_v59 = vmul.f32 %v11360_v32, %v3231_v51  ;;  %v3232_v17 = vmax.f32 %v3205_v43, 0.0 }
 0xc8c   : > { %v3249_v40 = vmul.f32 %v11360_v32, %v3234_v58  ;;  %v16840_v60 = vadd.f32 %v11361_v54, %v3248_v37 }
 0xc8d   : > { %v3247_v62 = vmul.f32 %v11360_v32, %v3232_v17  ;;  %v12583_v2 = vpop.f32.mrb[28].mxu0  ;;  %v16848_v1 = vadd.f32 %v11361_v54, %v3246_v59 }
 0xc8e   : > { %v3226_v45 = vadd.f32 %v12583_v2, %v11349_v38  ;;  %3279 = vrot.lane.b32.xlu0 %v16840_v60, %s15576_s10  ;;  %v3217_v23 = vpop.f32.mrb[29].mxu0  ;;  %v16844_v42 = vadd.f32 %v11361_v54, %v3249_v40 }
 0xc8f   : > { %v3218_v24 = vadd.f32 %v11349_v38, %v3217_v23  ;;  %v12584_v53 = vpop.f32.mrb[30].mxu0  ;;  %v16846_v4 = vadd.f32 %v11361_v54, %v3247_v62 }
 0xc90   : > { %v3220_v47 = vpop.f32.mrb[31].mxu0  ;;  %v13728_v7 = vpack.i.bf16 %v16844_v42, %v16840_v60  ;;  %v3237_v18 = vmax.f32 %v3226_v45, 0.0 }
 0xc91   : > { %v3235_v20 = vmax.f32 %v3218_v24, 0.0  ;;  %v3221_v6 = vadd.f32 %v11349_v38, %v3220_v47  ;;  %3277 = vrot.lane.b32.xlu1 %v16846_v4, %s15576_s10  ;;  %v13723_v21 = vpack.i.bf16 %v16846_v4, %v16848_v1 }
 0xc92   : > { %3275 = vrot.lane.b32.xlu0 %v16848_v1, %s15576_s10  ;;  %v3252_v26 = vmul.f32 %v11360_v32, %v3237_v18  ;;  %v14136_v18 = vld [vmem:[%s19039_s13 + $0x60] sm:$0xff]  }
 0xc93   : > { %v3250_v19 = vmul.f32 %v11360_v32, %v3235_v20  ;;  %v3236_v22 = vmax.f32 %v3221_v6, 0.0  ;;  %v14137_v20 = vld [vmem:[%s19039_s13 + $0x68] sm:$0xff]   ;;  %12585 = vmatprep.subr.bf16.mxu1 %v14136_v18  ;;  %v14138_v6 = vld [vmem:[%s19039_s13 + $0x70] sm:$0xff]  }
 0xc94   : > { %v16868_v3 = vadd.f32 %v11361_v54, %v3252_v26  ;;  %12586 = vmatpush3.bf16.msra.mxu1 %v14136_v18 }
 0xc95   : > { %v3251_v27 = vmul.f32 %v11360_v32, %v3236_v22  ;;  %3281 = vrot.lane.b32.xlu1 %v16844_v42, %s15576_s10  ;;  %v16860_v34 = vadd.f32 %v11361_v54, %v3250_v19  ;;  %12587 = vmatprep.subr.bf16.mxu1 %v14137_v20  ;;  %v14139_v19 = vld [vmem:[%s19039_s13 + $0x78] sm:$0xff]   ;;  %v14140_v22 = vld [vmem:[%s19039_s13 + $0x80] sm:$0xff]  }
 0xc97   : > { %3283 = vrot.lane.b32.xlu0 %v16860_v34, %s15576_s10  ;;  %v16864_v38 = vadd.f32 %v11361_v54, %v3251_v27 }
 0xc98   : > { %12588 = vmatpush3.bf16.msra.mxu1 %v14137_v20 }
 0xc99   : > { %3285 = vrot.lane.b32.xlu1 %v16864_v38, %s15576_s10  ;;  %v13748_v30 = vpack.i.bf16 %v16864_v38, %v16860_v34  ;;  %12589 = vmatprep.subr.bf16.mxu1 %v14138_v6 }
 0xc9b   : > { %3287 = vrot.lane.b32.xlu0 %v16868_v3, %s15576_s10 }
 0xc9c   : > { %12590 = vmatpush3.bf16.msra.mxu1 %v14138_v6 }
 0xc9d   : > { %12591 = vmatprep.subr.bf16.mxu1 %v14139_v19 }
 0xca0   : > { %12592 = vmatpush3.bf16.msra.mxu1 %v14139_v19 }
 0xca1   : > { %12593 = vmatprep.subr.bf16.mxu1 %v14140_v22 }
 0xca4   : > { %12594 = vmatpush3.bf16.msra.mxu1 %v14140_v22 }
 0xd00   : > { %v3280_v32 = vpop.permute.xlu0 %3279 }
 0xd01   : > { %v3298_v59 = vadd.f32 %v3280_v32, %v16623_v11 }
 0xd03   : > { %v3278_v35 = vpop.permute.xlu1 %3277 }
 0xd04   : > { %v3297_v36 = vadd.f32 %v3278_v35, %v16629_v16  ;;  %v3276_v51 = vpop.permute.xlu0 %3275 }
 0xd05   : > { %v3296_v43 = vadd.f32 %v3276_v51, %v16627_v13 }
 0xd07   : > { %v13668_v37 = vpack.i.bf16 %v3297_v36, %v3296_v43  ;;  %v3282_v58 = vpop.permute.xlu1 %3281  ;;  %v14141_v43 = vld [vmem:[%s19039_s13 + $0x88] sm:$0xff]  }
 0xd08   : > { %v3299_v54 = vadd.f32 %v3282_v58, %v16625_v12  ;;  %12595 = vmatprep.subr.bf16.mxu1 %v14141_v43 }
 0xd09   : > { %13669 = vrot.lane.b32.xlu1 %v13668_v37, %s15573_s26  ;;  %v3284_v17 = vpop.permute.xlu0 %3283  ;;  %12596 = vmatpush3.bf16.msra.mxu1 %v14141_v43 }
 0xd0a   : > { %v13663_v40 = vpack.i.bf16 %v3299_v54, %v3298_v59  ;;  %v16880_v62 = vadd.f32 %v3284_v17, %v16637_v33 }
 0xd0b   : > { %v3286_v2 = vpop.permute.xlu1 %3285 }
 0xd0c   : > { %v16883_v45 = vadd.f32 %v3286_v2, %v16643_v50  ;;  %13664 = vrot.lane.b32.xlu0 %v13663_v40, %s15573_s26 }
 0xd0d   : > { %3331 = vrot.lane.b32.xlu1 %v16880_v62, %s15573_s26  ;;  %v3288_v23 = vpop.permute.xlu0 %3287 }
 0xd0e   : > { %v13698_v24 = vpack.i.bf16 %v16883_v45, %v16880_v62  ;;  %v16891_v53 = vadd.f32 %v3288_v23, %v16641_v49 }
 0xd10   : > { %v13673_v47 = vpack.i.bf16 %v16891_v53, %v16883_v45 }
 0xd11   : > { %13679 = vrot.lane.b32.xlu1 %v13668_v37, %s15574_s12 }
 0xd12   : > { %13674 = vrot.lane.b32.xlu0 %v13673_v47, %s15573_s26 }
 0xd16   : > { %13684 = vrot.lane.b32.xlu0 %v13663_v40, %s15574_s12 }
 0xd7b   : > { %v13670_v26 = vpop.permute.xlu1 %13669 }
 0xd7c   : > { %v13672_v27 = vunpack.i.h.bf16 %v13670_v26  ;;  %v13671_v32 = vunpack.i.l.bf16 %v13670_v26 }
 0xd7e   : > { %v3345_v35 = vrot.slane %v13672_v27, 6  ;;  %v3344_v36 = vrot.slane %v13671_v32, 6  ;;  %v13665_v51 = vpop.permute.xlu0 %13664  ;;  %v3366_v37 = vrot.slane %v13672_v27, 2  ;;  %v3365_v58 = vrot.slane %v13671_v32, 2 }
 0xd7f   : > { %v13667_v59 = vunpack.i.h.bf16 %v13665_v51  ;;  %v13666_v54 = vunpack.i.l.bf16 %v13665_v51  ;;  %v16904_v17 = vpop.permute.xlu1 %3331 }
 0xd80   : > { %v3356_v40 = vsel %vm1929_vm7, %v3344_v36, %v3345_v35  ;;  %v3369_v62 = vrot.slane %v16904_v17, 2  ;;  %v3377_v19 = vsel %vm2121_vm3, %v3365_v58, %v3366_v37  ;;  %v3348_v61 = vrot.slane %v16904_v17, 6 }
 0xd81   : > { %v16909_v2 = vrot.slane %v13667_v59, 6  ;;  %v3368_v45 = vrot.slane %v13667_v59, 2  ;;  %v3346_v23 = vrot.slane %v13666_v54, 6  ;;  %v3367_v47 = vrot.slane %v13666_v54, 2 }
 0xd83   : > { %v3354_v18 = vsel %vm1929_vm7, %v3346_v23, %v16909_v2  ;;  %v3355_v20 = vsel %vm1929_vm7, %v3345_v35, %v3346_v23  ;;  %v3376_v6 = vsel %vm2121_vm3, %v3366_v37, %v3367_v47  ;;  %v3374_v27 = vsel %vm2121_vm3, %v3368_v45, %v3369_v62 }
 0xd84   : > { %v13675_v22 = vpop.permute.xlu0 %13674  ;;  %v13688_v26 = vpack.i.bf16 %v3376_v6, %v3377_v19  ;;  %v3375_v43 = vsel %vm2121_vm3, %v3367_v47, %v3368_v45  ;;  %v3353_v17 = vsel %vm1929_vm7, %v16909_v2, %v3348_v61 }
 0xd85   : > { %v13677_v32 = vunpack.i.h.bf16 %v13675_v22  ;;  %v13676_v51 = vunpack.i.l.bf16 %v13675_v22  ;;  %v13693_v59 = vpack.i.bf16 %v3374_v27, %v3375_v43 }
 0xd86   : > { %13689 = vrot.lane.b32.xlu1 %v13688_v26, %s15574_s12 }
 0xd87   : > { %v3350_v35 = vrot.slane %v13677_v32, 6  ;;  %v3371_v54 = vrot.slane %v13677_v32, 2  ;;  %v3349_v23 = vrot.slane %v13676_v51, 6  ;;  %v3370_v25 = vrot.slane %v13676_v51, 2  ;;  %13694 = vrot.lane.b32.xlu0 %v13693_v59, %s15574_s12 }
 0xd88   : > { %v13685_v39 = vpop.permute.xlu0 %13684 }
 0xd89   : > { %v3357_v37 = vsel %vm1929_vm7, %v3350_v35, %v3344_v36  ;;  %v3351_v6 = vsel %vm1929_vm7, %v3349_v23, %v3350_v35  ;;  %v3373_v45 = vsel %vm2121_vm3, %v3369_v62, %v3370_v25  ;;  %v3372_v47 = vsel %vm2121_vm3, %v3370_v25, %v3371_v54  ;;  %v13680_v25 = vpop.permute.xlu1 %13679 }
 0xd8a   : > { %13699 = vrot.lane.b32.xlu1 %v13698_v24, %s15574_s12  ;;  %v13703_v19 = vpack.i.bf16 %v3373_v45, %v16891_v53  ;;  %v3378_v22 = vsel %vm2121_vm3, %v3371_v54, %v3365_v58  ;;  %v13682_v55 = vunpack.i.h.bf16 %v13680_v25  ;;  %v3358_v48 = vsel %vm1944_vm9, %v3357_v37, 0.0 }
 0xd8b   : > { %v3385_v26 = vsel %vm2149_vm11, %v3378_v22, 0.0  ;;  %v13681_v63 = vunpack.i.l.bf16 %v13680_v25  ;;  %v13687_v56 = vunpack.i.h.bf16 %v13685_v39  ;;  %v3352_v54 = vsel %vm1929_vm7, %v3348_v61, %v3349_v23  ;;  %v14143_v23 = vld [vmem:[#allocation23 + $0x8] sm:$0xff]  }
 0xd8c   : > { %13704 = vrot.lane.b32.xlu0 %v13703_v19, %s15574_s12  ;;  %v13708_v36 = vpack.i.bf16 %v3385_v26, %v3372_v47  ;;  %v3436_v4 = vsel %vm1571_vm1, %v3356_v40, %v13682_v55  ;;  %v14145_v55 = vld [vmem:[#allocation23 + $0x18] sm:$0xff]   ;;  %vm6609_vm3 = vcmp.lt.s32.totalorder %v16398_v31, 4 }
 0xd8d   : > { %v3435_v8 = vsel %vm1571_vm1, %v3358_v48, %v13681_v63  ;;  %v3438_v24 = vsel %vm1571_vm1, %v3354_v18, %v13687_v56  ;;  %v14146_v48 = vld [vmem:[#allocation23 + $0x20] sm:$0xff]   ;;  %v14147_v63 = vld [vmem:[#allocation23 + $0x28] sm:$0xff]   ;;  %v14148_v56 = vld [vmem:[#allocation23 + $0x30] sm:$0xff]  }
 0xd8e   : > { %13709 = vrot.lane.b32.xlu1 %v13708_v36, %s15574_s12 }
 0xd90   : > { %13714 = vrot.lane.b32.xlu0 %v13713_v5, %s15573_s26 }
 0xd92   : > { %13719 = vrot.lane.b32.xlu1 %v13718_v0, %s15573_s26  ;;  %v13686_v0 = vunpack.i.l.bf16 %v13685_v39  ;;  %v14142_v39 = vld [vmem:[#allocation23] sm:$0xff]  }
 0xd93   : > { %12605 = vmatprep.subr.bf16.mxu0 %v14142_v39 }
 0xd94   : > { %13724 = vrot.lane.b32.xlu0 %v13723_v21, %s15574_s12  ;;  %v3437_v21 = vsel %vm1571_vm1, %v3355_v20, %v13686_v0  ;;  %12606 = vmatpush3.bf16.msra.mxu0 %v14142_v39  ;;  %v11374_v0 = vld [vmem:[#allocation19 + $0x2] ss:$0 sm:$0xff] }
 0xd95   : > { %12607 = vmatprep.subr.bf16.mxu0 %v14143_v23 }
 0xd96   : > { %13729 = vrot.lane.b32.xlu1 %v13728_v7, %s15574_s12 }
 0xd98   : > { %13734 = vrot.lane.b32.xlu0 %v13733_v10, %s15573_s26  ;;  %12608 = vmatpush3.bf16.msra.mxu0 %v14143_v23 }
 0xd9a   : > { %3622 = vrot.lane.b32.xlu1 %v16743_v57, %s15573_s26 }
 0xdf8   : > { %v13690_v5 = vpop.permute.xlu1 %13689 }
 0xdf9   : > { %v13692_v60 = vunpack.i.h.bf16 %v13690_v5  ;;  %v13691_v42 = vunpack.i.l.bf16 %v13690_v5  ;;  %v13695_v9 = vpop.permute.xlu0 %13694 }
 0xdfa   : > { %v13697_v1 = vunpack.i.h.bf16 %v13695_v9  ;;  %v13696_v7 = vunpack.i.l.bf16 %v13695_v9 }
 0xdfb   : > { %v3443_v10 = vsel %vm1615_vm2, %v3436_v4, %v13692_v60  ;;  %v3442_v57 = vsel %vm1615_vm2, %v3435_v8, %v13691_v42  ;;  %v11385_v4 = vld [vmem:[#allocation20 + $0x2] ss:$0 sm:$0xff] }
 0xdfc   : > { %v13700_v53 = vpop.permute.xlu1 %13699  ;;  %v3449_v58 = vpack.c.bf16 %v3443_v10, %v3442_v57  ;;  %v3444_v62 = vsel %vm1615_vm2, %v3437_v21, %v13696_v7  ;;  %v3445_v40 = vsel %vm1615_vm2, %v3438_v24, %v13697_v1  ;;  %v14149_v7 = vld [vmem:[#allocation23 + $0x38] sm:$0xff]  }
 0xdfd   : > { %v13701_v27 = vunpack.i.l.bf16 %v13700_v53  ;;  %v3450_v32 = vpack.c.bf16 %v3445_v40, %v3444_v62  ;;  %v13702_v51 = vunpack.i.h.bf16 %v13700_v53 }
 0xdfe   : > { %12597 = vmatprep.mubr.msk.bf16.mxu1 %vm2276_vm10, %v3449_v58  ;;  %v13705_v43 = vpop.permute.xlu0 %13704  ;;  %v11386_v58 = vld [vmem:[#allocation22 + $0x2] ss:$0 sm:$0xff] }
 0xdff   : > { %v13707_v59 = vunpack.i.h.bf16 %v13705_v43  ;;  %v13706_v20 = vunpack.i.l.bf16 %v13705_v43  ;;  %12598 = vmatmul.mubr.msk.bf16.vlgmr.msra.gmra.mrb[24].mxu1 %vm2276_vm10, %v3450_v32  ;;  %v3439_v18 = vsel %vm1571_vm1, %v3353_v17, %v13701_v27  ;;  %v3440_v19 = vsel %vm1571_vm1, %v3352_v54, %v13702_v51 }
 0xe00   : > { %v13710_v35 = vpop.permute.xlu1 %13709 }
 0xe01   : > { %v3441_v37 = vsel %vm1571_vm1, %v3351_v6, %v13706_v20  ;;  %v13712_v45 = vunpack.i.h.bf16 %v13710_v35  ;;  %v13711_v47 = vunpack.i.l.bf16 %v13710_v35  ;;  %v3446_v22 = vsel %vm1615_vm2, %v3439_v18, %v13707_v59  ;;  %v14144_v6 = vld [vmem:[#allocation23 + $0x10] sm:$0xff]  }
 0xe02   : > { %12609 = vmatprep.subr.bf16.mxu0 %v14144_v6 }
 0xe03   : > { %v3447_v2 = vsel %vm1615_vm2, %v3440_v19, %v13711_v47  ;;  %v3448_v26 = vsel %vm1615_vm2, %v3441_v37, %v13712_v45  ;;  %12610 = vmatpush3.bf16.msra.mxu0 %v14144_v6 }
 0xe04   : > { %v3451_v36 = vpack.c.bf16 %v3447_v2, %v3446_v22  ;;  %v3452_v25 = vpack.c.bf16 %v3448_v26, %v3448_v26  ;;  %12611 = vmatprep.subr.bf16.mxu0 %v14145_v55 }
 0xe06   : > { %12601 = vmatprep.mubr.msk.bf16.mxu1 %vm2276_vm10, %v3451_v36 }
 0xe07   : > { %12602 = vmatmul.mubr.msk.bf16.gmra.mrb[28].mxu1 %vm2276_vm10, %v3452_v25  ;;  %12612 = vmatpush3.bf16.msra.mxu0 %v14145_v55 }
 0xe08   : > { %12613 = vmatprep.subr.bf16.mxu0 %v14146_v48 }
 0xe0b   : > { %12614 = vmatpush3.bf16.msra.mxu0 %v14146_v48 }
 0xe0c   : > { %12615 = vmatprep.subr.bf16.mxu0 %v14147_v63 }
 0xe0f   : > { %12616 = vmatpush3.bf16.msra.mxu0 %v14147_v63 }
 0xe10   : > { %12617 = vmatprep.subr.bf16.mxu0 %v14148_v56 }
 0xe13   : > { %12618 = vmatpush3.bf16.msra.mxu0 %v14148_v56  ;;  %v13720_v56 = vpop.permute.xlu1 %13719 }
 0xe14   : > { %12619 = vmatprep.subr.bf16.mxu0 %v14149_v7 }
 0xe17   : > { %12620 = vmatpush3.bf16.msra.mxu0 %v14149_v7 }
 0xed2   : > { %v12599_v5 = vpop.f32.mrb[24].mxu1 }
 0xed3   : > { %v3552_v60 = vadd.f32 %v12599_v5, %v11374_v0  ;;  %v3543_v42 = vpop.f32.mrb[25].mxu1  ;;  %v13730_v5 = vpop.permute.xlu1 %13729 }
 0xed4   : > { %v3544_v8 = vadd.f32 %v11374_v0, %v3543_v42  ;;  %v12600_v9 = vpop.f32.mrb[26].mxu1 }
 0xed5   : > { %v3575_v10 = vmax.f32 %v3552_v60, 0.0  ;;  %v3555_v57 = vadd.f32 %v12600_v9, %v11374_v0  ;;  %v3546_v1 = vpop.f32.mrb[27].mxu1  ;;  %v13721_v9 = vunpack.i.l.bf16 %v13720_v56 }
 0xed6   : > { %v3573_v61 = vmax.f32 %v3544_v8, 0.0  ;;  %v3547_v21 = vadd.f32 %v11374_v0, %v3546_v1  ;;  %v13722_v8 = vunpack.i.h.bf16 %v13720_v56  ;;  %v13731_v1 = vunpack.i.l.bf16 %v13730_v5 }
 0xed7   : > { %v3590_v24 = vmul.f32 %v11385_v4, %v3575_v10  ;;  %v3576_v53 = vmax.f32 %v3555_v57, 0.0  ;;  %v13732_v57 = vunpack.i.h.bf16 %v13730_v5  ;;  %v18930_v56 = vmov 0.0   ;;  %v14151_v5 = vld [vmem:[%s19041_s4 + $0x8] sm:$0xff]  }
 0xed8   : > { %v3588_v62 = vmul.f32 %v11385_v4, %v3573_v61  ;;  %v3574_v40 = vmax.f32 %v3547_v21, 0.0  ;;  %v3683_v21 = vsel %vm1571_vm1, %v16625_v12, %v13722_v8  ;;  %12629 = vmatprep.subr.bf16.mxu1 %v18930_v56  ;;  %12649 = vmatprep.subr.bf16.mxu0 %v18930_v56  ;;  %v14156_v8 = vld [vmem:[%s19041_s4 + $0x30] sm:$0xff]  }
 0xed9   : > { %v3591_v27 = vmul.f32 %v11385_v4, %v3576_v53  ;;  %v3605_v43 = vadd.f32 %v11386_v58, %v3590_v24  ;;  %v3682_v24 = vsel %vm1571_vm1, %v16623_v11, %v13721_v9  ;;  %12645 = vmatprep.mubr.msk.bf16.mxu1 %vm15578_vm12, %v18930_v56  ;;  %v14158_v9 = vld [vmem:[%s19042_s11] sm:$0xff]  }
 0xeda   : > { %v3589_v32 = vmul.f32 %v11385_v4, %v3574_v40  ;;  %v12603_v51 = vpop.f32.mrb[28].mxu1  ;;  %v3603_v18 = vadd.f32 %v11386_v58, %v3588_v62  ;;  %v3689_v40 = vsel %vm1615_vm2, %v3682_v24, %v13731_v1 }
 0xedb   : > { %v3606_v17 = vadd.f32 %v11386_v58, %v3591_v27  ;;  %v3568_v59 = vadd.f32 %v12603_v51, %v11374_v0  ;;  %v3559_v20 = vpop.f32.mrb[29].mxu1  ;;  %v3690_v27 = vsel %vm1615_vm2, %v3683_v21, %v13732_v57  ;;  %v11387_v57 = vld [vmem:[#allocation25] ss:$0 sm:$0xff]  ;;  %v11396_v21 = vld [vmem:[#allocation26] ss:$0 sm:$0xff] }
 0xedc   : > { %v3604_v35 = vadd.f32 %v11386_v58, %v3589_v32  ;;  %v3560_v54 = vadd.f32 %v11374_v0, %v3559_v20  ;;  %v12604_v37 = vpop.f32.mrb[30].mxu1 }
 0xedd   : > { %v3579_v45 = vmax.f32 %v3568_v59, 0.0  ;;  %v3562_v47 = vpop.f32.mrb[31].mxu1  ;;  %v13738_v19 = vpack.i.bf16 %v3606_v17, %v3605_v43 }
 0xede   : > { %v3577_v22 = vmax.f32 %v3560_v54, 0.0  ;;  %v3563_v2 = vadd.f32 %v11374_v0, %v3562_v47  ;;  %v13743_v26 = vpack.i.bf16 %v3604_v35, %v3603_v18  ;;  %v13715_v0 = vpop.permute.xlu0 %13714 }
 0xedf   : > { %13739 = vrot.lane.b32.xlu1 %v13738_v19, %s15576_s10  ;;  %v3594_v39 = vmul.f32 %v11385_v4, %v3579_v45  ;;  %v13717_v42 = vunpack.i.h.bf16 %v13715_v0 }
 0xee0   : > { %v3592_v36 = vmul.f32 %v11385_v4, %v3577_v22  ;;  %v3578_v25 = vmax.f32 %v3563_v2, 0.0  ;;  %13744 = vrot.lane.b32.xlu0 %v13743_v26, %s15576_s10 }
 0xee1   : > { %v3609_v48 = vadd.f32 %v11386_v58, %v3594_v39 }
 0xee2   : > { %v3593_v23 = vmul.f32 %v11385_v4, %v3578_v25  ;;  %v3607_v6 = vadd.f32 %v11386_v58, %v3592_v36  ;;  %v13725_v60 = vpop.permute.xlu0 %13724  ;;  %v13716_v4 = vunpack.i.l.bf16 %v13715_v0  ;;  %v14150_v0 = vld [vmem:[%s19040_s7] sm:$0xff]  }
 0xee3   : > { %3643 = vrot.lane.b32.xlu1 %v16868_v3, %s15574_s12  ;;  %v3623_v3 = vpop.permute.xlu1 %3622  ;;  %v13727_v34 = vunpack.i.h.bf16 %v13725_v60  ;;  %v13726_v38 = vunpack.i.l.bf16 %v13725_v60  ;;  %12630 = vmatpush3.bf16.msra.mxu1 %v14150_v0  ;;  %v14152_v60 = vld [vmem:[%s19041_s4 + $0x10] sm:$0xff]  }
 0xee4   : > { %v3608_v55 = vadd.f32 %v11386_v58, %v3593_v23  ;;  %13749 = vrot.lane.b32.xlu0 %v13748_v30, %s15574_s12  ;;  %v3681_v30 = vsel %vm1571_vm1, %v16629_v16, %v13717_v42  ;;  %v3680_v7 = vsel %vm1571_vm1, %v16627_v13, %v13716_v4  ;;  %v3686_v2 = vsel %vm1571_vm1, %v16641_v49, %v3623_v3  ;;  %v14153_v42 = vld [vmem:[%s19041_s4 + $0x18] sm:$0xff]   ;;  %v14154_v4 = vld [vmem:[%s19041_s4 + $0x20] sm:$0xff]   ;;  %v14155_v3 = vld [vmem:[%s19041_s4 + $0x28] sm:$0xff]  }
 0xee5   : > { %v3687_v43 = vsel %vm1615_vm2, %v3680_v7, %v13726_v38  ;;  %v3688_v12 = vsel %vm1615_vm2, %v3681_v30, %v13727_v34  ;;  %12631 = vmatprep.subr.bf16.mxu1 %v18930_v56 }
 0xee6   : > { %v13753_v63 = vpack.i.bf16 %v3608_v55, %v3607_v6  ;;  %v13735_v10 = vpop.permute.xlu0 %13734 }
 0xee7   : > { %3671 = vrot.lane.b32.xlu1 %v3609_v48, %s15576_s10  ;;  %v13737_v20 = vunpack.i.h.bf16 %v13735_v10  ;;  %v13736_v54 = vunpack.i.l.bf16 %v13735_v10  ;;  %12632 = vmatpush3.bf16.msra.mxu1 %v14151_v5  ;;  %v14157_v10 = vld [vmem:[%s19041_s4 + $0x38] sm:$0xff]  }
 0xee8   : > { %13754 = vrot.lane.b32.xlu0 %v13753_v63, %s15576_s10  ;;  %12633 = vmatprep.subr.bf16.mxu1 %v18930_v56 }
 0xee9   : > { %v3685_v22 = vsel %vm1571_vm1, %v16643_v50, %v13737_v20  ;;  %v3684_v36 = vsel %vm1571_vm1, %v16637_v33, %v13736_v54 }
 0xeeb   : > { %12634 = vmatpush3.bf16.msra.mxu1 %v14152_v60 }
 0xeec   : > { %12635 = vmatprep.subr.bf16.mxu1 %v18930_v56 }
 0xeef   : > { %12636 = vmatpush3.bf16.msra.mxu1 %v14153_v42 }
 0xef0   : > { %12637 = vmatprep.subr.bf16.mxu1 %v18930_v56 }
 0xef3   : > { %12638 = vmatpush3.bf16.msra.mxu1 %v14154_v4 }
 0xef4   : > { %12639 = vmatprep.subr.bf16.mxu1 %v18930_v56 }
 0xef7   : > { %12640 = vmatpush3.bf16.msra.mxu1 %v14155_v3 }
 0xef8   : > { %12641 = vmatprep.subr.bf16.mxu1 %v18930_v56 }
 0xefb   : > { %12642 = vmatpush3.bf16.msra.mxu1 %v14156_v8 }
 0xefc   : > { %12643 = vmatprep.subr.bf16.mxu1 %v18930_v56 }
 0xeff   : > { %12644 = vmatpush3.bf16.msra.mxu1 %v14157_v10  ;;  %v14159_v10 = vld [vmem:[%s19043_s18 + $0x8] sm:$0xff]  }
 0xf51   : > { %v13740_v61 = vpop.permute.xlu1 %13739 }
 0xf52   : > { %v13742_v53 = vunpack.i.h.bf16 %v13740_v61  ;;  %v13741_v58 = vunpack.i.l.bf16 %v13740_v61  ;;  %v13745_v62 = vpop.permute.xlu0 %13744 }
 0xf53   : > { %v13747_v32 = vunpack.i.h.bf16 %v13745_v62  ;;  %v13746_v51 = vunpack.i.l.bf16 %v13745_v62 }
 0xf54   : > { %v3697_v16 = vsel %vm2276_vm10, %v3690_v27, %v13742_v53  ;;  %v3696_v13 = vsel %vm2276_vm10, %v3689_v40, %v13741_v58 }
 0xf55   : > { %v3644_v17 = vpop.permute.xlu1 %3643  ;;  %v3694_v11 = vsel %vm2276_vm10, %v3687_v43, %v13746_v51  ;;  %v3695_v59 = vsel %vm2276_vm10, %v3688_v12, %v13747_v32  ;;  %v3702_v37 = vpack.c.bf16 %v3697_v16, %v3696_v13  ;;  %v11397_v16 = vld [vmem:[#allocation28] ss:$0 sm:$0xff] }
 0xf56   : > { %v13750_v18 = vpop.permute.xlu0 %13749  ;;  %v3701_v35 = vpack.c.bf16 %v3695_v59, %v3694_v11  ;;  %v3693_v25 = vsel %vm1615_vm2, %v3686_v2, %v3644_v17 }
 0xf57   : > { %v13752_v45 = vunpack.i.h.bf16 %v13750_v18  ;;  %v13751_v47 = vunpack.i.l.bf16 %v13750_v18 }
 0xf58   : > { %12621 = vmatprep.mubr.bf16.mxu0 %v3701_v35 }
 0xf59   : > { %v3672_v19 = vpop.permute.xlu1 %3671  ;;  %12622 = vmatmul.mubr.bf16.vlgmr.msra.gmra.mrb[32].mxu0 %v3702_v37  ;;  %v3691_v55 = vsel %vm1615_vm2, %v3684_v36, %v13751_v47  ;;  %v3692_v48 = vsel %vm1615_vm2, %v3685_v22, %v13752_v45 }
 0xf5a   : > { %v13755_v26 = vpop.permute.xlu0 %13754  ;;  %v3700_v6 = vsel %vm2276_vm10, %v3693_v25, %v3672_v19  ;;  %12650 = vmatpush3.bf16.msra.mxu0 %v14158_v9 }
 0xf5b   : > { %v13757_v39 = vunpack.i.h.bf16 %v13755_v26  ;;  %v13756_v23 = vunpack.i.l.bf16 %v13755_v26  ;;  %v3704_v33 = vpack.c.bf16 %v3700_v6, %v3700_v6  ;;  %12651 = vmatprep.subr.bf16.mxu0 %v18930_v56 }
 0xf5d   : > { %v3698_v50 = vsel %vm2276_vm10, %v3691_v55, %v13756_v23  ;;  %v3699_v49 = vsel %vm2276_vm10, %v3692_v48, %v13757_v39 }
 0xf5e   : > { %v3703_v63 = vpack.c.bf16 %v3699_v49, %v3698_v50  ;;  %12652 = vmatpush3.bf16.msra.mxu0 %v14159_v10  ;;  %v11420_v10 = vld [vmem:[#allocation17 + $0x1] ss:$0 sm:$0xff] }
 0xf60   : > { %12625 = vmatprep.mubr.bf16.mxu0 %v3703_v63 }
 0xf61   : > { %12626 = vmatmul.mubr.bf16.gmra.mrb[36].mxu0 %v3704_v33 }
 0xf62   : > { %12653 = vmatprep.mubr.msk.bf16.mxu0 %vm15578_vm12, %v18930_v56 }
0x102c   : > { %v12623_v1 = vpop.f32.mrb[32].mxu0 }
0x102d   : > { %v3819_v34 = vadd.f32 %v12623_v1, %v11387_v57  ;;  %v3810_v38 = vpop.f32.mrb[33].mxu0 }
0x102e   : > { %v3811_v30 = vadd.f32 %v11387_v57, %v3810_v38  ;;  %v12624_v7 = vpop.f32.mrb[34].mxu0 }
0x102f   : > { %v3842_v61 = vmax.f32 %v3819_v34, 0.0  ;;  %v3822_v24 = vadd.f32 %v12624_v7, %v11387_v57  ;;  %v3813_v53 = vpop.f32.mrb[35].mxu0 }
0x1030   : > { %v3840_v58 = vmax.f32 %v3811_v30, 0.0  ;;  %v3814_v62 = vadd.f32 %v11387_v57, %v3813_v53  ;;  %v14161_v53 = vld [vmem:[#allocation13 + $0x48] sm:$0xff]  }
0x1031   : > { %v3843_v27 = vmax.f32 %v3822_v24, 0.0  ;;  %v3856_v51 = vmul.f32 %v11396_v21, %v3842_v61  ;;  %v14160_v24 = vld [vmem:[#allocation13 + $0x40] sm:$0xff]  }
0x1032   : > { %v3854_v40 = vmul.f32 %v11396_v21, %v3840_v58  ;;  %v3841_v32 = vmax.f32 %v3814_v62, 0.0  ;;  %12657 = vmatprep.subr.bf16.mxu1 %v14160_v24  ;;  %v14162_v58 = vld [vmem:[#allocation13 + $0x50] sm:$0xff]   ;;  %v14163_v62 = vld [vmem:[#allocation13 + $0x58] sm:$0xff]  }
0x1033   : > { %v3857_v59 = vmul.f32 %v11396_v21, %v3843_v27  ;;  %v17055_v54 = vadd.f32 %v11397_v16, %v3856_v51  ;;  %v14165_v27 = vld [vmem:[#allocation13 + $0x68] sm:$0xff]   ;;  %v14167_v51 = vld [vmem:[#allocation13 + $0x78] sm:$0xff]  }
0x1034   : > { %v3855_v13 = vmul.f32 %v11396_v21, %v3841_v32  ;;  %v12627_v43 = vpop.f32.mrb[36].mxu0  ;;  %v17051_v11 = vadd.f32 %v11397_v16, %v3854_v40  ;;  %v14164_v40 = vld [vmem:[#allocation13 + $0x60] sm:$0xff]   ;;  %v14166_v32 = vld [vmem:[#allocation13 + $0x70] sm:$0xff]  }
0x1035   : > { %v3835_v12 = vadd.f32 %v12627_v43, %v11387_v57  ;;  %v3826_v17 = vpop.f32.mrb[37].mxu0  ;;  %v17059_v2 = vadd.f32 %v11397_v16, %v3857_v59 }
0x1036   : > { %v17053_v20 = vadd.f32 %v11397_v16, %v3855_v13  ;;  %v3827_v18 = vadd.f32 %v11387_v57, %v3826_v17  ;;  %v12628_v35 = vpop.f32.mrb[38].mxu0 }
0x1037   : > { %v3829_v37 = vpop.f32.mrb[39].mxu0  ;;  %v3846_v47 = vmax.f32 %v3835_v12, 0.0 }
0x1038   : > { %v3875_v45 = vadd.f32 %v17053_v20, %v17051_v11  ;;  %v3844_v19 = vmax.f32 %v3827_v18, 0.0  ;;  %v3830_v22 = vadd.f32 %v11387_v57, %v3829_v37  ;;  %v3905_v57 = vld [vmem:[#allocation29] sm:$0x1] }
0x1039   : > { %v3860_v39 = vmul.f32 %v11396_v21, %v3846_v47 }
0x103a   : > { %v3876_v26 = vadd.f32 %v3875_v45, %v17055_v54  ;;  %v3858_v36 = vmul.f32 %v11396_v21, %v3844_v19  ;;  %v3845_v25 = vmax.f32 %v3830_v22, 0.0  ;;  %v17075_v45 = vsub.s32 0, %v16398_v31 }
0x103b   : > { %v17068_v49 = vadd.f32 %v11397_v16, %v3860_v39 }
0x103c   : > { %v17062_v23 = vadd.f32 %v11397_v16, %v3858_v36  ;;  %v3877_v6 = vadd.f32 %v3876_v26, %v17059_v2  ;;  %v3859_v55 = vmul.f32 %v11396_v21, %v3845_v25  ;;  %19044 = vst [vmem:[#allocation98_spill] sm:$0xff] %v17075_v45 }
0x103e   : > { %v3878_v48 = vadd.f32 %v3877_v6, %v17062_v23  ;;  %v17066_v50 = vadd.f32 %v11397_v16, %v3859_v55  ;;  %v4000_v16 = vld [vmem:[#allocation31] sm:$0x1] }
0x1040   : > { %v3879_v63 = vadd.f32 %v3878_v48, %v17066_v50 }
0x1042   : > { %v3880_v33 = vadd.f32 %v3879_v63, %v17068_v49 }
0x1044   : > { %v3881_v0 = vrot.slane %v3880_v33, 4 }
0x1046   : > { %v3882_v5 = vadd.f32 %v3881_v0, %v3880_v33  ;;  %v11419_v33 = vld [vmem:[#allocation16 + $0x1] ss:$0 sm:$0xff] }
0x1048   : > { %v3883_v60 = vrot.slane %v3882_v5, 2 }
0x104a   : > { %v3884_v42 = vadd.f32 %v3883_v60, %v3882_v5 }
0x104c   : > { %v3885_v4 = vrot.slane %v3884_v42, 1 }
0x104e   : > { %v3886_v3 = vadd.f32 %v3885_v4, %v3884_v42 }
0x1050   : > { %v3887_v8 = vmul.f32 0.017857144, %v3886_v3 }
0x1052   : > { %v3888_v9 = vpack.c.bf16 %v3887_v8, %v3887_v8 }
0x1054   : > { %12646 = vmatmul.mubr.bf16.vlgmr.msra.gmra.mrb[32].mxu1 %v3888_v9 }
0x1055   : > { %12658 = vmatpush3.bf16.msra.mxu1 %v14160_v24 }
0x1056   : > { %12659 = vmatprep.subr.bf16.mxu1 %v14161_v53 }
0x1059   : > { %12660 = vmatpush3.bf16.msra.mxu1 %v14161_v53 }
0x105a   : > { %12661 = vmatprep.subr.bf16.mxu1 %v14162_v58 }
0x105d   : > { %12662 = vmatpush3.bf16.msra.mxu1 %v14162_v58 }
0x105e   : > { %12663 = vmatprep.subr.bf16.mxu1 %v14163_v62 }
0x1061   : > { %12664 = vmatpush3.bf16.msra.mxu1 %v14163_v62 }
0x1062   : > { %12665 = vmatprep.subr.bf16.mxu1 %v14164_v40 }
0x1065   : > { %12666 = vmatpush3.bf16.msra.mxu1 %v14164_v40 }
0x1066   : > { %12667 = vmatprep.subr.bf16.mxu1 %v14165_v27 }
0x1069   : > { %12668 = vmatpush3.bf16.msra.mxu1 %v14165_v27 }
0x106a   : > { %12669 = vmatprep.subr.bf16.mxu1 %v14166_v32 }
0x106d   : > { %12670 = vmatpush3.bf16.msra.mxu1 %v14166_v32 }
0x106e   : > { %12671 = vmatprep.subr.bf16.mxu1 %v14167_v51 }
0x1071   : > { %12672 = vmatpush3.bf16.msra.mxu1 %v14167_v51 }
0x1127   : > { %v3988_v1 = vpop.f32.mrb[32].mxu1 }
0x1128   : > { %v3989_v34 = vadd.f32 %v3988_v1, %v3905_v57  ;;  %v12647_v38 = vpop.f32.mrb[33].mxu1 }
0x1129   : > { %v3991_v30 = vpop.f32.mrb[34].mxu1 }
0x112a   : > { %v3994_v7 = vmax.f32 %v3989_v34, 0.0  ;;  %v12648_v61 = vpop.f32.mrb[35].mxu1 }
0x112c   : > { %v3995_v21 = vpack.c.bf16 %v3994_v7, %v3994_v7 }
0x112e   : > { %12654 = vmatmul.mubr.msk.bf16.vlgmr.msra.gmra.mrb[40].mxu0 %vm1571_vm1, %v3995_v21 }
0x1201   : > { %v4050_v13 = vpop.f32.mrb[40].mxu0 }
0x1202   : > { %v4051_v43 = vadd.f32 %v4050_v13, %v4000_v16  ;;  %v12655_v12 = vpop.f32.mrb[41].mxu0 }
0x1203   : > { %v4053_v17 = vpop.f32.mrb[42].mxu0 }
0x1204   : > { %v11409_v59 = vmul.f32 -1.442695, %v4051_v43  ;;  %v12656_v18 = vpop.f32.mrb[43].mxu0 }
0x1206   : > { %14510 = vpow2.f32 %v11409_v59 }
0x1210   : > { %v14511_v35 = vpop.eup %14510 }
0x1211   : > { %v4059_v37 = vadd.f32 1.0, %v14511_v35 }
0x1213   : > { %14512 = vrcp.f32 %v4059_v37  ;;  %v14168_v37 = vld [vmem:[%s19039_s13 + $0x90] sm:$0xff]  }
0x1214   : > { %12681 = vmatprep.subr.bf16.mxu0 %v14168_v37 }
0x1215   : > { %12682 = vmatpush3.bf16.msra.mxu0 %v14168_v37 }
0x121d   : > { %v14513_v47 = vpop.eup %14512 }
0x121e   : > { %v4065_v19 = vrot.slane %v14513_v47, %v17075_v45  ;;  %v14169_v47 = vld [vmem:[%s19039_s13 + $0x98] sm:$0xff]  }
0x121f   : > { %12683 = vmatprep.subr.bf16.mxu0 %v14169_v47 }
0x1220   : > { %v4066_v22 = vmul.f32 %v4065_v19, %v17051_v11  ;;  %v4067_v26 = vmul.f32 %v4065_v19, %v17053_v20  ;;  %v4068_v36 = vmul.f32 %v4065_v19, %v17055_v54  ;;  %v4069_v25 = vmul.f32 %v4065_v19, %v17059_v2  ;;  %12684 = vmatpush3.bf16.msra.mxu0 %v14169_v47 }
0x1221   : > { %v4070_v39 = vmul.f32 %v4065_v19, %v17062_v23  ;;  %v4071_v6 = vmul.f32 %v4065_v19, %v17066_v50 }
0x1222   : > { %v17085_v55 = vadd.f32 %v4066_v22, %v16601_v14  ;;  %v17088_v48 = vadd.f32 %v4067_v26, %v16603_v15  ;;  %v17091_v63 = vadd.f32 %v4068_v36, %v16607_v28  ;;  %v17094_v11 = vadd.f32 %v4069_v25, %v16609_v29  ;;  %v14170_v36 = vld [vmem:[%s19039_s13 + $0xa0] sm:$0xff]   ;;  %v14171_v25 = vld [vmem:[%s19039_s13 + $0xa8] sm:$0xff]  }
0x1223   : > { %v17097_v20 = vadd.f32 %v4070_v39, %v16613_v52  ;;  %v17100_v54 = vadd.f32 %v4071_v6, %v16615_v41  ;;  %v4072_v15 = vmul.f32 %v4065_v19, %v17068_v49  ;;  %v11410_v41 = vld [vmem:[#allocation14 + $0x1] ss:$0 sm:$0xff]  ;;  %12685 = vmatprep.subr.bf16.mxu0 %v14170_v36 }
0x1224   : > { %v17104_v2 = vpack.c.bf16 %v17088_v48, %v17085_v55  ;;  %v17108_v14 = vpack.c.bf16 %v17094_v11, %v17091_v63  ;;  %12686 = vmatpush3.bf16.msra.mxu0 %v14170_v36  ;;  %v14172_v39 = vld [vmem:[%s19039_s13 + $0xb0] sm:$0xff]  }
0x1225   : > { %v17114_v28 = vpack.c.bf16 %v17100_v54, %v17097_v20  ;;  %v17119_v29 = vadd.f32 %v4072_v15, %v16619_v46  ;;  %12687 = vmatprep.subr.bf16.mxu0 %v14171_v25 }
0x1226   : > { %12673 = vmatprep.mubr.bf16.mxu1 %v17104_v2 }
0x1227   : > { %12674 = vmatmul.mubr.bf16.vlgmr.msra.gmra.mrb[36].mxu1 %v17108_v14  ;;  %v17123_v52 = vpack.c.bf16 %v17119_v29, %v17119_v29 }
0x1228   : > { %12677 = vmatprep.mubr.bf16.mxu1 %v17114_v28  ;;  %12688 = vmatpush3.bf16.msra.mxu0 %v14171_v25 }
0x1229   : > { %12689 = vmatprep.subr.bf16.mxu0 %v14172_v39 }
0x122c   : > { %12690 = vmatpush3.bf16.msra.mxu0 %v14172_v39  ;;  %v17197_v39 = vadd.s32 4294967293, %v16398_v31 }
0x122e   : > { %vm4353_vm0 = vcmp.ge.s32.totalorder %v17197_v39, 0 }
0x122f   : > { %12678 = vmatmul.mubr.bf16.gmra.mrb[40].mxu1 %v17123_v52 }
0x12fa   : > { %v12675_v23 = vpop.f32.mrb[36].mxu1 }
0x12fb   : > { %v4232_v50 = vadd.f32 %v12675_v23, %v11410_v41  ;;  %v4223_v49 = vpop.f32.mrb[37].mxu1 }
0x12fc   : > { %v4224_v0 = vadd.f32 %v11410_v41, %v4223_v49  ;;  %v12676_v5 = vpop.f32.mrb[38].mxu1 }
0x12fd   : > { %v4255_v60 = vmax.f32 %v4232_v50, 0.0  ;;  %v4235_v42 = vadd.f32 %v12676_v5, %v11410_v41  ;;  %v4226_v4 = vpop.f32.mrb[39].mxu1  ;;  %v14173_v50 = vld [vmem:[%s19039_s13 + $0xb8] sm:$0xff]  }
0x12fe   : > { %v4253_v3 = vmax.f32 %v4224_v0, 0.0  ;;  %v4227_v8 = vadd.f32 %v11410_v41, %v4226_v4  ;;  %12691 = vmatprep.subr.bf16.mxu0 %v14173_v50 }
0x12ff   : > { %v4270_v46 = vmul.f32 %v11419_v33, %v4255_v60  ;;  %v4256_v9 = vmax.f32 %v4235_v42, 0.0  ;;  %12692 = vmatpush3.bf16.msra.mxu0 %v14173_v50 }
0x1300   : > { %v4268_v57 = vmul.f32 %v11419_v33, %v4253_v3  ;;  %v4254_v1 = vmax.f32 %v4227_v8, 0.0 }
0x1301   : > { %v4271_v34 = vmul.f32 %v11419_v33, %v4256_v9  ;;  %v17126_v7 = vadd.f32 %v11420_v10, %v4270_v46 }
0x1302   : > { %v4269_v38 = vmul.f32 %v11419_v33, %v4254_v1  ;;  %v12679_v30 = vpop.f32.mrb[40].mxu1  ;;  %v17130_v53 = vadd.f32 %v11420_v10, %v4268_v57 }
0x1303   : > { %v17128_v61 = vadd.f32 %v11420_v10, %v4271_v34  ;;  %v4248_v21 = vadd.f32 %v12679_v30, %v11410_v41  ;;  %v4239_v24 = vpop.f32.mrb[41].mxu1 }
0x1304   : > { %v17132_v58 = vadd.f32 %v11420_v10, %v4269_v38  ;;  %v4240_v62 = vadd.f32 %v11410_v41, %v4239_v24  ;;  %v12680_v40 = vpop.f32.mrb[42].mxu1 }
0x1305   : > { %v4259_v27 = vmax.f32 %v4248_v21, 0.0  ;;  %v4242_v32 = vpop.f32.mrb[43].mxu1  ;;  %v13758_v51 = vpack.i.bf16 %v17128_v61, %v17126_v7  ;;  %v17173_v21 = vadd.s32 3, %v16420_v44 }
0x1306   : > { %v4257_v16 = vmax.f32 %v4240_v62, 0.0  ;;  %v4243_v13 = vadd.f32 %v11410_v41, %v4242_v32  ;;  %v13763_v43 = vpack.i.bf16 %v17132_v58, %v17130_v53 }
0x1307   : > { %13759 = vrot.lane.b32.xlu1 %v13758_v51, %s15576_s10  ;;  %v4274_v12 = vmul.f32 %v11419_v33, %v4259_v27  ;;  %vm4430_vm15 = vcmp.lt.s32.totalorder %v17173_v21, 56 }
0x1308   : > { %v4272_v17 = vmul.f32 %v11419_v33, %v4257_v16  ;;  %v4258_v59 = vmax.f32 %v4243_v13, 0.0  ;;  %13764 = vrot.lane.b32.xlu0 %v13763_v43, %s15576_s10 }
0x1309   : > { %v17144_v19 = vadd.f32 %v11420_v10, %v4274_v12 }
0x130a   : > { %v17140_v18 = vadd.f32 %v11420_v10, %v4272_v17  ;;  %v4273_v35 = vmul.f32 %v11419_v33, %v4258_v59 }
0x130c   : > { %v17146_v22 = vadd.f32 %v11420_v10, %v4273_v35  ;;  %4318 = vrot.lane.b32.xlu0 %v17140_v18, %s15576_s10 }
0x130e   : > { %v13768_v26 = vpack.i.bf16 %v17144_v19, %v17146_v22 }
0x1310   : > { %13769 = vrot.lane.b32.xlu1 %v13768_v26, %s15576_s10 }
0x1379   : > { %v13760_v6 = vpop.permute.xlu1 %13759 }
0x137a   : > { %v13762_v15 = vunpack.i.h.bf16 %v13760_v6  ;;  %v13761_v41 = vunpack.i.l.bf16 %v13760_v6  ;;  %v13765_v23 = vpop.permute.xlu0 %13764 }
0x137b   : > { %v13767_v49 = vunpack.i.h.bf16 %v13765_v23  ;;  %v13766_v33 = vunpack.i.l.bf16 %v13765_v23 }
0x137c   : > { %v17159_v0 = vrot.slane %v13762_v15, 5  ;;  %v4398_v5 = vrot.slane %v13762_v15, 3  ;;  %v4333_v60 = vrot.slane %v13761_v41, 5  ;;  %v4397_v42 = vrot.slane %v13761_v41, 3 }
0x137d   : > { %v4332_v4 = vrot.slane %v13767_v49, 5  ;;  %v4396_v3 = vrot.slane %v13767_v49, 3  ;;  %v4331_v8 = vrot.slane %v13766_v33, 5  ;;  %v4395_v46 = vrot.slane %v13766_v33, 3 }
0x137e   : > { %v4342_v9 = vsel %vm4338_vm13, %v4333_v60, %v17159_v0  ;;  %v4319_v10 = vpop.permute.xlu0 %4318  ;;  %v4406_v40 = vsel %vm4402_vm14, %v4397_v42, %v4398_v5 }
0x137f   : > { %v4343_v57 = vsel %vm4338_vm13, %v4332_v4, %v4333_v60  ;;  %v4344_v1 = vsel %vm4338_vm13, %v4331_v8, %v4332_v4  ;;  %v4399_v34 = vrot.slane %v4319_v10, 3  ;;  %v4407_v38 = vsel %vm4402_vm14, %v4396_v3, %v4397_v42 }
0x1380   : > { %v4408_v30 = vsel %vm4402_vm14, %v4395_v46, %v4396_v3  ;;  %v4335_v41 = vrot.slane %v4319_v10, 5 }
0x1381   : > { %v13773_v24 = vpack.i.bf16 %v4407_v38, %v4408_v30  ;;  %v4405_v62 = vsel %vm4402_vm14, %v4398_v5, %v4399_v34  ;;  %v4488_v5 = vsel %vm1571_vm1, %v4344_v1, %v17132_v58 }
0x1382   : > { %v13770_v27 = vpop.permute.xlu1 %13769  ;;  %v13778_v32 = vpack.i.bf16 %v4405_v62, %v4406_v40  ;;  %v4341_v1 = vsel %vm4338_vm13, %v17159_v0, %v4335_v41 }
0x1383   : > { %v13772_v51 = vunpack.i.h.bf16 %v13770_v27  ;;  %v13771_v16 = vunpack.i.l.bf16 %v13770_v27  ;;  %13774 = vrot.lane.b32.xlu0 %v13773_v24, %s15574_s12 }
0x1384   : > { %13779 = vrot.lane.b32.xlu1 %v13778_v32, %s15574_s12 }
0x1385   : > { %v4337_v13 = vrot.slane %v13772_v51, 5  ;;  %v4401_v43 = vrot.slane %v13772_v51, 3  ;;  %v4336_v12 = vrot.slane %v13771_v16, 5  ;;  %v4400_v17 = vrot.slane %v13771_v16, 3 }
0x1386   : > { %v4491_v51 = vsel %vm1571_vm1, %v4341_v1, %v17140_v18 }
0x1387   : > { %v4345_v59 = vsel %vm4338_vm13, %v4337_v13, %v4331_v8  ;;  %v4409_v35 = vsel %vm4402_vm14, %v4401_v43, %v4395_v46  ;;  %v4403_v37 = vsel %vm4402_vm14, %v4400_v17, %v4401_v43  ;;  %v4404_v26 = vsel %vm4402_vm14, %v4399_v34, %v4400_v17  ;;  %v11433_v17 = vld [vmem:[#allocation19 + $0x3] ss:$0 sm:$0xff] }
0x1388   : > { %v4458_v47 = vsel %vm4430_vm15, %v4409_v35, 0.0  ;;  %v4339_v36 = vsel %vm4338_vm13, %v4336_v12, %v4337_v13  ;;  %v13783_v25 = vpack.i.bf16 %v4403_v37, %v4404_v26  ;;  %v4388_v6 = vsel %vm4353_vm0, %v4345_v59, 0.0 }
0x1389   : > { %4478 = vrot.lane.b32.xlu1 %v4458_v47, %s15574_s12  ;;  %v4487_v33 = vsel %vm1571_vm1, %v4388_v6, %v17130_v53  ;;  %v4490_v8 = vsel %vm1571_vm1, %v4342_v9, %v17128_v61  ;;  %v4489_v46 = vsel %vm1571_vm1, %v4343_v57, %v17126_v7  ;;  %v4340_v24 = vsel %vm4338_vm13, %v4335_v41, %v4336_v12  ;;  %v11444_v47 = vld [vmem:[#allocation20 + $0x3] ss:$0 sm:$0xff] }
0x138a   : > { %13784 = vrot.lane.b32.xlu0 %v13783_v25, %s15574_s12  ;;  %v4493_v57 = vsel %vm1571_vm1, %v4339_v36, %v17144_v19  ;;  %v4492_v0 = vsel %vm1571_vm1, %v4340_v24, %v17146_v22 }
0x13f5   : > { %v13775_v15 = vpop.permute.xlu0 %13774 }
0x13f6   : > { %v13777_v23 = vunpack.i.h.bf16 %v13775_v15  ;;  %v13776_v50 = vunpack.i.l.bf16 %v13775_v15  ;;  %v13780_v49 = vpop.permute.xlu1 %13779 }
0x13f7   : > { %v13782_v60 = vunpack.i.h.bf16 %v13780_v49  ;;  %v13781_v42 = vunpack.i.l.bf16 %v13780_v49 }
0x13f8   : > { %v4494_v4 = vsel %vm1615_vm2, %v4487_v33, %v13776_v50  ;;  %v4495_v3 = vsel %vm1615_vm2, %v4488_v5, %v13777_v23  ;;  %v11445_v50 = vld [vmem:[#allocation22 + $0x3] ss:$0 sm:$0xff] }
0x13f9   : > { %v4497_v10 = vsel %vm1615_vm2, %v4490_v8, %v13782_v60  ;;  %v4496_v34 = vsel %vm1615_vm2, %v4489_v46, %v13781_v42  ;;  %v4501_v38 = vpack.c.bf16 %v4495_v3, %v4494_v4 }
0x13fa   : > { %v4502_v30 = vpack.c.bf16 %v4497_v10, %v4496_v34 }
0x13fb   : > { %12693 = vmatprep.mubr.msk.bf16.mxu0 %vm2276_vm10, %v4501_v38  ;;  %v4479_v62 = vpop.permute.xlu1 %4478 }
0x13fc   : > { %12694 = vmatmul.mubr.msk.bf16.vlgmr.msra.gmra.mrb[44].mxu0 %vm2276_vm10, %v4502_v30  ;;  %v13785_v9 = vpop.permute.xlu0 %13784  ;;  %v4500_v32 = vsel %vm1615_vm2, %v4493_v57, %v4479_v62 }
0x13fd   : > { %v13787_v40 = vunpack.i.h.bf16 %v13785_v9  ;;  %v13786_v27 = vunpack.i.l.bf16 %v13785_v9  ;;  %v4504_v12 = vpack.c.bf16 %v4500_v32, %v4500_v32 }
0x13ff   : > { %v4499_v16 = vsel %vm1615_vm2, %v4492_v0, %v13787_v40  ;;  %v4498_v13 = vsel %vm1615_vm2, %v4491_v51, %v13786_v27 }
0x1400   : > { %v4503_v43 = vpack.c.bf16 %v4499_v16, %v4498_v13 }
0x1402   : > { %12697 = vmatprep.mubr.msk.bf16.mxu0 %vm2276_vm10, %v4503_v43 }
0x1404   : > { %12698 = vmatmul.mubr.msk.bf16.gmra.mrb[48].mxu0 %vm2276_vm10, %v4504_v12 }
0x14cf   : > { %v12695_v59 = vpop.f32.mrb[44].mxu0 }
0x14d0   : > { %v4604_v35 = vadd.f32 %v12695_v59, %v11433_v17  ;;  %v4595_v37 = vpop.f32.mrb[45].mxu0 }
0x14d1   : > { %v4596_v26 = vadd.f32 %v11433_v17, %v4595_v37  ;;  %v12696_v36 = vpop.f32.mrb[46].mxu0 }
0x14d2   : > { %v4627_v25 = vmax.f32 %v4604_v35, 0.0  ;;  %v4607_v6 = vadd.f32 %v12696_v36, %v11433_v17  ;;  %v4598_v15 = vpop.f32.mrb[47].mxu0 }
0x14d3   : > { %v4625_v41 = vmax.f32 %v4596_v26, 0.0  ;;  %v4599_v23 = vadd.f32 %v11433_v17, %v4598_v15 }
0x14d4   : > { %v4642_v49 = vmul.f32 %v11444_v47, %v4627_v25  ;;  %v4628_v33 = vmax.f32 %v4607_v6, 0.0 }
0x14d5   : > { %v4640_v5 = vmul.f32 %v11444_v47, %v4625_v41  ;;  %v4626_v60 = vmax.f32 %v4599_v23, 0.0 }
0x14d6   : > { %v4643_v42 = vmul.f32 %v11444_v47, %v4628_v33  ;;  %v17232_v4 = vadd.f32 %v11445_v50, %v4642_v49 }
0x14d7   : > { %v4641_v3 = vmul.f32 %v11444_v47, %v4626_v60  ;;  %v12699_v8 = vpop.f32.mrb[48].mxu0  ;;  %v17240_v24 = vadd.f32 %v11445_v50, %v4640_v5 }
0x14d8   : > { %v4620_v46 = vadd.f32 %v12699_v8, %v11433_v17  ;;  %4673 = vrot.lane.b32.xlu0 %v17232_v4, %s15574_s12  ;;  %v4611_v10 = vpop.f32.mrb[49].mxu0  ;;  %v17236_v34 = vadd.f32 %v11445_v50, %v4643_v42  ;;  %v14174_v8 = vld [vmem:[%s19039_s13 + $0xc0] sm:$0xff]  }
0x14d9   : > { %v4612_v38 = vadd.f32 %v11433_v17, %v4611_v10  ;;  %v12700_v30 = vpop.f32.mrb[50].mxu0  ;;  %v17238_v1 = vadd.f32 %v11445_v50, %v4641_v3  ;;  %12701 = vmatprep.subr.bf16.mxu0 %v14174_v8 }
0x14da   : > { %v4614_v62 = vpop.f32.mrb[51].mxu0  ;;  %v4631_v57 = vmax.f32 %v4620_v46, 0.0  ;;  %v14175_v46 = vld [vmem:[%s19039_s13 + $0xc8] sm:$0xff]   ;;  %12702 = vmatpush3.bf16.msra.mxu0 %v14174_v8  ;;  %v14177_v30 = vld [vmem:[%s19039_s13 + $0xd8] sm:$0xff]  }
0x14db   : > { %v4629_v40 = vmax.f32 %v4612_v38, 0.0  ;;  %v4615_v27 = vadd.f32 %v11433_v17, %v4614_v62  ;;  %4671 = vrot.lane.b32.xlu1 %v17238_v1, %s15574_s12  ;;  %12703 = vmatprep.subr.bf16.mxu0 %v14175_v46  ;;  %v14176_v38 = vld [vmem:[%s19039_s13 + $0xd0] sm:$0xff]   ;;  %v14178_v62 = vld [vmem:[%s19039_s13 + $0xe0] sm:$0xff]  }
0x14dc   : > { %4669 = vrot.lane.b32.xlu0 %v17240_v24, %s15574_s12  ;;  %v4646_v16 = vmul.f32 %v11444_v47, %v4631_v57 }
0x14dd   : > { %v4644_v51 = vmul.f32 %v11444_v47, %v4629_v40  ;;  %v4630_v0 = vmax.f32 %v4615_v27, 0.0 }
0x14de   : > { %v17262_v59 = vadd.f32 %v11445_v50, %v4646_v16  ;;  %12704 = vmatpush3.bf16.msra.mxu0 %v14175_v46 }
0x14df   : > { %v4645_v13 = vmul.f32 %v11444_v47, %v4630_v0  ;;  %4675 = vrot.lane.b32.xlu1 %v17236_v34, %s15574_s12  ;;  %v17252_v43 = vadd.f32 %v11445_v50, %v4644_v51  ;;  %12705 = vmatprep.subr.bf16.mxu0 %v14176_v38  ;;  %v14179_v51 = vld [vmem:[%s19039_s13 + $0xe8] sm:$0xff]  }
0x14e1   : > { %4677 = vrot.lane.b32.xlu0 %v17252_v43, %s15574_s12  ;;  %v17256_v12 = vadd.f32 %v11445_v50, %v4645_v13 }
0x14e2   : > { %12706 = vmatpush3.bf16.msra.mxu0 %v14176_v38 }
0x14e3   : > { %4679 = vrot.lane.b32.xlu1 %v17256_v12, %s15574_s12  ;;  %12707 = vmatprep.subr.bf16.mxu0 %v14177_v30 }
0x14e5   : > { %4681 = vrot.lane.b32.xlu0 %v17262_v59, %s15574_s12 }
0x14e6   : > { %12708 = vmatpush3.bf16.msra.mxu0 %v14177_v30 }
0x14e7   : > { %12709 = vmatprep.subr.bf16.mxu0 %v14178_v62 }
0x14ea   : > { %12710 = vmatpush3.bf16.msra.mxu0 %v14178_v62 }
0x14eb   : > { %12711 = vmatprep.subr.bf16.mxu0 %v14179_v51 }
0x14ee   : > { %12712 = vmatpush3.bf16.msra.mxu0 %v14179_v51 }
0x154a   : > { %v4674_v35 = vpop.permute.xlu0 %4673 }
0x154b   : > { %v4692_v15 = vadd.f32 %v4674_v35, %v17126_v7 }
0x154d   : > { %v4672_v37 = vpop.permute.xlu1 %4671 }
0x154e   : > { %v4691_v47 = vadd.f32 %v4672_v37, %v17132_v58  ;;  %v4670_v26 = vpop.permute.xlu0 %4669 }
0x154f   : > { %v4690_v36 = vadd.f32 %v4670_v26, %v17130_v53 }
0x1551   : > { %v13793_v25 = vpack.i.bf16 %v4691_v47, %v4690_v36  ;;  %v4676_v6 = vpop.permute.xlu1 %4675 }
0x1552   : > { %v4693_v41 = vadd.f32 %v4676_v6, %v17128_v61 }
0x1553   : > { %13794 = vrot.lane.b32.xlu1 %v13793_v25, %s15574_s12  ;;  %v4678_v23 = vpop.permute.xlu0 %4677 }
0x1554   : > { %v13788_v50 = vpack.i.bf16 %v4693_v41, %v4692_v15  ;;  %v17272_v49 = vadd.f32 %v4678_v23, %v17140_v18 }
0x1555   : > { %v4680_v33 = vpop.permute.xlu1 %4679 }
0x1556   : > { %v17275_v5 = vadd.f32 %v4680_v33, %v17146_v22  ;;  %13789 = vrot.lane.b32.xlu0 %v13788_v50, %s15574_s12 }
0x1557   : > { %4725 = vrot.lane.b32.xlu1 %v17272_v49, %s15574_s12  ;;  %v4682_v60 = vpop.permute.xlu0 %4681 }
0x1558   : > { %v13818_v42 = vpack.i.bf16 %v17275_v5, %v17272_v49  ;;  %v17283_v3 = vadd.f32 %v4682_v60, %v17144_v19 }
0x155a   : > { %v13798_v10 = vpack.i.bf16 %v17283_v3, %v17275_v5 }
0x155b   : > { %13804 = vrot.lane.b32.xlu1 %v13793_v25, %s15576_s10 }
0x155c   : > { %13799 = vrot.lane.b32.xlu0 %v13798_v10, %s15574_s12 }
0x1560   : > { %13809 = vrot.lane.b32.xlu0 %v13788_v50, %s15576_s10 }
0x15c5   : > { %v13795_v57 = vpop.permute.xlu1 %13794 }
0x15c6   : > { %v13797_v40 = vunpack.i.h.bf16 %v13795_v57  ;;  %v13796_v27 = vunpack.i.l.bf16 %v13795_v57 }
0x15c8   : > { %v4739_v0 = vrot.slane %v13797_v40, 5  ;;  %v4738_v16 = vrot.slane %v13796_v27, 5  ;;  %v13790_v13 = vpop.permute.xlu0 %13789  ;;  %v4760_v35 = vrot.slane %v13797_v40, 3  ;;  %v4759_v36 = vrot.slane %v13796_v27, 3 }
0x15c9   : > { %v13792_v37 = vunpack.i.h.bf16 %v13790_v13  ;;  %v13791_v47 = vunpack.i.l.bf16 %v13790_v13  ;;  %v4726_v26 = vpop.permute.xlu1 %4725 }
0x15ca   : > { %v4742_v25 = vrot.slane %v4726_v26, 5  ;;  %v4763_v6 = vrot.slane %v4726_v26, 3  ;;  %v4750_v15 = vsel %vm4338_vm13, %v4738_v16, %v4739_v0  ;;  %v4771_v57 = vsel %vm4402_vm14, %v4759_v36, %v4760_v35 }
0x15cb   : > { %v4741_v41 = vrot.slane %v13792_v37, 5  ;;  %v4762_v23 = vrot.slane %v13792_v37, 3  ;;  %v4740_v50 = vrot.slane %v13791_v47, 5  ;;  %v4761_v33 = vrot.slane %v13791_v47, 3 }
0x15cd   : > { %v4748_v60 = vsel %vm4338_vm13, %v4740_v50, %v4741_v41  ;;  %v4749_v8 = vsel %vm4338_vm13, %v4739_v0, %v4740_v50  ;;  %v4770_v46 = vsel %vm4402_vm14, %v4760_v35, %v4761_v33  ;;  %v17306_v10 = vsel %vm4338_vm13, %v4741_v41, %v4742_v25 }
0x15ce   : > { %v4768_v38 = vsel %vm4402_vm14, %v4762_v23, %v4763_v6  ;;  %v4769_v30 = vsel %vm4402_vm14, %v4761_v33, %v4762_v23  ;;  %v13800_v62 = vpop.permute.xlu0 %13799  ;;  %v13813_v0 = vpack.i.bf16 %v4770_v46, %v4771_v57 }
0x15cf   : > { %v13823_v40 = vpack.i.bf16 %v4768_v38, %v4769_v30  ;;  %v13802_v27 = vunpack.i.h.bf16 %v13800_v62  ;;  %v13801_v51 = vunpack.i.l.bf16 %v13800_v62 }
0x15d0   : > { %13814 = vrot.lane.b32.xlu1 %v13813_v0, %s15574_s12 }
0x15d1   : > { %v4744_v13 = vrot.slane %v13802_v27, 5  ;;  %v4765_v37 = vrot.slane %v13802_v27, 3  ;;  %v4743_v47 = vrot.slane %v13801_v51, 5  ;;  %v4764_v26 = vrot.slane %v13801_v51, 3  ;;  %13824 = vrot.lane.b32.xlu0 %v13823_v40, %s15574_s12 }
0x15d2   : > { %v13810_v49 = vpop.permute.xlu0 %13809 }
0x15d3   : > { %v4751_v41 = vsel %vm4338_vm13, %v4744_v13, %v4738_v16  ;;  %v4746_v23 = vsel %vm4338_vm13, %v4742_v25, %v4743_v47  ;;  %v4766_v35 = vsel %vm4402_vm14, %v4764_v26, %v4765_v37  ;;  %v4767_v50 = vsel %vm4402_vm14, %v4763_v6, %v4764_v26  ;;  %v13805_v6 = vpop.permute.xlu1 %13804 }
0x15d4   : > { %13819 = vrot.lane.b32.xlu1 %v13818_v42, %s15576_s10  ;;  %v4772_v16 = vsel %vm4402_vm14, %v4765_v37, %v4759_v36  ;;  %v4745_v25 = vsel %vm4338_vm13, %v4743_v47, %v4744_v13  ;;  %v13828_v33 = vpack.i.bf16 %v4766_v35, %v4767_v50  ;;  %v13807_v5 = vunpack.i.h.bf16 %v13805_v6 }
0x15d5   : > { %4792 = vrot.lane.b32.xlu0 %v17283_v3, %s15576_s10  ;;  %v4779_v46 = vsel %vm4430_vm15, %v4772_v16, 0.0  ;;  %v13812_v42 = vunpack.i.h.bf16 %v13810_v49  ;;  %v13811_v38 = vunpack.i.l.bf16 %v13810_v49  ;;  %v4752_v3 = vsel %vm4353_vm0, %v4751_v41, 0.0 }
0x15d6   : > { %v13806_v36 = vunpack.i.l.bf16 %v13805_v6  ;;  %v4830_v0 = vsel %vm1571_vm1, %v4750_v15, %v13807_v5 }
0x15d7   : > { %v4831_v13 = vsel %vm1571_vm1, %v4749_v8, %v13811_v38  ;;  %v4832_v37 = vsel %vm1571_vm1, %v4748_v60, %v13812_v42 }
0x15d8   : > { %13829 = vrot.lane.b32.xlu1 %v13828_v33, %s15574_s12  ;;  %v4829_v47 = vsel %vm1571_vm1, %v4752_v3, %v13806_v36 }
0x15d9   : > { %4820 = vrot.lane.b32.xlu0 %v4779_v46, %s15574_s12 }
0x1642   : > { %v13815_v30 = vpop.permute.xlu1 %13814 }
0x1643   : > { %v13825_v62 = vpop.permute.xlu0 %13824  ;;  %v13817_v57 = vunpack.i.h.bf16 %v13815_v30  ;;  %v13816_v40 = vunpack.i.l.bf16 %v13815_v30 }
0x1644   : > { %v13827_v27 = vunpack.i.h.bf16 %v13825_v62  ;;  %v13826_v51 = vunpack.i.l.bf16 %v13825_v62 }
0x1645   : > { %v4837_v26 = vsel %vm1615_vm2, %v4830_v0, %v13817_v57  ;;  %v4836_v35 = vsel %vm1615_vm2, %v4829_v47, %v13816_v40 }
0x1646   : > { %v4838_v41 = vsel %vm1615_vm2, %v4831_v13, %v13826_v51  ;;  %v4839_v50 = vsel %vm1615_vm2, %v4832_v37, %v13827_v27  ;;  %v4843_v16 = vpack.c.bf16 %v4837_v26, %v4836_v35  ;;  %v13820_v46 = vpop.permute.xlu1 %13819 }
0x1647   : > { %v4844_v33 = vpack.c.bf16 %v4839_v50, %v4838_v41  ;;  %v4793_v6 = vpop.permute.xlu0 %4792  ;;  %v13822_v49 = vunpack.i.h.bf16 %v13820_v46  ;;  %v13821_v15 = vunpack.i.l.bf16 %v13820_v46  ;;  %v11470_v41 = vld [vmem:[#allocation22 + $0x4] ss:$0 sm:$0xff] }
0x1648   : > { %12713 = vmatprep.mubr.msk.bf16.mxu0 %vm2276_vm10, %v4843_v16  ;;  %v4835_v5 = vsel %vm1571_vm1, %v4745_v25, %v4793_v6  ;;  %v11458_v25 = vld [vmem:[#allocation19 + $0x4] ss:$0 sm:$0xff] }
0x1649   : > { %12714 = vmatmul.mubr.msk.bf16.vlgmr.msra.gmra.mrb[52].mxu0 %vm2276_vm10, %v4844_v33  ;;  %v4834_v3 = vsel %vm1571_vm1, %v4746_v23, %v13822_v49  ;;  %v4833_v36 = vsel %vm1571_vm1, %v17306_v10, %v13821_v15  ;;  %v11469_v23 = vld [vmem:[#allocation20 + $0x4] ss:$0 sm:$0xff] }
0x164a   : > { %v13830_v60 = vpop.permute.xlu1 %13829 }
0x164b   : > { %v4821_v8 = vpop.permute.xlu0 %4820  ;;  %v13832_v42 = vunpack.i.h.bf16 %v13830_v60  ;;  %v13831_v38 = vunpack.i.l.bf16 %v13830_v60 }
0x164c   : > { %v4842_v30 = vsel %vm1615_vm2, %v4835_v5, %v4821_v8 }
0x164d   : > { %v4840_v62 = vsel %vm1615_vm2, %v4833_v36, %v13831_v38  ;;  %v4841_v57 = vsel %vm1615_vm2, %v4834_v3, %v13832_v42  ;;  %v4846_v27 = vpack.c.bf16 %v4842_v30, %v4842_v30 }
0x164e   : > { %v4845_v40 = vpack.c.bf16 %v4841_v57, %v4840_v62 }
0x1650   : > { %12717 = vmatprep.mubr.msk.bf16.mxu0 %vm2276_vm10, %v4845_v40 }
0x1651   : > { %12718 = vmatmul.mubr.msk.bf16.gmra.mrb[56].mxu0 %vm2276_vm10, %v4846_v27 }
0x171c   : > { %v12715_v51 = vpop.f32.mrb[52].mxu0 }
0x171d   : > { %v4946_v0 = vadd.f32 %v12715_v51, %v11458_v25  ;;  %v4937_v13 = vpop.f32.mrb[53].mxu0 }
0x171e   : > { %v4938_v37 = vadd.f32 %v11458_v25, %v4937_v13  ;;  %v12716_v47 = vpop.f32.mrb[54].mxu0 }
0x171f   : > { %v4969_v10 = vmax.f32 %v4946_v0, 0.0  ;;  %v4949_v26 = vadd.f32 %v12716_v47, %v11458_v25  ;;  %v4940_v35 = vpop.f32.mrb[55].mxu0 }
0x1720   : > { %v4967_v50 = vmax.f32 %v4938_v37, 0.0  ;;  %v4941_v16 = vadd.f32 %v11458_v25, %v4940_v35 }
0x1721   : > { %v4984_v33 = vmul.f32 %v11469_v23, %v4969_v10  ;;  %v4970_v46 = vmax.f32 %v4949_v26, 0.0 }
0x1722   : > { %v4982_v6 = vmul.f32 %v11469_v23, %v4967_v50  ;;  %v4968_v49 = vmax.f32 %v4941_v16, 0.0 }
0x1723   : > { %v17359_v15 = vadd.f32 %v11470_v41, %v4984_v33  ;;  %v4985_v60 = vmul.f32 %v11469_v23, %v4970_v46 }
0x1724   : > { %v4983_v8 = vmul.f32 %v11469_v23, %v4968_v49  ;;  %v12719_v5 = vpop.f32.mrb[56].mxu0  ;;  %v17365_v36 = vadd.f32 %v11470_v41, %v4982_v6 }
0x1725   : > { %v17361_v42 = vadd.f32 %v11470_v41, %v4985_v60  ;;  %v4962_v38 = vadd.f32 %v12719_v5, %v11458_v25  ;;  %5015 = vrot.lane.b32.xlu1 %v17359_v15, %s15576_s10  ;;  %v4953_v3 = vpop.f32.mrb[57].mxu0 }
0x1726   : > { %v17367_v30 = vadd.f32 %v11470_v41, %v4983_v8  ;;  %v4954_v62 = vadd.f32 %v11458_v25, %v4953_v3  ;;  %v12720_v57 = vpop.f32.mrb[58].mxu0 }
0x1727   : > { %v4956_v27 = vpop.f32.mrb[59].mxu0  ;;  %v4973_v0 = vmax.f32 %v4962_v38, 0.0 }
0x1728   : > { %v4971_v13 = vmax.f32 %v4954_v62, 0.0  ;;  %v4957_v37 = vadd.f32 %v11458_v25, %v4956_v27  ;;  %5013 = vrot.lane.b32.xlu0 %v17367_v30, %s15576_s10  ;;  %v19048_v21 = vpack.i.bf16 %v17367_v30, %v17365_v36 }
0x1729   : > { %5011 = vrot.lane.b32.xlu1 %v17365_v36, %s15576_s10  ;;  %v4988_v26 = vmul.f32 %v11469_v23, %v4973_v0 }
0x172a   : > { %v4986_v47 = vmul.f32 %v11469_v23, %v4971_v13  ;;  %v4972_v10 = vmax.f32 %v4957_v37, 0.0 }
0x172b   : > { %v17385_v25 = vadd.f32 %v11470_v41, %v4988_v26  ;;  %v14180_v26 = vld [vmem:[%s19039_s13 + $0xf0] sm:$0xff]  }
0x172c   : > { %v17377_v35 = vadd.f32 %v11470_v41, %v4986_v47  ;;  %v4987_v50 = vmul.f32 %v11469_v23, %v4972_v10  ;;  %5017 = vrot.lane.b32.xlu0 %v17361_v42, %s15576_s10  ;;  %12721 = vmatprep.subr.bf16.mxu1 %v14180_v26 }
0x172d   : > { %12722 = vmatpush3.bf16.msra.mxu1 %v14180_v26 }
0x172e   : > { %v17381_v16 = vadd.f32 %v11470_v41, %v4987_v50  ;;  %5019 = vrot.lane.b32.xlu1 %v17377_v35, %s15576_s10  ;;  %v14181_v50 = vld [vmem:[%s19039_s13 + $0xf8] sm:$0xff]  }
0x172f   : > { %12723 = vmatprep.subr.bf16.mxu1 %v14181_v50 }
0x1730   : > { %5021 = vrot.lane.b32.xlu0 %v17381_v16, %s15576_s10 }
0x1731   : > { %12724 = vmatpush3.bf16.msra.mxu1 %v14181_v50 }
0x1732   : > { %5023 = vrot.lane.b32.xlu1 %v17385_v25, %s15576_s10 }
0x1797   : > { %v5016_v23 = vpop.permute.xlu1 %5015 }
0x1798   : > { %v5034_v41 = vadd.f32 %v5016_v23, %v17126_v7  ;;  %v14182_v23 = vld [vmem:[%s19039_s13 + $0x100] sm:$0xff]  }
0x1799   : > { %12725 = vmatprep.subr.bf16.mxu1 %v14182_v23 }
0x179a   : > { %v5014_v46 = vpop.permute.xlu0 %5013  ;;  %12726 = vmatpush3.bf16.msra.mxu1 %v14182_v23 }
0x179b   : > { %v5033_v6 = vadd.f32 %v5014_v46, %v17132_v58  ;;  %v5012_v49 = vpop.permute.xlu1 %5011  ;;  %v14183_v46 = vld [vmem:[%s19039_s13 + $0x108] sm:$0xff]  }
0x179c   : > { %v5032_v60 = vadd.f32 %v5012_v49, %v17130_v53  ;;  %12727 = vmatprep.subr.bf16.mxu1 %v14183_v46 }
0x179e   : > { %v13838_v8 = vpack.i.bf16 %v5033_v6, %v5032_v60  ;;  %v5018_v5 = vpop.permute.xlu0 %5017  ;;  %v14184_v6 = vld [vmem:[%s19039_s13 + $0x110] sm:$0xff]   ;;  %12728 = vmatpush3.bf16.msra.mxu1 %v14183_v46 }
0x179f   : > { %v5035_v38 = vadd.f32 %v5018_v5, %v17128_v61  ;;  %12729 = vmatprep.subr.bf16.mxu1 %v14184_v6  ;;  %v14185_v5 = vld [vmem:[%s19039_s13 + $0x118] sm:$0xff]  }
0x17a0   : > { %13839 = vrot.lane.b32.xlu0 %v13838_v8, %s15573_s26  ;;  %v5020_v3 = vpop.permute.xlu1 %5019 }
0x17a1   : > { %v13833_v62 = vpack.i.bf16 %v5035_v38, %v5034_v41  ;;  %v17399_v57 = vadd.f32 %v5020_v3, %v17140_v18 }
0x17a2   : > { %v5022_v27 = vpop.permute.xlu0 %5021  ;;  %12730 = vmatpush3.bf16.msra.mxu1 %v14184_v6 }
0x17a3   : > { %v17402_v0 = vadd.f32 %v5022_v27, %v17146_v22  ;;  %13834 = vrot.lane.b32.xlu1 %v13833_v62, %s15573_s26  ;;  %12731 = vmatprep.subr.bf16.mxu1 %v14185_v5 }
0x17a4   : > { %5067 = vrot.lane.b32.xlu0 %v17399_v57, %s15573_s26  ;;  %v5024_v13 = vpop.permute.xlu1 %5023 }
0x17a5   : > { %v17410_v47 = vadd.f32 %v5024_v13, %v17144_v19 }
0x17a6   : > { %12732 = vmatpush3.bf16.msra.mxu1 %v14185_v5 }
0x17a7   : > { %v13843_v10 = vpack.i.bf16 %v17410_v47, %v17402_v0  ;;  %12765 = vmatprep.subr.bf16.mxu1 %v18930_v56 }
0x17a8   : > { %13849 = vrot.lane.b32.xlu0 %v13838_v8, %s15574_s12 }
0x17a9   : > { %13844 = vrot.lane.b32.xlu1 %v13843_v10, %s15573_s26 }
0x17ad   : > { %13854 = vrot.lane.b32.xlu1 %v13833_v62, %s15574_s12 }
0x1812   : > { %v13840_v49 = vpop.permute.xlu0 %13839 }
0x1813   : > { %v13842_v60 = vunpack.i.h.bf16 %v13840_v49  ;;  %v13841_v8 = vunpack.i.l.bf16 %v13840_v49 }
0x1815   : > { %v5081_v41 = vrot.slane %v13842_v60, 5  ;;  %v5080_v38 = vrot.slane %v13841_v8, 5  ;;  %v13835_v3 = vpop.permute.xlu1 %13834  ;;  %v5102_v62 = vrot.slane %v13842_v60, 3  ;;  %v5101_v50 = vrot.slane %v13841_v8, 3 }
0x1816   : > { %v13837_v27 = vunpack.i.h.bf16 %v13835_v3  ;;  %v13836_v13 = vunpack.i.l.bf16 %v13835_v3  ;;  %v5068_v10 = vpop.permute.xlu0 %5067 }
0x1817   : > { %v5092_v26 = vsel %vm4338_vm13, %v5080_v38, %v5081_v41  ;;  %v5084_v23 = vrot.slane %v5068_v10, 5  ;;  %v5105_v46 = vrot.slane %v5068_v10, 3  ;;  %v5113_v5 = vsel %vm4402_vm14, %v5101_v50, %v5102_v62 }
0x1818   : > { %v5083_v6 = vrot.slane %v13837_v27, 5  ;;  %v5104_v33 = vrot.slane %v13837_v27, 3  ;;  %v5082_v17 = vrot.slane %v13836_v13, 5  ;;  %v5103_v49 = vrot.slane %v13836_v13, 3 }
0x181a   : > { %v5090_v60 = vsel %vm4338_vm13, %v5082_v17, %v5083_v6  ;;  %v5091_v3 = vsel %vm4338_vm13, %v5081_v41, %v5082_v17  ;;  %v5112_v40 = vsel %vm4402_vm14, %v5102_v62, %v5103_v49  ;;  %v17434_v8 = vsel %vm4338_vm13, %v5083_v6, %v5084_v23 }
0x181b   : > { %v5110_v27 = vsel %vm4402_vm14, %v5104_v33, %v5105_v46  ;;  %v5111_v13 = vsel %vm4402_vm14, %v5103_v49, %v5104_v33  ;;  %v13845_v10 = vpop.permute.xlu1 %13844  ;;  %v13858_v41 = vpack.i.bf16 %v5112_v40, %v5113_v5 }
0x181c   : > { %v13863_v56 = vpack.i.bf16 %v5110_v27, %v5111_v13  ;;  %v13847_v51 = vunpack.i.h.bf16 %v13845_v10  ;;  %v13846_v17 = vunpack.i.l.bf16 %v13845_v10 }
0x181d   : > { %13859 = vrot.lane.b32.xlu0 %v13858_v41, %s15574_s12 }
0x181e   : > { %v5086_v9 = vrot.slane %v13847_v51, 5  ;;  %v5107_v32 = vrot.slane %v13847_v51, 3  ;;  %v5085_v37 = vrot.slane %v13846_v17, 5  ;;  %v5106_v44 = vrot.slane %v13846_v17, 3  ;;  %13864 = vrot.lane.b32.xlu1 %v13863_v56, %s15574_s12 }
0x181f   : > { %v19045_v56 = vpack.i.bf16 %v17402_v0, %v17399_v57  ;;  %v19049_v57 = vpack.i.bf16 %v17361_v42, %v17359_v15 }
0x1820   : > { %v5093_v62 = vsel %vm4338_vm13, %v5086_v9, %v5080_v38  ;;  %v5114_v6 = vsel %vm4402_vm14, %v5107_v32, %v5101_v50  ;;  %v5087_v33 = vsel %vm4338_vm13, %v5085_v37, %v5086_v9  ;;  %v5088_v40 = vsel %vm4338_vm13, %v5084_v23, %v5085_v37 }
0x1821   : > { %v5108_v51 = vsel %vm4402_vm14, %v5106_v44, %v5107_v32  ;;  %v5109_v49 = vsel %vm4402_vm14, %v5105_v46, %v5106_v44  ;;  %13869 = vrot.lane.b32.xlu0 %v19045_v56, %s15574_s12  ;;  %v5121_v50 = vsel %vm4430_vm15, %v5114_v6, 0.0  ;;  %v19046_v32 = vpack.i.bf16 %v17238_v1, %v17240_v24 }
0x1822   : > { %v13873_v38 = vpack.i.bf16 %v5109_v49, %v17410_v47  ;;  %v13878_v9 = vpack.i.bf16 %v5121_v50, %v5108_v51  ;;  %v19047_v44 = vpack.i.bf16 %v17236_v34, %v17232_v4  ;;  %v19050_v1 = vpack.i.bf16 %v17256_v12, %v17252_v43  ;;  %v13850_v4 = vpop.permute.xlu0 %13849  ;;  %v13855_v34 = vpop.permute.xlu1 %13854 }
0x1823   : > { %v13852_v24 = vunpack.i.h.bf16 %v13850_v4  ;;  %v13857_v0 = vunpack.i.h.bf16 %v13855_v34  ;;  %v13856_v37 = vunpack.i.l.bf16 %v13855_v34  ;;  %v5094_v36 = vsel %vm4353_vm0, %v5093_v62, 0.0 }
0x1824   : > { %13874 = vrot.lane.b32.xlu1 %v13873_v38, %s15574_s12  ;;  %v13851_v30 = vunpack.i.l.bf16 %v13850_v4 }
0x1825   : > { %13879 = vrot.lane.b32.xlu0 %v13878_v9, %s15574_s12  ;;  %v5172_v43 = vsel %vm1571_vm1, %v5092_v26, %v13852_v24  ;;  %v5173_v12 = vsel %vm1571_vm1, %v5091_v3, %v13856_v37  ;;  %v14187_v24 = vld [vmem:[#allocation23 + $0x48] sm:$0xff]   ;;  %v14190_v37 = vld [vmem:[#allocation23 + $0x60] sm:$0xff]  }
0x1826   : > { %v5171_v27 = vsel %vm1571_vm1, %v5094_v36, %v13851_v30  ;;  %v14191_v36 = vld [vmem:[#allocation23 + $0x68] sm:$0xff]   ;;  %v14192_v30 = vld [vmem:[#allocation23 + $0x70] sm:$0xff]  }
0x1828   : > { %13884 = vrot.lane.b32.xlu1 %v19046_v32, %s15573_s26 }
0x1829   : > { %13889 = vrot.lane.b32.xlu0 %v19047_v44, %s15573_s26 }
0x182c   : > { %13894 = vrot.lane.b32.xlu1 %v19048_v21, %s15574_s12 }
0x182d   : > { %13899 = vrot.lane.b32.xlu0 %v19049_v57, %s15574_s12 }
0x1830   : > { %13904 = vrot.lane.b32.xlu1 %v19050_v1, %s15573_s26 }
0x1831   : > { %5358 = vrot.lane.b32.xlu0 %v17262_v59, %s15573_s26  ;;  %v5174_v59 = vsel %vm1571_vm1, %v5090_v60, %v13857_v0  ;;  %v14189_v0 = vld [vmem:[#allocation23 + $0x58] sm:$0xff]  }
0x188f   : > { %v13860_v47 = vpop.permute.xlu0 %13859 }
0x1890   : > { %v13865_v15 = vpop.permute.xlu1 %13864  ;;  %v13862_v42 = vunpack.i.h.bf16 %v13860_v47  ;;  %v13861_v23 = vunpack.i.l.bf16 %v13860_v47  ;;  %v11483_v47 = vld [vmem:[#allocation19 + $0x5] ss:$0 sm:$0xff] }
0x1891   : > { %v13867_v46 = vunpack.i.h.bf16 %v13865_v15  ;;  %v13866_v5 = vunpack.i.l.bf16 %v13865_v15 }
0x1892   : > { %v5179_v13 = vsel %vm1615_vm2, %v5172_v43, %v13862_v42  ;;  %v5178_v39 = vsel %vm1615_vm2, %v5171_v27, %v13861_v23 }
0x1893   : > { %v5180_v10 = vsel %vm1615_vm2, %v5173_v12, %v13866_v5  ;;  %v5181_v17 = vsel %vm1615_vm2, %v5174_v59, %v13867_v46  ;;  %v5185_v41 = vpack.c.bf16 %v5179_v13, %v5178_v39  ;;  %v13870_v6 = vpop.permute.xlu0 %13869  ;;  %v11494_v46 = vld [vmem:[#allocation20 + $0x5] ss:$0 sm:$0xff]  ;;  %v14193_v13 = vld [vmem:[#allocation23 + $0x78] sm:$0xff]  }
0x1894   : > { %v5186_v62 = vpack.c.bf16 %v5181_v17, %v5180_v10  ;;  %v13871_v51 = vunpack.i.l.bf16 %v13870_v6  ;;  %v13872_v49 = vunpack.i.h.bf16 %v13870_v6 }
0x1895   : > { %12733 = vmatprep.mubr.msk.bf16.mxu1 %vm2276_vm10, %v5185_v41 }
0x1896   : > { %v13875_v26 = vpop.permute.xlu1 %13874  ;;  %12734 = vmatmul.mubr.msk.bf16.vlgmr.msra.gmra.mrb[44].mxu1 %vm2276_vm10, %v5186_v62  ;;  %v5175_v56 = vsel %vm1571_vm1, %v17434_v8, %v13871_v51  ;;  %v5176_v44 = vsel %vm1571_vm1, %v5088_v40, %v13872_v49  ;;  %v19051_v8 = vmov 0.0   ;;  %v14188_v40 = vld [vmem:[#allocation23 + $0x50] sm:$0xff]   ;;  %v11495_v62 = vld [vmem:[#allocation22 + $0x5] ss:$0 sm:$0xff] }
0x1897   : > { %v13877_v3 = vunpack.i.h.bf16 %v13875_v26  ;;  %v13876_v60 = vunpack.i.l.bf16 %v13875_v26  ;;  %v13880_v38 = vpop.permute.xlu0 %13879 }
0x1898   : > { %v13882_v9 = vunpack.i.h.bf16 %v13880_v38  ;;  %v13881_v32 = vunpack.i.l.bf16 %v13880_v38 }
0x1899   : > { %v5177_v50 = vsel %vm1571_vm1, %v5087_v33, %v13876_v60  ;;  %v5182_v21 = vsel %vm1615_vm2, %v5175_v56, %v13877_v3  ;;  %v14186_v33 = vld [vmem:[#allocation23 + $0x40] sm:$0xff]  }
0x189a   : > { %v5183_v57 = vsel %vm1615_vm2, %v5176_v44, %v13881_v32  ;;  %v5184_v1 = vsel %vm1615_vm2, %v5177_v50, %v13882_v9  ;;  %12741 = vmatprep.subr.bf16.mxu0 %v14186_v33 }
0x189b   : > { %v5187_v4 = vpack.c.bf16 %v5183_v57, %v5182_v21  ;;  %v5188_v34 = vpack.c.bf16 %v5184_v1, %v5184_v1  ;;  %12742 = vmatpush3.bf16.msra.mxu0 %v14186_v33 }
0x189c   : > { %12743 = vmatprep.subr.bf16.mxu0 %v14187_v24 }
0x189d   : > { %12737 = vmatprep.mubr.msk.bf16.mxu1 %vm2276_vm10, %v5187_v4 }
0x189e   : > { %12738 = vmatmul.mubr.msk.bf16.gmra.mrb[48].mxu1 %vm2276_vm10, %v5188_v34 }
0x189f   : > { %12781 = vmatprep.mubr.msk.bf16.mxu1 %vm15578_vm12, %v19051_v8  ;;  %12744 = vmatpush3.bf16.msra.mxu0 %v14187_v24 }
0x18a0   : > { %12745 = vmatprep.subr.bf16.mxu0 %v14188_v40 }
0x18a3   : > { %12746 = vmatpush3.bf16.msra.mxu0 %v14188_v40 }
0x18a4   : > { %12747 = vmatprep.subr.bf16.mxu0 %v14189_v0 }
0x18a7   : > { %12748 = vmatpush3.bf16.msra.mxu0 %v14189_v0 }
0x18a8   : > { %12749 = vmatprep.subr.bf16.mxu0 %v14190_v37 }
0x18ab   : > { %12750 = vmatpush3.bf16.msra.mxu0 %v14190_v37 }
0x18ac   : > { %12751 = vmatprep.subr.bf16.mxu0 %v14191_v36 }
0x18af   : > { %12752 = vmatpush3.bf16.msra.mxu0 %v14191_v36 }
0x18b0   : > { %12753 = vmatprep.subr.bf16.mxu0 %v14192_v30 }
0x18b3   : > { %12754 = vmatpush3.bf16.msra.mxu0 %v14192_v30 }
0x18b4   : > { %12755 = vmatprep.subr.bf16.mxu0 %v14193_v13 }
0x18b7   : > { %12756 = vmatpush3.bf16.msra.mxu0 %v14193_v13 }
0x1969   : > { %v12735_v15 = vpop.f32.mrb[44].mxu1 }
0x196a   : > { %v5288_v42 = vadd.f32 %v12735_v15, %v11483_v47  ;;  %v5279_v23 = vpop.f32.mrb[45].mxu1 }
0x196b   : > { %v5280_v5 = vadd.f32 %v11483_v47, %v5279_v23  ;;  %v12736_v43 = vpop.f32.mrb[46].mxu1 }
0x196c   : > { %v5311_v12 = vmax.f32 %v5288_v42, 0.0  ;;  %v5291_v59 = vadd.f32 %v12736_v43, %v11483_v47  ;;  %v5282_v27 = vpop.f32.mrb[47].mxu1  ;;  %v19052_v42 = vpack.i.bf16 %v17381_v16, %v17377_v35  ;;  %v13885_v43 = vpop.permute.xlu1 %13884 }
0x196d   : > { %v5309_v39 = vmax.f32 %v5280_v5, 0.0  ;;  %v5283_v10 = vadd.f32 %v11483_v47, %v5282_v27  ;;  %v13890_v5 = vpop.permute.xlu0 %13889  ;;  %v13886_v27 = vunpack.i.l.bf16 %v13885_v43 }
0x196e   : > { %v5326_v17 = vmul.f32 %v11494_v46, %v5311_v12  ;;  %v5312_v41 = vmax.f32 %v5291_v59, 0.0  ;;  %v13887_v59 = vunpack.i.h.bf16 %v13885_v43  ;;  %v13892_v13 = vunpack.i.h.bf16 %v13890_v5 }
0x196f   : > { %v5324_v6 = vmul.f32 %v11494_v46, %v5309_v39  ;;  %v5310_v51 = vmax.f32 %v5283_v10, 0.0  ;;  %v13891_v39 = vunpack.i.l.bf16 %v13890_v5 }
0x1970   : > { %v5327_v49 = vmul.f32 %v11494_v46, %v5312_v41  ;;  %v5341_v60 = vadd.f32 %v11495_v62, %v5326_v17 }
0x1971   : > { %v5325_v26 = vmul.f32 %v11494_v46, %v5310_v51  ;;  %v12739_v3 = vpop.f32.mrb[48].mxu1  ;;  %v5339_v9 = vadd.f32 %v11495_v62, %v5324_v6  ;;  %v13900_v12 = vpop.permute.xlu0 %13899  ;;  %v5416_v6 = vsel %vm1571_vm1, %v17130_v53, %v13886_v27  ;;  %v19053_v27 = vmov 0  }
0x1972   : > { %v5342_v56 = vadd.f32 %v11495_v62, %v5327_v49  ;;  %v5304_v38 = vadd.f32 %v12739_v3, %v11483_v47  ;;  %v5295_v50 = vpop.f32.mrb[49].mxu1  ;;  %v13902_v17 = vunpack.i.h.bf16 %v13900_v12  ;;  %v13901_v41 = vunpack.i.l.bf16 %v13900_v12 }
0x1973   : > { %v5340_v32 = vadd.f32 %v11495_v62, %v5325_v26  ;;  %v5296_v44 = vadd.f32 %v11483_v47, %v5295_v50  ;;  %v12740_v21 = vpop.f32.mrb[50].mxu1  ;;  %v5419_v49 = vsel %vm1571_vm1, %v17128_v61, %v13892_v13  ;;  %v5418_v26 = vsel %vm1571_vm1, %v17126_v7, %v13891_v39  ;;  %v14195_v13 = vld [vmem:[%s19041_s4 + $0x48] sm:$0xff]   ;;  %v14196_v39 = vld [vmem:[%s19041_s4 + $0x50] sm:$0xff]  }
0x1974   : > { %v13908_v57 = vpack.i.bf16 %v5342_v56, %v5341_v60  ;;  %v5315_v1 = vmax.f32 %v5304_v38, 0.0  ;;  %v5298_v4 = vpop.f32.mrb[51].mxu1  ;;  %v5425_v38 = vsel %vm1615_vm2, %v5418_v26, %v13901_v41  ;;  %v5426_v50 = vsel %vm1615_vm2, %v5419_v49, %v13902_v17  ;;  %v14198_v17 = vld [vmem:[%s19041_s4 + $0x60] sm:$0xff]   ;;  %v14199_v41 = vld [vmem:[%s19041_s4 + $0x68] sm:$0xff]  }
0x1975   : > { %v13913_v34 = vpack.i.bf16 %v5340_v32, %v5339_v9  ;;  %v5313_v33 = vmax.f32 %v5296_v44, 0.0  ;;  %v5299_v24 = vadd.f32 %v11483_v47, %v5298_v4 }
0x1976   : > { %13909 = vrot.lane.b32.xlu0 %v13908_v57, %s15576_s10  ;;  %v5330_v37 = vmul.f32 %v11494_v46, %v5315_v1 }
0x1977   : > { %v5328_v40 = vmul.f32 %v11494_v46, %v5313_v33  ;;  %v5314_v0 = vmax.f32 %v5299_v24, 0.0  ;;  %13914 = vrot.lane.b32.xlu1 %v13913_v34, %s15576_s10 }
0x1978   : > { %v5345_v23 = vadd.f32 %v11495_v62, %v5330_v37 }
0x1979   : > { %v5329_v36 = vmul.f32 %v11494_v46, %v5314_v0  ;;  %v5343_v30 = vadd.f32 %v11495_v62, %v5328_v40  ;;  %v13895_v46 = vpop.permute.xlu1 %13894 }
0x197a   : > { %5379 = vrot.lane.b32.xlu0 %v17385_v25, %s15574_s12  ;;  %v5359_v25 = vpop.permute.xlu0 %5358  ;;  %v13897_v35 = vunpack.i.h.bf16 %v13895_v46  ;;  %v13896_v16 = vunpack.i.l.bf16 %v13895_v46 }
0x197b   : > { %v5344_v15 = vadd.f32 %v11495_v62, %v5329_v36  ;;  %13919 = vrot.lane.b32.xlu1 %v19052_v42, %s15574_s12  ;;  %v5417_v62 = vsel %vm1571_vm1, %v17132_v58, %v13887_v59 }
0x197c   : > { %v5423_v58 = vsel %vm1615_vm2, %v5416_v6, %v13896_v16  ;;  %v5424_v53 = vsel %vm1615_vm2, %v5417_v62, %v13897_v35  ;;  %v14200_v35 = vld [vmem:[%s19041_s4 + $0x70] sm:$0xff]   ;;  %v14201_v16 = vld [vmem:[%s19041_s4 + $0x78] sm:$0xff]   ;;  %v11496_v62 = vld [vmem:[#allocation25 + $0x1] ss:$0 sm:$0xff] }
0x197d   : > { %v13923_v47 = vpack.i.bf16 %v5344_v15, %v5343_v30  ;;  %v13905_v10 = vpop.permute.xlu1 %13904  ;;  %v5422_v30 = vsel %vm1571_vm1, %v17144_v19, %v5359_v25  ;;  %v14194_v25 = vld [vmem:[%s19041_s4 + $0x40] sm:$0xff]  }
0x197e   : > { %5407 = vrot.lane.b32.xlu0 %v5345_v23, %s15576_s10  ;;  %v13907_v1 = vunpack.i.h.bf16 %v13905_v10  ;;  %v13906_v33 = vunpack.i.l.bf16 %v13905_v10  ;;  %12766 = vmatpush3.bf16.msra.mxu1 %v14194_v25  ;;  %v14197_v10 = vld [vmem:[%s19041_s4 + $0x58] sm:$0xff]  }
0x197f   : > { %13924 = vrot.lane.b32.xlu1 %v13923_v47, %s15576_s10  ;;  %12767 = vmatprep.subr.bf16.mxu1 %v19051_v8 }
0x1980   : > { %v5421_v36 = vsel %vm1571_vm1, %v17146_v22, %v13907_v1  ;;  %v5420_v42 = vsel %vm1571_vm1, %v17140_v18, %v13906_v33 }
0x1982   : > { %12768 = vmatpush3.bf16.msra.mxu1 %v14195_v13 }
0x1983   : > { %12769 = vmatprep.subr.bf16.mxu1 %v19051_v8 }
0x1986   : > { %12770 = vmatpush3.bf16.msra.mxu1 %v14196_v39 }
0x1987   : > { %12771 = vmatprep.subr.bf16.mxu1 %v19051_v8 }
0x198a   : > { %12772 = vmatpush3.bf16.msra.mxu1 %v14197_v10 }
0x198b   : > { %12773 = vmatprep.subr.bf16.mxu1 %v19051_v8 }
0x198e   : > { %12774 = vmatpush3.bf16.msra.mxu1 %v14198_v17 }
0x198f   : > { %12775 = vmatprep.subr.bf16.mxu1 %v19051_v8 }
0x1992   : > { %12776 = vmatpush3.bf16.msra.mxu1 %v14199_v41 }
0x1993   : > { %12777 = vmatprep.subr.bf16.mxu1 %v19051_v8 }
0x1996   : > { %12778 = vmatpush3.bf16.msra.mxu1 %v14200_v35 }
0x1997   : > { %12779 = vmatprep.subr.bf16.mxu1 %v19051_v8 }
0x199a   : > { %12780 = vmatpush3.bf16.msra.mxu1 %v14201_v16 }
0x199b   : > { %12785 = vmatprep.subr.bf16.mxu1 %v19051_v8 }
0x19e8   : > { %v13910_v51 = vpop.permute.xlu0 %13909 }
0x19e9   : > { %v13912_v3 = vunpack.i.h.bf16 %v13910_v51  ;;  %v13911_v60 = vunpack.i.l.bf16 %v13910_v51  ;;  %v13915_v56 = vpop.permute.xlu1 %13914 }
0x19ea   : > { %v13917_v9 = vunpack.i.h.bf16 %v13915_v56  ;;  %v13916_v32 = vunpack.i.l.bf16 %v13915_v56  ;;  %v11505_v56 = vld [vmem:[#allocation26 + $0x1] ss:$0 sm:$0xff] }
0x19eb   : > { %v5433_v44 = vsel %vm2276_vm10, %v5426_v50, %v13912_v3  ;;  %v5432_v61 = vsel %vm2276_vm10, %v5425_v38, %v13911_v60 }
0x19ec   : > { %v5380_v21 = vpop.permute.xlu0 %5379  ;;  %v5430_v7 = vsel %vm2276_vm10, %v5423_v58, %v13916_v32  ;;  %v5431_v57 = vsel %vm2276_vm10, %v5424_v53, %v13917_v9  ;;  %v5438_v24 = vpack.c.bf16 %v5433_v44, %v5432_v61 }
0x19ed   : > { %v13920_v4 = vpop.permute.xlu1 %13919  ;;  %v5437_v34 = vpack.c.bf16 %v5431_v57, %v5430_v7  ;;  %v5429_v23 = vsel %vm1615_vm2, %v5422_v30, %v5380_v21  ;;  %v11506_v21 = vld [vmem:[#allocation28 + $0x1] ss:$0 sm:$0xff] }
0x19ee   : > { %v13922_v40 = vunpack.i.h.bf16 %v13920_v4  ;;  %v13921_v0 = vunpack.i.l.bf16 %v13920_v4 }
0x19ef   : > { %12757 = vmatprep.mubr.bf16.mxu0 %v5437_v34 }
0x19f0   : > { %v5408_v37 = vpop.permute.xlu0 %5407  ;;  %12758 = vmatmul.mubr.bf16.vlgmr.msra.gmra.mrb[60].mxu0 %v5438_v24  ;;  %v5428_v43 = vsel %vm1615_vm2, %v5421_v36, %v13922_v40  ;;  %v5427_v12 = vsel %vm1615_vm2, %v5420_v42, %v13921_v0 }
0x19f1   : > { %v13925_v15 = vpop.permute.xlu1 %13924  ;;  %v5436_v22 = vsel %vm2276_vm10, %v5429_v23, %v5408_v37 }
0x19f2   : > { %v13927_v47 = vunpack.i.h.bf16 %v13925_v15  ;;  %v13926_v5 = vunpack.i.l.bf16 %v13925_v15  ;;  %v5440_v18 = vpack.c.bf16 %v5436_v22, %v5436_v22 }
0x19f4   : > { %v5434_v46 = vsel %vm2276_vm10, %v5427_v12, %v13926_v5  ;;  %v5435_v19 = vsel %vm2276_vm10, %v5428_v43, %v13927_v47 }
0x19f5   : > { %v5439_v59 = vpack.c.bf16 %v5435_v19, %v5434_v46 }
0x19f7   : > { %12761 = vmatprep.mubr.bf16.mxu0 %v5439_v59 }
0x19f8   : > { %12762 = vmatmul.mubr.bf16.gmra.mrb[64].mxu0 %v5440_v18 }
0x19f9   : > { %6021 = vmatprep.mubr.bf16.mxu0 %v19053_v27 }
0x1ac3   : > { %v12759_v6 = vpop.f32.mrb[60].mxu0 }
0x1ac4   : > { %v5557_v51 = vadd.f32 %v12759_v6, %v11496_v62  ;;  %v5548_v49 = vpop.f32.mrb[61].mxu0 }
0x1ac5   : > { %v5549_v26 = vadd.f32 %v11496_v62, %v5548_v49  ;;  %v12760_v3 = vpop.f32.mrb[62].mxu0 }
0x1ac6   : > { %v5580_v60 = vmax.f32 %v5557_v51, 0.0  ;;  %v5560_v38 = vadd.f32 %v12760_v3, %v11496_v62  ;;  %v5551_v50 = vpop.f32.mrb[63].mxu0  ;;  %v14203_v3 = vld [vmem:[%s19043_s18 + $0x18] sm:$0xff]  }
0x1ac7   : > { %v5578_v9 = vmax.f32 %v5549_v26, 0.0  ;;  %v5552_v32 = vadd.f32 %v11496_v62, %v5551_v50  ;;  %v14202_v26 = vld [vmem:[%s19043_s18 + $0x10] sm:$0xff]  }
0x1ac8   : > { %v5581_v53 = vmax.f32 %v5560_v38, 0.0  ;;  %v5595_v61 = vmul.f32 %v11505_v56, %v5580_v60  ;;  %v5647_v60 = vld [vmem:[#allocation29 + $0x1] sm:$0x1] }
0x1ac9   : > { %v5593_v58 = vmul.f32 %v11505_v56, %v5578_v9  ;;  %v5579_v44 = vmax.f32 %v5552_v32, 0.0 }
0x1aca   : > { %v5596_v33 = vmul.f32 %v11505_v56, %v5581_v53  ;;  %v17569_v37 = vadd.f32 %v11506_v21, %v5595_v61  ;;  %v14207_v61 = vld [vmem:[%s19054_s2 + $0xc8] ss:$12 sps:$4 sm:$0xff]  }
0x1acb   : > { %v5594_v7 = vmul.f32 %v11505_v56, %v5579_v44  ;;  %v12763_v57 = vpop.f32.mrb[64].mxu0  ;;  %v17565_v34 = vadd.f32 %v11506_v21, %v5593_v58  ;;  %v14206_v44 = vld [vmem:[%s19054_s2 + $0xc4] ss:$12 sps:$4 sm:$0xff]  }
0x1acc   : > { %v5573_v1 = vadd.f32 %v12763_v57, %v11496_v62  ;;  %v5564_v4 = vpop.f32.mrb[65].mxu0  ;;  %v17573_v47 = vadd.f32 %v11506_v21, %v5596_v33  ;;  %5989 = vmatprep.subr.bf16.mxu0 %v14206_v44  ;;  %v14211_v57 = vld [vmem:[%s19054_s2 + $0xe0] ss:$12 sps:$4 sm:$0xff]   ;;  %v14215_v33 = vld [vmem:[%s19054_s2 + $0xf8] ss:$12 sps:$4 sm:$0xff]  }
0x1acd   : > { %v17567_v24 = vadd.f32 %v11506_v21, %v5594_v7  ;;  %v5565_v40 = vadd.f32 %v11496_v62, %v5564_v4  ;;  %v12764_v0 = vpop.f32.mrb[66].mxu0  ;;  %v14210_v7 = vld [vmem:[%s19054_s2 + $0xdc] ss:$12 sps:$4 sm:$0xff]   ;;  %v14214_v4 = vld [vmem:[%s19054_s2 + $0xf4] ss:$12 sps:$4 sm:$0xff]  }
0x1ace   : > { %v5567_v36 = vpop.f32.mrb[67].mxu0  ;;  %v5584_v15 = vmax.f32 %v5573_v1, 0.0  ;;  %v14208_v1 = vld [vmem:[%s19054_s2 + $0xd8] ss:$12 sps:$4 sm:$0xff]  }
0x1acf   : > { %v5615_v30 = vadd.f32 %v17567_v24, %v17565_v34  ;;  %v5582_v42 = vmax.f32 %v5565_v40, 0.0  ;;  %v5568_v23 = vadd.f32 %v11496_v62, %v5567_v36  ;;  %v14212_v40 = vld [vmem:[%s19054_s2 + $0xf0] ss:$12 sps:$4 sm:$0xff]   ;;  %v14218_v0 = vld [vmem:[%s19054_s2 + $0x10c] ss:$12 sps:$4 sm:$0xff]  }
0x1ad0   : > { %v5599_v22 = vmul.f32 %v11505_v56, %v5584_v15  ;;  %v14219_v36 = vld [vmem:[%s19054_s2 + $0x110] ss:$12 sps:$4 sm:$0xff]  }
0x1ad1   : > { %v5616_v5 = vadd.f32 %v5615_v30, %v17569_v37  ;;  %v5597_v43 = vmul.f32 %v11505_v56, %v5582_v42  ;;  %v5583_v12 = vmax.f32 %v5568_v23, 0.0  ;;  %v14216_v30 = vld [vmem:[%s19054_s2 + $0x108] ss:$12 sps:$4 sm:$0xff]   ;;  %v14222_v15 = vld [vmem:[%s19054_s2 + $0x124] ss:$12 sps:$4 sm:$0xff]  }
0x1ad2   : > { %v17582_v13 = vadd.f32 %v11506_v21, %v5599_v22  ;;  %v14223_v42 = vld [vmem:[%s19054_s2 + $0x128] ss:$12 sps:$4 sm:$0xff]   ;;  %v14220_v23 = vld [vmem:[%s19054_s2 + $0x120] ss:$12 sps:$4 sm:$0xff]  }
0x1ad3   : > { %v17576_v46 = vadd.f32 %v11506_v21, %v5597_v43  ;;  %v5617_v19 = vadd.f32 %v5616_v5, %v17573_v47  ;;  %v5598_v59 = vmul.f32 %v11505_v56, %v5583_v12  ;;  %v14226_v5 = vld [vmem:[%s19054_s2 + $0x13c] ss:$12 sps:$4 sm:$0xff]   ;;  %v14227_v43 = vld [vmem:[%s19054_s2 + $0x140] ss:$12 sps:$4 sm:$0xff]   ;;  %v14224_v12 = vld [vmem:[%s19054_s2 + $0x138] ss:$12 sps:$4 sm:$0xff]  }
0x1ad4   : > { %v14230_v22 = vld [vmem:[%s19054_s2 + $0x154] ss:$12 sps:$4 sm:$0xff]  }
0x1ad5   : > { %v5618_v18 = vadd.f32 %v5617_v19, %v17576_v46  ;;  %v17580_v25 = vadd.f32 %v11506_v21, %v5598_v59  ;;  %v14204_v21 = vld [vmem:[%s19054_s2 + $0xc0] ss:$12 sps:$4 sm:$0xff]   ;;  %v14231_v19 = vld [vmem:[%s19054_s2 + $0x158] ss:$12 sps:$4 sm:$0xff]   ;;  %v14228_v59 = vld [vmem:[%s19054_s2 + $0x150] ss:$12 sps:$4 sm:$0xff]  }
0x1ad6   : > { %5990 = vmatpush1.bf16.msra.mxu0 %v14204_v21 }
0x1ad7   : > { %v5619_v39 = vadd.f32 %v5618_v18, %v17580_v25  ;;  %5991 = vmatprep.subr.bf16.mxu0 %v14210_v7  ;;  %v14234_v18 = vld [vmem:[%s19054_s2 + $0x16c] ss:$12 sps:$4 sm:$0xff]   ;;  %v14246_v7 = vld [vmem:[%s19054_s2 + $0x34] ss:$12 sps:$4 sm:$0xff]  }
0x1ad9   : > { %v5620_v10 = vadd.f32 %v5619_v39, %v17582_v13  ;;  %v14235_v39 = vld [vmem:[%s19054_s2 + $0x170] ss:$12 sps:$4 sm:$0xff]  }
0x1ada   : > { %5992 = vmatpush1.bf16.msra.mxu0 %v14208_v1  ;;  %v14244_v1 = vld [vmem:[%s19054_s2 + $0x30] ss:$12 sps:$4 sm:$0xff]  }
0x1adb   : > { %v5621_v17 = vrot.slane %v5620_v10, 4  ;;  %5993 = vmatprep.subr.bf16.mxu0 %v14214_v4 }
0x1add   : > { %v5622_v41 = vadd.f32 %v5621_v17, %v5620_v10  ;;  %v14232_v10 = vld [vmem:[%s19054_s2 + $0x168] ss:$12 sps:$4 sm:$0xff]   ;;  %v14238_v17 = vld [vmem:[%s19054_s2 + $0x4] ss:$12 sps:$4 sm:$0xff]  }
0x1ade   : > { %5994 = vmatpush1.bf16.msra.mxu0 %v14212_v40  ;;  %v14251_v40 = vld [vmem:[%s19054_s2 + $0x50] ss:$12 sps:$4 sm:$0xff]  }
0x1adf   : > { %v5623_v35 = vrot.slane %v5622_v41, 2  ;;  %5995 = vmatprep.subr.bf16.mxu0 %v14218_v0  ;;  %v14254_v0 = vld [vmem:[%s19054_s2 + $0x64] ss:$12 sps:$4 sm:$0xff]  }
0x1ae1   : > { %v5624_v16 = vadd.f32 %v5623_v35, %v5622_v41  ;;  %v14239_v41 = vld [vmem:[%s19054_s2 + $0x8] ss:$12 sps:$4 sm:$0xff]   ;;  %v5744_v35 = vld [vmem:[#allocation31 + $0x1] sm:$0x1] }
0x1ae2   : > { %5996 = vmatpush1.bf16.msra.mxu0 %v14216_v30  ;;  %v14252_v30 = vld [vmem:[%s19054_s2 + $0x60] ss:$12 sps:$4 sm:$0xff]  }
0x1ae3   : > { %v5625_v62 = vrot.slane %v5624_v16, 1  ;;  %5997 = vmatprep.subr.bf16.mxu0 %v14222_v15  ;;  %v14258_v15 = vld [vmem:[%s19054_s2 + $0x7c] ss:$12 sps:$4 sm:$0xff]  }
0x1ae5   : > { %v5626_v6 = vadd.f32 %v5625_v62, %v5624_v16 }
0x1ae6   : > { %5998 = vmatpush1.bf16.msra.mxu0 %v14220_v23  ;;  %v14256_v23 = vld [vmem:[%s19054_s2 + $0x78] ss:$12 sps:$4 sm:$0xff]  }
0x1ae7   : > { %v5627_v51 = vmul.f32 0.017857144, %v5626_v6  ;;  %5999 = vmatprep.subr.bf16.mxu0 %v14226_v5  ;;  %v14262_v5 = vld [vmem:[%s19054_s2 + $0x94] ss:$12 sps:$4 sm:$0xff]  }
0x1ae9   : > { %v5628_v49 = vpack.c.bf16 %v5627_v51, %v5627_v51 }
0x1aea   : > { %6000 = vmatpush1.bf16.msra.mxu0 %v14224_v12  ;;  %v14260_v12 = vld [vmem:[%s19054_s2 + $0x90] ss:$12 sps:$4 sm:$0xff]  }
0x1aeb   : > { %12782 = vmatmul.mubr.bf16.vlgmr.msra.gmra.mrb[52].mxu1 %v5628_v49  ;;  %6001 = vmatprep.subr.bf16.mxu0 %v14230_v22  ;;  %v14266_v22 = vld [vmem:[%s19054_s2 + $0xac] ss:$12 sps:$4 sm:$0xff]  }
0x1aec   : > { %12789 = vmatprep.mubr.msk.bf16.mxu1 %vm15578_vm12, %v19051_v8  ;;  %12786 = vmatpush3.bf16.msra.mxu1 %v14202_v26 }
0x1aed   : > { %12787 = vmatprep.subr.bf16.mxu1 %v19051_v8 }
0x1aee   : > { %6002 = vmatpush1.bf16.msra.mxu0 %v14228_v59  ;;  %v14264_v59 = vld [vmem:[%s19054_s2 + $0xa8] ss:$12 sps:$4 sm:$0xff]  }
0x1aef   : > { %6003 = vmatprep.subr.bf16.mxu0 %v14234_v18  ;;  %v14268_v18 = vld [vmem:[#allocation13 + $0x80] sm:$0xff]  }
0x1af0   : > { %12788 = vmatpush3.bf16.msra.mxu1 %v14203_v3 }
0x1af1   : > { %12793 = vmatprep.subr.bf16.mxu1 %v14207_v61 }
0x1af2   : > { %6004 = vmatpush1.bf16.msra.mxu0 %v14232_v10  ;;  %v14270_v10 = vld [vmem:[#allocation13 + $0x90] sm:$0xff]  }
0x1af3   : > { %6252 = vmatprep.subr.bf16.mxu0 %v14238_v17  ;;  %v14271_v17 = vld [vmem:[#allocation13 + $0x98] sm:$0xff]  }
0x1bbe   : > { %v5730_v56 = vpop.f32.mrb[52].mxu1 }
0x1bbf   : > { %v5731_v38 = vadd.f32 %v5730_v56, %v5647_v60  ;;  %v12783_v50 = vpop.f32.mrb[53].mxu1 }
0x1bc0   : > { %v5733_v9 = vpop.f32.mrb[54].mxu1 }
0x1bc1   : > { %v5736_v32 = vmax.f32 %v5731_v38, 0.0  ;;  %v12784_v58 = vpop.f32.mrb[55].mxu1 }
0x1bc3   : > { %v5737_v53 = vpack.c.bf16 %v5736_v32, %v5736_v32 }
0x1bc5   : > { %12790 = vmatmul.mubr.msk.bf16.vlgmr.msra.gmra.mrb[56].mxu1 %vm1571_vm1, %v5737_v53 }
0x1bc6   : > { %12794 = vmatpush3.bf16.msra.mxu1 %v14207_v61 }
0x1bc7   : > { %12795 = vmatprep.subr.bf16.mxu1 %v14211_v57 }
0x1bca   : > { %12796 = vmatpush3.bf16.msra.mxu1 %v14211_v57 }
0x1bcb   : > { %12797 = vmatprep.subr.bf16.mxu1 %v14215_v33 }
0x1bce   : > { %12798 = vmatpush3.bf16.msra.mxu1 %v14215_v33  ;;  %v14250_v33 = vld [vmem:[%s19054_s2 + $0x4c] ss:$12 sps:$4 sm:$0xff]  }
0x1bcf   : > { %12799 = vmatprep.subr.bf16.mxu1 %v14219_v36 }
0x1bd2   : > { %12800 = vmatpush3.bf16.msra.mxu1 %v14219_v36  ;;  %v14255_v36 = vld [vmem:[%s19054_s2 + $0x68] ss:$12 sps:$4 sm:$0xff]  }
0x1bd3   : > { %12801 = vmatprep.subr.bf16.mxu1 %v14223_v42 }
0x1bd6   : > { %12802 = vmatpush3.bf16.msra.mxu1 %v14223_v42  ;;  %v14259_v42 = vld [vmem:[%s19054_s2 + $0x80] ss:$12 sps:$4 sm:$0xff]  }
0x1bd7   : > { %12803 = vmatprep.subr.bf16.mxu1 %v14227_v43 }
0x1bda   : > { %12804 = vmatpush3.bf16.msra.mxu1 %v14227_v43  ;;  %v14263_v43 = vld [vmem:[%s19054_s2 + $0x98] ss:$12 sps:$4 sm:$0xff]  }
0x1bdb   : > { %12805 = vmatprep.subr.bf16.mxu1 %v14231_v19 }
0x1bde   : > { %12806 = vmatpush3.bf16.msra.mxu1 %v14231_v19  ;;  %v14267_v19 = vld [vmem:[%s19054_s2 + $0xb0] ss:$12 sps:$4 sm:$0xff]  }
0x1bdf   : > { %12807 = vmatprep.subr.bf16.mxu1 %v14235_v39 }
0x1be2   : > { %12808 = vmatpush3.bf16.msra.mxu1 %v14235_v39  ;;  %v14269_v39 = vld [vmem:[#allocation13 + $0x88] sm:$0xff]  }
0x1be3   : > { %12817 = vmatprep.subr.bf16.mxu1 %v14239_v41 }
0x1c98   : > { %v5794_v16 = vpop.f32.mrb[56].mxu1 }
0x1c99   : > { %v5795_v62 = vadd.f32 %v5794_v16, %v5744_v35  ;;  %v12791_v6 = vpop.f32.mrb[57].mxu1  ;;  %v14274_v35 = vld [vmem:[#allocation13 + $0xb0] sm:$0xff]  }
0x1c9a   : > { %v5797_v51 = vpop.f32.mrb[58].mxu1 }
0x1c9b   : > { %v11538_v49 = vmul.f32 -1.442695, %v5795_v62  ;;  %v12792_v26 = vpop.f32.mrb[59].mxu1 }
0x1c9d   : > { %14514 = vpow2.f32 %v11538_v49 }
0x1ca7   : > { %v14515_v3 = vpop.eup %14514 }
0x1ca8   : > { %v5803_v60 = vadd.f32 1.0, %v14515_v3 }
0x1caa   : > { %14516 = vrcp.f32 %v5803_v60 }
0x1cb4   : > { %v14517_v56 = vpop.eup %14516 }
0x1cb5   : > { %v5809_v38 = vrot.slane %v14517_v56, %v17075_v45 }
0x1cb7   : > { %v5810_v50 = vmul.f32 %v5809_v38, %v17565_v34  ;;  %v5811_v9 = vmul.f32 %v5809_v38, %v17567_v24  ;;  %v5812_v32 = vmul.f32 %v5809_v38, %v17569_v37  ;;  %v5813_v58 = vmul.f32 %v5809_v38, %v17573_v47  ;;  %v14236_v37 = vld [vmem:[%s19054_s2] ss:$12 sps:$4 sm:$0xff]  }
0x1cb8   : > { %v5814_v53 = vmul.f32 %v5809_v38, %v17576_v46  ;;  %v5815_v44 = vmul.f32 %v5809_v38, %v17580_v25  ;;  %v5816_v25 = vmul.f32 %v5809_v38, %v17582_v13  ;;  %v14247_v13 = vld [vmem:[%s19054_s2 + $0x38] ss:$12 sps:$4 sm:$0xff]  }
0x1cb9   : > { %v17626_v61 = vadd.f32 %v5810_v50, %v17085_v55  ;;  %v17629_v21 = vadd.f32 %v5811_v9, %v17088_v48  ;;  %v17632_v34 = vadd.f32 %v5812_v32, %v17091_v63  ;;  %v17635_v24 = vadd.f32 %v5813_v58, %v17094_v11  ;;  %v14242_v63 = vld [vmem:[%s19054_s2 + $0x1c] ss:$12 sps:$4 sm:$0xff]   ;;  %v14243_v11 = vld [vmem:[%s19054_s2 + $0x20] ss:$12 sps:$4 sm:$0xff]  }
0x1cba   : > { %v17639_v47 = vadd.f32 %v5814_v53, %v17097_v20  ;;  %v17642_v46 = vadd.f32 %v5815_v44, %v17100_v54  ;;  %v14240_v54 = vld [vmem:[%s19054_s2 + $0x18] ss:$12 sps:$4 sm:$0xff]   ;;  %v17667_v57 = vadd.f32 %v5816_v25, %v17119_v29  ;;  %v14248_v29 = vld [vmem:[%s19054_s2 + $0x48] ss:$12 sps:$4 sm:$0xff]  }
0x1cbb   : > { %v17646_v55 = vpack.c.bf16 %v17629_v21, %v17626_v61  ;;  %v17650_v48 = vpack.c.bf16 %v17635_v24, %v17632_v34 }
0x1cbc   : > { %v17659_v20 = vpack.c.bf16 %v17642_v46, %v17639_v47  ;;  %v17673_v4 = vpack.c.bf16 %v17667_v57, %v17667_v57 }
0x1cbd   : > { %6022 = vmatmul.mubr.bf16.vlgmr.msra.gmra.mrb[68].mxu0 %v17646_v55  ;;  %12809 = vmatprep.mubr.bf16.mxu1 %v17646_v55 }
0x1cbe   : > { %12810 = vmatmul.mubr.bf16.vlgmr.msra.gmra.mrb[60].mxu1 %v17650_v48  ;;  %6253 = vmatpush1.bf16.msra.mxu0 %v14236_v37 }
0x1cbf   : > { %12818 = vmatpush3.bf16.msra.mxu1 %v14239_v41  ;;  %12813 = vmatprep.mubr.bf16.mxu1 %v17659_v20  ;;  %v14273_v41 = vld [vmem:[#allocation13 + $0xa8] sm:$0xff]  }
0x1cc0   : > { %6254 = vmatprep.subr.bf16.mxu0 %v14242_v63  ;;  %12819 = vmatprep.subr.bf16.mxu1 %v14243_v11  ;;  %v11619_v63 = vld [vmem:[#allocation14 + $0x2] ss:$0 sm:$0xff] }
0x1cc1   : > { %6031 = vmatprep.mubr.bf16.mxu0 %v19053_v27 }
0x1cc2   : > { %6255 = vmatpush1.bf16.msra.mxu0 %v14240_v54  ;;  %v11628_v54 = vld [vmem:[#allocation16 + $0x2] ss:$0 sm:$0xff] }
0x1cc3   : > { %12820 = vmatpush3.bf16.msra.mxu1 %v14243_v11  ;;  %6256 = vmatprep.subr.bf16.mxu0 %v14246_v7 }
0x1cc4   : > { %12821 = vmatprep.subr.bf16.mxu1 %v14247_v13 }
0x1cc5   : > { %6032 = vmatmul.mubr.bf16.gmra.mrb[72].mxu0 %v17650_v48 }
0x1cc6   : > { %12814 = vmatmul.mubr.bf16.gmra.mrb[64].mxu1 %v17673_v4  ;;  %6257 = vmatpush1.bf16.msra.mxu0 %v14244_v1 }
0x1cc7   : > { %12822 = vmatpush3.bf16.msra.mxu1 %v14247_v13  ;;  %12833 = vmatprep.mubr.bf16.mxu1 %v17104_v2 }
0x1cc8   : > { %6258 = vmatprep.subr.bf16.mxu0 %v14250_v33  ;;  %12823 = vmatprep.subr.bf16.mxu1 %v14251_v40 }
0x1cc9   : > { %6041 = vmatprep.mubr.bf16.mxu0 %v19053_v27 }
0x1cca   : > { %6259 = vmatpush1.bf16.msra.mxu0 %v14248_v29 }
0x1ccb   : > { %12824 = vmatpush3.bf16.msra.mxu1 %v14251_v40  ;;  %6260 = vmatprep.subr.bf16.mxu0 %v14254_v0 }
0x1ccc   : > { %12825 = vmatprep.subr.bf16.mxu1 %v14255_v36 }
0x1ccd   : > { %6042 = vmatmul.mubr.bf16.gmra.mrb[76].mxu0 %v17659_v20 }
0x1cce   : > { %6261 = vmatpush1.bf16.msra.mxu0 %v14252_v30  ;;  %6051 = vmatprep.mubr.bf16.mxu0 %v19053_v27  ;;  %v11629_v30 = vld [vmem:[#allocation17 + $0x2] ss:$0 sm:$0xff] }
0x1ccf   : > { %12826 = vmatpush3.bf16.msra.mxu1 %v14255_v36  ;;  %6262 = vmatprep.subr.bf16.mxu0 %v14258_v15 }
0x1cd0   : > { %12827 = vmatprep.subr.bf16.mxu1 %v14259_v42 }
0x1cd2   : > { %6263 = vmatpush1.bf16.msra.mxu0 %v14256_v23 }
0x1cd3   : > { %12828 = vmatpush3.bf16.msra.mxu1 %v14259_v42  ;;  %6264 = vmatprep.subr.bf16.mxu0 %v14262_v5 }
0x1cd4   : > { %12829 = vmatprep.subr.bf16.mxu1 %v14263_v43 }
0x1cd5   : > { %6052 = vmatmul.mubr.bf16.gmra.mrb[80].mxu0 %v17673_v4 }
0x1cd6   : > { %6265 = vmatpush1.bf16.msra.mxu0 %v14260_v12  ;;  %6284 = vmatprep.mubr.bf16.mxu0 %v19053_v27 }
0x1cd7   : > { %12830 = vmatpush3.bf16.msra.mxu1 %v14263_v43  ;;  %6266 = vmatprep.subr.bf16.mxu0 %v14266_v22 }
0x1cd8   : > { %12831 = vmatprep.subr.bf16.mxu1 %v14267_v19 }
0x1cda   : > { %6267 = vmatpush1.bf16.msra.mxu0 %v14264_v59 }
0x1cdb   : > { %12832 = vmatpush3.bf16.msra.mxu1 %v14267_v19  ;;  %12841 = vmatprep.subr.bf16.mxu0 %v14268_v18 }
0x1cdd   : > { %6285 = vmatmul.mubr.bf16.vlgmr.msra.gmra.mrb[68].mxu0 %v17104_v2  ;;  %v14272_v2 = vld [vmem:[#allocation13 + $0xa0] sm:$0xff]  }
0x1cde   : > { %12834 = vmatmul.mubr.bf16.vlgmr.msra.gmra.mrb[60].mxu1 %v17108_v14  ;;  %12842 = vmatpush3.bf16.msra.mxu0 %v14268_v18 }
0x1cdf   : > { %12837 = vmatprep.mubr.bf16.mxu1 %v17114_v28  ;;  %12843 = vmatprep.subr.bf16.mxu0 %v14269_v39 }
0x1ce0   : > { %6294 = vmatprep.mubr.bf16.mxu0 %v19053_v27 }
0x1ce2   : > { %12844 = vmatpush3.bf16.msra.mxu0 %v14269_v39 }
0x1ce3   : > { %12845 = vmatprep.subr.bf16.mxu0 %v14270_v10 }
0x1ce5   : > { %6295 = vmatmul.mubr.bf16.gmra.mrb[72].mxu0 %v17108_v14  ;;  %v14275_v14 = vld [vmem:[#allocation13 + $0xb8] sm:$0xff]  }
0x1ce6   : > { %12838 = vmatmul.mubr.bf16.gmra.mrb[68].mxu1 %v17123_v52  ;;  %12846 = vmatpush3.bf16.msra.mxu0 %v14270_v10 }
0x1ce7   : > { %12847 = vmatprep.subr.bf16.mxu0 %v14271_v17  ;;  %6304 = vmatprep.mubr.bf16.mxu0 %v19053_v27 }
0x1cea   : > { %12848 = vmatpush3.bf16.msra.mxu0 %v14271_v17 }
0x1ceb   : > { %12849 = vmatprep.subr.bf16.mxu0 %v14272_v2 }
0x1ced   : > { %6305 = vmatmul.mubr.bf16.gmra.mrb[76].mxu0 %v17114_v28 }
0x1cee   : > { %12850 = vmatpush3.bf16.msra.mxu0 %v14272_v2  ;;  %6314 = vmatprep.mubr.bf16.mxu0 %v19053_v27 }
0x1cef   : > { %12851 = vmatprep.subr.bf16.mxu0 %v14273_v41 }
0x1cf2   : > { %12852 = vmatpush3.bf16.msra.mxu0 %v14273_v41 }
0x1cf3   : > { %12853 = vmatprep.subr.bf16.mxu0 %v14274_v35 }
0x1cf5   : > { %6315 = vmatmul.mubr.bf16.gmra.mrb[84].mxu0 %v17123_v52 }
0x1cf6   : > { %12854 = vmatpush3.bf16.msra.mxu0 %v14274_v35  ;;  %12857 = vmatprep.mubr.bf16.mxu0 %v17646_v55 }
0x1cf7   : > { %12855 = vmatprep.subr.bf16.mxu0 %v14275_v14 }
0x1cfa   : > { %12856 = vmatpush3.bf16.msra.mxu0 %v14275_v14 }
0x1cfd   : > { %12858 = vmatmul.mubr.bf16.vlgmr.msra.gmra.mrb[88].mxu0 %v17650_v48 }
0x1cfe   : > { %12861 = vmatprep.mubr.bf16.mxu0 %v17659_v20 }
0x1d05   : > { %12862 = vmatmul.mubr.bf16.gmra.mrb[92].mxu0 %v17673_v4 }
0x1d99   : > { %v12815_v28 = vpop.f32.mrb[64].mxu1 }
0x1d9a   : > { %v6110_v16 = vpop.f32.mrb[65].mxu1 }
0x1d9b   : > { %v12816_v62 = vpop.f32.mrb[66].mxu1 }
0x1d9c   : > { %v6113_v6 = vpop.f32.mrb[67].mxu1 }
0x1da8   : > { %v6053_v51 = vpop.f32.mrb[80].mxu0 }
0x1da9   : > { %v6055_v49 = vpop.f32.mrb[81].mxu0 }
0x1daa   : > { %v6057_v26 = vpop.f32.mrb[82].mxu0 }
0x1dab   : > { %v6058_v3 = vpop.f32.mrb[83].mxu0 }
0x1dac   : > { %v14276_v3 = vld [vmem:[%s19039_s13 + $0x120] sm:$0xff]  }
0x1dad   : > { %12865 = vmatprep.subr.bf16.mxu1 %v14276_v3 }
0x1dae   : > { %12866 = vmatpush3.bf16.msra.mxu1 %v14276_v3 }
0x1db9   : > { %v12839_v52 = vpop.f32.mrb[68].mxu1 }
0x1dba   : > { %v17712_v60 = vadd.f32 %v12839_v52, %v12815_v28  ;;  %v6373_v56 = vpop.f32.mrb[69].mxu1  ;;  %v14277_v52 = vld [vmem:[%s19039_s13 + $0x128] sm:$0xff]  }
0x1dbb   : > { %v17714_v38 = vadd.f32 %v6373_v56, %v6110_v16  ;;  %v12840_v50 = vpop.f32.mrb[70].mxu1  ;;  %12867 = vmatprep.subr.bf16.mxu1 %v14277_v52 }
0x1dbc   : > { %v6376_v9 = vpop.f32.mrb[71].mxu1  ;;  %12868 = vmatpush3.bf16.msra.mxu1 %v14277_v52 }
0x1dbd   : > { %v17716_v32 = vadd.f32 %v6376_v9, %v6113_v6 }
0x1dc8   : > { %v6316_v58 = vpop.f32.mrb[84].mxu0 }
0x1dc9   : > { %v17718_v53 = vadd.f32 %v6316_v58, %v6053_v51  ;;  %v6318_v44 = vpop.f32.mrb[85].mxu0  ;;  %v14278_v58 = vld [vmem:[%s19039_s13 + $0x130] sm:$0xff]  }
0x1dca   : > { %v17720_v37 = vadd.f32 %v6318_v44, %v6055_v49  ;;  %v6320_v55 = vpop.f32.mrb[86].mxu0  ;;  %12869 = vmatprep.subr.bf16.mxu1 %v14278_v58  ;;  %v14279_v44 = vld [vmem:[%s19039_s13 + $0x138] sm:$0xff]  }
0x1dcb   : > { %v6321_v48 = vpop.f32.mrb[87].mxu0  ;;  %12870 = vmatpush3.bf16.msra.mxu1 %v14278_v58  ;;  %v14280_v55 = vld [vmem:[%s19039_s13 + $0x140] sm:$0xff]  }
0x1dcc   : > { %12871 = vmatprep.subr.bf16.mxu1 %v14279_v44 }
0x1dcf   : > { %12872 = vmatpush3.bf16.msra.mxu1 %v14279_v44 }
0x1dd0   : > { %v12859_v11 = vpop.f32.mrb[88].mxu0  ;;  %12873 = vmatprep.subr.bf16.mxu1 %v14280_v55 }
0x1dd1   : > { %v6503_v25 = vadd.f32 %v12859_v11, %v11619_v63  ;;  %v6494_v20 = vpop.f32.mrb[89].mxu0 }
0x1dd2   : > { %v6495_v7 = vadd.f32 %v11619_v63, %v6494_v20  ;;  %v12860_v13 = vpop.f32.mrb[90].mxu0  ;;  %v14281_v20 = vld [vmem:[%s19039_s13 + $0x148] sm:$0xff]  }
0x1dd3   : > { %v6526_v1 = vmax.f32 %v6503_v25, 0.0  ;;  %v6506_v4 = vadd.f32 %v12860_v13, %v11619_v63  ;;  %v6497_v33 = vpop.f32.mrb[91].mxu0  ;;  %12874 = vmatpush3.bf16.msra.mxu1 %v14280_v55 }
0x1dd4   : > { %v6524_v40 = vmax.f32 %v6495_v7, 0.0  ;;  %v6498_v29 = vadd.f32 %v11619_v63, %v6497_v33  ;;  %12875 = vmatprep.subr.bf16.mxu1 %v14281_v20 }
0x1dd5   : > { %v6541_v0 = vmul.f32 %v11628_v54, %v6526_v1  ;;  %v6527_v36 = vmax.f32 %v6506_v4, 0.0 }
0x1dd6   : > { %v6539_v15 = vmul.f32 %v11628_v54, %v6524_v40  ;;  %v6525_v42 = vmax.f32 %v6498_v29, 0.0 }
0x1dd7   : > { %v6542_v23 = vmul.f32 %v11628_v54, %v6527_v36  ;;  %v17722_v12 = vadd.f32 %v11629_v30, %v6541_v0  ;;  %12876 = vmatpush3.bf16.msra.mxu1 %v14281_v20 }
0x1dd8   : > { %v6540_v5 = vmul.f32 %v11628_v54, %v6525_v42  ;;  %v12863_v43 = vpop.f32.mrb[92].mxu0  ;;  %v17726_v18 = vadd.f32 %v11629_v30, %v6539_v15 }
0x1dd9   : > { %v17724_v22 = vadd.f32 %v11629_v30, %v6542_v23  ;;  %v6519_v19 = vadd.f32 %v12863_v43, %v11619_v63  ;;  %v6510_v59 = vpop.f32.mrb[93].mxu0  ;;  %v19055_v23 = vld [vmem:[#allocation97_spill] sm:$0xff] }
0x1dda   : > { %v17728_v39 = vadd.f32 %v11629_v30, %v6540_v5  ;;  %v6511_v10 = vadd.f32 %v11619_v63, %v6510_v59  ;;  %v12864_v17 = vpop.f32.mrb[94].mxu0  ;;  %v17763_v5 = vadd.s32 4, %v19055_v23 }
0x1ddb   : > { %v6530_v2 = vmax.f32 %v6519_v19, 0.0  ;;  %v6513_v41 = vpop.f32.mrb[95].mxu0  ;;  %v13928_v35 = vpack.i.bf16 %v17724_v22, %v17722_v12 }
0x1ddc   : > { %v6528_v14 = vmax.f32 %v6511_v10, 0.0  ;;  %v6514_v28 = vadd.f32 %v11619_v63, %v6513_v41  ;;  %v13933_v16 = vpack.i.bf16 %v17728_v39, %v17726_v18  ;;  %vm6686_vm4 = vcmp.lt.s32.totalorder %v17763_v5, 56 }
0x1ddd   : > { %13929 = vrot.lane.b32.xlu0 %v13928_v35, %s15576_s10  ;;  %v6545_v62 = vmul.f32 %v11628_v54, %v6530_v2 }
0x1dde   : > { %v6543_v6 = vmul.f32 %v11628_v54, %v6528_v14  ;;  %v6529_v51 = vmax.f32 %v6514_v28, 0.0  ;;  %13934 = vrot.lane.b32.xlu1 %v13933_v16, %s15576_s10 }
0x1ddf   : > { %v17740_v56 = vadd.f32 %v11629_v30, %v6545_v62  ;;  %v17779_v62 = vadd.s32 4294967292, %v16398_v31 }
0x1de0   : > { %v17736_v49 = vadd.f32 %v11629_v30, %v6543_v6  ;;  %v6544_v26 = vmul.f32 %v11628_v54, %v6529_v51 }
0x1de1   : > { %vm6624_vm5 = vcmp.ge.s32.totalorder %v17779_v62, 0 }
0x1de2   : > { %v17742_v50 = vadd.f32 %v11629_v30, %v6544_v26  ;;  %6589 = vrot.lane.b32.xlu1 %v17736_v49, %s15576_s10 }
0x1de4   : > { %v13938_v9 = vpack.i.bf16 %v17740_v56, %v17742_v50 }
0x1de6   : > { %13939 = vrot.lane.b32.xlu0 %v13938_v9, %s15576_s10 }
0x1e4f   : > { %v13930_v48 = vpop.permute.xlu0 %13929 }
0x1e50   : > { %v13932_v63 = vunpack.i.h.bf16 %v13930_v48  ;;  %v13931_v11 = vunpack.i.l.bf16 %v13930_v48  ;;  %v13935_v25 = vpop.permute.xlu1 %13934 }
0x1e51   : > { %v13937_v54 = vunpack.i.h.bf16 %v13935_v25  ;;  %v13936_v7 = vunpack.i.l.bf16 %v13935_v25 }
0x1e52   : > { %v6604_v13 = vrot.slane %v13931_v11, 4  ;;  %v6605_v1 = vrot.slane %v13932_v63, 4 }
0x1e53   : > { %v6603_v4 = vrot.slane %v13937_v54, 4  ;;  %v6602_v33 = vrot.slane %v13936_v7, 4 }
0x1e54   : > { %v6590_v40 = vpop.permute.xlu1 %6589  ;;  %v6613_v15 = vsel %vm6609_vm3, %v6604_v13, %v6605_v1 }
0x1e55   : > { %v6614_v29 = vsel %vm6609_vm3, %v6603_v4, %v6604_v13  ;;  %v6615_v0 = vsel %vm6609_vm3, %v6602_v33, %v6603_v4  ;;  %v6606_v36 = vrot.slane %v6590_v40, 4  ;;  %v6746_v25 = vsel %vm1571_vm1, %v6613_v15, %v17724_v22 }
0x1e56   : > { %v13943_v30 = vpack.i.bf16 %v6614_v29, %v6615_v0  ;;  %v6744_v9 = vsel %vm1571_vm1, %v6615_v0, %v17728_v39  ;;  %v6745_v20 = vsel %vm1571_vm1, %v6614_v29, %v17722_v12 }
0x1e57   : > { %v6612_v42 = vsel %vm6609_vm3, %v6605_v1, %v6606_v36 }
0x1e58   : > { %v13948_v43 = vpack.i.bf16 %v6612_v42, %v6613_v15  ;;  %v13940_v19 = vpop.permute.xlu0 %13939  ;;  %13944 = vrot.lane.b32.xlu1 %v13943_v30, %s15574_s12  ;;  %v6747_v0 = vsel %vm1571_vm1, %v6612_v42, %v17736_v49 }
0x1e59   : > { %v13942_v59 = vunpack.i.h.bf16 %v13940_v19  ;;  %v13941_v10 = vunpack.i.l.bf16 %v13940_v19 }
0x1e5a   : > { %13949 = vrot.lane.b32.xlu0 %v13948_v43, %s15574_s12 }
0x1e5b   : > { %v6608_v17 = vrot.slane %v13942_v59, 4  ;;  %v6607_v2 = vrot.slane %v13941_v10, 4  ;;  %v11642_v59 = vld [vmem:[#allocation19 + $0x6] ss:$0 sm:$0xff] }
0x1e5d   : > { %v6610_v41 = vsel %vm6609_vm3, %v6607_v2, %v6608_v17  ;;  %v6611_v35 = vsel %vm6609_vm3, %v6606_v36, %v6607_v2  ;;  %v6616_v14 = vsel %vm6609_vm3, %v6608_v17, %v6602_v33  ;;  %v11653_v2 = vld [vmem:[#allocation20 + $0x6] ss:$0 sm:$0xff] }
0x1e5e   : > { %v6714_v28 = vsel %vm6686_vm4, %v6616_v14, 0.0  ;;  %v13953_v16 = vpack.i.bf16 %v6610_v41, %v6611_v35  ;;  %v6659_v6 = vsel %vm6624_vm5, %v6616_v14, 0.0  ;;  %v6749_v36 = vsel %vm1571_vm1, %v6610_v41, %v17740_v56 }
0x1e5f   : > { %6734 = vrot.lane.b32.xlu0 %v6714_v28, %s15574_s12  ;;  %v6743_v52 = vsel %vm1571_vm1, %v6659_v6, %v17726_v18  ;;  %v6748_v29 = vsel %vm1571_vm1, %v6611_v35, %v17742_v50  ;;  %v11654_v6 = vld [vmem:[#allocation22 + $0x6] ss:$0 sm:$0xff] }
0x1e60   : > { %13954 = vrot.lane.b32.xlu1 %v13953_v16, %s15574_s12 }
0x1eca   : > { %v13945_v51 = vpop.permute.xlu1 %13944 }
0x1ecb   : > { %v13947_v26 = vunpack.i.h.bf16 %v13945_v51  ;;  %v13946_v3 = vunpack.i.l.bf16 %v13945_v51 }
0x1ecc   : > { %v13950_v58 = vpop.permute.xlu0 %13949 }
0x1ecd   : > { %v6750_v44 = vsel %vm1615_vm2, %v6743_v52, %v13946_v3  ;;  %v6751_v55 = vsel %vm1615_vm2, %v6744_v9, %v13947_v26  ;;  %v13952_v48 = vunpack.i.h.bf16 %v13950_v58  ;;  %v13951_v63 = vunpack.i.l.bf16 %v13950_v58 }
0x1ece   : > { %v6757_v11 = vpack.c.bf16 %v6751_v55, %v6750_v44 }
0x1ecf   : > { %v6753_v54 = vsel %vm1615_vm2, %v6746_v25, %v13952_v48  ;;  %v6752_v7 = vsel %vm1615_vm2, %v6745_v20, %v13951_v63 }
0x1ed0   : > { %v6758_v13 = vpack.c.bf16 %v6753_v54, %v6752_v7  ;;  %12877 = vmatprep.mubr.msk.bf16.mxu1 %vm2276_vm10, %v6757_v11 }
0x1ed1   : > { %v6735_v1 = vpop.permute.xlu0 %6734 }
0x1ed2   : > { %v13955_v4 = vpop.permute.xlu1 %13954  ;;  %12878 = vmatmul.mubr.msk.bf16.vlgmr.msra.gmra.mrb[72].mxu1 %vm2276_vm10, %v6758_v13  ;;  %v6756_v30 = vsel %vm1615_vm2, %v6749_v36, %v6735_v1 }
0x1ed3   : > { %v13957_v33 = vunpack.i.h.bf16 %v13955_v4  ;;  %v13956_v40 = vunpack.i.l.bf16 %v13955_v4  ;;  %v6760_v19 = vpack.c.bf16 %v6756_v30, %v6756_v30 }
0x1ed5   : > { %v6755_v15 = vsel %vm1615_vm2, %v6748_v29, %v13957_v33  ;;  %v6754_v23 = vsel %vm1615_vm2, %v6747_v0, %v13956_v40 }
0x1ed6   : > { %v6759_v43 = vpack.c.bf16 %v6755_v15, %v6754_v23 }
0x1ed8   : > { %12881 = vmatprep.mubr.msk.bf16.mxu1 %vm2276_vm10, %v6759_v43 }
0x1eda   : > { %12882 = vmatmul.mubr.msk.bf16.gmra.mrb[76].mxu1 %vm2276_vm10, %v6760_v19 }
0x1fa5   : > { %v12879_v42 = vpop.f32.mrb[72].mxu1 }
0x1fa6   : > { %v6860_v10 = vadd.f32 %v12879_v42, %v11642_v59  ;;  %v6851_v17 = vpop.f32.mrb[73].mxu1 }
0x1fa7   : > { %v6852_v41 = vadd.f32 %v11642_v59, %v6851_v17  ;;  %v12880_v14 = vpop.f32.mrb[74].mxu1 }
0x1fa8   : > { %v6883_v35 = vmax.f32 %v6860_v10, 0.0  ;;  %v6863_v28 = vadd.f32 %v12880_v14, %v11642_v59  ;;  %v6854_v16 = vpop.f32.mrb[75].mxu1 }
0x1fa9   : > { %v6881_v51 = vmax.f32 %v6852_v41, 0.0  ;;  %v6855_v26 = vadd.f32 %v11642_v59, %v6854_v16 }
0x1faa   : > { %v6898_v3 = vmul.f32 %v11653_v2, %v6883_v35  ;;  %v6884_v52 = vmax.f32 %v6863_v28, 0.0 }
0x1fab   : > { %v6896_v9 = vmul.f32 %v11653_v2, %v6881_v51  ;;  %v6882_v58 = vmax.f32 %v6855_v26, 0.0 }
0x1fac   : > { %v17809_v44 = vadd.f32 %v11654_v6, %v6898_v3  ;;  %v6899_v55 = vmul.f32 %v11653_v2, %v6884_v52 }
0x1fad   : > { %v6897_v48 = vmul.f32 %v11653_v2, %v6882_v58  ;;  %v12883_v63 = vpop.f32.mrb[76].mxu1  ;;  %v17815_v54 = vadd.f32 %v11654_v6, %v6896_v9 }
0x1fae   : > { %v17811_v11 = vadd.f32 %v11654_v6, %v6899_v55  ;;  %v6876_v25 = vadd.f32 %v12883_v63, %v11642_v59  ;;  %6929 = vrot.lane.b32.xlu1 %v17809_v44, %s15574_s12  ;;  %v6867_v20 = vpop.f32.mrb[77].mxu1 }
0x1faf   : > { %v17817_v7 = vadd.f32 %v11654_v6, %v6897_v48  ;;  %v6868_v13 = vadd.f32 %v11642_v59, %v6867_v20  ;;  %v12884_v1 = vpop.f32.mrb[78].mxu1  ;;  %v14283_v20 = vld [vmem:[%s19039_s13 + $0x158] sm:$0xff]  }
0x1fb0   : > { %v14058_v4 = vpack.i.bf16 %v17811_v11, %v17809_v44  ;;  %v6870_v33 = vpop.f32.mrb[79].mxu1  ;;  %v6887_v0 = vmax.f32 %v6876_v25, 0.0  ;;  %v14282_v25 = vld [vmem:[%s19039_s13 + $0x150] sm:$0xff]   ;;  %v14284_v1 = vld [vmem:[%s19039_s13 + $0x160] sm:$0xff]  }
0x1fb1   : > { %v14053_v40 = vpack.i.bf16 %v17817_v7, %v17815_v54  ;;  %v6885_v36 = vmax.f32 %v6868_v13, 0.0  ;;  %v6871_v29 = vadd.f32 %v11642_v59, %v6870_v33  ;;  %6927 = vrot.lane.b32.xlu0 %v17817_v7, %s15574_s12  ;;  %12885 = vmatprep.subr.bf16.mxu0 %v14282_v25  ;;  %v14285_v33 = vld [vmem:[%s19039_s13 + $0x168] sm:$0xff]  }
0x1fb2   : > { %6925 = vrot.lane.b32.xlu1 %v17815_v54, %s15574_s12  ;;  %v6902_v23 = vmul.f32 %v11653_v2, %v6887_v0  ;;  %12886 = vmatpush3.bf16.msra.mxu0 %v14282_v25  ;;  %v14286_v0 = vld [vmem:[%s19039_s13 + $0x170] sm:$0xff]  }
0x1fb3   : > { %v6900_v30 = vmul.f32 %v11653_v2, %v6885_v36  ;;  %v6886_v15 = vmax.f32 %v6871_v29, 0.0  ;;  %12887 = vmatprep.subr.bf16.mxu0 %v14283_v20 }
0x1fb4   : > { %v17835_v59 = vadd.f32 %v11654_v6, %v6902_v23 }
0x1fb5   : > { %v17827_v43 = vadd.f32 %v11654_v6, %v6900_v30  ;;  %v6901_v19 = vmul.f32 %v11653_v2, %v6886_v15  ;;  %6931 = vrot.lane.b32.xlu0 %v17811_v11, %s15574_s12  ;;  %v14287_v15 = vld [vmem:[%s19039_s13 + $0x178] sm:$0xff]  }
0x1fb6   : > { %12888 = vmatpush3.bf16.msra.mxu0 %v14283_v20 }
0x1fb7   : > { %v17831_v42 = vadd.f32 %v11654_v6, %v6901_v19  ;;  %6933 = vrot.lane.b32.xlu1 %v17827_v43, %s15574_s12  ;;  %12889 = vmatprep.subr.bf16.mxu0 %v14284_v1 }
0x1fb9   : > { %v14073_v10 = vpack.i.bf16 %v17831_v42, %v17827_v43  ;;  %6935 = vrot.lane.b32.xlu0 %v17831_v42, %s15574_s12 }
0x1fba   : > { %12890 = vmatpush3.bf16.msra.mxu0 %v14284_v1 }
0x1fbb   : > { %6937 = vrot.lane.b32.xlu1 %v17835_v59, %s15574_s12  ;;  %12891 = vmatprep.subr.bf16.mxu0 %v14285_v33 }
0x1fbe   : > { %12892 = vmatpush3.bf16.msra.mxu0 %v14285_v33 }
0x1fbf   : > { %12893 = vmatprep.subr.bf16.mxu0 %v14286_v0 }
0x1fc2   : > { %12894 = vmatpush3.bf16.msra.mxu0 %v14286_v0 }
0x1fc3   : > { %12895 = vmatprep.subr.bf16.mxu0 %v14287_v15 }
0x1fc6   : > { %12896 = vmatpush3.bf16.msra.mxu0 %v14287_v15 }
0x2020   : > { %v6930_v17 = vpop.permute.xlu1 %6929 }
0x2021   : > { %v6948_v6 = vadd.f32 %v6930_v17, %v17722_v12 }
0x2023   : > { %v6928_v2 = vpop.permute.xlu0 %6927 }
0x2024   : > { %v6947_v41 = vadd.f32 %v6928_v2, %v17728_v39  ;;  %v6926_v14 = vpop.permute.xlu1 %6925 }
0x2025   : > { %v6946_v35 = vadd.f32 %v6926_v14, %v17726_v18 }
0x2027   : > { %v13963_v28 = vpack.i.bf16 %v6947_v41, %v6946_v35  ;;  %v6932_v16 = vpop.permute.xlu0 %6931 }
0x2028   : > { %v6949_v51 = vadd.f32 %v6932_v16, %v17724_v22 }
0x2029   : > { %13964 = vrot.lane.b32.xlu0 %v13963_v28, %s15574_s12  ;;  %v6934_v26 = vpop.permute.xlu1 %6933 }
0x202a   : > { %v13958_v3 = vpack.i.bf16 %v6949_v51, %v6948_v6  ;;  %v6950_v52 = vadd.f32 %v6934_v26, %v17736_v49 }
0x202b   : > { %v6936_v9 = vpop.permute.xlu0 %6935 }
0x202c   : > { %v6951_v58 = vadd.f32 %v6936_v9, %v17742_v50  ;;  %13959 = vrot.lane.b32.xlu1 %v13958_v3, %s15574_s12 }
0x202d   : > { %6981 = vrot.lane.b32.xlu0 %v6950_v52, %s15574_s12  ;;  %v6938_v55 = vpop.permute.xlu1 %6937 }
0x202e   : > { %v13988_v48 = vpack.i.bf16 %v6951_v58, %v6950_v52  ;;  %v6952_v63 = vadd.f32 %v6938_v55, %v17740_v56 }
0x2030   : > { %v13968_v13 = vpack.i.bf16 %v6952_v63, %v6951_v58 }
0x2031   : > { %13974 = vrot.lane.b32.xlu0 %v13963_v28, %s15576_s10 }
0x2032   : > { %13969 = vrot.lane.b32.xlu1 %v13968_v13, %s15574_s12 }
0x2036   : > { %13979 = vrot.lane.b32.xlu1 %v13958_v3, %s15576_s10 }
0x209b   : > { %v13965_v36 = vpop.permute.xlu0 %13964 }
0x209c   : > { %v13967_v29 = vunpack.i.h.bf16 %v13965_v36  ;;  %v13966_v30 = vunpack.i.l.bf16 %v13965_v36 }
0x209e   : > { %v13960_v23 = vpop.permute.xlu1 %13959  ;;  %v6995_v19 = vrot.slane %v13967_v29, 4  ;;  %v6994_v17 = vrot.slane %v13966_v30, 4 }
0x209f   : > { %v13962_v2 = vunpack.i.h.bf16 %v13960_v23  ;;  %v13961_v41 = vunpack.i.l.bf16 %v13960_v23  ;;  %v6982_v14 = vpop.permute.xlu0 %6981 }
0x20a0   : > { %v6998_v35 = vrot.slane %v6982_v14, 4  ;;  %v7006_v6 = vsel %vm6609_vm3, %v6994_v17, %v6995_v19 }
0x20a1   : > { %v6997_v28 = vrot.slane %v13962_v2, 4  ;;  %v6996_v16 = vrot.slane %v13961_v41, 4 }
0x20a3   : > { %v7004_v51 = vsel %vm6609_vm3, %v6996_v16, %v6997_v28  ;;  %v7005_v26 = vsel %vm6609_vm3, %v6995_v19, %v6996_v16  ;;  %v7003_v3 = vsel %vm6609_vm3, %v6997_v28, %v6998_v35  ;;  %v13975_v30 = vpop.permute.xlu0 %13974 }
0x20a4   : > { %v13993_v52 = vpack.i.bf16 %v7003_v3, %v7004_v51  ;;  %v13970_v9 = vpop.permute.xlu1 %13969  ;;  %v13983_v58 = vpack.i.bf16 %v7005_v26, %v7006_v6  ;;  %v13977_v23 = vunpack.i.h.bf16 %v13975_v30 }
0x20a5   : > { %v13972_v55 = vunpack.i.h.bf16 %v13970_v9  ;;  %v13971_v25 = vunpack.i.l.bf16 %v13970_v9 }
0x20a6   : > { %13984 = vrot.lane.b32.xlu0 %v13983_v58, %s15574_s12  ;;  %13994 = vrot.lane.b32.xlu1 %v13993_v52, %s15574_s12  ;;  %v7072_v52 = vsel %vm1571_vm1, %v7006_v6, %v13977_v23 }
0x20a7   : > { %v7000_v20 = vrot.slane %v13972_v55, 4  ;;  %v6999_v13 = vrot.slane %v13971_v25, 4 }
0x20a8   : > { %v13980_v15 = vpop.permute.xlu1 %13979 }
0x20a9   : > { %v7001_v1 = vsel %vm6609_vm3, %v6999_v13, %v7000_v20  ;;  %v7002_v33 = vsel %vm6609_vm3, %v6998_v35, %v6999_v13  ;;  %v7007_v0 = vsel %vm6609_vm3, %v7000_v20, %v6994_v17  ;;  %v13982_v19 = vunpack.i.h.bf16 %v13980_v15 }
0x20aa   : > { %13989 = vrot.lane.b32.xlu0 %v13988_v48, %s15576_s10  ;;  %7034 = vrot.lane.b32.xlu1 %v6952_v63, %s15576_s10  ;;  %v13998_v36 = vpack.i.bf16 %v7001_v1, %v7002_v33  ;;  %v7021_v29 = vsel %vm6686_vm4, %v7007_v0, 0.0  ;;  %v13981_v2 = vunpack.i.l.bf16 %v13980_v15  ;;  %v7008_v48 = vsel %vm6624_vm5, %v7007_v0, 0.0 }
0x20ab   : > { %v13976_v63 = vunpack.i.l.bf16 %v13975_v30  ;;  %v7074_v58 = vsel %vm1571_vm1, %v7004_v51, %v13982_v19 }
0x20ac   : > { %v7073_v9 = vsel %vm1571_vm1, %v7005_v26, %v13981_v2 }
0x20ad   : > { %v7071_v55 = vsel %vm1571_vm1, %v7008_v48, %v13976_v63 }
0x20ae   : > { %13999 = vrot.lane.b32.xlu0 %v13998_v36, %s15574_s12  ;;  %7062 = vrot.lane.b32.xlu1 %v7021_v29, %s15574_s12 }
0x2118   : > { %v13985_v41 = vpop.permute.xlu0 %13984  ;;  %v13995_v14 = vpop.permute.xlu1 %13994 }
0x2119   : > { %v13987_v17 = vunpack.i.h.bf16 %v13985_v41  ;;  %v13986_v35 = vunpack.i.l.bf16 %v13985_v41  ;;  %v13997_v28 = vunpack.i.h.bf16 %v13995_v14  ;;  %v13996_v16 = vunpack.i.l.bf16 %v13995_v14 }
0x211b   : > { %v7079_v25 = vsel %vm1615_vm2, %v7072_v52, %v13987_v17  ;;  %v7078_v20 = vsel %vm1615_vm2, %v7071_v55, %v13986_v35  ;;  %v7080_v13 = vsel %vm1615_vm2, %v7073_v9, %v13996_v16  ;;  %v7081_v0 = vsel %vm1615_vm2, %v7074_v58, %v13997_v28  ;;  %v11667_v52 = vld [vmem:[#allocation19 + $0x7] ss:$0 sm:$0xff]  ;;  %v11678_v55 = vld [vmem:[#allocation20 + $0x7] ss:$0 sm:$0xff] }
0x211c   : > { %v7085_v36 = vpack.c.bf16 %v7079_v25, %v7078_v20  ;;  %v7086_v29 = vpack.c.bf16 %v7081_v0, %v7080_v13  ;;  %v13990_v30 = vpop.permute.xlu0 %13989  ;;  %v7035_v15 = vpop.permute.xlu1 %7034  ;;  %v11679_v0 = vld [vmem:[#allocation22 + $0x7] ss:$0 sm:$0xff] }
0x211d   : > { %v13992_v41 = vunpack.i.h.bf16 %v13990_v30  ;;  %v13991_v6 = vunpack.i.l.bf16 %v13990_v30  ;;  %v7077_v23 = vsel %vm1571_vm1, %v7001_v1, %v7035_v15 }
0x211e   : > { %12897 = vmatprep.mubr.msk.bf16.mxu0 %vm2276_vm10, %v7085_v36 }
0x211f   : > { %12898 = vmatmul.mubr.msk.bf16.vlgmr.msra.gmra.mrb[96].mxu0 %vm2276_vm10, %v7086_v29  ;;  %v7076_v48 = vsel %vm1571_vm1, %v7002_v33, %v13992_v41  ;;  %v7075_v63 = vsel %vm1571_vm1, %v7003_v3, %v13991_v6 }
0x2120   : > { %v14000_v51 = vpop.permute.xlu0 %13999  ;;  %v7063_v26 = vpop.permute.xlu1 %7062 }
0x2121   : > { %v14002_v19 = vunpack.i.h.bf16 %v14000_v51  ;;  %v14001_v2 = vunpack.i.l.bf16 %v14000_v51  ;;  %v7084_v14 = vsel %vm1615_vm2, %v7077_v23, %v7063_v26 }
0x2122   : > { %v7088_v16 = vpack.c.bf16 %v7084_v14, %v7084_v14 }
0x2123   : > { %v7082_v17 = vsel %vm1615_vm2, %v7075_v63, %v14001_v2  ;;  %v7083_v35 = vsel %vm1615_vm2, %v7076_v48, %v14002_v19 }
0x2124   : > { %v7087_v28 = vpack.c.bf16 %v7083_v35, %v7082_v17 }
0x2126   : > { %12901 = vmatprep.mubr.msk.bf16.mxu0 %vm2276_vm10, %v7087_v28 }
0x2127   : > { %12902 = vmatmul.mubr.msk.bf16.gmra.mrb[100].mxu0 %vm2276_vm10, %v7088_v16 }
0x21f2   : > { %v12899_v1 = vpop.f32.mrb[96].mxu0 }
0x21f3   : > { %v7188_v9 = vadd.f32 %v12899_v1, %v11667_v52  ;;  %v7179_v58 = vpop.f32.mrb[97].mxu0 }
0x21f4   : > { %v7180_v33 = vadd.f32 %v11667_v52, %v7179_v58  ;;  %v12900_v25 = vpop.f32.mrb[98].mxu0 }
0x21f5   : > { %v7211_v3 = vmax.f32 %v7188_v9, 0.0  ;;  %v7191_v20 = vadd.f32 %v12900_v25, %v11667_v52  ;;  %v7182_v13 = vpop.f32.mrb[99].mxu0 }
0x21f6   : > { %v7209_v36 = vmax.f32 %v7180_v33, 0.0  ;;  %v7183_v29 = vadd.f32 %v11667_v52, %v7182_v13 }
0x21f7   : > { %v7226_v30 = vmul.f32 %v11678_v55, %v7211_v3  ;;  %v7212_v15 = vmax.f32 %v7191_v20, 0.0 }
0x21f8   : > { %v7224_v41 = vmul.f32 %v11678_v55, %v7209_v36  ;;  %v7210_v6 = vmax.f32 %v7183_v29, 0.0 }
0x21f9   : > { %v17904_v51 = vadd.f32 %v11679_v0, %v7226_v30  ;;  %v7227_v26 = vmul.f32 %v11678_v55, %v7212_v15 }
0x21fa   : > { %v7225_v23 = vmul.f32 %v11678_v55, %v7210_v6  ;;  %v12903_v19 = vpop.f32.mrb[100].mxu0  ;;  %v17910_v14 = vadd.f32 %v11679_v0, %v7224_v41 }
0x21fb   : > { %v17906_v2 = vadd.f32 %v11679_v0, %v7227_v26  ;;  %v7204_v48 = vadd.f32 %v12903_v19, %v11667_v52  ;;  %7257 = vrot.lane.b32.xlu0 %v17904_v51, %s15576_s10  ;;  %v7195_v63 = vpop.f32.mrb[101].mxu0 }
0x21fc   : > { %v17912_v17 = vadd.f32 %v11679_v0, %v7225_v23  ;;  %v7196_v35 = vadd.f32 %v11667_v52, %v7195_v63  ;;  %v12904_v28 = vpop.f32.mrb[102].mxu0 }
0x21fd   : > { %v14068_v16 = vpack.i.bf16 %v17906_v2, %v17904_v51  ;;  %v7198_v1 = vpop.f32.mrb[103].mxu0  ;;  %v7215_v58 = vmax.f32 %v7204_v48, 0.0 }
0x21fe   : > { %v14063_v9 = vpack.i.bf16 %v17912_v17, %v17910_v14  ;;  %v7213_v33 = vmax.f32 %v7196_v35, 0.0  ;;  %v7199_v25 = vadd.f32 %v11667_v52, %v7198_v1  ;;  %7255 = vrot.lane.b32.xlu1 %v17912_v17, %s15576_s10 }
0x21ff   : > { %7253 = vrot.lane.b32.xlu0 %v17910_v14, %s15576_s10  ;;  %v7230_v13 = vmul.f32 %v11678_v55, %v7215_v58 }
0x2200   : > { %v7228_v3 = vmul.f32 %v11678_v55, %v7213_v33  ;;  %v7214_v20 = vmax.f32 %v7199_v25, 0.0 }
0x2201   : > { %v17930_v52 = vadd.f32 %v11679_v0, %v7230_v13 }
0x2202   : > { %v17922_v36 = vadd.f32 %v11679_v0, %v7228_v3  ;;  %v7229_v29 = vmul.f32 %v11678_v55, %v7214_v20  ;;  %7259 = vrot.lane.b32.xlu1 %v17906_v2, %s15576_s10 }
0x2204   : > { %v17926_v30 = vadd.f32 %v11679_v0, %v7229_v29  ;;  %7261 = vrot.lane.b32.xlu0 %v17922_v36, %s15576_s10  ;;  %v14288_v29 = vld [vmem:[%s19039_s13 + $0x180] sm:$0xff]  }
0x2205   : > { %12905 = vmatprep.subr.bf16.mxu1 %v14288_v29 }
0x2206   : > { %v14088_v15 = vpack.i.bf16 %v17926_v30, %v17922_v36  ;;  %7263 = vrot.lane.b32.xlu1 %v17926_v30, %s15576_s10  ;;  %12906 = vmatpush3.bf16.msra.mxu1 %v14288_v29 }
0x2208   : > { %7265 = vrot.lane.b32.xlu0 %v17930_v52, %s15576_s10 }
0x226d   : > { %v7258_v55 = vpop.permute.xlu0 %7257 }
0x226e   : > { %v7276_v0 = vadd.f32 %v7258_v55, %v17722_v12  ;;  %v14289_v55 = vld [vmem:[%s19039_s13 + $0x188] sm:$0xff]  }
0x226f   : > { %12907 = vmatprep.subr.bf16.mxu1 %v14289_v55 }
0x2270   : > { %v7256_v41 = vpop.permute.xlu1 %7255  ;;  %12908 = vmatpush3.bf16.msra.mxu1 %v14289_v55 }
0x2271   : > { %v7275_v6 = vadd.f32 %v7256_v41, %v17728_v39  ;;  %v7254_v26 = vpop.permute.xlu0 %7253  ;;  %v14290_v41 = vld [vmem:[%s19039_s13 + $0x190] sm:$0xff]  }
0x2272   : > { %v7274_v23 = vadd.f32 %v7254_v26, %v17726_v18  ;;  %12909 = vmatprep.subr.bf16.mxu1 %v14290_v41  ;;  %v14292_v26 = vld [vmem:[%s19039_s13 + $0x1a0] sm:$0xff]  }
0x2274   : > { %v14008_v19 = vpack.i.bf16 %v7275_v6, %v7274_v23  ;;  %v7260_v48 = vpop.permute.xlu1 %7259  ;;  %v14291_v6 = vld [vmem:[%s19039_s13 + $0x198] sm:$0xff]   ;;  %12910 = vmatpush3.bf16.msra.mxu1 %v14290_v41 }
0x2275   : > { %v7277_v63 = vadd.f32 %v7260_v48, %v17724_v22  ;;  %12911 = vmatprep.subr.bf16.mxu1 %v14291_v6 }
0x2276   : > { %14009 = vrot.lane.b32.xlu1 %v14008_v19, %s15573_s26  ;;  %v7262_v35 = vpop.permute.xlu0 %7261 }
0x2277   : > { %v14003_v28 = vpack.i.bf16 %v7277_v63, %v7276_v0  ;;  %v7278_v1 = vadd.f32 %v7262_v35, %v17736_v49  ;;  %v14293_v0 = vld [vmem:[%s19039_s13 + $0x1a8] sm:$0xff]  }
0x2278   : > { %v7264_v58 = vpop.permute.xlu1 %7263  ;;  %12912 = vmatpush3.bf16.msra.mxu1 %v14291_v6 }
0x2279   : > { %v7279_v33 = vadd.f32 %v7264_v58, %v17742_v50  ;;  %14004 = vrot.lane.b32.xlu0 %v14003_v28, %s15573_s26  ;;  %12913 = vmatprep.subr.bf16.mxu1 %v14292_v26 }
0x227a   : > { %7309 = vrot.lane.b32.xlu1 %v7278_v1, %s15573_s26  ;;  %v7266_v25 = vpop.permute.xlu0 %7265 }
0x227b   : > { %v14038_v3 = vpack.i.bf16 %v7279_v33, %v7278_v1  ;;  %v7280_v20 = vadd.f32 %v7266_v25, %v17740_v56 }
0x227c   : > { %12914 = vmatpush3.bf16.msra.mxu1 %v14292_v26 }
0x227d   : > { %v14013_v13 = vpack.i.bf16 %v7280_v20, %v7279_v33  ;;  %12915 = vmatprep.subr.bf16.mxu1 %v14293_v0 }
0x227e   : > { %14019 = vrot.lane.b32.xlu1 %v14008_v19, %s15574_s12 }
0x227f   : > { %14014 = vrot.lane.b32.xlu0 %v14013_v13, %s15573_s26 }
0x2280   : > { %12916 = vmatpush3.bf16.msra.mxu1 %v14293_v0 }
0x2281   : > { %12949 = vmatprep.subr.bf16.mxu1 %v19051_v8 }
0x2283   : > { %14024 = vrot.lane.b32.xlu0 %v14003_v28, %s15574_s12 }
0x22e8   : > { %v14010_v23 = vpop.permute.xlu1 %14009 }
0x22e9   : > { %v14012_v19 = vunpack.i.h.bf16 %v14010_v23  ;;  %v14011_v48 = vunpack.i.l.bf16 %v14010_v23 }
0x22eb   : > { %v14005_v63 = vpop.permute.xlu0 %14004  ;;  %v7323_v35 = vrot.slane %v14012_v19, 4  ;;  %v7322_v28 = vrot.slane %v14011_v48, 4 }
0x22ec   : > { %v14007_v1 = vunpack.i.h.bf16 %v14005_v63  ;;  %v14006_v58 = vunpack.i.l.bf16 %v14005_v63  ;;  %v7310_v33 = vpop.permute.xlu1 %7309 }
0x22ed   : > { %v7326_v25 = vrot.slane %v7310_v33, 4  ;;  %v7334_v55 = vsel %vm6609_vm3, %v7322_v28, %v7323_v35 }
0x22ee   : > { %v7325_v13 = vrot.slane %v14007_v1, 4  ;;  %v7324_v29 = vrot.slane %v14006_v58, 4 }
0x22f0   : > { %v7332_v41 = vsel %vm6609_vm3, %v7324_v29, %v7325_v13  ;;  %v7333_v6 = vsel %vm6609_vm3, %v7323_v35, %v7324_v29  ;;  %v7331_v26 = vsel %vm6609_vm3, %v7325_v13, %v7326_v25  ;;  %v14020_v5 = vpop.permute.xlu1 %14019 }
0x22f1   : > { %v14033_v23 = vpack.i.bf16 %v7331_v26, %v7332_v41  ;;  %v14015_v19 = vpop.permute.xlu0 %14014  ;;  %v14028_v48 = vpack.i.bf16 %v7333_v6, %v7334_v55  ;;  %v14022_v11 = vunpack.i.h.bf16 %v14020_v5 }
0x22f2   : > { %v14017_v0 = vunpack.i.h.bf16 %v14015_v19  ;;  %v14016_v63 = vunpack.i.l.bf16 %v14015_v19 }
0x22f3   : > { %14029 = vrot.lane.b32.xlu1 %v14028_v48, %s15574_s12  ;;  %14034 = vrot.lane.b32.xlu0 %v14033_v23, %s15574_s12  ;;  %v7400_v43 = vsel %vm1571_vm1, %v7334_v55, %v14022_v11 }
0x22f4   : > { %v7328_v1 = vrot.slane %v14017_v0, 4  ;;  %v7327_v58 = vrot.slane %v14016_v63, 4 }
0x22f5   : > { %v14025_v44 = vpop.permute.xlu0 %14024 }
0x22f6   : > { %v7335_v33 = vsel %vm6609_vm3, %v7328_v1, %v7322_v28  ;;  %v7329_v35 = vsel %vm6609_vm3, %v7327_v58, %v7328_v1  ;;  %v7330_v13 = vsel %vm6609_vm3, %v7326_v25, %v7327_v58  ;;  %v14027_v54 = vunpack.i.h.bf16 %v14025_v44 }
0x22f7   : > { %v7349_v29 = vsel %vm6686_vm4, %v7335_v33, 0.0  ;;  %14039 = vrot.lane.b32.xlu1 %v14038_v3, %s15574_s12  ;;  %v14043_v19 = vpack.i.bf16 %v7330_v13, %v7280_v20  ;;  %v14026_v7 = vunpack.i.l.bf16 %v14025_v44 }
0x22f8   : > { %v14048_v48 = vpack.i.bf16 %v7349_v29, %v7329_v35 }
0x22f9   : > { %14044 = vrot.lane.b32.xlu0 %v14043_v19, %s15574_s12  ;;  %v7401_v42 = vsel %vm1571_vm1, %v7333_v6, %v14026_v7 }
0x22fb   : > { %14049 = vrot.lane.b32.xlu1 %v14048_v48, %s15574_s12 }
0x22fd   : > { %14054 = vrot.lane.b32.xlu0 %v14053_v40, %s15573_s26  ;;  %v14021_v40 = vunpack.i.l.bf16 %v14020_v5 }
0x22ff   : > { %14059 = vrot.lane.b32.xlu1 %v14058_v4, %s15573_s26  ;;  %v7336_v4 = vsel %vm6624_vm5, %v7335_v33, 0.0 }
0x2301   : > { %14064 = vrot.lane.b32.xlu0 %v14063_v9, %s15574_s12 }
0x2303   : > { %14069 = vrot.lane.b32.xlu1 %v14068_v16, %s15574_s12 }
0x2305   : > { %14074 = vrot.lane.b32.xlu0 %v14073_v10, %s15573_s26  ;;  %v7399_v10 = vsel %vm1571_vm1, %v7336_v4, %v14021_v40  ;;  %v14297_v40 = vld [vmem:[#allocation23 + $0x98] sm:$0xff]  }
0x2307   : > { %7586 = vrot.lane.b32.xlu1 %v17835_v59, %s15573_s26  ;;  %v7402_v59 = vsel %vm1571_vm1, %v7332_v41, %v14027_v54  ;;  %s1502_s26 = sand.u32 1, %s15494_s0  }
0x2308   : > { %s1503_s7 = scalar_lea.vmem [#allocation46], %s1502_s26  ;;  %s10845_s1 = scalar_lea.sflag [#allocation4], %s1502_s26 }
0x2309   : > { %s10857_s11 = sshll.u32 %s1503_s7, 4  ;;  %s18841_s11 = int_to_ptr.vmem [resolvable:$true] %s10857_s11 }
0x2365   : > { %v14030_v14 = vpop.permute.xlu1 %14029  ;;  %v14035_v51 = vpop.permute.xlu0 %14034 }
0x2366   : > { %v14032_v2 = vunpack.i.h.bf16 %v14030_v14  ;;  %v14031_v17 = vunpack.i.l.bf16 %v14030_v14  ;;  %v14037_v16 = vunpack.i.h.bf16 %v14035_v51  ;;  %v14036_v9 = vunpack.i.l.bf16 %v14035_v51  ;;  %v14298_v14 = vld [vmem:[#allocation23 + $0xa0] sm:$0xff]   ;;  %v14299_v51 = vld [vmem:[#allocation23 + $0xa8] sm:$0xff]  }
0x2368   : > { %v7407_v3 = vsel %vm1615_vm2, %v7400_v43, %v14032_v2  ;;  %v7406_v62 = vsel %vm1615_vm2, %v7399_v10, %v14031_v17  ;;  %v7408_v20 = vsel %vm1615_vm2, %v7401_v42, %v14036_v9  ;;  %v7409_v28 = vsel %vm1615_vm2, %v7402_v59, %v14037_v16  ;;  %v14300_v2 = vld [vmem:[#allocation23 + $0xb0] sm:$0xff]   ;;  %v11692_v17 = vld [vmem:[#allocation19 + $0x8] ss:$0 sm:$0xff] }
0x2369   : > { %v7413_v25 = vpack.c.bf16 %v7407_v3, %v7406_v62  ;;  %v7414_v23 = vpack.c.bf16 %v7409_v28, %v7408_v20  ;;  %v14040_v0 = vpop.permute.xlu1 %14039  ;;  %v11703_v42 = vld [vmem:[#allocation20 + $0x8] ss:$0 sm:$0xff]  ;;  %v14301_v28 = vld [vmem:[#allocation23 + $0xb8] sm:$0xff]  }
0x236a   : > { %v14041_v63 = vunpack.i.l.bf16 %v14040_v0  ;;  %v14042_v1 = vunpack.i.h.bf16 %v14040_v0 }
0x236b   : > { %12917 = vmatprep.mubr.msk.bf16.mxu1 %vm2276_vm10, %v7413_v25  ;;  %v14045_v55 = vpop.permute.xlu0 %14044 }
0x236c   : > { %v14047_v6 = vunpack.i.h.bf16 %v14045_v55  ;;  %v14046_v41 = vunpack.i.l.bf16 %v14045_v55  ;;  %12918 = vmatmul.mubr.msk.bf16.vlgmr.msra.gmra.mrb[80].mxu1 %vm2276_vm10, %v7414_v23  ;;  %v7403_v58 = vsel %vm1571_vm1, %v7331_v26, %v14041_v63  ;;  %v7404_v5 = vsel %vm1571_vm1, %v7330_v13, %v14042_v1  ;;  %v14294_v26 = vld [vmem:[#allocation23 + $0x80] sm:$0xff]   ;;  %v14296_v13 = vld [vmem:[#allocation23 + $0x90] sm:$0xff]   ;;  %v11704_v1 = vld [vmem:[#allocation22 + $0x8] ss:$0 sm:$0xff] }
0x236d   : > { %v14050_v33 = vpop.permute.xlu1 %14049  ;;  %12925 = vmatprep.subr.bf16.mxu0 %v14294_v26 }
0x236e   : > { %v7405_v29 = vsel %vm1571_vm1, %v7329_v35, %v14046_v41  ;;  %v14052_v19 = vunpack.i.h.bf16 %v14050_v33  ;;  %v14051_v48 = vunpack.i.l.bf16 %v14050_v33  ;;  %v7410_v44 = vsel %vm1615_vm2, %v7403_v58, %v14047_v6  ;;  %v14295_v35 = vld [vmem:[#allocation23 + $0x88] sm:$0xff]   ;;  %12926 = vmatpush3.bf16.msra.mxu0 %v14294_v26 }
0x236f   : > { %12927 = vmatprep.subr.bf16.mxu0 %v14295_v35 }
0x2370   : > { %v7411_v11 = vsel %vm1615_vm2, %v7404_v5, %v14051_v48  ;;  %v7412_v54 = vsel %vm1615_vm2, %v7405_v29, %v14052_v19 }
0x2371   : > { %v7415_v7 = vpack.c.bf16 %v7411_v11, %v7410_v44  ;;  %v7416_v4 = vpack.c.bf16 %v7412_v54, %v7412_v54 }
0x2372   : > { %12928 = vmatpush3.bf16.msra.mxu0 %v14295_v35 }
0x2373   : > { %12921 = vmatprep.mubr.msk.bf16.mxu1 %vm2276_vm10, %v7415_v7  ;;  %12929 = vmatprep.subr.bf16.mxu0 %v14296_v13 }
0x2374   : > { %12922 = vmatmul.mubr.msk.bf16.gmra.mrb[84].mxu1 %vm2276_vm10, %v7416_v4 }
0x2375   : > { %12965 = vmatprep.mubr.msk.bf16.mxu1 %vm15578_vm12, %v19051_v8 }
0x2376   : > { %12930 = vmatpush3.bf16.msra.mxu0 %v14296_v13 }
0x2377   : > { %12931 = vmatprep.subr.bf16.mxu0 %v14297_v40 }
0x237a   : > { %12932 = vmatpush3.bf16.msra.mxu0 %v14297_v40 }
0x237b   : > { %12933 = vmatprep.subr.bf16.mxu0 %v14298_v14 }
0x237e   : > { %12934 = vmatpush3.bf16.msra.mxu0 %v14298_v14 }
0x237f   : > { %12935 = vmatprep.subr.bf16.mxu0 %v14299_v51 }
0x2382   : > { %12936 = vmatpush3.bf16.msra.mxu0 %v14299_v51 }
0x2383   : > { %12937 = vmatprep.subr.bf16.mxu0 %v14300_v2 }
0x2386   : > { %12938 = vmatpush3.bf16.msra.mxu0 %v14300_v2 }
0x2387   : > { %12939 = vmatprep.subr.bf16.mxu0 %v14301_v28 }
0x238a   : > { %12940 = vmatpush3.bf16.msra.mxu0 %v14301_v28 }
0x243f   : > { %v12919_v16 = vpop.f32.mrb[80].mxu1 }
0x2440   : > { %v7516_v9 = vadd.f32 %v12919_v16, %v11692_v17  ;;  %v7507_v43 = vpop.f32.mrb[81].mxu1 }
0x2441   : > { %v7508_v59 = vadd.f32 %v11692_v17, %v7507_v43  ;;  %v12920_v10 = vpop.f32.mrb[82].mxu1 }
0x2442   : > { %v7539_v3 = vmax.f32 %v7516_v9, 0.0  ;;  %v7519_v62 = vadd.f32 %v12920_v10, %v11692_v17  ;;  %v7510_v20 = vpop.f32.mrb[83].mxu1 }
0x2443   : > { %v7537_v25 = vmax.f32 %v7508_v59, 0.0  ;;  %v7511_v23 = vadd.f32 %v11692_v17, %v7510_v20 }
0x2444   : > { %v7554_v0 = vmul.f32 %v11703_v42, %v7539_v3  ;;  %v7540_v63 = vmax.f32 %v7519_v62, 0.0  ;;  %v14060_v3 = vpop.permute.xlu1 %14059  ;;  %v14055_v62 = vpop.permute.xlu0 %14054 }
0x2445   : > { %v7552_v55 = vmul.f32 %v11703_v42, %v7537_v25  ;;  %v7538_v6 = vmax.f32 %v7511_v23, 0.0  ;;  %v14057_v28 = vunpack.i.h.bf16 %v14055_v62  ;;  %v14056_v25 = vunpack.i.l.bf16 %v14055_v62 }
0x2446   : > { %v7555_v41 = vmul.f32 %v11703_v42, %v7540_v63  ;;  %v7569_v29 = vadd.f32 %v11704_v1, %v7554_v0  ;;  %v14062_v23 = vunpack.i.h.bf16 %v14060_v3  ;;  %v14061_v0 = vunpack.i.l.bf16 %v14060_v3 }
0x2447   : > { %v7553_v58 = vmul.f32 %v11703_v42, %v7538_v6  ;;  %v12923_v33 = vpop.f32.mrb[84].mxu1  ;;  %v7567_v44 = vadd.f32 %v11704_v1, %v7552_v55 }
0x2448   : > { %v7570_v19 = vadd.f32 %v11704_v1, %v7555_v41  ;;  %v7532_v48 = vadd.f32 %v12923_v33, %v11692_v17  ;;  %v7523_v5 = vpop.f32.mrb[85].mxu1  ;;  %v14070_v20 = vpop.permute.xlu1 %14069  ;;  %v7646_v33 = vsel %vm1571_vm1, %v17722_v12, %v14061_v0  ;;  %v14303_v0 = vld [vmem:[%s19041_s4 + $0x88] sm:$0xff]  }
0x2449   : > { %v7568_v11 = vadd.f32 %v11704_v1, %v7553_v58  ;;  %v7524_v54 = vadd.f32 %v11692_v17, %v7523_v5  ;;  %v12924_v7 = vpop.f32.mrb[86].mxu1  ;;  %v14072_v55 = vunpack.i.h.bf16 %v14070_v20  ;;  %v14071_v6 = vunpack.i.l.bf16 %v14070_v20 }
0x244a   : > { %v14078_v4 = vpack.i.bf16 %v7570_v19, %v7569_v29  ;;  %v7543_v26 = vmax.f32 %v7532_v48, 0.0  ;;  %v7526_v35 = vpop.f32.mrb[87].mxu1  ;;  %v7647_v58 = vsel %vm1571_vm1, %v17724_v22, %v14062_v23  ;;  %v14302_v23 = vld [vmem:[%s19041_s4 + $0x80] sm:$0xff]  }
0x244b   : > { %v14083_v13 = vpack.i.bf16 %v7568_v11, %v7567_v44  ;;  %v7541_v40 = vmax.f32 %v7524_v54, 0.0  ;;  %v7527_v14 = vadd.f32 %v11692_v17, %v7526_v35  ;;  %v7653_v5 = vsel %vm1615_vm2, %v7646_v33, %v14071_v6  ;;  %12950 = vmatpush3.bf16.msra.mxu1 %v14302_v23  ;;  %v14306_v6 = vld [vmem:[%s19041_s4 + $0xa0] sm:$0xff]  }
0x244c   : > { %14079 = vrot.lane.b32.xlu1 %v14078_v4, %s15576_s10  ;;  %v7558_v16 = vmul.f32 %v11703_v42, %v7543_v26  ;;  %v7654_v44 = vsel %vm1615_vm2, %v7647_v58, %v14072_v55  ;;  %12951 = vmatprep.subr.bf16.mxu1 %v19051_v8  ;;  %v14305_v55 = vld [vmem:[%s19041_s4 + $0x98] sm:$0xff]  }
0x244d   : > { %v7556_v51 = vmul.f32 %v11703_v42, %v7541_v40  ;;  %v7542_v2 = vmax.f32 %v7527_v14, 0.0  ;;  %14084 = vrot.lane.b32.xlu0 %v14083_v13, %s15576_s10 }
0x244e   : > { %v7573_v10 = vadd.f32 %v11704_v1, %v7558_v16 }
0x244f   : > { %v7557_v9 = vmul.f32 %v11703_v42, %v7542_v2  ;;  %v7571_v43 = vadd.f32 %v11704_v1, %v7556_v51  ;;  %v14065_v42 = vpop.permute.xlu0 %14064  ;;  %12952 = vmatpush3.bf16.msra.mxu1 %v14303_v0 }
0x2450   : > { %7607 = vrot.lane.b32.xlu1 %v17930_v52, %s15574_s12  ;;  %v7587_v52 = vpop.permute.xlu1 %7586  ;;  %v14067_v36 = vunpack.i.h.bf16 %v14065_v42  ;;  %v14066_v30 = vunpack.i.l.bf16 %v14065_v42  ;;  %12953 = vmatprep.subr.bf16.mxu1 %v19051_v8 }
0x2451   : > { %v7572_v59 = vadd.f32 %v11704_v1, %v7557_v9  ;;  %14089 = vrot.lane.b32.xlu0 %v14088_v15, %s15574_s12  ;;  %v7645_v15 = vsel %vm1571_vm1, %v17728_v39, %v14057_v28  ;;  %v7644_v1 = vsel %vm1571_vm1, %v17726_v18, %v14056_v25  ;;  %s19064_s12 = sld [smem:[#allocation95_spill]] }
0x2452   : > { %v7651_v39 = vsel %vm1615_vm2, %v7644_v1, %v14066_v30  ;;  %v7652_v18 = vsel %vm1615_vm2, %v7645_v15, %v14067_v36  ;;  %v14307_v36 = vld [vmem:[%s19041_s4 + $0xa8] sm:$0xff]   ;;  %v14308_v30 = vld [vmem:[%s19041_s4 + $0xb0] sm:$0xff]   ;;  %v14309_v15 = vld [vmem:[%s19041_s4 + $0xb8] sm:$0xff]  }
0x2453   : > { %v14093_v17 = vpack.i.bf16 %v7572_v59, %v7571_v43  ;;  %v14075_v63 = vpop.permute.xlu0 %14074  ;;  %v7650_v59 = vsel %vm1571_vm1, %v17740_v56, %v7587_v52  ;;  %v11705_v1 = vld [vmem:[#allocation25 + $0x2] ss:$0 sm:$0xff] }
0x2454   : > { %7635 = vrot.lane.b32.xlu1 %v7573_v10, %s15576_s10  ;;  %v14077_v35 = vunpack.i.h.bf16 %v14075_v63  ;;  %v14076_v14 = vunpack.i.l.bf16 %v14075_v63  ;;  %v14304_v63 = vld [vmem:[%s19041_s4 + $0x90] sm:$0xff]  }
0x2455   : > { %14094 = vrot.lane.b32.xlu0 %v14093_v17, %s15576_s10  ;;  %12954 = vmatpush3.bf16.msra.mxu1 %v14304_v63  ;;  %s12047_s10 = sshll.u32 %s15796_s15, 4  ;;  %s15384_s15 = sshll.u32 %s15579_s3, 4  ;;  %s15385_s15 = int_to_ptr.vmem [resolvable:$false] %s15384_s15 }
0x2456   : > { %v7649_v43 = vsel %vm1571_vm1, %v17742_v50, %v14077_v35  ;;  %v7648_v17 = vsel %vm1571_vm1, %v17736_v49, %v14076_v14  ;;  %12955 = vmatprep.subr.bf16.mxu1 %v19051_v8  ;;  %s15386_s4 = scalar_lea.vmem %s15385_s15, 32  ;;  %p15387_p2 = scmp.lt.s32.totalorder %s18841_s11, %s15385_s15 }
0x2457   : > { %p19065_p10 = scmp.ne.s32.totalorder %s19064_s12, 0 }
0x2459   : > { %12956 = vmatpush3.bf16.msra.mxu1 %v14305_v55 }
0x245a   : > { %12957 = vmatprep.subr.bf16.mxu1 %v19051_v8 }
0x245d   : > { %12958 = vmatpush3.bf16.msra.mxu1 %v14306_v6 }
0x245e   : > { %12959 = vmatprep.subr.bf16.mxu1 %v19051_v8 }
0x2461   : > { %12960 = vmatpush3.bf16.msra.mxu1 %v14307_v36 }
0x2462   : > { %12961 = vmatprep.subr.bf16.mxu1 %v19051_v8 }
0x2465   : > { %12962 = vmatpush3.bf16.msra.mxu1 %v14308_v30 }
0x2466   : > { %12963 = vmatprep.subr.bf16.mxu1 %v19051_v8 }
0x2469   : > { %12964 = vmatpush3.bf16.msra.mxu1 %v14309_v15 }
0x246a   : > { %12969 = vmatprep.subr.bf16.mxu1 %v19051_v8 }
0x24be   : > { %v14080_v41 = vpop.permute.xlu1 %14079 }
0x24bf   : > { %v14082_v29 = vunpack.i.h.bf16 %v14080_v41  ;;  %v14081_v19 = vunpack.i.l.bf16 %v14080_v41  ;;  %v14085_v48 = vpop.permute.xlu0 %14084 }
0x24c0   : > { %v14087_v11 = vunpack.i.h.bf16 %v14085_v48  ;;  %v14086_v54 = vunpack.i.l.bf16 %v14085_v48 }
0x24c1   : > { %v7661_v7 = vsel %vm2276_vm10, %v7654_v44, %v14082_v29  ;;  %v7660_v22 = vsel %vm2276_vm10, %v7653_v5, %v14081_v19  ;;  %v11714_v5 = vld [vmem:[#allocation26 + $0x2] ss:$0 sm:$0xff] }
0x24c2   : > { %v7608_v4 = vpop.permute.xlu1 %7607  ;;  %v7658_v12 = vsel %vm2276_vm10, %v7651_v39, %v14086_v54  ;;  %v7659_v26 = vsel %vm2276_vm10, %v7652_v18, %v14087_v11  ;;  %v7666_v51 = vpack.c.bf16 %v7661_v7, %v7660_v22 }
0x24c3   : > { %v14090_v13 = vpop.permute.xlu0 %14089  ;;  %v7665_v40 = vpack.c.bf16 %v7659_v26, %v7658_v12  ;;  %v7657_v3 = vsel %vm1615_vm2, %v7650_v59, %v7608_v4  ;;  %v11715_v12 = vld [vmem:[#allocation28 + $0x2] ss:$0 sm:$0xff] }
0x24c4   : > { %v14092_v2 = vunpack.i.h.bf16 %v14090_v13  ;;  %v14091_v16 = vunpack.i.l.bf16 %v14090_v13 }
0x24c5   : > { %12941 = vmatprep.mubr.bf16.mxu0 %v7665_v40 }
0x24c6   : > { %v7636_v9 = vpop.permute.xlu1 %7635  ;;  %12942 = vmatmul.mubr.bf16.vlgmr.msra.gmra.mrb[104].mxu0 %v7666_v51  ;;  %v7656_v42 = vsel %vm1615_vm2, %v7649_v43, %v14092_v2  ;;  %v7655_v28 = vsel %vm1615_vm2, %v7648_v17, %v14091_v16 }
0x24c7   : > { %v14095_v10 = vpop.permute.xlu0 %14094  ;;  %v7664_v50 = vsel %vm2276_vm10, %v7657_v3, %v7636_v9 }
0x24c8   : > { %v14097_v62 = vunpack.i.h.bf16 %v14095_v10  ;;  %v14096_v20 = vunpack.i.l.bf16 %v14095_v10  ;;  %v7668_v49 = vpack.c.bf16 %v7664_v50, %v7664_v50 }
0x24ca   : > { %v7662_v25 = vsel %vm2276_vm10, %v7655_v28, %v14096_v20  ;;  %v7663_v56 = vsel %vm2276_vm10, %v7656_v42, %v14097_v62 }
0x24cb   : > { %v7667_v52 = vpack.c.bf16 %v7663_v56, %v7662_v25 }
0x24cd   : > { %12945 = vmatprep.mubr.bf16.mxu0 %v7667_v52 }
0x24ce   : > { %12946 = vmatmul.mubr.bf16.gmra.mrb[108].mxu0 %v7668_v49 }
0x24cf   : > { %8249 = vmatprep.mubr.bf16.mxu0 %v19053_v27 }
0x2599   : > { %v12943_v41 = vpop.f32.mrb[104].mxu0 }
0x259a   : > { %v7785_v58 = vadd.f32 %v12943_v41, %v11705_v1  ;;  %v7776_v33 = vpop.f32.mrb[105].mxu0 }
0x259b   : > { %v7777_v29 = vadd.f32 %v11705_v1, %v7776_v33  ;;  %v12944_v19 = vpop.f32.mrb[106].mxu0 }
0x259c   : > { %v7808_v48 = vmax.f32 %v7785_v58, 0.0  ;;  %v7788_v44 = vadd.f32 %v12944_v19, %v11705_v1  ;;  %v7779_v11 = vpop.f32.mrb[107].mxu0  ;;  %v14310_v19 = vld [vmem:[%s19043_s18 + $0x20] sm:$0xff]  }
0x259d   : > { %v7806_v54 = vmax.f32 %v7777_v29, 0.0  ;;  %v7780_v39 = vadd.f32 %v11705_v1, %v7779_v11 }
0x259e   : > { %v7809_v7 = vmax.f32 %v7788_v44, 0.0  ;;  %v7823_v4 = vmul.f32 %v11714_v5, %v7808_v48  ;;  %v14311_v48 = vld [vmem:[%s19043_s18 + $0x28] sm:$0xff]  }
0x259f   : > { %v7821_v18 = vmul.f32 %v11714_v5, %v7806_v54  ;;  %v7807_v22 = vmax.f32 %v7780_v39, 0.0 }
0x25a0   : > { %v7824_v51 = vmul.f32 %v11714_v5, %v7809_v7  ;;  %v18082_v43 = vadd.f32 %v11715_v12, %v7823_v4  ;;  %v14314_v4 = vld [vmem:[%s19054_s2 + $0x184] ss:$12 sps:$4 sm:$0xff]  }
0x25a1   : > { %v7822_v26 = vmul.f32 %v11714_v5, %v7807_v22  ;;  %v12947_v35 = vpop.f32.mrb[108].mxu0  ;;  %v18078_v14 = vadd.f32 %v11715_v12, %v7821_v18  ;;  %8217 = vmatprep.subr.bf16.mxu0 %v14314_v4 }
0x25a2   : > { %v7801_v13 = vadd.f32 %v12947_v35, %v11705_v1  ;;  %v7792_v40 = vpop.f32.mrb[109].mxu0  ;;  %v18086_v20 = vadd.f32 %v11715_v12, %v7824_v51  ;;  %v14318_v35 = vld [vmem:[%s19054_s2 + $0x19c] ss:$12 sps:$4 sm:$0xff]   ;;  %v14322_v51 = vld [vmem:[%s19054_s2 + $0x1b4] ss:$12 sps:$4 sm:$0xff]  }
0x25a3   : > { %v18080_v2 = vadd.f32 %v11715_v12, %v7822_v26  ;;  %v7793_v16 = vadd.f32 %v11705_v1, %v7792_v40  ;;  %v12948_v9 = vpop.f32.mrb[110].mxu0  ;;  %v14315_v26 = vld [vmem:[%s19054_s2 + $0x188] ss:$12 sps:$4 sm:$0xff]   ;;  %v14319_v40 = vld [vmem:[%s19054_s2 + $0x1a0] ss:$12 sps:$4 sm:$0xff]  }
0x25a4   : > { %v7795_v59 = vpop.f32.mrb[111].mxu0  ;;  %v7812_v17 = vmax.f32 %v7801_v13, 0.0  ;;  %v14316_v13 = vld [vmem:[%s19054_s2 + $0x198] ss:$12 sps:$4 sm:$0xff]  }
0x25a5   : > { %v7843_v10 = vadd.f32 %v18080_v2, %v18078_v14  ;;  %v7810_v3 = vmax.f32 %v7793_v16, 0.0  ;;  %v7796_v62 = vadd.f32 %v11705_v1, %v7795_v59  ;;  %v14320_v16 = vld [vmem:[%s19054_s2 + $0x1b0] ss:$12 sps:$4 sm:$0xff]   ;;  %v14323_v9 = vld [vmem:[%s19054_s2 + $0x1b8] ss:$12 sps:$4 sm:$0xff]  }
0x25a6   : > { %v7827_v25 = vmul.f32 %v11714_v5, %v7812_v17  ;;  %v14326_v59 = vld [vmem:[%s19054_s2 + $0x1cc] ss:$12 sps:$4 sm:$0xff]   ;;  %v14327_v17 = vld [vmem:[%s19054_s2 + $0x1d0] ss:$12 sps:$4 sm:$0xff]  }
0x25a7   : > { %v7844_v42 = vadd.f32 %v7843_v10, %v18082_v43  ;;  %v7825_v28 = vmul.f32 %v11714_v5, %v7810_v3  ;;  %v7811_v50 = vmax.f32 %v7796_v62, 0.0  ;;  %v14324_v10 = vld [vmem:[%s19054_s2 + $0x1c8] ss:$12 sps:$4 sm:$0xff]   ;;  %v14330_v3 = vld [vmem:[%s19054_s2 + $0x1e4] ss:$12 sps:$4 sm:$0xff]  }
0x25a8   : > { %v18095_v63 = vadd.f32 %v11715_v12, %v7827_v25  ;;  %v14328_v62 = vld [vmem:[%s19054_s2 + $0x1e0] ss:$12 sps:$4 sm:$0xff]   ;;  %v14332_v25 = vld [vmem:[%s19054_s2 + $0x1f8] ss:$12 sps:$4 sm:$0xff]  }
0x25a9   : > { %v18089_v56 = vadd.f32 %v11715_v12, %v7825_v28  ;;  %v7845_v52 = vadd.f32 %v7844_v42, %v18086_v20  ;;  %v7826_v49 = vmul.f32 %v11714_v5, %v7811_v50  ;;  %v7875_v5 = vld [vmem:[#allocation29 + $0x2] sm:$0x1]  ;;  %v14331_v42 = vld [vmem:[%s19054_s2 + $0x1e8] ss:$12 sps:$4 sm:$0xff]  }
0x25aa   : > { %v14334_v28 = vld [vmem:[%s19054_s2 + $0x1fc] ss:$12 sps:$4 sm:$0xff]   ;;  %v14335_v50 = vld [vmem:[%s19054_s2 + $0x200] ss:$12 sps:$4 sm:$0xff]  }
0x25ab   : > { %v7846_v23 = vadd.f32 %v7845_v52, %v18089_v56  ;;  %v18093_v0 = vadd.f32 %v11715_v12, %v7826_v49  ;;  %v14312_v12 = vld [vmem:[%s19054_s2 + $0x180] ss:$12 sps:$4 sm:$0xff]   ;;  %v14339_v49 = vld [vmem:[%s19054_s2 + $0x218] ss:$12 sps:$4 sm:$0xff]  }
0x25ac   : > { %8218 = vmatpush1.bf16.msra.mxu0 %v14312_v12  ;;  %v14338_v52 = vld [vmem:[%s19054_s2 + $0x214] ss:$12 sps:$4 sm:$0xff]  }
0x25ad   : > { %v7847_v55 = vadd.f32 %v7846_v23, %v18093_v0  ;;  %8219 = vmatprep.subr.bf16.mxu0 %v14318_v35  ;;  %v14336_v23 = vld [vmem:[%s19054_s2 + $0x210] ss:$12 sps:$4 sm:$0xff]  }
0x25af   : > { %v7848_v6 = vadd.f32 %v7847_v55, %v18095_v63  ;;  %v14342_v55 = vld [vmem:[%s19054_s2 + $0x22c] ss:$12 sps:$4 sm:$0xff]  }
0x25b0   : > { %8220 = vmatpush1.bf16.msra.mxu0 %v14316_v13 }
0x25b1   : > { %v7849_v36 = vrot.slane %v7848_v6, 4  ;;  %8221 = vmatprep.subr.bf16.mxu0 %v14322_v51  ;;  %v14352_v51 = vld [vmem:[%s19056_s23 + $0x160] sm:$0xff]  }
0x25b3   : > { %v7850_v30 = vadd.f32 %v7849_v36, %v7848_v6  ;;  %v14343_v6 = vld [vmem:[%s19054_s2 + $0x230] ss:$12 sps:$4 sm:$0xff]   ;;  %v14340_v36 = vld [vmem:[%s19054_s2 + $0x228] ss:$12 sps:$4 sm:$0xff]   ;;  %s15380_s2 = scalar_lea.vmem %s18841_s11, 16 }
0x25b4   : > { %8222 = vmatpush1.bf16.msra.mxu0 %v14320_v16  ;;  %v14353_v16 = vld [vmem:[%s19056_s23 + $0x110] sm:$0xff]   ;;  %p15381_p9 = scmp.ne.s32.totalorder %s18841_s11, %s15380_s2  ;;  %p15388_p3 = scmp.lt.s32.totalorder %s15386_s4, %s15380_s2 }
0x25b5   : > { %v7851_v15 = vrot.slane %v7850_v30, 2  ;;  %8223 = vmatprep.subr.bf16.mxu0 %v14326_v59  ;;  %v14355_v59 = vld [vmem:[%s19056_s23 + $0x168] sm:$0xff]  }
0x25b6   : > { %p15382_p12 = pnand %p15381_p9, %p19065_p10  ;;  %p15389_p4 = por %p15388_p3, %p15387_p2 }
0x25b7   : > { %v7852_v1 = vadd.f32 %v7851_v15, %v7850_v30  ;;  %v7972_v30 = vld [vmem:[#allocation31 + $0x2] sm:$0x1] }
0x25b8   : > { %8224 = vmatpush1.bf16.msra.mxu0 %v14324_v10  ;;  %v14356_v10 = vld [vmem:[%s19056_s23 + $0x118] sm:$0xff]   ;;  %p15383_p1 = pneg %p15382_p12 }
0x25b9   : > { %v7853_v41 = vrot.slane %v7852_v1, 1  ;;  %8225 = vmatprep.subr.bf16.mxu0 %v14330_v3  ;;  %v14358_v3 = vld [vmem:[%s19056_s23 + $0x170] sm:$0xff]  }
0x25ba   : > { %p15390_p7 = pnand %p15389_p4, %p15383_p1 }
0x25bb   : > { %v7854_v58 = vadd.f32 %v7853_v41, %v7852_v1 }
0x25bc   : > { %8226 = vmatpush1.bf16.msra.mxu0 %v14328_v62  ;;  %v14359_v62 = vld [vmem:[%s19056_s23 + $0x120] sm:$0xff]  }
0x25bd   : > { %v7855_v33 = vmul.f32 0.017857144, %v7854_v58  ;;  %8227 = vmatprep.subr.bf16.mxu0 %v14334_v28  ;;  %v14361_v28 = vld [vmem:[%s19056_s23 + $0x178] sm:$0xff]  }
0x25bf   : > { %v7856_v29 = vpack.c.bf16 %v7855_v33, %v7855_v33 }
0x25c0   : > { %8228 = vmatpush1.bf16.msra.mxu0 %v14332_v25  ;;  %v18177_v25 = vld [vmem:[%s19056_s23 + $0x80] sm:$0xff]  }
0x25c1   : > { %12966 = vmatmul.mubr.bf16.vlgmr.msra.gmra.mrb[88].mxu1 %v7856_v29  ;;  %8229 = vmatprep.subr.bf16.mxu0 %v14338_v52  ;;  %v14364_v52 = vld [vmem:[%s19056_s23 + $0xe8] sm:$0xff]  }
0x25c2   : > { %12973 = vmatprep.mubr.msk.bf16.mxu1 %vm15578_vm12, %v19051_v8  ;;  %12970 = vmatpush3.bf16.msra.mxu1 %v14310_v19 }
0x25c3   : > { %12971 = vmatprep.subr.bf16.mxu1 %v19051_v8 }
0x25c4   : > { %8230 = vmatpush1.bf16.msra.mxu0 %v14336_v23  ;;  %v14367_v23 = vld [vmem:[%s19056_s23 + $0xf0] sm:$0xff]  }
0x25c5   : > { %8231 = vmatprep.subr.bf16.mxu0 %v14342_v55  ;;  %v14368_v55 = vld [vmem:[%s19056_s23 + $0x138] sm:$0xff]  }
0x25c6   : > { %12972 = vmatpush3.bf16.msra.mxu1 %v14311_v48 }
0x25c7   : > { %12977 = vmatprep.subr.bf16.mxu1 %v14315_v26 }
0x25c8   : > { %8232 = vmatpush1.bf16.msra.mxu0 %v14340_v36  ;;  %v14371_v36 = vld [vmem:[%s19056_s23 + $0x40] sm:$0xff]  }
0x2694   : > { %v7958_v44 = vpop.f32.mrb[88].mxu1 }
0x2695   : > { %v7959_v11 = vadd.f32 %v7958_v44, %v7875_v5  ;;  %v12967_v54 = vpop.f32.mrb[89].mxu1 }
0x2696   : > { %v7961_v39 = vpop.f32.mrb[90].mxu1 }
0x2697   : > { %v7964_v18 = vmax.f32 %v7959_v11, 0.0  ;;  %v12968_v7 = vpop.f32.mrb[91].mxu1 }
0x2699   : > { %v7965_v22 = vpack.c.bf16 %v7964_v18, %v7964_v18 }
0x269b   : > { %12974 = vmatmul.mubr.msk.bf16.vlgmr.msra.gmra.mrb[92].mxu1 %vm1571_vm1, %v7965_v22 }
0x269c   : > { %12978 = vmatpush3.bf16.msra.mxu1 %v14315_v26 }
0x269d   : > { %12979 = vmatprep.subr.bf16.mxu1 %v14319_v40 }
0x26a0   : > { %12980 = vmatpush3.bf16.msra.mxu1 %v14319_v40  ;;  %v14351_v40 = vld [vmem:[%s19056_s23 + $0xc8] sm:$0xff]  }
0x26a1   : > { %12981 = vmatprep.subr.bf16.mxu1 %v14323_v9 }
0x26a4   : > { %12982 = vmatpush3.bf16.msra.mxu1 %v14323_v9  ;;  %v14354_v9 = vld [vmem:[%s19056_s23 + $0xd0] sm:$0xff]  }
0x26a5   : > { %12983 = vmatprep.subr.bf16.mxu1 %v14327_v17 }
0x26a8   : > { %12984 = vmatpush3.bf16.msra.mxu1 %v14327_v17  ;;  %v14357_v17 = vld [vmem:[%s19056_s23 + $0xd8] sm:$0xff]  }
0x26a9   : > { %12985 = vmatprep.subr.bf16.mxu1 %v14331_v42 }
0x26ac   : > { %12986 = vmatpush3.bf16.msra.mxu1 %v14331_v42  ;;  %v14360_v42 = vld [vmem:[%s19056_s23 + $0xe0] sm:$0xff]  }
0x26ad   : > { %12987 = vmatprep.subr.bf16.mxu1 %v14335_v50 }
0x26b0   : > { %12988 = vmatpush3.bf16.msra.mxu1 %v14335_v50  ;;  %v14362_v50 = vld [vmem:[%s19056_s23 + $0x128] sm:$0xff]  }
0x26b1   : > { %12989 = vmatprep.subr.bf16.mxu1 %v14339_v49 }
0x26b4   : > { %12990 = vmatpush3.bf16.msra.mxu1 %v14339_v49  ;;  %v14365_v49 = vld [vmem:[%s19056_s23 + $0x130] sm:$0xff]  }
0x26b5   : > { %12991 = vmatprep.subr.bf16.mxu1 %v14343_v6 }
0x26b8   : > { %12992 = vmatpush3.bf16.msra.mxu1 %v14343_v6  ;;  %v14370_v6 = vld [vmem:[%s19056_s23 + $0xf8] sm:$0xff]  }
0x26b9   : > { %13001 = vmatprep.subr.bf16.mxu1 %v19051_v8 }
0x276e   : > { %v8022_v15 = vpop.f32.mrb[92].mxu1 }
0x276f   : > { %v8023_v1 = vadd.f32 %v8022_v15, %v7972_v30  ;;  %v12975_v41 = vpop.f32.mrb[93].mxu1  ;;  %v18187_v30 = vsub.s32 2, %v16398_v31  ;;  %v8373_v15 = vld [vmem:[#allocation32] sm:$0x7] }
0x2770   : > { %v8025_v58 = vpop.f32.mrb[94].mxu1 }
0x2771   : > { %v11747_v33 = vmul.f32 -1.442695, %v8023_v1  ;;  %v12976_v29 = vpop.f32.mrb[95].mxu1  ;;  %19057 = vst [vmem:[#allocation97_spill] sm:$0xff] %v18187_v30  ;;  %v18190_v1 = vsub.s32 1, %v16398_v31  ;;  %v18193_v41 = vrot.slane %v8373_v15, %v18187_v30 }
0x2773   : > { %14518 = vpow2.f32 %v11747_v33  ;;  %19058 = vst [vmem:[#allocation99_spill] sm:$0xff] %v18190_v1 }
0x277d   : > { %v14519_v19 = vpop.eup %14518 }
0x277e   : > { %v8031_v48 = vadd.f32 1.0, %v14519_v19 }
0x2780   : > { %14520 = vrcp.f32 %v8031_v48 }
0x278a   : > { %v14521_v5 = vpop.eup %14520 }
0x278b   : > { %v8037_v44 = vrot.slane %v14521_v5, %v17075_v45  ;;  %v18196_v5 = vrot.slane %v8373_v15, %v17075_v45 }
0x278d   : > { %v8038_v11 = vmul.f32 %v8037_v44, %v18078_v14  ;;  %v8039_v54 = vmul.f32 %v8037_v44, %v18080_v2  ;;  %v8040_v39 = vmul.f32 %v8037_v44, %v18082_v43  ;;  %v8041_v18 = vmul.f32 %v8037_v44, %v18086_v20 }
0x278e   : > { %v8042_v7 = vmul.f32 %v8037_v44, %v18089_v56  ;;  %v8043_v22 = vmul.f32 %v8037_v44, %v18093_v0  ;;  %v8044_v20 = vmul.f32 %v8037_v44, %v18095_v63  ;;  %v14349_v0 = vld [vmem:[%s19056_s23 + $0x158] sm:$0xff]   ;;  %v14350_v63 = vld [vmem:[%s19056_s23 + $0x108] sm:$0xff]  }
0x278f   : > { %v8045_v4 = vadd.f32 %v8038_v11, %v17626_v61  ;;  %v8046_v12 = vadd.f32 %v8039_v54, %v17629_v21  ;;  %v8047_v26 = vadd.f32 %v8040_v39, %v17632_v34  ;;  %v8048_v35 = vadd.f32 %v8041_v18, %v17635_v24  ;;  %v14344_v34 = vld [vmem:[%s19056_s23 + $0x140] sm:$0xff]   ;;  %v14345_v24 = vld [vmem:[%s19056_s23 + $0x148] sm:$0xff]   ;;  %v8432_v44 = vld [vmem:[#allocation34] sm:$0x7] }
0x2790   : > { %v8049_v14 = vadd.f32 %v8042_v7, %v17639_v47  ;;  %v8050_v2 = vadd.f32 %v8043_v22, %v17642_v46  ;;  %v8051_v61 = vadd.f32 %v8044_v20, %v17667_v57  ;;  %v14346_v47 = vld [vmem:[%s19056_s23 + $0x150] sm:$0xff]   ;;  %v14347_v46 = vld [vmem:[%s19056_s23 + $0x100] sm:$0xff]   ;;  %v18199_v11 = vrot.slane %v8373_v15, %v18190_v1 }
0x2791   : > { %v8052_v13 = vpack.c.bf16 %v8046_v12, %v8045_v4  ;;  %v8053_v43 = vpack.c.bf16 %v8048_v35, %v8047_v26  ;;  %v14348_v57 = vld [vmem:[%s19056_s23 + $0xc0] sm:$0xff]   ;;  %12301 = vmatprep.subr.bf16.mxu0 %v14347_v46  ;;  %v18207_v26 = vrot.slane %v8432_v44, %v18187_v30 }
0x2792   : > { %v8054_v56 = vpack.c.bf16 %v8050_v2, %v8049_v14  ;;  %v8055_v21 = vpack.c.bf16 %v8051_v61, %v8051_v61  ;;  %v8470_v2 = vld [vmem:[#allocation35] sm:$0x7] }
0x2793   : > { %8250 = vmatmul.mubr.bf16.vlgmr.msra.gmra.mrb[68].mxu0 %v8052_v13  ;;  %12993 = vmatprep.mubr.bf16.mxu1 %v8052_v13 }
0x2794   : > { %12994 = vmatmul.mubr.bf16.vlgmr.msra.gmra.mrb[60].mxu1 %v8053_v43  ;;  %8259 = vmatprep.mubr.bf16.mxu0 %v19053_v27 }
0x2795   : > { %12997 = vmatprep.mubr.bf16.mxu1 %v8054_v56  ;;  %13002 = vmatpush3.bf16.msra.mxu1 %v14344_v34 }
0x2796   : > { %13003 = vmatprep.subr.bf16.mxu1 %v19051_v8  ;;  %12302 = vmatpush3.bf16.msra.mxu0 %v14348_v57  ;;  %v18214_v57 = vrot.slane %v8470_v2, %v18187_v30 }
0x2797   : > { %12303 = vmatprep.subr.bf16.mxu0 %v14350_v63 }
0x2799   : > { %13004 = vmatpush3.bf16.msra.mxu1 %v14345_v24 }
0x279a   : > { %13005 = vmatprep.subr.bf16.mxu1 %v19051_v8  ;;  %12304 = vmatpush3.bf16.msra.mxu0 %v14351_v40 }
0x279b   : > { %8260 = vmatmul.mubr.bf16.gmra.mrb[72].mxu0 %v8053_v43  ;;  %12305 = vmatprep.subr.bf16.mxu0 %v14353_v16  ;;  %v18218_v16 = vrot.slane %v8432_v44, %v17075_v45 }
0x279c   : > { %12998 = vmatmul.mubr.bf16.gmra.mrb[96].mxu1 %v8055_v21  ;;  %8269 = vmatprep.mubr.bf16.mxu0 %v19053_v27 }
0x279d   : > { %13017 = vmatprep.mubr.msk.bf16.mxu1 %vm15578_vm12, %v19051_v8  ;;  %13006 = vmatpush3.bf16.msra.mxu1 %v14346_v47 }
0x279e   : > { %13007 = vmatprep.subr.bf16.mxu1 %v19051_v8  ;;  %12306 = vmatpush3.bf16.msra.mxu0 %v14354_v9  ;;  %v18221_v9 = vrot.slane %v8432_v44, %v18190_v1  ;;  %v18243_v44 = vrot.slane %v8470_v2, %v18190_v1 }
0x279f   : > { %12307 = vmatprep.subr.bf16.mxu0 %v14356_v10 }
0x27a1   : > { %13008 = vmatpush3.bf16.msra.mxu1 %v14349_v0 }
0x27a2   : > { %13009 = vmatprep.subr.bf16.mxu1 %v19051_v8  ;;  %12308 = vmatpush3.bf16.msra.mxu0 %v14357_v17 }
0x27a3   : > { %8270 = vmatmul.mubr.bf16.gmra.mrb[76].mxu0 %v8054_v56  ;;  %12309 = vmatprep.subr.bf16.mxu0 %v14359_v62 }
0x27a4   : > { %8279 = vmatprep.mubr.bf16.mxu0 %v19053_v27 }
0x27a5   : > { %13010 = vmatpush3.bf16.msra.mxu1 %v14352_v51 }
0x27a6   : > { %13011 = vmatprep.subr.bf16.mxu1 %v19051_v8  ;;  %12310 = vmatpush3.bf16.msra.mxu0 %v14360_v42 }
0x27a7   : > { %12311 = vmatprep.subr.bf16.mxu0 %v14362_v50 }
0x27a9   : > { %13012 = vmatpush3.bf16.msra.mxu1 %v14355_v59 }
0x27aa   : > { %13013 = vmatprep.subr.bf16.mxu1 %v19051_v8  ;;  %12312 = vmatpush3.bf16.msra.mxu0 %v14364_v52 }
0x27ab   : > { %8280 = vmatmul.mubr.bf16.gmra.mrb[112].mxu0 %v8055_v21  ;;  %12313 = vmatprep.subr.bf16.mxu0 %v14365_v49 }
0x27ad   : > { %13014 = vmatpush3.bf16.msra.mxu1 %v14358_v3 }
0x27ae   : > { %13015 = vmatprep.subr.bf16.mxu1 %v19051_v8  ;;  %12314 = vmatpush3.bf16.msra.mxu0 %v14367_v23 }
0x27af   : > { %12315 = vmatprep.subr.bf16.mxu0 %v14368_v55 }
0x27b1   : > { %13016 = vmatpush3.bf16.msra.mxu1 %v14361_v28 }
0x27b2   : > { %13021 = vmatprep.subr.bf16.mxu1 %v18177_v25  ;;  %12316 = vmatpush3.bf16.msra.mxu0 %v14370_v6 }
0x27b3   : > { %12332 = vmatprep.subr.bf16.mxu0 %v14371_v36 }
0x2866   : > { %v8251_v58 = vpop.f32.mrb[68].mxu0 }
0x2867   : > { %v8253_v33 = vpop.f32.mrb[69].mxu0  ;;  %v12995_v29 = vpop.f32.mrb[60].mxu1  ;;  %v8390_v14 = vadd.f32 %v18196_v5, %v8251_v58  ;;  %v18237_v58 = vrot.slane %v8470_v2, %v17075_v45 }
0x2868   : > { %v8255_v19 = vpop.f32.mrb[70].mxu0  ;;  %v8322_v48 = vpop.f32.mrb[61].mxu1  ;;  %v8398_v18 = vadd.f32 %v12995_v29, %v18193_v41  ;;  %v8391_v43 = vadd.f32 %v18199_v11, %v8253_v33 }
0x2869   : > { %v8392_v54 = vadd.f32 %v18193_v41, %v8322_v48  ;;  %v8257_v39 = vpop.f32.mrb[71].mxu0  ;;  %v12996_v31 = vpop.f32.mrb[62].mxu1  ;;  %v8393_v22 = vadd.f32 %v18196_v5, %v8255_v19  ;;  %v8411_v51 = vmax.f32 %v8390_v14, 0.0 }
0x286a   : > { %v8325_v7 = vpop.f32.mrb[63].mxu1  ;;  %v8394_v4 = vadd.f32 %v18199_v11, %v8257_v39  ;;  %v8419_v20 = vmax.f32 %v8398_v18, 0.0  ;;  %v8401_v34 = vadd.f32 %v12996_v31, %v18193_v41  ;;  %v8412_v17 = vmax.f32 %v8391_v43, 0.0 }
0x286b   : > { %v8395_v12 = vadd.f32 %v18193_v41, %v8325_v7  ;;  %v8413_v35 = vmax.f32 %v8392_v54, 0.0  ;;  %v8414_v61 = vmax.f32 %v8393_v22, 0.0  ;;  %v8449_v19 = vmul.f32 %v18218_v16, %v8411_v51 }
0x286c   : > { %v8415_v21 = vmax.f32 %v8394_v4, 0.0  ;;  %v8457_v3 = vmul.f32 %v18207_v26, %v8419_v20  ;;  %v8422_v49 = vmax.f32 %v8401_v34, 0.0  ;;  %v8450_v48 = vmul.f32 %v18221_v9, %v8412_v17 }
0x286d   : > { %v8416_v13 = vmax.f32 %v8395_v12, 0.0  ;;  %v8451_v0 = vmul.f32 %v18207_v26, %v8413_v35  ;;  %v8452_v50 = vmul.f32 %v18218_v16, %v8414_v61  ;;  %v18264_v61 = vadd.f32 %v18237_v58, %v8449_v19 }
0x286e   : > { %v8261_v56 = vpop.f32.mrb[72].mxu0  ;;  %v8453_v52 = vmul.f32 %v18221_v9, %v8415_v21  ;;  %v8460_v35 = vmul.f32 %v18207_v26, %v8422_v49  ;;  %v18267_v21 = vadd.f32 %v18243_v44, %v8450_v48 }
0x286f   : > { %v8454_v24 = vmul.f32 %v18207_v26, %v8416_v13  ;;  %v8263_v47 = vpop.f32.mrb[73].mxu0  ;;  %v12999_v46 = vpop.f32.mrb[96].mxu1  ;;  %v8396_v42 = vadd.f32 %v18196_v5, %v8261_v56  ;;  %v18232_v55 = vadd.f32 %v18214_v57, %v8451_v0  ;;  %v18254_v4 = vadd.f32 %v18237_v58, %v8452_v50 }
0x2870   : > { %v8265_v63 = vpop.f32.mrb[74].mxu0  ;;  %v8338_v40 = vpop.f32.mrb[97].mxu1  ;;  %v8397_v23 = vadd.f32 %v18199_v11, %v8263_v47  ;;  %v8372_v36 = vadd.f32 %v12999_v46, %v17712_v60  ;;  %v18257_v12 = vadd.f32 %v18243_v44, %v8453_v52 }
0x2871   : > { %v8267_v59 = vpop.f32.mrb[75].mxu0  ;;  %v13000_v10 = vpop.f32.mrb[98].mxu1  ;;  %v18225_v62 = vadd.f32 %v18214_v57, %v8454_v24  ;;  %v8417_v6 = vmax.f32 %v8396_v42, 0.0  ;;  %v8399_v15 = vadd.f32 %v18196_v5, %v8265_v63  ;;  %v8366_v29 = vadd.f32 %v8338_v40, %v17714_v38 }
0x2872   : > { %v8341_v28 = vpop.f32.mrb[99].mxu1  ;;  %v8418_v33 = vmax.f32 %v8397_v23, 0.0  ;;  %v8410_v31 = vadd.f32 %v18193_v41, %v8372_v36  ;;  %v18251_v38 = vadd.f32 %v18214_v57, %v8457_v3  ;;  %v8400_v43 = vadd.f32 %v18199_v11, %v8267_v59 }
0x2873   : > { %v8532_v54 = vadd.f32 %v18225_v62, %v18232_v55  ;;  %v8455_v60 = vmul.f32 %v18218_v16, %v8417_v6  ;;  %v8420_v18 = vmax.f32 %v8399_v15, 0.0  ;;  %v8404_v7 = vadd.f32 %v18193_v41, %v8366_v29 }
0x2874   : > { %v8456_v2 = vmul.f32 %v18221_v9, %v8418_v33  ;;  %v8369_v20 = vadd.f32 %v8341_v28, %v17716_v32  ;;  %v8431_v47 = vmax.f32 %v8410_v31, 0.0  ;;  %v8508_v32 = vadd.f32 %v18254_v4, %v18264_v61 }
0x2875   : > { %v8425_v13 = vmax.f32 %v8404_v7, 0.0  ;;  %v8533_v34 = vadd.f32 %v8532_v54, %v18251_v38  ;;  %v18271_v24 = vadd.f32 %v18237_v58, %v8455_v60  ;;  %v8458_v46 = vmul.f32 %v18218_v16, %v8420_v18 }
0x2876   : > { %v8271_v39 = vpop.f32.mrb[76].mxu0  ;;  %v8549_v63 = vmul.f32 %v18232_v55, %v18232_v55  ;;  %v18280_v40 = vadd.f32 %v18214_v57, %v8460_v35  ;;  %v8520_v51 = vadd.f32 %v18257_v12, %v18267_v21  ;;  %v18285_v59 = vadd.f32 %v18243_v44, %v8456_v2 }
0x2877   : > { %v8273_v22 = vpop.f32.mrb[77].mxu0  ;;  %v8463_v0 = vmul.f32 %v18207_v26, %v8425_v13  ;;  %v8421_v10 = vmax.f32 %v8400_v43, 0.0  ;;  %v8407_v17 = vadd.f32 %v18193_v41, %v8369_v20  ;;  %v8552_v3 = vmul.f32 %v18225_v62, %v18225_v62 }
0x2878   : > { %v8275_v14 = vpop.f32.mrb[78].mxu0  ;;  %v8402_v28 = vadd.f32 %v18196_v5, %v8271_v39  ;;  %v8403_v50 = vadd.f32 %v18199_v11, %v8273_v22  ;;  %v8509_v49 = vadd.f32 %v8508_v32, %v18271_v24  ;;  %v8469_v23 = vmul.f32 %v18207_v26, %v8431_v47 }
0x2879   : > { %v8277_v56 = vpop.f32.mrb[79].mxu0  ;;  %v18291_v42 = vadd.f32 %v18214_v57, %v8463_v0  ;;  %v18298_v6 = vadd.f32 %v18237_v58, %v8458_v46  ;;  %v8534_v41 = vadd.f32 %v8533_v34, %v18280_v40  ;;  %v8428_v15 = vmax.f32 %v8407_v17, 0.0 }
0x287a   : > { %v8423_v33 = vmax.f32 %v8402_v28, 0.0  ;;  %v8424_v29 = vmax.f32 %v8403_v50, 0.0  ;;  %v8405_v19 = vadd.f32 %v18196_v5, %v8275_v14  ;;  %v8521_v54 = vadd.f32 %v8520_v51, %v18285_v59 }
0x287b   : > { %v8459_v39 = vmul.f32 %v18221_v9, %v8421_v10  ;;  %v8406_v60 = vadd.f32 %v18199_v11, %v8277_v56  ;;  %v8535_v7 = vadd.f32 %v8534_v41, %v18291_v42  ;;  %v8466_v22 = vmul.f32 %v18207_v26, %v8428_v15 }
0x287c   : > { %v8461_v35 = vmul.f32 %v18218_v16, %v8423_v33  ;;  %v8426_v2 = vmax.f32 %v8405_v19, 0.0  ;;  %v8462_v13 = vmul.f32 %v18221_v9, %v8424_v29  ;;  %v8510_v34 = vadd.f32 %v8509_v49, %v18298_v6 }
0x287d   : > { %v8427_v14 = vmax.f32 %v8406_v60, 0.0  ;;  %v18314_v56 = vadd.f32 %v18214_v57, %v8466_v22  ;;  %v18321_v47 = vadd.f32 %v18243_v44, %v8459_v39  ;;  %v8592_v10 = vadd.f32 %v8552_v3, %v8549_v63 }
0x287e   : > { %v8281_v52 = vpop.f32.mrb[112].mxu0  ;;  %v8464_v26 = vmul.f32 %v18218_v16, %v8426_v2  ;;  %v18331_v17 = vadd.f32 %v18243_v44, %v8462_v13  ;;  %v8555_v63 = vmul.f32 %v18251_v38, %v18251_v38  ;;  %v8554_v3 = vmul.f32 %v18285_v59, %v18285_v59 }
0x287f   : > { %v8283_v36 = vpop.f32.mrb[113].mxu0  ;;  %v8370_v31 = vadd.f32 %v8281_v52, %v17718_v53  ;;  %v18317_v53 = vadd.f32 %v18237_v58, %v8461_v35  ;;  %v8465_v46 = vmul.f32 %v18221_v9, %v8427_v14  ;;  %v8536_v32 = vadd.f32 %v8535_v7, %v18314_v56 }
0x2880   : > { %v8285_v48 = vpop.f32.mrb[114].mxu0  ;;  %v8371_v20 = vadd.f32 %v8283_v36, %v17720_v37  ;;  %v18326_v37 = vadd.f32 %v18214_v57, %v8469_v23  ;;  %v18334_v28 = vadd.f32 %v18237_v58, %v8464_v26  ;;  %v8548_v52 = vmul.f32 %v18267_v21, %v18267_v21 }
0x2881   : > { %v8286_v18 = vpop.f32.mrb[115].mxu0  ;;  %v8408_v43 = vadd.f32 %v18196_v5, %v8370_v31  ;;  %v8511_v51 = vadd.f32 %v8510_v34, %v18317_v53  ;;  %v8522_v23 = vadd.f32 %v8521_v54, %v18321_v47  ;;  %v18348_v41 = vadd.f32 %v18243_v44, %v8465_v46 }
0x2882   : > { %v8409_v5 = vadd.f32 %v18199_v11, %v8371_v20  ;;  %v8551_v11 = vmul.f32 %v18257_v12, %v18257_v12  ;;  %v8537_v49 = vadd.f32 %v8536_v32, %v18326_v37  ;;  %v8593_v29 = vadd.f32 %v8592_v10, %v8555_v63 }
0x2883   : > { %v8429_v0 = vmax.f32 %v8408_v43, 0.0  ;;  %v8523_v19 = vadd.f32 %v8522_v23, %v18331_v17  ;;  %v8558_v54 = vmul.f32 %v18280_v40, %v18280_v40  ;;  %v8561_v31 = vmul.f32 %v18291_v42, %v18291_v42 }
0x2884   : > { %v8430_v57 = vmax.f32 %v8409_v5, 0.0  ;;  %v8538_v33 = vrot.slane %v8537_v49, 4  ;;  %v8580_v48 = vadd.f32 %v8551_v11, %v8548_v52  ;;  %v8557_v7 = vmul.f32 %v18321_v47, %v18321_v47 }
0x2885   : > { %v8467_v50 = vmul.f32 %v18218_v16, %v8429_v0  ;;  %v8512_v16 = vadd.f32 %v8511_v51, %v18334_v28  ;;  %v8524_v18 = vadd.f32 %v8523_v19, %v18348_v41  ;;  %v8594_v35 = vadd.f32 %v8593_v29, %v8558_v54 }
0x2886   : > { %v8468_v15 = vmul.f32 %v18221_v9, %v8430_v57  ;;  %v8581_v9 = vadd.f32 %v8580_v48, %v8554_v3  ;;  %v8560_v14 = vmul.f32 %v18331_v17, %v18331_v17  ;;  %v8564_v34 = vmul.f32 %v18314_v56, %v18314_v56 }
0x2887   : > { %v18352_v36 = vadd.f32 %v18237_v58, %v8467_v50  ;;  %v8539_v58 = vadd.f32 %v8538_v33, %v8537_v49  ;;  %v8595_v20 = vadd.f32 %v8594_v35, %v8561_v31  ;;  %v8547_v0 = vmul.f32 %v18264_v61, %v18264_v61 }
0x2888   : > { %v18358_v60 = vadd.f32 %v18243_v44, %v8468_v15  ;;  %v8550_v44 = vmul.f32 %v18254_v4, %v18254_v4  ;;  %v8553_v5 = vmul.f32 %v18271_v24, %v18271_v24  ;;  %v8582_v32 = vadd.f32 %v8581_v9, %v8557_v7  ;;  %v14366_v7 = vld [vmem:[%s19056_s23 + $0x88] sm:$0xff]  }
0x2889   : > { %v8513_v39 = vadd.f32 %v8512_v16, %v18352_v36  ;;  %v8540_v2 = vrot.slane %v8539_v58, 2  ;;  %v8563_v57 = vmul.f32 %v18348_v41, %v18348_v41  ;;  %v8596_v63 = vadd.f32 %v8595_v20, %v8564_v34 }
0x288a   : > { %v8525_v13 = vadd.f32 %v8524_v18, %v18358_v60  ;;  %v8568_v52 = vadd.f32 %v8550_v44, %v8547_v0  ;;  %v8583_v11 = vadd.f32 %v8582_v32, %v8560_v14  ;;  %v8556_v15 = vmul.f32 %v18298_v6, %v18298_v6 }
0x288b   : > { %v8514_v22 = vrot.slane %v8513_v39, 4  ;;  %v8541_v26 = vadd.f32 %v8540_v2, %v8539_v58  ;;  %v8566_v33 = vmul.f32 %v18358_v60, %v18358_v60  ;;  %v8567_v19 = vmul.f32 %v18326_v37, %v18326_v37 }
0x288c   : > { %v8526_v46 = vrot.slane %v8525_v13, 4  ;;  %v8569_v16 = vadd.f32 %v8568_v52, %v8553_v5  ;;  %v8559_v54 = vmul.f32 %v18317_v53, %v18317_v53  ;;  %v8584_v31 = vadd.f32 %v8583_v11, %v8563_v57  ;;  %v14372_v11 = vld [vmem:[%s19056_s23 + $0x98] sm:$0xff]  }
0x288d   : > { %v8515_v43 = vadd.f32 %v8514_v22, %v8513_v39  ;;  %v8542_v10 = vrot.slane %v8541_v26, 1  ;;  %v8597_v18 = vadd.f32 %v8596_v63, %v8567_v19  ;;  %v8639_v2 = vpack.c.bf16 %v18225_v62, %v18232_v55  ;;  %v14379_v19 = vld [vmem:[%s19056_s23 + $0x10] sm:$0xff]  }
0x288e   : > { %v8527_v50 = vadd.f32 %v8526_v46, %v8525_v13  ;;  %v8570_v35 = vadd.f32 %v8569_v16, %v8556_v15  ;;  %v8585_v13 = vadd.f32 %v8584_v31, %v8566_v33  ;;  %v8565_v0 = vmul.f32 %v18352_v36, %v18352_v36  ;;  %v14375_v15 = vld [vmem:[%s19056_s23 + $0xa0] sm:$0xff]   ;;  %v14378_v31 = vld [vmem:[%s19056_s23 + $0xa8] sm:$0xff]  }
0x288f   : > { %v8516_v51 = vrot.slane %v8515_v43, 2  ;;  %v8543_v3 = vadd.f32 %v8542_v10, %v8541_v26  ;;  %v8598_v34 = vrot.slane %v8597_v18, 4  ;;  %v14369_v26 = vld [vmem:[%s19056_s23 + $0x90] sm:$0xff]   ;;  %v8638_v57 = vpack.c.bf16 %v18257_v12, %v18267_v21 }
0x2890   : > { %v8528_v23 = vrot.slane %v8527_v50, 2  ;;  %v8571_v14 = vadd.f32 %v8570_v35, %v8559_v54  ;;  %v8586_v5 = vrot.slane %v8585_v13, 4  ;;  %v14381_v35 = vld [vmem:[%s19056_s23 + $0xb0] sm:$0xff]  }
0x2891   : > { %v8517_v49 = vadd.f32 %v8516_v51, %v8515_v43  ;;  %v18386_v48 = vmul.f32 0.017857144, %v8543_v3  ;;  %v8562_v43 = vmul.f32 %v18334_v28, %v18334_v28  ;;  %v14373_v51 = vld [vmem:[%s19056_s23] sm:$0xff]   ;;  %v8599_v52 = vadd.f32 %v8598_v34, %v8597_v18  ;;  %v14376_v3 = vld [vmem:[%s19056_s23 + $0x8] sm:$0xff]   ;;  %v14384_v34 = vld [vmem:[%s19056_s23 + $0xb8] sm:$0xff]  }
0x2892   : > { %v8529_v39 = vadd.f32 %v8528_v23, %v8527_v50  ;;  %v14374_v50 = vld [vmem:[%s19056_s23 + $0x48] sm:$0xff]   ;;  %v8587_v63 = vadd.f32 %v8586_v5, %v8585_v13  ;;  %v14377_v23 = vld [vmem:[%s19056_s23 + $0x50] sm:$0xff]  }
0x2893   : > { %v8518_v29 = vrot.slane %v8517_v49, 1  ;;  %v8699_v9 = vpack.c.bf16 %v18386_v48, %v18386_v48  ;;  %v8572_v10 = vadd.f32 %v8571_v14, %v8562_v43  ;;  %v8600_v16 = vrot.slane %v8599_v52, 2  ;;  %v14386_v14 = vld [vmem:[%s19056_s23 + $0x68] sm:$0xff]  }
0x2894   : > { %v8530_v22 = vrot.slane %v8529_v39, 1  ;;  %v14387_v5 = vld [vmem:[%s19056_s23 + $0x28] sm:$0xff]  }
0x2895   : > { %v8519_v58 = vadd.f32 %v8518_v29, %v8517_v49  ;;  %13018 = vmatmul.mubr.bf16.vlgmr.msra.gmra.mrb[100].mxu1 %v8699_v9  ;;  %v8573_v49 = vadd.f32 %v8572_v10, %v8565_v0  ;;  %v8588_v29 = vrot.slane %v8587_v63, 2  ;;  %v8601_v54 = vadd.f32 %v8600_v16, %v8599_v52  ;;  %v14382_v9 = vld [vmem:[%s19056_s23 + $0x18] sm:$0xff]  }
0x2896   : > { %v8531_v44 = vadd.f32 %v8530_v22, %v8529_v39  ;;  %13022 = vmatpush3.bf16.msra.mxu1 %v18177_v25  ;;  %13037 = vmatprep.mubr.bf16.mxu1 %v8639_v2  ;;  %v14380_v39 = vld [vmem:[%s19056_s23 + $0x58] sm:$0xff]   ;;  %v8609_v10 = vmul.f32 %v18386_v48, %v18386_v48 }
0x2897   : > { %v18398_v20 = vmul.f32 0.017857144, %v8519_v58  ;;  %13023 = vmatprep.subr.bf16.mxu1 %v14366_v7  ;;  %v8574_v33 = vrot.slane %v8573_v49, 4  ;;  %v8589_v18 = vadd.f32 %v8588_v29, %v8587_v63  ;;  %v8602_v22 = vrot.slane %v8601_v54, 1  ;;  %v14392_v48 = vld [vmem:[%s19056_s23 + $0x78] sm:$0xff]  }
0x2898   : > { %v18401_v46 = vmul.f32 0.017857144, %v8531_v44  ;;  %v14385_v44 = vld [vmem:[%s19056_s23 + $0x20] sm:$0xff]   ;;  %v8642_v63 = vpack.c.bf16 %v18280_v40, %v18251_v38  ;;  %v14393_v16 = vld [vmem:[%s19056_s23 + $0x38] sm:$0xff]  }
0x2899   : > { %v8697_v25 = vpack.c.bf16 %v18398_v20, %v18398_v20  ;;  %v8575_v58 = vadd.f32 %v8574_v33, %v8573_v49  ;;  %v8590_v2 = vrot.slane %v8589_v18, 1  ;;  %v8603_v43 = vadd.f32 %v8602_v22, %v8601_v54  ;;  %v14395_v33 = vld [vmem:[%s19056_s23 + $0x1c0] sm:$0xff]  }
0x289a   : > { %v8698_v32 = vpack.c.bf16 %v18401_v46, %v18401_v46  ;;  %13024 = vmatpush3.bf16.msra.mxu1 %v14366_v7  ;;  %v14383_v7 = vld [vmem:[%s19056_s23 + $0x60] sm:$0xff]   ;;  %v8607_v54 = vmul.f32 %v18398_v20, %v18398_v20  ;;  %v14398_v20 = vld [vmem:[%s19056_s23 + $0x1c8] sm:$0xff]  }
0x289b   : > { %13025 = vmatprep.subr.bf16.mxu1 %v14369_v26  ;;  %v8576_v13 = vrot.slane %v8575_v58, 2 }
0x289c   : > { %8925 = vmatprep.mubr.bf16.mxu0 %v8698_v32  ;;  %v14389_v32 = vld [vmem:[%s19056_s23 + $0x70] sm:$0xff]  }
0x289d   : > { %8926 = vmatmul.mubr.bf16.vlgmr.msra.gmra.mrb[116].mxu0 %v8697_v25  ;;  %v8577_v0 = vadd.f32 %v8576_v13, %v8575_v58  ;;  %v8637_v58 = vpack.c.bf16 %v18254_v4, %v18264_v61  ;;  %v14401_v13 = vld [vmem:[%s19056_s23 + $0x1d0] sm:$0xff]  }
0x289e   : > { %12333 = vmatpush3.bf16.msra.mxu0 %v14373_v51  ;;  %9153 = vmatprep.mubr.bf16.mxu0 %v8638_v57  ;;  %v8606_v51 = vmul.f32 0.017857144, %v8603_v43  ;;  %v14388_v57 = vld [vmem:[%s19056_s23 + $0x200] sm:$0xff]   ;;  %v8640_v43 = vpack.c.bf16 %v18298_v6, %v18271_v24 }
0x289f   : > { %13026 = vmatpush3.bf16.msra.mxu1 %v14369_v26  ;;  %12334 = vmatprep.subr.bf16.mxu0 %v14374_v50  ;;  %v8591_v26 = vadd.f32 %v8590_v2, %v8589_v18  ;;  %v8608_v50 = vmul.f32 %v18401_v46, %v18401_v46  ;;  %v8578_v52 = vrot.slane %v8577_v0, 1  ;;  %v8645_v46 = vpack.c.bf16 %v18314_v56, %v18291_v42  ;;  %v14396_v18 = vld [vmem:[%s19056_s23 + $0x180] sm:$0xff]   ;;  %v14399_v2 = vld [vmem:[%s19056_s23 + $0x188] sm:$0xff]  }
0x28a0   : > { %13027 = vmatprep.subr.bf16.mxu1 %v14372_v11  ;;  %v8612_v49 = vsub.f32 %v8606_v51, %v8609_v10  ;;  %v14403_v51 = vld [vmem:[%s19056_s23 + $0x228] sm:$0xff]   ;;  %v14405_v10 = vld [vmem:[%s19056_s23 + $0x198] sm:$0xff]  }
0x28a1   : > { %v8605_v25 = vmul.f32 0.017857144, %v8591_v26  ;;  %v8644_v26 = vpack.c.bf16 %v18348_v41, %v18331_v17 }
0x28a2   : > { %12335 = vmatpush3.bf16.msra.mxu0 %v14376_v3  ;;  %v18443_v29 = vmax.f32 %v8612_v49, 1e-12  ;;  %v14408_v49 = vld [vmem:[%s19056_s23 + $0x1a0] sm:$0xff]  }
0x28a3   : > { %13028 = vmatpush3.bf16.msra.mxu1 %v14372_v11  ;;  %12336 = vmatprep.subr.bf16.mxu0 %v14377_v23  ;;  %v14390_v11 = vld [vmem:[%s19056_s23 + $0x30] sm:$0xff]   ;;  %v8611_v3 = vsub.f32 %v8605_v25, %v8608_v50  ;;  %v8579_v23 = vadd.f32 %v8578_v52, %v8577_v0  ;;  %v14404_v0 = vld [vmem:[%s19056_s23 + $0x1d8] sm:$0xff]   ;;  %v14407_v25 = vld [vmem:[%s19056_s23 + $0x1e0] sm:$0xff]  }
0x28a4   : > { %13029 = vmatprep.subr.bf16.mxu1 %v14375_v15  ;;  %14522 = vrsqrt.f32 %v18443_v29  ;;  %vm8632_vm1 = vcmp.eq.f32.partialorder %v18443_v29, inf  ;;  %vm8634_vm6 = vcmp.eq.f32.partialorder %v18443_v29, 0.0 }
0x28a6   : > { %12337 = vmatpush3.bf16.msra.mxu0 %v14379_v19  ;;  %v18446_v19 = vmax.f32 %v8611_v3, 1e-12 }
0x28a7   : > { %13030 = vmatpush3.bf16.msra.mxu1 %v14375_v15  ;;  %12338 = vmatprep.subr.bf16.mxu0 %v14380_v39  ;;  %v14391_v15 = vld [vmem:[%s19056_s23 + $0x208] sm:$0xff]   ;;  %v8604_v39 = vmul.f32 0.017857144, %v8579_v23 }
0x28a8   : > { %13031 = vmatprep.subr.bf16.mxu1 %v14378_v31  ;;  %14524 = vrsqrt.f32 %v18446_v19  ;;  %vm8625_vm2 = vcmp.eq.f32.partialorder %v18446_v19, inf  ;;  %vm8627_vm7 = vcmp.eq.f32.partialorder %v18446_v19, 0.0 }
0x28a9   : > { %v8610_v22 = vsub.f32 %v8604_v39, %v8607_v54  ;;  %v8628_v39 = vand.u32 2147483648, %v18446_v19  ;;  %v14412_v54 = vld [vmem:[%s19056_s23 + $0x1f0] sm:$0xff]  }
0x28aa   : > { %12339 = vmatpush3.bf16.msra.mxu0 %v14382_v9  ;;  %v8648_v9 = vpack.c.bf16 %v18326_v37, %v18326_v37 }
0x28ab   : > { %13032 = vmatpush3.bf16.msra.mxu1 %v14378_v31  ;;  %12340 = vmatprep.subr.bf16.mxu0 %v14383_v7  ;;  %v14394_v31 = vld [vmem:[%s19056_s23 + $0x210] sm:$0xff]   ;;  %v8641_v7 = vpack.c.bf16 %v18321_v47, %v18285_v59 }
0x28ac   : > { %13033 = vmatprep.subr.bf16.mxu1 %v14381_v35 }
0x28ae   : > { %12341 = vmatpush3.bf16.msra.mxu0 %v14385_v44  ;;  %v18466_v44 = vmax.f32 %v8610_v22, 1e-12 }
0x28af   : > { %13034 = vmatpush3.bf16.msra.mxu1 %v14381_v35  ;;  %12342 = vmatprep.subr.bf16.mxu0 %v14386_v14  ;;  %v14397_v35 = vld [vmem:[%s19056_s23 + $0x218] sm:$0xff]   ;;  %v14400_v14 = vld [vmem:[%s19056_s23 + $0x220] sm:$0xff]  }
0x28b0   : > { %13035 = vmatprep.subr.bf16.mxu1 %v14384_v34  ;;  %14526 = vrsqrt.f32 %v18466_v44  ;;  %vm8618_vm8 = vcmp.eq.f32.partialorder %v18466_v44, inf  ;;  %vm8620_vm9 = vcmp.eq.f32.partialorder %v18466_v44, 0.0 }
0x28b2   : > { %12343 = vmatpush3.bf16.msra.mxu0 %v14387_v5  ;;  %v14523_v5 = vpop.eup %14522 }
0x28b3   : > { %13036 = vmatpush3.bf16.msra.mxu1 %v14384_v34  ;;  %12344 = vmatprep.subr.bf16.mxu0 %v14389_v32  ;;  %v14402_v34 = vld [vmem:[%s19056_s23 + $0x190] sm:$0xff]   ;;  %v14525_v32 = vpop.eup %14524  ;;  %v8631_v50 = vmul.f32 %v14523_v5, %v18443_v29  ;;  %v14423_v5 = vld [vmem:[%s19059_s16 + $0x20] ss:$12 sps:$4 sm:$0xff]  }
0x28b4   : > { %13045 = vmatprep.subr.bf16.mxu1 %v19051_v8  ;;  %v8624_v52 = vmul.f32 %v14525_v32, %v18446_v19  ;;  %v14426_v32 = vld [vmem:[%s19059_s16 + $0x34] ss:$12 sps:$4 sm:$0xff]  }
0x28b5   : > { %v8633_v3 = vsel %vm8632_vm1, %v18443_v29, %v8631_v50  ;;  %v14431_v50 = vld [vmem:[%s19059_s16 + $0x50] ss:$12 sps:$4 sm:$0xff]  }
0x28b6   : > { %13038 = vmatmul.mubr.bf16.vlgmr.msra.gmra.mrb[104].mxu1 %v8642_v63  ;;  %12345 = vmatpush3.bf16.msra.mxu0 %v14390_v11  ;;  %v14406_v11 = vld [vmem:[%s19056_s23 + $0x230] sm:$0xff]   ;;  %v8647_v63 = vpack.c.bf16 %v18358_v60, %v18358_v60  ;;  %v8626_v23 = vsel %vm8625_vm2, %v18446_v19, %v8624_v52  ;;  %v14415_v19 = vld [vmem:[%s19056_s23 + $0x1b8] sm:$0xff]  }
0x28b7   : > { %13041 = vmatprep.mubr.bf16.mxu1 %v8645_v46  ;;  %13046 = vmatpush3.bf16.msra.mxu1 %v14388_v57  ;;  %v8643_v57 = vpack.c.bf16 %v18334_v28, %v18317_v53  ;;  %v14428_v52 = vld [vmem:[%s19059_s16 + $0x48] ss:$12 sps:$4 sm:$0xff]  }
0x28b8   : > { %13047 = vmatprep.subr.bf16.mxu1 %v19051_v8  ;;  %12346 = vmatprep.subr.bf16.mxu0 %v14392_v48  ;;  %v14410_v48 = vld [vmem:[%s19056_s23 + $0x1e8] sm:$0xff]  }
0x28ba   : > { %12347 = vmatpush3.bf16.msra.mxu0 %v14393_v16  ;;  %v14527_v46 = vpop.eup %14526  ;;  %v14409_v16 = vld [vmem:[%s19056_s23 + $0x238] sm:$0xff]  }
0x28bb   : > { %13048 = vmatpush3.bf16.msra.mxu1 %v14391_v15  ;;  %12384 = vmatprep.subr.bf16.mxu0 %v14395_v33  ;;  %v8635_v15 = vand.u32 2147483648, %v18443_v29  ;;  %v14411_v33 = vld [vmem:[%s19056_s23 + $0x1a8] sm:$0xff]  }
0x28bc   : > { %13049 = vmatprep.subr.bf16.mxu1 %v19051_v8 }
0x28bd   : > { %9154 = vmatmul.mubr.bf16.vlgmr.msra.gmra.mrb[120].mxu0 %v8637_v58  ;;  %v8629_v58 = vsel %vm8627_vm7, %v8628_v39, %v8626_v23  ;;  %v14442_v23 = vld [vmem:[%s19059_s16 + $0x94] ss:$12 sps:$4 sm:$0xff]  }
0x28be   : > { %13042 = vmatmul.mubr.bf16.gmra.mrb[108].mxu1 %v8648_v9  ;;  %9161 = vmatprep.mubr.bf16.mxu0 %v8641_v7  ;;  %v8646_v9 = vpack.c.bf16 %v18352_v36, %v18352_v36  ;;  %v14413_v7 = vld [vmem:[%s19056_s23 + $0x1b0] sm:$0xff]   ;;  %v9250_v22 = vpack.c.bf16 %v8629_v58, %v8629_v58 }
0x28bf   : > { %13050 = vmatpush3.bf16.msra.mxu1 %v14394_v31  ;;  %12385 = vmatpush3.bf16.msra.mxu0 %v14396_v18  ;;  %v8636_v31 = vsel %vm8634_vm6, %v8635_v15, %v8633_v3  ;;  %v8617_v18 = vmul.f32 %v14527_v46, %v18466_v44  ;;  %v14436_v3 = vld [vmem:[%s19059_s16 + $0x78] ss:$12 sps:$4 sm:$0xff]   ;;  %v14444_v39 = vld [vmem:[%s19059_s16 + $0xa8] ss:$12 sps:$4 sm:$0xff]  }
0x28c0   : > { %13051 = vmatprep.subr.bf16.mxu1 %v19051_v8  ;;  %12386 = vmatprep.subr.bf16.mxu0 %v14398_v20  ;;  %v9251_v20 = vpack.c.bf16 %v8636_v31, %v8636_v31  ;;  %v14443_v46 = vld [vmem:[%s19059_s16 + $0x98] ss:$12 sps:$4 sm:$0xff]  }
0x28c1   : > { %13061 = vmatprep.mubr.msk.bf16.mxu1 %vm15578_vm12, %v19051_v8  ;;  %v8619_v29 = vsel %vm8618_vm8, %v18466_v44, %v8617_v18  ;;  %v14446_v15 = vld [vmem:[%s19059_s16 + $0xac] ss:$12 sps:$4 sm:$0xff]  }
0x28c3   : > { %13052 = vmatpush3.bf16.msra.mxu1 %v14397_v35  ;;  %12387 = vmatpush3.bf16.msra.mxu0 %v14399_v2  ;;  %v14414_v35 = vld [vmem:[%s19056_s23 + $0x1f8] sm:$0xff]   ;;  %v8621_v2 = vand.u32 2147483648, %v18466_v44 }
0x28c4   : > { %13053 = vmatprep.subr.bf16.mxu1 %v19051_v8  ;;  %12388 = vmatprep.subr.bf16.mxu0 %v14401_v13  ;;  %v14422_v44 = vld [vmem:[%s19059_s16 + $0x1c] ss:$12 sps:$4 sm:$0xff]  }
0x28c5   : > { %9162 = vmatmul.mubr.bf16.gmra.mrb[124].mxu0 %v8640_v43  ;;  %v8622_v13 = vsel %vm8620_vm9, %v8621_v2, %v8619_v29  ;;  %v14416_v43 = vld [vmem:[%s19059_s16] ss:$12 sps:$4 sm:$0xff]  }
0x28c6   : > { %9169 = vmatprep.mubr.bf16.mxu0 %v8644_v26  ;;  %v14419_v26 = vld [vmem:[%s19059_s16 + $0x8] ss:$12 sps:$4 sm:$0xff]  }
0x28c7   : > { %13054 = vmatpush3.bf16.msra.mxu1 %v14400_v14  ;;  %12389 = vmatpush3.bf16.msra.mxu0 %v14402_v34  ;;  %v9249_v14 = vpack.c.bf16 %v8622_v13, %v8622_v13  ;;  %v14418_v34 = vld [vmem:[%s19059_s16 + $0x4] ss:$12 sps:$4 sm:$0xff]  }
0x28c8   : > { %13055 = vmatprep.subr.bf16.mxu1 %v19051_v8  ;;  %12390 = vmatprep.subr.bf16.mxu0 %v14404_v0  ;;  %v14420_v0 = vld [vmem:[%s19059_s16 + $0x18] ss:$12 sps:$4 sm:$0xff]  }
0x28cb   : > { %13056 = vmatpush3.bf16.msra.mxu1 %v14403_v51  ;;  %12391 = vmatpush3.bf16.msra.mxu0 %v14405_v10  ;;  %v14427_v51 = vld [vmem:[%s19059_s16 + $0x38] ss:$12 sps:$4 sm:$0xff]   ;;  %v14424_v10 = vld [vmem:[%s19059_s16 + $0x30] ss:$12 sps:$4 sm:$0xff]  }
0x28cc   : > { %13057 = vmatprep.subr.bf16.mxu1 %v19051_v8  ;;  %12392 = vmatprep.subr.bf16.mxu0 %v14407_v25  ;;  %v14430_v25 = vld [vmem:[%s19059_s16 + $0x4c] ss:$12 sps:$4 sm:$0xff]  }
0x28cd   : > { %9170 = vmatmul.mubr.bf16.gmra.mrb[128].mxu0 %v8643_v57  ;;  %v14435_v57 = vld [vmem:[%s19059_s16 + $0x68] ss:$12 sps:$4 sm:$0xff]  }
0x28ce   : > { %9177 = vmatprep.mubr.bf16.mxu0 %v8647_v63  ;;  %v14438_v63 = vld [vmem:[%s19059_s16 + $0x7c] ss:$12 sps:$4 sm:$0xff]  }
0x28cf   : > { %13058 = vmatpush3.bf16.msra.mxu1 %v14406_v11  ;;  %12393 = vmatpush3.bf16.msra.mxu0 %v14408_v49  ;;  %v14434_v11 = vld [vmem:[%s19059_s16 + $0x64] ss:$12 sps:$4 sm:$0xff]   ;;  %v14432_v49 = vld [vmem:[%s19059_s16 + $0x60] ss:$12 sps:$4 sm:$0xff]  }
0x28d0   : > { %13059 = vmatprep.subr.bf16.mxu1 %v19051_v8  ;;  %12394 = vmatprep.subr.bf16.mxu0 %v14410_v48  ;;  %v14439_v48 = vld [vmem:[%s19059_s16 + $0x80] ss:$12 sps:$4 sm:$0xff]  }
0x28d3   : > { %13060 = vmatpush3.bf16.msra.mxu1 %v14409_v16  ;;  %12395 = vmatpush3.bf16.msra.mxu0 %v14411_v33  ;;  %v14440_v16 = vld [vmem:[%s19059_s16 + $0x90] ss:$12 sps:$4 sm:$0xff]  }
0x28d4   : > { %12396 = vmatprep.subr.bf16.mxu0 %v14412_v54  ;;  %13065 = vmatprep.subr.bf16.mxu1 %v14419_v26  ;;  %v14447_v33 = vld [vmem:[%s19059_s16 + $0xb0] ss:$12 sps:$4 sm:$0xff]  }
0x28d5   : > { %9178 = vmatmul.mubr.bf16.gmra.mrb[132].mxu0 %v8646_v9 }
0x28d6   : > { %13062 = vmatmul.mubr.bf16.vlgmr.msra.gmra.mrb[112].mxu1 %v9251_v20  ;;  %9477 = vmatprep.mubr.bf16.mxu0 %v9250_v22 }
0x28d7   : > { %12397 = vmatpush3.bf16.msra.mxu0 %v14413_v7  ;;  %13066 = vmatpush3.bf16.msra.mxu1 %v14419_v26 }
0x28d8   : > { %12398 = vmatprep.subr.bf16.mxu0 %v14414_v35  ;;  %13067 = vmatprep.subr.bf16.mxu1 %v14423_v5 }
0x28db   : > { %12399 = vmatpush3.bf16.msra.mxu0 %v14415_v19  ;;  %13068 = vmatpush3.bf16.msra.mxu1 %v14423_v5 }
0x28dc   : > { %9773 = vmatprep.subr.bf16.mxu0 %v14418_v34  ;;  %13069 = vmatprep.subr.bf16.mxu1 %v14427_v51 }
0x28de   : > { %9478 = vmatmul.mubr.bf16.vlgmr.msra.gmra.mrb[136].mxu0 %v9249_v14 }
0x28df   : > { %9805 = vmatprep.mubr.bf16.mxu0 %v19053_v27  ;;  %9774 = vmatpush1.bf16.msra.mxu0 %v14416_v43 }
0x28e0   : > { %9775 = vmatprep.subr.bf16.mxu0 %v14422_v44  ;;  %13070 = vmatpush3.bf16.msra.mxu1 %v14427_v51 }
0x28e1   : > { %13071 = vmatprep.subr.bf16.mxu1 %v14431_v50 }
0x28e3   : > { %9776 = vmatpush1.bf16.msra.mxu0 %v14420_v0 }
0x28e4   : > { %9777 = vmatprep.subr.bf16.mxu0 %v14426_v32  ;;  %13072 = vmatpush3.bf16.msra.mxu1 %v14431_v50 }
0x28e5   : > { %13073 = vmatprep.subr.bf16.mxu1 %v14435_v57 }
0x28e7   : > { %9778 = vmatpush1.bf16.msra.mxu0 %v14424_v10 }
0x28e8   : > { %9779 = vmatprep.subr.bf16.mxu0 %v14430_v25  ;;  %13074 = vmatpush3.bf16.msra.mxu1 %v14435_v57 }
0x28e9   : > { %13075 = vmatprep.subr.bf16.mxu1 %v14439_v48 }
0x28eb   : > { %9780 = vmatpush1.bf16.msra.mxu0 %v14428_v52 }
0x28ec   : > { %9781 = vmatprep.subr.bf16.mxu0 %v14434_v11  ;;  %13076 = vmatpush3.bf16.msra.mxu1 %v14439_v48 }
0x28ed   : > { %13077 = vmatprep.subr.bf16.mxu1 %v14443_v46 }
0x28ef   : > { %9782 = vmatpush1.bf16.msra.mxu0 %v14432_v49 }
0x28f0   : > { %9783 = vmatprep.subr.bf16.mxu0 %v14438_v63  ;;  %13078 = vmatpush3.bf16.msra.mxu1 %v14443_v46 }
0x28f1   : > { %13079 = vmatprep.subr.bf16.mxu1 %v14447_v33 }
0x28f3   : > { %9784 = vmatpush1.bf16.msra.mxu0 %v14436_v3 }
0x28f4   : > { %9785 = vmatprep.subr.bf16.mxu0 %v14442_v23  ;;  %13080 = vmatpush3.bf16.msra.mxu1 %v14447_v33 }
0x28f5   : > { %13089 = vmatprep.subr.bf16.mxu1 %v19051_v8 }
0x28f7   : > { %9786 = vmatpush1.bf16.msra.mxu0 %v14440_v16 }
0x28f8   : > { %9787 = vmatprep.subr.bf16.mxu0 %v14446_v15 }
0x28fb   : > { %9788 = vmatpush1.bf16.msra.mxu0 %v14444_v39 }
0x2968   : > { %v8967_v54 = vpop.f32.mrb[100].mxu1 }
0x2969   : > { %v13019_v31 = vpop.f32.mrb[101].mxu1 }
0x296a   : > { %v8970_v58 = vpop.f32.mrb[102].mxu1 }
0x296b   : > { %v13020_v18 = vpop.f32.mrb[103].mxu1 }
0x2970   : > { %v12317_v9 = vpop.f32.mrb[116].mxu0 }
0x2971   : > { %v12318_v7 = vpop.f32.mrb[117].mxu0 }
0x2972   : > { %v12319_v20 = vadd.f32 %v12318_v7, %v12317_v9  ;;  %v12320_v22 = vpop.f32.mrb[118].mxu0 }
0x2973   : > { %v12321_v35 = vpop.f32.mrb[119].mxu0 }
0x2974   : > { %v8968_v29 = vadd.f32 %v12319_v20, %v8967_v54 }
0x2976   : > { %v8976_v0 = vrot.slane %v8968_v29, %v17075_v45 }
0x2989   : > { %v13039_v19 = vpop.f32.mrb[104].mxu1 }
0x298a   : > { %v9219_v2 = vpop.f32.mrb[105].mxu1 }
0x298b   : > { %v13040_v13 = vpop.f32.mrb[106].mxu1 }
0x298c   : > { %v9222_v14 = vpop.f32.mrb[107].mxu1 }
0x2990   : > { %v12348_v43 = vpop.f32.mrb[120].mxu0 }
0x2991   : > { %v13043_v34 = vpop.f32.mrb[108].mxu1  ;;  %v12349_v26 = vpop.f32.mrb[121].mxu0 }
0x2992   : > { %v9235_v44 = vpop.f32.mrb[109].mxu1  ;;  %v12350_v5 = vadd.f32 %v12349_v26, %v12348_v43  ;;  %v12351_v32 = vpop.f32.mrb[122].mxu0 }
0x2993   : > { %v13044_v51 = vpop.f32.mrb[110].mxu1  ;;  %v12352_v10 = vpop.f32.mrb[123].mxu0 }
0x2994   : > { %v9238_v25 = vpop.f32.mrb[111].mxu1  ;;  %v9156_v50 = vadd.f32 %v12350_v5, %v8976_v0  ;;  %v12353_v52 = vadd.f32 %v12352_v10, %v12351_v32 }
0x2996   : > { %v9220_v11 = vadd.f32 %v9219_v2, %v9156_v50  ;;  %v9159_v57 = vadd.f32 %v12353_v52, %v8976_v0 }
0x2998   : > { %v9223_v49 = vadd.f32 %v9222_v14, %v9159_v57  ;;  %v12354_v63 = vpop.f32.mrb[124].mxu0 }
0x2999   : > { %v12355_v48 = vpop.f32.mrb[125].mxu0 }
0x299a   : > { %v12356_v3 = vadd.f32 %v12355_v48, %v12354_v63  ;;  %v12357_v23 = vpop.f32.mrb[126].mxu0 }
0x299b   : > { %v12358_v46 = vpop.f32.mrb[127].mxu0 }
0x299c   : > { %v9164_v16 = vadd.f32 %v12356_v3, %v8976_v0  ;;  %v12359_v15 = vadd.f32 %v12358_v46, %v12357_v23 }
0x299e   : > { %v9228_v33 = vadd.f32 %v13039_v19, %v9164_v16  ;;  %v9167_v39 = vadd.f32 %v12359_v15, %v8976_v0 }
0x29a0   : > { %v9231_v54 = vadd.f32 %v13040_v13, %v9167_v39  ;;  %v12360_v31 = vpop.f32.mrb[128].mxu0 }
0x29a1   : > { %v12361_v58 = vpop.f32.mrb[129].mxu0 }
0x29a2   : > { %v12362_v18 = vadd.f32 %v12361_v58, %v12360_v31  ;;  %v12363_v9 = vpop.f32.mrb[130].mxu0 }
0x29a3   : > { %v12364_v7 = vpop.f32.mrb[131].mxu0 }
0x29a4   : > { %v9172_v20 = vadd.f32 %v12362_v18, %v8976_v0  ;;  %v12365_v22 = vadd.f32 %v12364_v7, %v12363_v9 }
0x29a6   : > { %v9236_v35 = vadd.f32 %v9235_v44, %v9172_v20  ;;  %v9175_v29 = vadd.f32 %v12365_v22, %v8976_v0  ;;  %v11973_v22 = vld [vmem:[#allocation38] ss:$0 sm:$0xff] }
0x29a8   : > { %v9239_v2 = vadd.f32 %v9238_v25, %v9175_v29  ;;  %v12366_v14 = vpop.f32.mrb[132].mxu0  ;;  %v11972_v25 = vld [vmem:[#allocation37] ss:$0 sm:$0xff] }
0x29a9   : > { %v9519_v43 = vpop.f32.mrb[112].mxu1  ;;  %v12367_v26 = vpop.f32.mrb[133].mxu0 }
0x29aa   : > { %v13063_v5 = vpop.f32.mrb[113].mxu1  ;;  %v12368_v32 = vadd.f32 %v12367_v26, %v12366_v14  ;;  %v12369_v51 = vpop.f32.mrb[134].mxu0 }
0x29ab   : > { %v9522_v10 = vpop.f32.mrb[114].mxu1  ;;  %v12370_v19 = vpop.f32.mrb[135].mxu0 }
0x29ac   : > { %v13064_v50 = vpop.f32.mrb[115].mxu1  ;;  %v9180_v13 = vadd.f32 %v12368_v32, %v8976_v0 }
0x29ae   : > { %v9244_v52 = vadd.f32 %v13043_v34, %v9180_v13 }
0x29b1   : > { %v12400_v57 = vpop.f32.mrb[136].mxu0 }
0x29b2   : > { %v12401_v63 = vpop.f32.mrb[137].mxu0 }
0x29b3   : > { %v12402_v48 = vadd.f32 %v12401_v63, %v12400_v57  ;;  %v12403_v3 = vpop.f32.mrb[138].mxu0 }
0x29b4   : > { %v12404_v23 = vpop.f32.mrb[139].mxu0 }
0x29b5   : > { %v9520_v46 = vadd.f32 %v12402_v48, %v9519_v43 }
0x29b7   : > { %v9528_v44 = vrot.slane %v9520_v46, %v17075_v45 }
0x29b9   : > { %v9529_v16 = vadd.f32 %v9528_v44, %v9220_v11  ;;  %v9530_v15 = vadd.f32 %v9528_v44, %v9223_v49  ;;  %v9531_v39 = vadd.f32 %v9528_v44, %v9228_v33  ;;  %v9532_v31 = vadd.f32 %v9528_v44, %v9231_v54  ;;  %v11974_v11 = vld [vmem:[%s19060_s28] ss:$0 sm:$0xff]  ;;  %s18839_s28 = scalar_lea.hbm %s15773_s17, %s12047_s10 }
0x29ba   : > { %v9533_v58 = vadd.f32 %v9528_v44, %v9236_v35  ;;  %v9534_v18 = vadd.f32 %v9528_v44, %v9239_v2  ;;  %v9535_v9 = vadd.f32 %v9528_v44, %v9244_v52 }
0x29bb   : > { %v9543_v7 = vadd.f32 %v11972_v25, %v9529_v16  ;;  %v9544_v0 = vadd.f32 %v11972_v25, %v9530_v15  ;;  %v9545_v34 = vadd.f32 %v11972_v25, %v9531_v39  ;;  %v9546_v20 = vadd.f32 %v11972_v25, %v9532_v31 }
0x29bc   : > { %v9547_v29 = vadd.f32 %v11972_v25, %v9533_v58  ;;  %v9548_v14 = vadd.f32 %v11972_v25, %v9534_v18  ;;  %v9549_v26 = vadd.f32 %v11972_v25, %v9535_v9 }
0x29bd   : > { %v9550_v43 = vmax.f32 %v9543_v7, 0.0  ;;  %v9551_v5 = vmax.f32 %v9544_v0, 0.0  ;;  %v9552_v32 = vmax.f32 %v9545_v34, 0.0  ;;  %v9553_v51 = vmax.f32 %v9546_v20, 0.0  ;;  %v9628_v20 = vld [vmem:[#allocation40] sm:$0x7] }
0x29be   : > { %v9554_v49 = vmax.f32 %v9547_v29, 0.0  ;;  %v9555_v33 = vmax.f32 %v9548_v14, 0.0  ;;  %v9556_v13 = vmax.f32 %v9549_v26, 0.0  ;;  %v9641_v29 = vrot.slane %v9628_v20, %v18187_v30 }
0x29bf   : > { %v9564_v54 = vmul.f32 %v11973_v22, %v9550_v43  ;;  %v9565_v10 = vmul.f32 %v11973_v22, %v9551_v5  ;;  %v9566_v35 = vmul.f32 %v11973_v22, %v9552_v32  ;;  %v9567_v2 = vmul.f32 %v11973_v22, %v9553_v51  ;;  %v14449_v43 = vld [vmem:[#allocation44 + $0x148] sm:$0xff]  }
0x29c0   : > { %v9568_v19 = vmul.f32 %v11973_v22, %v9554_v49  ;;  %v9569_v50 = vmul.f32 %v11973_v22, %v9555_v33  ;;  %v9570_v46 = vmul.f32 %v11973_v22, %v9556_v13  ;;  %v14448_v22 = vld [vmem:[#allocation44 + $0x140] sm:$0xff]  }
0x29c1   : > { %v9578_v52 = vadd.f32 %v11974_v11, %v9564_v54  ;;  %v9579_v57 = vadd.f32 %v11974_v11, %v9565_v10  ;;  %v9580_v63 = vadd.f32 %v11974_v11, %v9566_v35  ;;  %v9581_v48 = vadd.f32 %v11974_v11, %v9567_v2  ;;  %v14450_v2 = vld [vmem:[#allocation44 + $0x150] sm:$0xff]  }
0x29c2   : > { %v9582_v3 = vadd.f32 %v11974_v11, %v9568_v19  ;;  %v9583_v23 = vadd.f32 %v11974_v11, %v9569_v50  ;;  %v9584_v44 = vadd.f32 %v11974_v11, %v9570_v46  ;;  %v18557_v54 = vrot.slane %v9628_v20, %v17075_v45  ;;  %v14465_v45 = vld [vmem:[#allocation44 + $0xe0] sm:$0xff]  }
0x29c3   : > { %14528 = vtanh.f32 %v9578_v52  ;;  %v18562_v19 = vrot.slane %v9628_v20, %v18190_v1 }
0x29c4   : > { %14530 = vtanh.f32 %v9579_v57 }
0x29c5   : > { %14532 = vtanh.f32 %v9580_v63 }
0x29c6   : > { %14534 = vtanh.f32 %v9581_v48 }
0x29c7   : > { %14536 = vtanh.f32 %v9582_v3 }
0x29c8   : > { %14538 = vtanh.f32 %v9583_v23  ;;  %v14451_v23 = vld [vmem:[#allocation44 + $0x158] sm:$0xff]  }
0x29c9   : > { %14540 = vtanh.f32 %v9584_v44 }
0x29cd   : > { %v14529_v25 = vpop.eup %14528 }
0x29ce   : > { %v14531_v16 = vpop.eup %14530 }
0x29cf   : > { %v14533_v15 = vpop.eup %14532  ;;  %v9592_v39 = vpack.c.bf16 %v14531_v16, %v14529_v25 }
0x29d0   : > { %v14535_v31 = vpop.eup %14534 }
0x29d1   : > { %v14537_v58 = vpop.eup %14536  ;;  %9806 = vmatmul.mubr.bf16.vlgmr.msra.gmra.mrb[140].mxu0 %v9592_v39  ;;  %13081 = vmatprep.mubr.bf16.mxu1 %v9592_v39  ;;  %v9593_v18 = vpack.c.bf16 %v14535_v31, %v14533_v15  ;;  %v14452_v15 = vld [vmem:[#allocation44 + $0x100] sm:$0xff]  }
0x29d2   : > { %v14539_v9 = vpop.eup %14538  ;;  %9815 = vmatprep.mubr.bf16.mxu0 %v19053_v27  ;;  %12427 = vmatprep.subr.bf16.mxu0 %v14452_v15 }
0x29d3   : > { %13082 = vmatmul.mubr.bf16.vlgmr.msra.gmra.mrb[116].mxu1 %v9593_v18  ;;  %v9594_v7 = vpack.c.bf16 %v14539_v9, %v14537_v58  ;;  %v14541_v0 = vpop.eup %14540 }
0x29d4   : > { %v9595_v34 = vpack.c.bf16 %v14541_v0, %v14541_v0  ;;  %13090 = vmatpush3.bf16.msra.mxu1 %v14448_v22  ;;  %v14453_v0 = vld [vmem:[#allocation44 + $0xc0] sm:$0xff]  }
0x29d5   : > { %13085 = vmatprep.mubr.bf16.mxu1 %v9594_v7  ;;  %13091 = vmatprep.subr.bf16.mxu1 %v19051_v8 }
0x29d6   : > { %12428 = vmatpush3.bf16.msra.mxu0 %v14453_v0 }
0x29d8   : > { %13092 = vmatpush3.bf16.msra.mxu1 %v14449_v43 }
0x29d9   : > { %9816 = vmatmul.mubr.bf16.gmra.mrb[144].mxu0 %v9593_v18  ;;  %13093 = vmatprep.subr.bf16.mxu1 %v19051_v8 }
0x29da   : > { %9825 = vmatprep.mubr.bf16.mxu0 %v19053_v27 }
0x29db   : > { %13086 = vmatmul.mubr.bf16.gmra.mrb[120].mxu1 %v9595_v34 }
0x29dc   : > { %13105 = vmatprep.mubr.msk.bf16.mxu1 %vm15578_vm12, %v19051_v8  ;;  %13094 = vmatpush3.bf16.msra.mxu1 %v14450_v2  ;;  %v14456_v2 = vld [vmem:[#allocation44 + $0xc8] sm:$0xff]  }
0x29dd   : > { %13095 = vmatprep.subr.bf16.mxu1 %v19051_v8 }
0x29e0   : > { %13096 = vmatpush3.bf16.msra.mxu1 %v14451_v23 }
0x29e1   : > { %9826 = vmatmul.mubr.bf16.gmra.mrb[148].mxu0 %v9594_v7  ;;  %13097 = vmatprep.subr.bf16.mxu1 %v19051_v8 }
0x29e2   : > { %9835 = vmatprep.mubr.bf16.mxu0 %v19053_v27 }
0x29e9   : > { %9836 = vmatmul.mubr.bf16.gmra.mrb[152].mxu0 %v9595_v34 }
0x2aa4   : > { %v9807_v14 = vpop.f32.mrb[140].mxu0 }
0x2aa5   : > { %v9809_v26 = vpop.f32.mrb[141].mxu0  ;;  %v18572_v63 = vadd.f32 %v9807_v14, %v18557_v54 }
0x2aa6   : > { %v13083_v5 = vpop.f32.mrb[116].mxu1  ;;  %v9811_v32 = vpop.f32.mrb[142].mxu0  ;;  %v18578_v46 = vadd.f32 %v9809_v26, %v18562_v19 }
0x2aa7   : > { %v18551_v51 = vadd.f32 %v13083_v5, %v9641_v29  ;;  %v9878_v11 = vpop.f32.mrb[117].mxu1  ;;  %v9813_v49 = vpop.f32.mrb[143].mxu0  ;;  %v18584_v39 = vadd.f32 %v9811_v32, %v18557_v54  ;;  %v14454_v5 = vld [vmem:[#allocation44 + $0x160] sm:$0xff]  }
0x2aa8   : > { %v18553_v33 = vadd.f32 %v9878_v11, %v9641_v29  ;;  %v13084_v27 = vpop.f32.mrb[118].mxu1  ;;  %v18587_v31 = vadd.f32 %v9813_v49, %v18562_v19  ;;  %13098 = vmatpush3.bf16.msra.mxu1 %v14454_v5 }
0x2aa9   : > { %v18559_v10 = vadd.f32 %v13084_v27, %v9641_v29  ;;  %v9881_v35 = vpop.f32.mrb[119].mxu1  ;;  %13099 = vmatprep.subr.bf16.mxu1 %v19051_v8 }
0x2aaa   : > { %v9932_v50 = vmax.f32 %v18553_v33, %v18551_v51  ;;  %v18566_v13 = vadd.f32 %v9881_v35, %v9641_v29  ;;  %v14455_v35 = vld [vmem:[#allocation44 + $0x108] sm:$0xff]  }
0x2aab   : > { %12429 = vmatprep.subr.bf16.mxu0 %v14455_v35 }
0x2aac   : > { %v9933_v52 = vmax.f32 %v18566_v13, %v18559_v10  ;;  %v9817_v57 = vpop.f32.mrb[144].mxu0  ;;  %12430 = vmatpush3.bf16.msra.mxu0 %v14456_v2 }
0x2aad   : > { %v18575_v48 = vadd.f32 %v9817_v57, %v18557_v54  ;;  %v9819_v3 = vpop.f32.mrb[145].mxu0 }
0x2aae   : > { %v18581_v44 = vadd.f32 %v9819_v3, %v18562_v19  ;;  %v13087_v25 = vpop.f32.mrb[120].mxu1  ;;  %v9821_v16 = vpop.f32.mrb[146].mxu0 }
0x2aaf   : > { %v9908_v58 = vmax.f32 %v18572_v63, %v18575_v48  ;;  %v18592_v18 = vadd.f32 %v9821_v16, %v18557_v54  ;;  %v9894_v9 = vpop.f32.mrb[121].mxu1  ;;  %v9823_v7 = vpop.f32.mrb[147].mxu0  ;;  %v18604_v32 = vadd.f32 %v13087_v25, %v9641_v29  ;;  %v14457_v25 = vld [vmem:[#allocation44 + $0x168] sm:$0xff]   ;;  %v14458_v16 = vld [vmem:[#allocation44 + $0x110] sm:$0xff]  }
0x2ab0   : > { %v9920_v34 = vmax.f32 %v18578_v46, %v18581_v44  ;;  %v18596_v20 = vadd.f32 %v9894_v9, %v9641_v29  ;;  %v18599_v22 = vadd.f32 %v9823_v7, %v18562_v19  ;;  %v13088_v14 = vpop.f32.mrb[122].mxu1  ;;  %12431 = vmatprep.subr.bf16.mxu0 %v14458_v16  ;;  %13100 = vmatpush3.bf16.msra.mxu1 %v14457_v25  ;;  %v14463_v25 = vld [vmem:[#allocation44 + $0x178] sm:$0xff]  }
0x2ab1   : > { %v9909_v26 = vmax.f32 %v18584_v39, %v18592_v18  ;;  %v9897_v43 = vpop.f32.mrb[123].mxu1  ;;  %v14461_v14 = vld [vmem:[#allocation44 + $0x118] sm:$0xff]   ;;  %13101 = vmatprep.subr.bf16.mxu1 %v19051_v8 }
0x2ab2   : > { %v9934_v11 = vmax.f32 %v9932_v50, %v18596_v20  ;;  %v9921_v49 = vmax.f32 %v18587_v31, %v18599_v22  ;;  %v18609_v27 = vadd.f32 %v9897_v43, %v9641_v29  ;;  %v14459_v29 = vld [vmem:[#allocation44 + $0xd0] sm:$0xff]  }
0x2ab3   : > { %12432 = vmatpush3.bf16.msra.mxu0 %v14459_v29 }
0x2ab4   : > { %v9936_v57 = vmax.f32 %v9934_v11, %v18604_v32  ;;  %v9935_v3 = vmax.f32 %v9933_v52, %v18609_v27  ;;  %v9827_v23 = vpop.f32.mrb[148].mxu0  ;;  %v14460_v11 = vld [vmem:[#allocation44 + $0x170] sm:$0xff]   ;;  %12433 = vmatprep.subr.bf16.mxu0 %v14461_v14 }
0x2ab5   : > { %v18615_v50 = vadd.f32 %v9827_v23, %v18557_v54  ;;  %v9829_v15 = vpop.f32.mrb[149].mxu0  ;;  %13102 = vmatpush3.bf16.msra.mxu1 %v14460_v11 }
0x2ab6   : > { %v9937_v9 = vmax.f32 %v9936_v57, %v9935_v3  ;;  %v18618_v7 = vadd.f32 %v9829_v15, %v18562_v19  ;;  %v9831_v0 = vpop.f32.mrb[150].mxu0  ;;  %v14462_v3 = vld [vmem:[#allocation44 + $0xd8] sm:$0xff]   ;;  %v14464_v15 = vld [vmem:[#allocation44 + $0x120] sm:$0xff]   ;;  %13103 = vmatprep.subr.bf16.mxu1 %v19051_v8 }
0x2ab7   : > { %v9910_v52 = vmax.f32 %v9908_v58, %v18615_v50  ;;  %v18622_v43 = vadd.f32 %v9831_v0, %v18557_v54  ;;  %v9833_v5 = vpop.f32.mrb[151].mxu0  ;;  %12434 = vmatpush3.bf16.msra.mxu0 %v14462_v3 }
0x2ab8   : > { %v9938_v35 = vrot.slane %v9937_v9, 4  ;;  %v9922_v23 = vmax.f32 %v9920_v34, %v18618_v7  ;;  %v18626_v2 = vadd.f32 %v9833_v5, %v18562_v19  ;;  %12435 = vmatprep.subr.bf16.mxu0 %v14464_v15 }
0x2ab9   : > { %v9911_v57 = vmax.f32 %v9909_v26, %v18622_v43  ;;  %13104 = vmatpush3.bf16.msra.mxu1 %v14463_v25 }
0x2aba   : > { %v9939_v16 = vmax.f32 %v9937_v9, %v9938_v35  ;;  %v9923_v58 = vmax.f32 %v9921_v49, %v18626_v2  ;;  %v14467_v49 = vld [vmem:[#allocation44 + $0x128] sm:$0xff]   ;;  %13109 = vmatprep.subr.bf16.mxu1 %v19051_v8 }
0x2abb   : > { %12436 = vmatpush3.bf16.msra.mxu0 %v14465_v45 }
0x2abc   : > { %v9940_v0 = vrot.slane %v9939_v16, 2  ;;  %v9837_v1 = vpop.f32.mrb[152].mxu0  ;;  %12437 = vmatprep.subr.bf16.mxu0 %v14467_v49  ;;  %v14473_v49 = vld [vmem:[#allocation44 + $0x138] sm:$0xff]  }
0x2abd   : > { %v18633_v34 = vadd.f32 %v9837_v1, %v18557_v54  ;;  %v9839_v5 = vpop.f32.mrb[153].mxu0  ;;  %v14468_v54 = vld [vmem:[#allocation44 + $0xe8] sm:$0xff]  }
0x2abe   : > { %v9941_v26 = vmax.f32 %v9939_v16, %v9940_v0  ;;  %v18636_v29 = vadd.f32 %v9839_v5, %v18562_v19  ;;  %v9841_v9 = vpop.f32.mrb[154].mxu0  ;;  %v14470_v19 = vld [vmem:[#allocation44 + $0x130] sm:$0xff]  }
0x2abf   : > { %v9912_v14 = vmax.f32 %v9910_v52, %v18633_v34  ;;  %v9842_v11 = vpop.f32.mrb[155].mxu0  ;;  %12438 = vmatpush3.bf16.msra.mxu0 %v14468_v54 }
0x2ac0   : > { %v9942_v35 = vrot.slane %v9941_v26, 1  ;;  %v9924_v30 = vmax.f32 %v9922_v23, %v18636_v29  ;;  %12439 = vmatprep.subr.bf16.mxu0 %v14470_v19  ;;  %v14476_v19 = vld [vmem:[#allocation44 + $0x40] sm:$0xff]  }
0x2ac1   : > { %v9913_v1 = vmax.f32 %v9912_v14, %v9911_v57 }
0x2ac2   : > { %v9943_v3 = vmax.f32 %v9941_v26, %v9942_v35  ;;  %v9925_v16 = vmax.f32 %v9924_v30, %v9923_v58  ;;  %v14471_v30 = vld [vmem:[#allocation44 + $0xf0] sm:$0xff]  }
0x2ac3   : > { %v9914_v0 = vrot.slane %v9913_v1, 4  ;;  %12440 = vmatpush3.bf16.msra.mxu0 %v14471_v30 }
0x2ac4   : > { %v9946_v15 = vsub.f32 %v18553_v33, %v9943_v3  ;;  %v9949_v5 = vsub.f32 %v18566_v13, %v9943_v3  ;;  %v9952_v52 = vsub.f32 %v18551_v51, %v9943_v3  ;;  %v9955_v25 = vsub.f32 %v18559_v10, %v9943_v3  ;;  %v14474_v10 = vld [vmem:[#allocation44 + $0xf8] sm:$0xff]   ;;  %12441 = vmatprep.subr.bf16.mxu0 %v14473_v49 }
0x2ac5   : > { %v9958_v23 = vsub.f32 %v18596_v20, %v9943_v3  ;;  %v9961_v9 = vsub.f32 %v18609_v27, %v9943_v3  ;;  %v9964_v45 = vsub.f32 %v18604_v32, %v9943_v3  ;;  %v9915_v57 = vmax.f32 %v9913_v1, %v9914_v0 }
0x2ac6   : > { %v9969_v58 = vmul.f32 1.442695, %v9946_v15  ;;  %v9975_v26 = vmul.f32 1.442695, %v9949_v5  ;;  %v9981_v33 = vmul.f32 1.442695, %v9952_v52 }
0x2ac7   : > { %v9916_v13 = vrot.slane %v9915_v57, 2  ;;  %v9926_v14 = vrot.slane %v9925_v16, 4  ;;  %v9987_v51 = vmul.f32 1.442695, %v9955_v25  ;;  %v9993_v20 = vmul.f32 1.442695, %v9958_v23  ;;  %12442 = vmatpush3.bf16.msra.mxu0 %v14474_v10 }
0x2ac8   : > { %14542 = vpow2.f32 %v9969_v58  ;;  %v9999_v32 = vmul.f32 1.442695, %v9961_v9  ;;  %v10005_v0 = vmul.f32 1.442695, %v9964_v45  ;;  %12458 = vmatprep.subr.bf16.mxu0 %v14476_v19 }
0x2ac9   : > { %14544 = vpow2.f32 %v9975_v26  ;;  %v9917_v11 = vmax.f32 %v9915_v57, %v9916_v13  ;;  %v9927_v27 = vmax.f32 %v9925_v16, %v9926_v14 }
0x2aca   : > { %14546 = vpow2.f32 %v9981_v33 }
0x2acb   : > { %v9918_v35 = vrot.slane %v9917_v11, 1  ;;  %v9928_v1 = vrot.slane %v9927_v27, 2  ;;  %14548 = vpow2.f32 %v9987_v51 }
0x2acc   : > { %14550 = vpow2.f32 %v9993_v20 }
0x2acd   : > { %v9919_v54 = vmax.f32 %v9917_v11, %v9918_v35  ;;  %v9929_v3 = vmax.f32 %v9927_v27, %v9928_v1  ;;  %14552 = vpow2.f32 %v9999_v32 }
0x2ace   : > { %14554 = vpow2.f32 %v10005_v0 }
0x2acf   : > { %v9944_v15 = vsub.f32 %v18572_v63, %v9919_v54  ;;  %v9947_v5 = vsub.f32 %v18584_v39, %v9919_v54  ;;  %v9950_v52 = vsub.f32 %v18575_v48, %v9919_v54  ;;  %v9953_v16 = vsub.f32 %v18592_v18, %v9919_v54 }
0x2ad0   : > { %v9956_v25 = vsub.f32 %v18615_v50, %v9919_v54  ;;  %v9959_v23 = vsub.f32 %v18622_v43, %v9919_v54  ;;  %v9962_v9 = vsub.f32 %v18633_v34, %v9919_v54  ;;  %v9930_v57 = vrot.slane %v9929_v3, 1 }
0x2ad1   : > { %v9965_v58 = vmul.f32 1.442695, %v9944_v15  ;;  %v9971_v45 = vmul.f32 1.442695, %v9947_v5  ;;  %v9977_v63 = vmul.f32 1.442695, %v9950_v52 }
0x2ad2   : > { %v18655_v30 = vpop.eup %14542  ;;  %v9931_v39 = vmax.f32 %v9929_v3, %v9930_v57  ;;  %v9983_v18 = vmul.f32 1.442695, %v9953_v16  ;;  %v9989_v13 = vmul.f32 1.442695, %v9956_v25  ;;  %v9995_v35 = vmul.f32 1.442695, %v9959_v23 }
0x2ad3   : > { %v18657_v26 = vpop.eup %14544  ;;  %14556 = vpow2.f32 %v9965_v58  ;;  %v10001_v1 = vmul.f32 1.442695, %v9962_v9 }
0x2ad4   : > { %v10031_v48 = vadd.f32 %v18657_v26, %v18655_v30  ;;  %v18661_v50 = vpop.eup %14546  ;;  %14558 = vpow2.f32 %v9971_v45  ;;  %v9945_v43 = vsub.f32 %v18578_v46, %v9931_v39  ;;  %v9948_v34 = vsub.f32 %v18587_v31, %v9931_v39 }
0x2ad5   : > { %v9951_v49 = vsub.f32 %v18581_v44, %v9931_v39  ;;  %v9954_v14 = vsub.f32 %v18599_v22, %v9931_v39  ;;  %v9957_v51 = vsub.f32 %v18618_v7, %v9931_v39  ;;  %v18669_v10 = vpop.eup %14548  ;;  %14560 = vpow2.f32 %v9977_v63 }
0x2ad6   : > { %v10032_v33 = vadd.f32 %v18661_v50, %v10031_v48  ;;  %v9960_v20 = vsub.f32 %v18626_v2, %v9931_v39  ;;  %v9963_v11 = vsub.f32 %v18636_v29, %v9931_v39  ;;  %v9967_v27 = vmul.f32 1.442695, %v9945_v43  ;;  %v18673_v46 = vpop.eup %14550 }
0x2ad7   : > { %v9973_v44 = vmul.f32 1.442695, %v9948_v34  ;;  %v18676_v32 = vpop.eup %14552  ;;  %14562 = vpow2.f32 %v9983_v18  ;;  %v9979_v7 = vmul.f32 1.442695, %v9951_v49  ;;  %v9985_v29 = vmul.f32 1.442695, %v9954_v14 }
0x2ad8   : > { %v10033_v31 = vadd.f32 %v18669_v10, %v10032_v33  ;;  %14564 = vpow2.f32 %v9989_v13  ;;  %v14555_v54 = vpop.eup %14554  ;;  %v9991_v0 = vmul.f32 1.442695, %v9957_v51  ;;  %v9997_v16 = vmul.f32 1.442695, %v9960_v20 }
0x2ad9   : > { %14566 = vpow2.f32 %v9967_v27  ;;  %v10003_v57 = vmul.f32 1.442695, %v9963_v11 }
0x2ada   : > { %v10034_v22 = vadd.f32 %v18673_v46, %v10033_v31  ;;  %14568 = vpow2.f32 %v9973_v44 }
0x2adb   : > { %14570 = vpow2.f32 %v9995_v35 }
0x2adc   : > { %v10035_v2 = vadd.f32 %v18676_v32, %v10034_v22  ;;  %14572 = vpow2.f32 %v9979_v7 }
0x2add   : > { %v18680_v3 = vpop.eup %14556  ;;  %14574 = vpow2.f32 %v10001_v1 }
0x2ade   : > { %v10036_v19 = vadd.f32 %v14555_v54, %v10035_v2  ;;  %v18682_v15 = vpop.eup %14558  ;;  %14576 = vpow2.f32 %v9985_v29 }
0x2adf   : > { %v10007_v52 = vadd.f32 %v18682_v15, %v18680_v3  ;;  %v18686_v25 = vpop.eup %14560  ;;  %14578 = vpow2.f32 %v9991_v0 }
0x2ae0   : > { %v10037_v5 = vrot.slane %v10036_v19, 4  ;;  %14580 = vpow2.f32 %v9997_v16 }
0x2ae1   : > { %v10008_v9 = vadd.f32 %v18686_v25, %v10007_v52  ;;  %v18689_v58 = vpop.eup %14562  ;;  %14582 = vpow2.f32 %v10003_v57 }
0x2ae2   : > { %v10038_v23 = vadd.f32 %v10037_v5, %v10036_v19  ;;  %v18691_v45 = vpop.eup %14564 }
0x2ae3   : > { %v10009_v39 = vadd.f32 %v18689_v58, %v10008_v9  ;;  %v18694_v48 = vpop.eup %14566 }
0x2ae4   : > { %v10039_v63 = vrot.slane %v10038_v23, 2  ;;  %v18696_v18 = vpop.eup %14568 }
0x2ae5   : > { %v10010_v34 = vadd.f32 %v18691_v45, %v10009_v39  ;;  %v18699_v49 = vpop.eup %14570  ;;  %v10019_v33 = vadd.f32 %v18696_v18, %v18694_v48 }
0x2ae6   : > { %v10040_v43 = vadd.f32 %v10039_v63, %v10038_v23  ;;  %v18703_v13 = vpop.eup %14572 }
0x2ae7   : > { %v10011_v51 = vadd.f32 %v18699_v49, %v10010_v34  ;;  %v18706_v20 = vpop.eup %14574  ;;  %v10020_v11 = vadd.f32 %v18703_v13, %v10019_v33 }
0x2ae8   : > { %v10041_v14 = vrot.slane %v10040_v43, 1  ;;  %v18709_v27 = vpop.eup %14576 }
0x2ae9   : > { %v10012_v44 = vadd.f32 %v18706_v20, %v10011_v51  ;;  %v10021_v35 = vadd.f32 %v18709_v27, %v10020_v11  ;;  %v18713_v22 = vpop.eup %14578 }
0x2aea   : > { %v10042_v31 = vadd.f32 %v10041_v14, %v10040_v43  ;;  %v18716_v2 = vpop.eup %14580 }
0x2aeb   : > { %v10013_v7 = vrot.slane %v10012_v44, 4  ;;  %v10022_v1 = vadd.f32 %v18713_v22, %v10021_v35  ;;  %v18719_v0 = vpop.eup %14582 }
0x2aec   : > { %14584 = vrcp.f32 %v10042_v31 }
0x2aed   : > { %v10014_v29 = vadd.f32 %v10013_v7, %v10012_v44  ;;  %v10023_v19 = vadd.f32 %v18716_v2, %v10022_v1 }
0x2aef   : > { %v10015_v5 = vrot.slane %v10014_v29, 2  ;;  %v10024_v52 = vadd.f32 %v18719_v0, %v10023_v19 }
0x2af1   : > { %v10016_v16 = vadd.f32 %v10015_v5, %v10014_v29  ;;  %v10025_v23 = vrot.slane %v10024_v52, 4 }
0x2af3   : > { %v10017_v9 = vrot.slane %v10016_v16, 1  ;;  %v10026_v39 = vadd.f32 %v10025_v23, %v10024_v52 }
0x2af5   : > { %v10018_v63 = vadd.f32 %v10017_v9, %v10016_v16  ;;  %v10027_v1 = vrot.slane %v10026_v39, 2 }
0x2af6   : > { %v14585_v57 = vpop.eup %14584 }
0x2af7   : > { %v10048_v43 = vmul.f32 %v14585_v57, %v18655_v30  ;;  %v10051_v34 = vmul.f32 %v14585_v57, %v18657_v26  ;;  %v10054_v33 = vmul.f32 %v14585_v57, %v18661_v50  ;;  %v10057_v14 = vmul.f32 %v14585_v57, %v18669_v10 }
0x2af8   : > { %v10060_v51 = vmul.f32 %v14585_v57, %v18673_v46  ;;  %v10063_v11 = vmul.f32 %v14585_v57, %v18676_v32  ;;  %v10066_v31 = vmul.f32 %v14585_v57, %v14555_v54  ;;  %14586 = vrcp.f32 %v10018_v63 }
0x2af9   : > { %v10069_v44 = vmul.f32 %v10048_v43, %v18232_v55  ;;  %v10072_v35 = vmul.f32 %v10051_v34, %v18225_v62  ;;  %v10075_v7 = vmul.f32 %v10054_v33, %v18251_v38  ;;  %v10078_v30 = vmul.f32 %v10057_v14, %v18280_v40 }
0x2afa   : > { %v10081_v46 = vmul.f32 %v10060_v51, %v18291_v42  ;;  %v10084_v19 = vmul.f32 %v10063_v11, %v18314_v56  ;;  %v10087_v5 = vmul.f32 %v10066_v31, %v18326_v37  ;;  %v10028_v52 = vadd.f32 %v10027_v1, %v10026_v39 }
0x2afb   : > { %v10112_v26 = vadd.f32 %v10072_v35, %v10069_v44  ;;  %v10126_v50 = vmul.f32 %v10069_v44, %v18232_v55  ;;  %v10129_v10 = vmul.f32 %v10072_v35, %v18225_v62  ;;  %v10132_v32 = vmul.f32 %v10075_v7, %v18251_v38 }
0x2afc   : > { %v10135_v23 = vmul.f32 %v10078_v30, %v18280_v40  ;;  %v10138_v55 = vmul.f32 %v10081_v46, %v18291_v42  ;;  %v10141_v43 = vmul.f32 %v10084_v19, %v18314_v56  ;;  %v10144_v34 = vmul.f32 %v10087_v5, %v18326_v37 }
0x2afd   : > { %v10113_v29 = vadd.f32 %v10112_v26, %v10075_v7  ;;  %v10169_v54 = vadd.f32 %v10129_v10, %v10126_v50  ;;  %v10029_v38 = vrot.slane %v10028_v52, 1 }
0x2aff   : > { %v10114_v16 = vadd.f32 %v10113_v29, %v10078_v30  ;;  %v10170_v9 = vadd.f32 %v10169_v54, %v10132_v32  ;;  %v10030_v30 = vadd.f32 %v10029_v38, %v10028_v52 }
0x2b01   : > { %v10115_v57 = vadd.f32 %v10114_v16, %v10081_v46  ;;  %v10171_v63 = vadd.f32 %v10170_v9, %v10135_v23  ;;  %14588 = vrcp.f32 %v10030_v30 }
0x2b02   : > { %v14587_v62 = vpop.eup %14586 }
0x2b03   : > { %v10116_v33 = vadd.f32 %v10115_v57, %v10084_v19  ;;  %v10172_v14 = vadd.f32 %v10171_v63, %v10138_v55  ;;  %v10046_v51 = vmul.f32 %v14587_v62, %v18680_v3  ;;  %v10049_v39 = vmul.f32 %v14587_v62, %v18682_v15 }
0x2b04   : > { %v10052_v11 = vmul.f32 %v14587_v62, %v18686_v25  ;;  %v10055_v40 = vmul.f32 %v14587_v62, %v18689_v58  ;;  %v10058_v31 = vmul.f32 %v14587_v62, %v18691_v45  ;;  %v10061_v42 = vmul.f32 %v14587_v62, %v18699_v49 }
0x2b05   : > { %v10117_v44 = vadd.f32 %v10116_v33, %v10087_v5  ;;  %v10173_v35 = vadd.f32 %v10172_v14, %v10141_v43  ;;  %v10064_v56 = vmul.f32 %v14587_v62, %v18706_v20  ;;  %v10067_v37 = vmul.f32 %v10046_v51, %v18264_v61 }
0x2b06   : > { %v10070_v7 = vmul.f32 %v10049_v39, %v18254_v4  ;;  %v10073_v3 = vmul.f32 %v10052_v11, %v18271_v24  ;;  %v10076_v25 = vmul.f32 %v10055_v40, %v18298_v6  ;;  %v10079_v20 = vmul.f32 %v10058_v31, %v18317_v53 }
0x2b07   : > { %v10118_v1 = vrot.slane %v10117_v44, 4  ;;  %v10174_v15 = vadd.f32 %v10173_v35, %v10144_v34  ;;  %v10124_v45 = vmul.f32 %v10067_v37, %v18264_v61  ;;  %v10082_v19 = vmul.f32 %v10061_v42, %v18334_v28 }
0x2b08   : > { %v10088_v58 = vadd.f32 %v10070_v7, %v10067_v37  ;;  %v10127_v49 = vmul.f32 %v10070_v7, %v18254_v4  ;;  %v10130_v46 = vmul.f32 %v10073_v3, %v18271_v24  ;;  %v10133_v52 = vmul.f32 %v10076_v25, %v18298_v6 }
0x2b09   : > { %v10119_v26 = vadd.f32 %v10118_v1, %v10117_v44  ;;  %v10175_v50 = vrot.slane %v10174_v15, 4  ;;  %v10085_v4 = vmul.f32 %v10064_v56, %v18352_v36  ;;  %v10136_v57 = vmul.f32 %v10079_v20, %v18317_v53 }
0x2b0a   : > { %v10089_v10 = vadd.f32 %v10088_v58, %v10073_v3  ;;  %v10145_v29 = vadd.f32 %v10127_v49, %v10124_v45  ;;  %v10139_v43 = vmul.f32 %v10082_v19, %v18334_v28 }
0x2b0b   : > { %v10120_v32 = vrot.slane %v10119_v26, 2  ;;  %v10176_v54 = vadd.f32 %v10175_v50, %v10174_v15  ;;  %v10142_v6 = vmul.f32 %v10085_v4, %v18352_v36  ;;  %v14589_v31 = vpop.eup %14588 }
0x2b0c   : > { %v10090_v5 = vadd.f32 %v10089_v10, %v10076_v25  ;;  %v10146_v16 = vadd.f32 %v10145_v29, %v10130_v46  ;;  %v10047_v28 = vmul.f32 %v14589_v31, %v18694_v48  ;;  %v10050_v56 = vmul.f32 %v14589_v31, %v18696_v18 }
0x2b0d   : > { %v10121_v61 = vadd.f32 %v10120_v32, %v10119_v26  ;;  %v10177_v23 = vrot.slane %v10176_v54, 2  ;;  %v10053_v37 = vmul.f32 %v14589_v31, %v18703_v13  ;;  %v10056_v7 = vmul.f32 %v14589_v31, %v18709_v27 }
0x2b0e   : > { %v10091_v9 = vadd.f32 %v10090_v5, %v10079_v20  ;;  %v10147_v55 = vadd.f32 %v10146_v16, %v10133_v52  ;;  %v10059_v36 = vmul.f32 %v14589_v31, %v18713_v22  ;;  %v10062_v15 = vmul.f32 %v14589_v31, %v18716_v2 }
0x2b0f   : > { %v10122_v63 = vrot.slane %v10121_v61, 1  ;;  %v10178_v24 = vadd.f32 %v10177_v23, %v10176_v54  ;;  %v10065_v30 = vmul.f32 %v14589_v31, %v18719_v0  ;;  %v10068_v25 = vmul.f32 %v10047_v28, %v18267_v21 }
0x2b10   : > { %v10092_v62 = vadd.f32 %v10091_v9, %v10082_v19  ;;  %v10148_v34 = vadd.f32 %v10147_v55, %v10136_v57  ;;  %v10071_v58 = vmul.f32 %v10050_v56, %v18257_v12  ;;  %v10074_v48 = vmul.f32 %v10053_v37, %v18285_v59 }
0x2b11   : > { %v18762_v38 = vadd.f32 %v10122_v63, %v10121_v61  ;;  %v10179_v33 = vrot.slane %v10178_v24, 1  ;;  %v10125_v27 = vmul.f32 %v10068_v25, %v18267_v21  ;;  %v10077_v2 = vmul.f32 %v10056_v7, %v18321_v47 }
0x2b12   : > { %v10093_v14 = vadd.f32 %v10092_v62, %v10085_v4  ;;  %v10149_v51 = vadd.f32 %v10148_v34, %v10139_v43  ;;  %v10100_v13 = vadd.f32 %v10071_v58, %v10068_v25  ;;  %v10128_v22 = vmul.f32 %v10071_v58, %v18257_v12  ;;  %v18792_v43 = vld [vmem:[#allocation41 + $0x3] sm:$0x7] }
0x2b13   : > { %v10180_v39 = vadd.f32 %v10179_v33, %v10178_v24  ;;  %v10183_v11 = vmul.f32 %v18762_v38, %v18762_v38  ;;  %v10080_v0 = vmul.f32 %v10059_v36, %v18331_v17  ;;  %v10131_v10 = vmul.f32 %v10074_v48, %v18285_v59 }
0x2b14   : > { %v10094_v40 = vrot.slane %v10093_v14, 4  ;;  %v10150_v53 = vadd.f32 %v10149_v51, %v10142_v6  ;;  %v10101_v20 = vadd.f32 %v10100_v13, %v10074_v48  ;;  %v10157_v32 = vadd.f32 %v10128_v22, %v10125_v27  ;;  %v14469_v48 = vld [vmem:[#allocation44 + $0x88] sm:$0xff]   ;;  %v14475_v27 = vld [vmem:[#allocation44 + $0x98] sm:$0xff]  }
0x2b15   : > { %v10186_v42 = vsub.f32 %v10180_v39, %v10183_v11  ;;  %v10083_v54 = vmul.f32 %v10062_v15, %v18348_v41  ;;  %v10134_v5 = vmul.f32 %v10077_v2, %v18321_v47  ;;  %v10086_v23 = vmul.f32 %v10065_v30, %v18358_v60  ;;  %v18794_v47 = vld [vmem:[#allocation43 + $0x3] sm:$0x7]  ;;  %v19061_v39 = vld [vmem:[#allocation97_spill] sm:$0xff] }
0x2b16   : > { %v10095_v44 = vadd.f32 %v10094_v40, %v10093_v14  ;;  %v10151_v35 = vrot.slane %v10150_v53, 4  ;;  %v10102_v19 = vadd.f32 %v10101_v20, %v10077_v2  ;;  %v10158_v52 = vadd.f32 %v10157_v32, %v10131_v10  ;;  %v18808_v10 = vld [vmem:[#allocation41] sm:$0x7] }
0x2b17   : > { %v10189_v45 = vmax.f32 %v10186_v42, 1e-12  ;;  %v10137_v59 = vmul.f32 %v10080_v0, %v18331_v17  ;;  %v10140_v57 = vmul.f32 %v10083_v54, %v18348_v41  ;;  %v10143_v24 = vmul.f32 %v10086_v23, %v18358_v60  ;;  %v19063_v32 = vld [vmem:[#allocation99_spill] sm:$0xff] }
0x2b18   : > { %v10096_v3 = vrot.slane %v10095_v44, 2  ;;  %v10152_v1 = vadd.f32 %v10151_v35, %v10150_v53  ;;  %v10103_v16 = vadd.f32 %v10102_v19, %v10080_v0  ;;  %v10159_v4 = vadd.f32 %v10158_v52, %v10134_v5  ;;  %v19062_v0 = vld [vmem:[#allocation98_spill] sm:$0xff] }
0x2b19   : > { %14590 = vrsqrt.f32 %v10189_v45  ;;  %v10264_v17 = vrot.slane %v18792_v43, %v19061_v39  ;;  %vm10206_vm10 = vcmp.eq.f32.partialorder %v10189_v45, inf  ;;  %v10209_v41 = vand.u32 2147483648, %v10189_v45 }
0x2b1a   : > { %v10097_v18 = vadd.f32 %v10096_v3, %v10095_v44  ;;  %v10153_v49 = vrot.slane %v10152_v1, 2  ;;  %v10104_v9 = vadd.f32 %v10103_v16, %v10083_v54  ;;  %v10160_v55 = vadd.f32 %v10159_v4, %v10137_v59  ;;  %v14466_v3 = vld [vmem:[#allocation44 + $0x80] sm:$0xff]  }
0x2b1b   : > { %v10284_v40 = vrot.slane %v18794_v47, %v19061_v39  ;;  %vm10208_vm11 = vcmp.eq.f32.partialorder %v10189_v45, 0.0  ;;  %v10256_v20 = vrot.slane %v18792_v43, %v19062_v0  ;;  %v10220_v54 = vrot.slane %v18808_v10, %v19063_v32 }
0x2b1c   : > { %v10098_v26 = vrot.slane %v10097_v18, 1  ;;  %v10154_v50 = vadd.f32 %v10153_v49, %v10152_v1  ;;  %v10105_v63 = vadd.f32 %v10104_v9, %v10086_v23  ;;  %v10161_v62 = vadd.f32 %v10160_v55, %v10140_v57 }
0x2b1d   : > { %v10260_v52 = vrot.slane %v18792_v43, %v19063_v32  ;;  %v10276_v4 = vrot.slane %v18794_v47, %v19062_v0  ;;  %v10280_v57 = vrot.slane %v18794_v47, %v19063_v32 }
0x2b1e   : > { %v18782_v46 = vadd.f32 %v10098_v26, %v10097_v18  ;;  %v10155_v29 = vrot.slane %v10154_v50, 1  ;;  %v10106_v34 = vrot.slane %v10105_v63, 4  ;;  %v10162_v14 = vadd.f32 %v10161_v62, %v10143_v24  ;;  %v14472_v18 = vld [vmem:[#allocation44 + $0x90] sm:$0xff]  }
0x2b1f   : > { %v14484_v24 = vld [vmem:[#allocation44 + $0xb0] sm:$0xff]  }
0x2b20   : > { %v10156_v21 = vadd.f32 %v10155_v29, %v10154_v50  ;;  %v10181_v12 = vmul.f32 %v18782_v46, %v18782_v46  ;;  %v10107_v6 = vadd.f32 %v10106_v34, %v10105_v63  ;;  %v10163_v11 = vrot.slane %v10162_v14, 4  ;;  %v14478_v50 = vld [vmem:[#allocation44 + $0xa0] sm:$0xff]  }
0x2b22   : > { %v10184_v61 = vsub.f32 %v10156_v21, %v10181_v12  ;;  %v10108_v53 = vrot.slane %v10107_v6, 2  ;;  %v10164_v42 = vadd.f32 %v10163_v11, %v10162_v14  ;;  %v18812_v21 = vld [vmem:[#allocation43] sm:$0x7]  ;;  %v14481_v12 = vld [vmem:[#allocation44 + $0xa8] sm:$0xff]   ;;  %v14477_v11 = vld [vmem:[#allocation44] sm:$0xff]  }
0x2b23   : > { %v14591_v33 = vpop.eup %14590  ;;  %v10240_v16 = vrot.slane %v18812_v21, %v19063_v32  ;;  %v10244_v34 = vrot.slane %v18812_v21, %v19061_v39 }
0x2b24   : > { %v10205_v51 = vmul.f32 %v14591_v33, %v10189_v45  ;;  %v10187_v60 = vmax.f32 %v10184_v61, 1e-12  ;;  %v10109_v35 = vadd.f32 %v10108_v53, %v10107_v6  ;;  %v10165_v56 = vrot.slane %v10164_v42, 2  ;;  %v14482_v53 = vld [vmem:[#allocation44 + $0x50] sm:$0xff]  }
0x2b25   : > { %v10224_v61 = vrot.slane %v18808_v10, %v19061_v39 }
0x2b26   : > { %v10207_v31 = vsel %vm10206_vm10, %v10189_v45, %v10205_v51  ;;  %v10110_v37 = vrot.slane %v10109_v35, 1  ;;  %14592 = vrsqrt.f32 %v10187_v60  ;;  %v10166_v36 = vadd.f32 %v10165_v56, %v10164_v42  ;;  %v14487_v51 = vld [vmem:[#allocation44 + $0xb8] sm:$0xff]   ;;  %v14491_v56 = vld [vmem:[#allocation44 + $0x28] sm:$0xff]  }
0x2b27   : > { %v10210_v44 = vsel %vm10208_vm11, %v10209_v41, %v10207_v31  ;;  %vm10192_vm13 = vcmp.eq.f32.partialorder %v10187_v60, inf  ;;  %v10195_v2 = vand.u32 2147483648, %v10187_v60  ;;  %v10230_v43 = vmul.f32 %v10224_v61, %v18762_v38  ;;  %v14480_v38 = vld [vmem:[#allocation44 + $0x8] sm:$0xff]   ;;  %v14483_v31 = vld [vmem:[#allocation44 + $0x10] sm:$0xff]   ;;  %v14485_v42 = vld [vmem:[#allocation44 + $0x58] sm:$0xff]  }
0x2b28   : > { %v10270_v28 = vmul.f32 %v10264_v17, %v10210_v44  ;;  %v10111_v1 = vadd.f32 %v10110_v37, %v10109_v35  ;;  %v10167_v30 = vrot.slane %v10166_v36, 1  ;;  %v14488_v44 = vld [vmem:[#allocation44 + $0x60] sm:$0xff]   ;;  %v14492_v37 = vld [vmem:[#allocation44 + $0x70] sm:$0xff]  }
0x2b29   : > { %v10250_v47 = vadd.f32 %v10244_v34, %v10230_v43  ;;  %v14489_v35 = vld [vmem:[#allocation44 + $0x20] sm:$0xff]  }
0x2b2a   : > { %v10290_v7 = vadd.f32 %v10284_v40, %v10270_v28  ;;  %v10182_v25 = vmul.f32 %v10111_v1, %v10111_v1  ;;  %v10168_v58 = vadd.f32 %v10167_v30, %v10166_v36  ;;  %v10229_v55 = vmul.f32 %v10220_v54, %v10111_v1  ;;  %v14479_v40 = vld [vmem:[#allocation44 + $0x48] sm:$0xff]   ;;  %v14493_v36 = vld [vmem:[#allocation44 + $0x30] sm:$0xff]   ;;  %v14495_v30 = vld [vmem:[#allocation44 + $0x38] sm:$0xff]  }
0x2b2b   : > { %v10293_v39 = vpack.c.bf16 %v10250_v47, %v10250_v47  ;;  %v14490_v28 = vld [vmem:[#allocation44 + $0x68] sm:$0xff]  }
0x2b2c   : > { %v10344_v15 = vpack.c.bf16 %v10290_v7, %v10290_v7  ;;  %v10185_v45 = vsub.f32 %v10168_v58, %v10182_v25  ;;  %v10249_v6 = vadd.f32 %v10240_v16, %v10229_v55  ;;  %v10216_v7 = vrot.slane %v18808_v10, %v19062_v0 }
0x2b2e   : > { %13106 = vmatmul.mubr.bf16.vlgmr.msra.gmra.mrb[124].mxu1 %v10344_v15  ;;  %v10188_v49 = vmax.f32 %v10185_v45, 1e-12  ;;  %v10228_v1 = vmul.f32 %v10216_v7, %v18782_v46  ;;  %v10236_v15 = vrot.slane %v18812_v21, %v19062_v0 }
0x2b2f   : > { %13110 = vmatpush3.bf16.msra.mxu1 %v14466_v3  ;;  %13125 = vmatprep.mubr.msk.bf16.mxu1 %vm15578_vm12, %v19051_v8  ;;  %vm10194_vm12 = vcmp.eq.f32.partialorder %v10187_v60, 0.0  ;;  %v14494_v3 = vld [vmem:[#allocation44 + $0x78] sm:$0xff]  }
0x2b30   : > { %13111 = vmatprep.subr.bf16.mxu1 %v19051_v8  ;;  %v14593_v13 = vpop.eup %14592  ;;  %14594 = vrsqrt.f32 %v10188_v49  ;;  %vm10199_vm14 = vcmp.eq.f32.partialorder %v10188_v49, inf  ;;  %v10202_v23 = vand.u32 2147483648, %v10188_v49  ;;  %vm10201_vm15 = vcmp.eq.f32.partialorder %v10188_v49, 0.0 }
0x2b31   : > { %v10191_v22 = vmul.f32 %v14593_v13, %v10187_v60  ;;  %v10248_v25 = vadd.f32 %v10236_v15, %v10228_v1 }
0x2b33   : > { %13112 = vmatpush3.bf16.msra.mxu1 %v14469_v48  ;;  %v10193_v26 = vsel %vm10192_vm13, %v10187_v60, %v10191_v22  ;;  %v10292_v60 = vpack.c.bf16 %v10249_v6, %v10249_v6  ;;  %v10291_v58 = vpack.c.bf16 %v10248_v25, %v10248_v25 }
0x2b34   : > { %13113 = vmatprep.subr.bf16.mxu1 %v19051_v8  ;;  %v10196_v29 = vsel %vm10194_vm12, %v10195_v2, %v10193_v26 }
0x2b35   : > { %v10268_v59 = vmul.f32 %v10256_v20, %v10196_v29 }
0x2b37   : > { %13114 = vmatpush3.bf16.msra.mxu1 %v14472_v18  ;;  %v10288_v33 = vadd.f32 %v10276_v4, %v10268_v59 }
0x2b38   : > { %13115 = vmatprep.subr.bf16.mxu1 %v19051_v8 }
0x2b39   : > { %v10342_v41 = vpack.c.bf16 %v10288_v33, %v10288_v33 }
0x2b3a   : > { %v14595_v19 = vpop.eup %14594 }
0x2b3b   : > { %13116 = vmatpush3.bf16.msra.mxu1 %v14475_v27  ;;  %v10198_v5 = vmul.f32 %v14595_v19, %v10188_v49 }
0x2b3c   : > { %13117 = vmatprep.subr.bf16.mxu1 %v19051_v8 }
0x2b3d   : > { %v10200_v9 = vsel %vm10199_vm14, %v10188_v49, %v10198_v5  ;;  %v10841_v5 = vld [vmem:[%s15768_s14] sm:$0x1] }
0x2b3e   : > { %v10203_v63 = vsel %vm10201_vm15, %v10202_v23, %v10200_v9 }
0x2b3f   : > { %13118 = vmatpush3.bf16.msra.mxu1 %v14478_v50  ;;  %v10269_v62 = vmul.f32 %v10260_v52, %v10203_v63 }
0x2b40   : > { %13119 = vmatprep.subr.bf16.mxu1 %v19051_v8 }
0x2b41   : > { %v10289_v14 = vadd.f32 %v10280_v57, %v10269_v62 }
0x2b43   : > { %13120 = vmatpush3.bf16.msra.mxu1 %v14481_v12  ;;  %v10343_v17 = vpack.c.bf16 %v10289_v14, %v10289_v14 }
0x2b44   : > { %13121 = vmatprep.subr.bf16.mxu1 %v19051_v8 }
0x2b45   : > { %10569 = vmatprep.mubr.bf16.mxu0 %v10343_v17 }
0x2b46   : > { %10570 = vmatmul.mubr.bf16.vlgmr.msra.gmra.mrb[156].mxu0 %v10342_v41 }
0x2b47   : > { %13122 = vmatpush3.bf16.msra.mxu1 %v14484_v24  ;;  %12459 = vmatpush3.bf16.msra.mxu0 %v14477_v11 }
0x2b48   : > { %13123 = vmatprep.subr.bf16.mxu1 %v19051_v8  ;;  %10793 = vmatprep.mubr.bf16.mxu0 %v10292_v60  ;;  %v14486_v8 = vld [vmem:[#allocation44 + $0x18] sm:$0xff]  }
0x2b49   : > { %12460 = vmatprep.subr.bf16.mxu0 %v14479_v40 }
0x2b4b   : > { %13124 = vmatpush3.bf16.msra.mxu1 %v14487_v51  ;;  %12461 = vmatpush3.bf16.msra.mxu0 %v14480_v38 }
0x2b4c   : > { %12462 = vmatprep.subr.bf16.mxu0 %v14482_v53 }
0x2b4e   : > { %13126 = vmatmul.mubr.bf16.vlgmr.msra.gmra.mrb[128].mxu1 %v10293_v39 }
0x2b4f   : > { %12463 = vmatpush3.bf16.msra.mxu0 %v14483_v31 }
0x2b50   : > { %12464 = vmatprep.subr.bf16.mxu0 %v14485_v42 }
0x2b53   : > { %12465 = vmatpush3.bf16.msra.mxu0 %v14486_v8 }
0x2b54   : > { %12466 = vmatprep.subr.bf16.mxu0 %v14488_v44 }
0x2b57   : > { %12467 = vmatpush3.bf16.msra.mxu0 %v14489_v35 }
0x2b58   : > { %12468 = vmatprep.subr.bf16.mxu0 %v14490_v28 }
0x2b5b   : > { %12469 = vmatpush3.bf16.msra.mxu0 %v14491_v56 }
0x2b5c   : > { %12470 = vmatprep.subr.bf16.mxu0 %v14492_v37 }
0x2b5f   : > { %12471 = vmatpush3.bf16.msra.mxu0 %v14493_v36 }
0x2b60   : > { %12472 = vmatprep.subr.bf16.mxu0 %v14494_v3 }
0x2b63   : > { %12473 = vmatpush3.bf16.msra.mxu0 %v14495_v30 }
0x2b66   : > { %10794 = vmatmul.mubr.bf16.vlgmr.msra.gmra.mrb[160].mxu0 %v10291_v58 }
0x2c01   : > { %v10611_v48 = vpop.f32.mrb[124].mxu1 }
0x2c02   : > { %v13107_v45 = vpop.f32.mrb[125].mxu1 }
0x2c03   : > { %v10614_v18 = vpop.f32.mrb[126].mxu1 }
0x2c04   : > { %v13108_v49 = vpop.f32.mrb[127].mxu1 }
0x2c19   : > { %v12443_v13 = vpop.f32.mrb[156].mxu0 }
0x2c1a   : > { %v12444_v27 = vpop.f32.mrb[157].mxu0 }
0x2c1b   : > { %v12445_v22 = vadd.f32 %v12444_v27, %v12443_v13  ;;  %v12446_v46 = vpop.f32.mrb[158].mxu0 }
0x2c1c   : > { %v12447_v26 = vpop.f32.mrb[159].mxu0 }
0x2c1d   : > { %v10612_v2 = vadd.f32 %v12445_v22, %v10611_v48 }
0x2c21   : > { %v10835_v50 = vpop.f32.mrb[128].mxu1 }
0x2c22   : > { %v13127_v0 = vpop.f32.mrb[129].mxu1 }
0x2c23   : > { %v10838_v20 = vpop.f32.mrb[130].mxu1 }
0x2c24   : > { %v13128_v10 = vpop.f32.mrb[131].mxu1 }
0x2c39   : > { %v12474_v29 = vpop.f32.mrb[160].mxu0 }
0x2c3a   : > { %v12475_v32 = vpop.f32.mrb[161].mxu0 }
0x2c3b   : > { %v12476_v54 = vadd.f32 %v12475_v32, %v12474_v29  ;;  %v12477_v19 = vpop.f32.mrb[162].mxu0 }
0x2c3c   : > { %v12478_v21 = vpop.f32.mrb[163].mxu0 }
0x2c3d   : > { %v10796_v12 = vadd.f32 %v12476_v54, %v10612_v2 }
0x2c3f   : > { %v10836_v52 = vadd.f32 %v10835_v50, %v10796_v12 }
0x2c41   : > { %v10842_v16 = vadd.f32 %v10841_v5, %v10836_v52 }
0x2c43   : > { %10843 = vst [vmem:[%s1503_s7] sm:$0x1] %v10842_v16 }
0x2c44   : > { %15393 = shalt.err (!%p15390_p7)
}
0x2c45   : > { %s15394_s26 = scalar_lea.hbm %s18839_s28, 16  ;;  %s15398_s3 = scalar_lea.hbm %s15773_s17, 32 }
0x2c46   : > { %p15395_p8 = scmp.ne.s32.totalorder %s18839_s28, %s15394_s26  ;;  %p15399_p0 = scmp.lt.u32.totalorder %s18839_s28, %s15773_s17 }
0x2c47   : > { %p15400_p6 = scmp.lt.u32.totalorder %s15398_s3, %s15394_s26  ;;  %p15402_p9 = scmp.lt.u32.totalorder %s15394_s26, %s18839_s28 }
0x2c48   : > { %p15396_p11 = pnand %p15395_p8, %p19065_p10 }
0x2c49   : > { %p15401_p5 = por %p15400_p6, %p15399_p0 }
0x2c4a   : > { %p15397_p13 = pneg %p15396_p11 }
0x2c4b   : > { %p15403_p12 = por %p15402_p9, %p15401_p5 }
0x2c4d   : > { %p15404_p1 = pnand %p15403_p12, %p15397_p13 }
0x2c4f   : > { %15407 = shalt.err (!%p15404_p1)
}
0x2c50   : > { %13273 = dma.vmem_to_hbm [thread:$0]  (%p19065_p10), %s18841_s11, 16, %s18839_s28, %s10845_s1  }
0x2c51 PF: > { %s19066_s4 = sld [smem:[#allocation92_spill]]  ;;  %s19067_s2 = sld [smem:[#allocation90_spill]] }
0x2c52   : > { %s19068_s10 = sld [smem:[#allocation96_spill]] }
0x2c57   : > { %p13420_p2 = scmp.ge.s32.totalorder %s19066_s4, 2  ;;  %s10869_s7 = sand.u32 1, %s19067_s2  }
0x2c58   : > { %p19069_p3 = scmp.ne.s32.totalorder %s19068_s10, 0  ;;  %s10870_s15 = scalar_lea.sflag [#allocation4], %s10869_s7 }
0x2c5a   : > { %p13361_p4 = pnand %p13420_p2, %p19069_p3 }
0x2c5c   : > { %15485 = dma.done.wait (!%p13361_p4), %s10870_s15, 16  }
0x2c5d   : > { %15487 = vsyncadd (!%p13361_p4), %s10870_s15, 4294967280  ;;  %s19070_s11 = sld [smem:[#allocation93_spill]]  ;;  %s19071_s26 = sld [smem:[#allocation91_spill]] }
0x2c5e   : > { %s19072_s10 = sld [smem:[#allocation94_spill]]  ;;  %s19073_s7 = smov %s15494_s0 }
0x2c63   : > { %p100_p7 = scmp.ge.s32.totalorder %s19070_s11, 4   ;;  %s19074_s0 = smov %s19071_s26 }
0x2c65   :  { %102 = sbr.rel (!%p100_p7) target bundleno = 85 (0x55), region = 413 }
0x2c6c   :  { %10874 = vsyncpa [#allocation3], 1 }
0x2c6d   :  { %10876 = vsyncpa [#allocation3 + $0x1], 1 }
0x2c6e   :  { %10877 = vsyncpa [#allocation6], 1 }
0x2c6f   :  { %10878 = vsyncpa [#allocation9], 1 }
0x2c70   :  { %10879 = vsyncpa [#allocation12], 1 }
0x2c71   :  { %10880 = vsyncpa [#allocation15], 1 }
0x2c72   :  { %10881 = vsyncpa [#allocation18], 1 }
0x2c73   :  { %10882 = vsyncpa [#allocation21], 1 }
0x2c74   :  { %10883 = vsyncpa [#allocation24], 1 }
0x2c75   :  { %10884 = vsyncpa [#allocation27], 1 }
0x2c76   :  { %10885 = vsyncpa [#allocation30], 1 }
0x2c77   :  { %10886 = vsyncpa [#allocation33], 1 }
0x2c78   :  { %10887 = vsyncpa [#allocation36], 1 }
0x2c79   :  { %10888 = vsyncpa [#allocation39], 1 }
0x2c7a   :  { %10889 = vsyncpa [#allocation42], 1 }
0x2c7b   :  { %10890 = vsyncpa [#allocation45], 1 }
0x2c7c   :  { %10891 = vsyncpa [#allocation4], 1 }
0x2c7d   :  { %10893 = vsyncpa [#allocation4 + $0x1], 1 }

</bundles_post_ra>
